<compile_context>
chip_gen: v6e
topology: v6e:2x2x1
jax: 0.10.0
libtpu: 0.0.40
codegen_flags: <defaults>
</compile_context>

<pallas_src>
import math
import jax
import jax.numpy as jnp
from jax import lax
from jax.experimental import pallas as pl
from jax.experimental.pallas import tpu as pltpu

D_MODEL = 32
N_HEADS = 4
D_HEAD = D_MODEL // N_HEADS
D_FF = 64
EPS = 1e-6
NEG_INF = -1e9
HP = lax.Precision.HIGHEST      # exact f32 matmuls everywhere (kernel + reference)


# ---------------------------------------------------------------- kernel math
def _layernorm(x, a, b, eps=EPS):
    # torch: a_2 * (x - mean) / (std + eps) + b_2, std unbiased (ddof=1).
    # One-pass stats: the two cross-lane reductions are independent.
    d = x.shape[-1]
    s1 = jnp.sum(x, axis=-1, keepdims=True)
    s2 = jnp.sum(x * x, axis=-1, keepdims=True)
    mean = s1 * (1.0 / d)
    var = jnp.maximum(s2 - s1 * mean, 0.0) * (1.0 / (d - 1))
    return a * (x - mean) / (jnp.sqrt(var) + eps) + b


def _mha(q_all, q_off, k_all, k_off, v_all, v_off, mask_add, wo, bo_b):
    # q_all[:, q_off:q_off+D] etc. hold Q/K/V (possibly fused in one array).
    # W_o is folded into the head loop (no concat); result = sum_h ctx_h @ Wo_h + bo.
    scale = 1.0 / math.sqrt(D_HEAD)
    out = bo_b
    for h in range(N_HEADS):                                   # static unroll
        qh = q_all[:, q_off + h * D_HEAD: q_off + (h + 1) * D_HEAD]
        kh = k_all[:, k_off + h * D_HEAD: k_off + (h + 1) * D_HEAD]
        vh = v_all[:, v_off + h * D_HEAD: v_off + (h + 1) * D_HEAD]
        s = lax.dot_general(qh, kh, (((1,), (1,)), ((), ())),
                            precision=HP,
                            preferred_element_type=jnp.float32) * scale
        if mask_add is not None:
            s = s + mask_add
        s = s - jnp.max(s, axis=-1, keepdims=True)
        p = jnp.exp(s)
        p = p * (1.0 / jnp.sum(p, axis=-1, keepdims=True))      # exact softmax
        ctx = jnp.dot(p, vh, precision=HP,
                      preferred_element_type=jnp.float32)       # (R, D_HEAD)
        out = out + jnp.dot(ctx, wo[h * D_HEAD:(h + 1) * D_HEAD, :],
                            precision=HP, preferred_element_type=jnp.float32)
    return out


# ---------------------------------------------------------------- fused kernel
def make_decoder_kernel(n_layers):
    def kernel(x_ref, mem_ref, mask_ref,
               wqkv1_ref, bqkv1_ref, wq2_ref, bq2_ref, wkv2_ref, bkv2_ref,
               wo1_ref, bo1_ref, wo2_ref, bo2_ref,
               w1_ref, b1_ref, w2_ref, b2_ref, nrm_ref, o_ref):
        # One grid step == one batch element (batch dim squeezed by BlockSpec).
        x = x_ref[...]                   # (T, D)
        mem = mem_ref[...]               # (S, D)
        mask_add = mask_ref[...]         # (T, T) additive causal mask
        T = x.shape[0]

        wqkv1 = wqkv1_ref[...]           # (D, 3D) fused Q|K|V (self-attn)
        wq2 = wq2_ref[...]               # (D, D)
        wo1 = wo1_ref[...]               # (D, D)
        wo2 = wo2_ref[...]               # (D, D)
        w1 = w1_ref[...]                 # (D, D_FF)
        w2 = w2_ref[...]                 # (D_FF, D)
        nrm = nrm_ref[...]               # (8, D)

        n1a, n1b = nrm[0:1], nrm[1:2]
        n2a, n2b = nrm[2:3], nrm[3:4]
        n3a, n3b = nrm[4:5], nrm[5:6]
        fa, fb = nrm[6:7], nrm[7:8]

        # Bias broadcasts hoisted out of the layer loop (JAX does not CSE them).
        bqkv1 = jnp.broadcast_to(bqkv1_ref[...], (T, 3 * D_MODEL))
        bq2 = jnp.broadcast_to(bq2_ref[...], (T, D_MODEL))
        bo1 = jnp.broadcast_to(bo1_ref[...], (T, D_MODEL))
        bo2 = jnp.broadcast_to(bo2_ref[...], (T, D_MODEL))
        b1 = jnp.broadcast_to(b1_ref[...], (T, D_FF))
        b2 = jnp.broadcast_to(b2_ref[...], (T, D_MODEL))

        # Cross-attention K|V of `memory`: layer-invariant (shared weights),
        # computed once before the layer loop.
        kv_mem = jnp.dot(mem, wkv2_ref[...], precision=HP,
                         preferred_element_type=jnp.float32) + bkv2_ref[...]

        def layer_step(xc):
            # sublayer 0: xc = xc + self_attn(norm(xc), tgt_mask)
            xn = _layernorm(xc, n1a, n1b)
            qkv = jnp.dot(xn, wqkv1, precision=HP,
                          preferred_element_type=jnp.float32) + bqkv1
            xc = xc + _mha(qkv, 0, qkv, D_MODEL, qkv, 2 * D_MODEL,
                           mask_add, wo1, bo1)
            # sublayer 1: xc = xc + src_attn(norm(xc), memory, memory)
            xn = _layernorm(xc, n2a, n2b)
            q2 = jnp.dot(xn, wq2, precision=HP,
                         preferred_element_type=jnp.float32) + bq2
            xc = xc + _mha(q2, 0, kv_mem, 0, kv_mem, D_MODEL, None, wo2, bo2)
            # sublayer 2: xc = xc + FFN(norm(xc))
            xn = _layernorm(xc, n3a, n3b)
            ff = jnp.maximum(jnp.dot(xn, w1, precision=HP,
                                     preferred_element_type=jnp.float32) + b1, 0.0)
            return xc + jnp.dot(ff, w2, precision=HP,
                                preferred_element_type=jnp.float32) + b2

        # Small N: static unroll. Deep stacks: fori_loop bounds vreg live ranges.
        if n_layers <= 4:
            for _ in range(n_layers):
                x = layer_step(x)
        else:
            x = lax.fori_loop(0, n_layers, lambda i, xc: layer_step(xc), x)

        o_ref[...] = _layernorm(x, fa, fb)
    return kernel


# ---------------------------------------------------------------- wrapper
def decoder_forward(x, memory, tgt_mask, p, norm_a, norm_b, n_layers):
    # TODO(synk): dropout inside the decoder layer is omitted (deterministic eval, p=0).
    B, T, D = x.shape
    S = memory.shape[1]

    # Naturally-aligned weight groups (no packed, lane-misaligned slab).
    wqkv1 = jnp.concatenate([p["wq1"], p["wk1"], p["wv1"]], axis=1)   # (D, 3D)
    bqkv1 = jnp.concatenate([p["bq1"], p["bk1"], p["bv1"]], axis=1)   # (1, 3D)
    wkv2 = jnp.concatenate([p["wk2"], p["wv2"]], axis=1)              # (D, 2D)
    bkv2 = jnp.concatenate([p["bk2"], p["bv2"]], axis=1)              # (1, 2D)
    norms = jnp.concatenate([p["n1a"], p["n1b"], p["n2a"], p["n2b"],
                             p["n3a"], p["n3b"], norm_a, norm_b], axis=0)  # (8, D)

    mask_add = jnp.where(tgt_mask > 0.0, 0.0, NEG_INF).astype(jnp.float32)  # (T, T)

    def full_spec(a):
        return pl.BlockSpec(a.shape, lambda *_: (0,) * a.ndim)

    weights = (wqkv1, bqkv1, p["wq2"], p["bq2"], wkv2, bkv2,
               p["wo1"], p["bo1"], p["wo2"], p["bo2"],
               p["w1"], p["b1"], p["w2"], p["b2"], norms)

    in_specs = [
        pl.BlockSpec((None, T, D), lambda b: (b, 0, 0)),   # x: one batch / step
        pl.BlockSpec((None, S, D), lambda b: (b, 0, 0)),   # memory: one batch / step
        pl.BlockSpec((T, T), lambda b: (0, 0)),            # causal mask, resident
    ] + [full_spec(w) for w in weights]

    out = pl.pallas_call(
        make_decoder_kernel(n_layers),
        grid=(B,),
        in_specs=in_specs,
        out_specs=pl.BlockSpec((None, T, D), lambda b: (b, 0, 0)),
        out_shape=jax.ShapeDtypeStruct((B, T, D), jnp.float32),
        compiler_params=pltpu.CompilerParams(dimension_semantics=("parallel",)),
    )(x, memory, mask_add, *weights)
    return out


# ---------------------------------------------------------------- params
def init_layer_params(key):
    def lin(k, din, dout):
        w = jax.random.normal(k, (din, dout), jnp.float32) / math.sqrt(din)
        b = jnp.zeros((1, dout), jnp.float32)
        return w, b

    ks = jax.random.split(key, 10)
    p = {}
    p["n1a"] = jnp.ones((1, D_MODEL), jnp.float32); p["n1b"] = jnp.zeros((1, D_MODEL), jnp.float32)
    p["wq1"], p["bq1"] = lin(ks[0], D_MODEL, D_MODEL)
    p["wk1"], p["bk1"] = lin(ks[1], D_MODEL, D_MODEL)
    p["wv1"], p["bv1"] = lin(ks[2], D_MODEL, D_MODEL)
    p["wo1"], p["bo1"] = lin(ks[3], D_MODEL, D_MODEL)
    p["n2a"] = jnp.ones((1, D_MODEL), jnp.float32); p["n2b"] = jnp.zeros((1, D_MODEL), jnp.float32)
    p["wq2"], p["bq2"] = lin(ks[4], D_MODEL, D_MODEL)
    p["wk2"], p["bk2"] = lin(ks[5], D_MODEL, D_MODEL)
    p["wv2"], p["bv2"] = lin(ks[6], D_MODEL, D_MODEL)
    p["wo2"], p["bo2"] = lin(ks[7], D_MODEL, D_MODEL)
    p["n3a"] = jnp.ones((1, D_MODEL), jnp.float32); p["n3b"] = jnp.zeros((1, D_MODEL), jnp.float32)
    p["w1"], p["b1"] = lin(ks[8], D_MODEL, D_FF)
    p["w2"], p["b2"] = lin(ks[9], D_FF, D_MODEL)
    return p


# ---------------------------------------------------------------- pure-JAX reference
def _ref_layernorm(x, a, b, eps=EPS):
    # Independent implementation of the torch LayerNorm (std unbiased, ddof=1).
    mean = jnp.mean(x, axis=-1, keepdims=True)
    std = jnp.std(x, axis=-1, keepdims=True, ddof=1)
    return a * (x - mean) / (std + eps) + b


def _ref_mha(q_in, k_in, v_in, wq, bq, wk, bk, wv, bv, wo, bo, mask):
    q = jnp.einsum("btd,de->bte", q_in, wq, precision=HP) + bq
    k = jnp.einsum("bsd,de->bse", k_in, wk, precision=HP) + bk
    v = jnp.einsum("bsd,de->bse", v_in, wv, precision=HP) + bv
    Bb, Tt, _ = q.shape
    Ss = k.shape[1]
    qh = q.reshape(Bb, Tt, N_HEADS, D_HEAD).transpose(0, 2, 1, 3)
    kh = k.reshape(Bb, Ss, N_HEADS, D_HEAD).transpose(0, 2, 1, 3)
    vh = v.reshape(Bb, Ss, N_HEADS, D_HEAD).transpose(0, 2, 1, 3)
    s = jnp.einsum("bhtd,bhsd->bhts", qh, kh, precision=HP) / math.sqrt(D_HEAD)
    if mask is not None:
        s = jnp.where(mask[None, None] > 0.0, s, NEG_INF)
    p = jax.nn.softmax(s, axis=-1)
    o = jnp.einsum("bhts,bhsd->bhtd", p, vh, precision=HP)
    o = o.transpose(0, 2, 1, 3).reshape(Bb, Tt, -1)
    return jnp.einsum("btd,de->bte", o, wo, precision=HP) + bo


def _ref_decoder(x, memory, tgt_mask, p, norm_a, norm_b, n_layers):
    for _ in range(n_layers):
        xn = _ref_layernorm(x, p["n1a"], p["n1b"])
        x = x + _ref_mha(xn, xn, xn, p["wq1"], p["bq1"], p["wk1"], p["bk1"],
                         p["wv1"], p["bv1"], p["wo1"], p["bo1"], tgt_mask)
        xn = _ref_layernorm(x, p["n2a"], p["n2b"])
        x = x + _ref_mha(xn, memory, memory, p["wq2"], p["bq2"], p["wk2"], p["bk2"],
                         p["wv2"], p["bv2"], p["wo2"], p["bo2"], None)
        xn = _ref_layernorm(x, p["n3a"], p["n3b"])
        h = jnp.maximum(jnp.einsum("btd,df->btf", xn, p["w1"], precision=HP) + p["b1"], 0.0)
        x = x + jnp.einsum("btf,fd->btd", h, p["w2"], precision=HP) + p["b2"]
    return _ref_layernorm(x, norm_a, norm_b)


# ---------------------------------------------------------------- main
if __name__ == "__main__":
    B, T, S, N_LAYERS = 2, 8, 8, 2
    key = jax.random.PRNGKey(0)
    k_x, k_m, k_p = jax.random.split(key, 3)

    x = jax.random.normal(k_x, (B, T, D_MODEL), jnp.float32)
    memory = jax.random.normal(k_m, (B, S, D_MODEL), jnp.float32)
    tgt_mask = jnp.tril(jnp.ones((T, T), jnp.float32))   # causal: 1=attend, 0=mask

    layer_params = init_layer_params(k_p)
    norm_a = jnp.ones((1, D_MODEL), jnp.float32)          # final LayerNorm.a_2
    norm_b = jnp.zeros((1, D_MODEL), jnp.float32)         # final LayerNorm.b_2

    y = decoder_forward(x, memory, tgt_mask, layer_params, norm_a, norm_b, N_LAYERS)
    jax.block_until_ready(y)
    assert y.shape == (B, T, D_MODEL)

    # correctness check against an independent pure-JAX reference of the torch module
    y_ref = _ref_decoder(x, memory, tgt_mask, layer_params, norm_a, norm_b, N_LAYERS)
    err = float(jnp.max(jnp.abs(y - y_ref)))
    assert err < 2e-3, f"kernel/reference mismatch: max abs err {err}"

    print("KERNEL_OK")
</pallas_src>

<mosaic_0001>
module attributes {stable_mosaic.version = 11 : i64} {
  func.func @kernel(%arg0: i32, %arg1: memref<1x8x32xf32, #tpu.memory_space<vmem>>, %arg2: memref<1x8x32xf32, #tpu.memory_space<vmem>>, %arg3: memref<8x8xf32, #tpu.memory_space<vmem>>, %arg4: memref<32x96xf32, #tpu.memory_space<vmem>>, %arg5: memref<1x96xf32, #tpu.memory_space<vmem>>, %arg6: memref<32x32xf32, #tpu.memory_space<vmem>>, %arg7: memref<1x32xf32, #tpu.memory_space<vmem>>, %arg8: memref<32x64xf32, #tpu.memory_space<vmem>>, %arg9: memref<1x64xf32, #tpu.memory_space<vmem>>, %arg10: memref<32x32xf32, #tpu.memory_space<vmem>>, %arg11: memref<1x32xf32, #tpu.memory_space<vmem>>, %arg12: memref<32x32xf32, #tpu.memory_space<vmem>>, %arg13: memref<1x32xf32, #tpu.memory_space<vmem>>, %arg14: memref<32x64xf32, #tpu.memory_space<vmem>>, %arg15: memref<1x64xf32, #tpu.memory_space<vmem>>, %arg16: memref<64x32xf32, #tpu.memory_space<vmem>>, %arg17: memref<1x32xf32, #tpu.memory_space<vmem>>, %arg18: memref<8x32xf32, #tpu.memory_space<vmem>>, %arg19: memref<1x8x32xf32, #tpu.memory_space<vmem>>) attributes {dimension_semantics = [#tpu.dimension_semantics<parallel>], iteration_bounds = array<i64: 2>, scalar_prefetch = 0 : i64, scratch_operands = 0 : i64, tpu.core_type = #tpu.core_type<tc>, window_params = [{transform_indices = @transform_0, window_bounds = array<i64: 1, 8, 32>}, {transform_indices = @transform_1, window_bounds = array<i64: 1, 8, 32>}, {pipeline_mode = #tpu.pipeline_mode<synchronous>, transform_indices = @transform_2, window_bounds = array<i64: 8, 8>}, {pipeline_mode = #tpu.pipeline_mode<synchronous>, transform_indices = @transform_3, window_bounds = array<i64: 32, 96>}, {pipeline_mode = #tpu.pipeline_mode<synchronous>, transform_indices = @transform_4, window_bounds = array<i64: 1, 96>}, {pipeline_mode = #tpu.pipeline_mode<synchronous>, transform_indices = @transform_5, window_bounds = array<i64: 32, 32>}, {pipeline_mode = #tpu.pipeline_mode<synchronous>, transform_indices = @transform_6, window_bounds = array<i64: 1, 32>}, {pipeline_mode = #tpu.pipeline_mode<synchronous>, transform_indices = @transform_7, window_bounds = array<i64: 32, 64>}, {pipeline_mode = #tpu.pipeline_mode<synchronous>, transform_indices = @transform_8, window_bounds = array<i64: 1, 64>}, {pipeline_mode = #tpu.pipeline_mode<synchronous>, transform_indices = @transform_9, window_bounds = array<i64: 32, 32>}, {pipeline_mode = #tpu.pipeline_mode<synchronous>, transform_indices = @transform_10, window_bounds = array<i64: 1, 32>}, {pipeline_mode = #tpu.pipeline_mode<synchronous>, transform_indices = @transform_11, window_bounds = array<i64: 32, 32>}, {pipeline_mode = #tpu.pipeline_mode<synchronous>, transform_indices = @transform_12, window_bounds = array<i64: 1, 32>}, {pipeline_mode = #tpu.pipeline_mode<synchronous>, transform_indices = @transform_13, window_bounds = array<i64: 32, 64>}, {pipeline_mode = #tpu.pipeline_mode<synchronous>, transform_indices = @transform_14, window_bounds = array<i64: 1, 64>}, {pipeline_mode = #tpu.pipeline_mode<synchronous>, transform_indices = @transform_15, window_bounds = array<i64: 64, 32>}, {pipeline_mode = #tpu.pipeline_mode<synchronous>, transform_indices = @transform_16, window_bounds = array<i64: 1, 32>}, {pipeline_mode = #tpu.pipeline_mode<synchronous>, transform_indices = @transform_17, window_bounds = array<i64: 8, 32>}, {transform_indices = @transform_18, window_bounds = array<i64: 1, 8, 32>}]} {
    %c0 = arith.constant 0 : index
    %c0_0 = arith.constant 0 : index
    %c0_1 = arith.constant 0 : index
    %0 = vector.load %arg1[%c0, %c0_0, %c0_1] : memref<1x8x32xf32, #tpu.memory_space<vmem>>, vector<1x8x32xf32>
    %1 = vector.shape_cast %0 : vector<1x8x32xf32> to vector<8x32xf32>
    %c0_2 = arith.constant 0 : index
    %c0_3 = arith.constant 0 : index
    %c0_4 = arith.constant 0 : index
    %2 = vector.load %arg2[%c0_2, %c0_3, %c0_4] : memref<1x8x32xf32, #tpu.memory_space<vmem>>, vector<1x8x32xf32>
    %3 = vector.shape_cast %2 : vector<1x8x32xf32> to vector<8x32xf32>
    %c0_5 = arith.constant 0 : index
    %c0_6 = arith.constant 0 : index
    %4 = vector.load %arg3[%c0_5, %c0_6] : memref<8x8xf32, #tpu.memory_space<vmem>>, vector<8x8xf32>
    %c0_7 = arith.constant 0 : index
    %c0_8 = arith.constant 0 : index
    %5 = vector.load %arg4[%c0_7, %c0_8] : memref<32x96xf32, #tpu.memory_space<vmem>>, vector<32x96xf32>
    %c0_9 = arith.constant 0 : index
    %c0_10 = arith.constant 0 : index
    %6 = vector.load %arg6[%c0_9, %c0_10] : memref<32x32xf32, #tpu.memory_space<vmem>>, vector<32x32xf32>
    %c0_11 = arith.constant 0 : index
    %c0_12 = arith.constant 0 : index
    %7 = vector.load %arg10[%c0_11, %c0_12] : memref<32x32xf32, #tpu.memory_space<vmem>>, vector<32x32xf32>
    %c0_13 = arith.constant 0 : index
    %c0_14 = arith.constant 0 : index
    %8 = vector.load %arg12[%c0_13, %c0_14] : memref<32x32xf32, #tpu.memory_space<vmem>>, vector<32x32xf32>
    %c0_15 = arith.constant 0 : index
    %c0_16 = arith.constant 0 : index
    %9 = vector.load %arg14[%c0_15, %c0_16] : memref<32x64xf32, #tpu.memory_space<vmem>>, vector<32x64xf32>
    %c0_17 = arith.constant 0 : index
    %c0_18 = arith.constant 0 : index
    %10 = vector.load %arg16[%c0_17, %c0_18] : memref<64x32xf32, #tpu.memory_space<vmem>>, vector<64x32xf32>
    %c0_19 = arith.constant 0 : index
    %c0_20 = arith.constant 0 : index
    %11 = vector.load %arg18[%c0_19, %c0_20] : memref<8x32xf32, #tpu.memory_space<vmem>>, vector<8x32xf32>
    %12 = vector.extract_strided_slice %11 {offsets = [0, 0], sizes = [1, 32], strides = [1, 1]} : vector<8x32xf32> to vector<1x32xf32>
    %13 = vector.extract_strided_slice %11 {offsets = [1, 0], sizes = [1, 32], strides = [1, 1]} : vector<8x32xf32> to vector<1x32xf32>
    %14 = vector.extract_strided_slice %11 {offsets = [2, 0], sizes = [1, 32], strides = [1, 1]} : vector<8x32xf32> to vector<1x32xf32>
    %15 = vector.extract_strided_slice %11 {offsets = [3, 0], sizes = [1, 32], strides = [1, 1]} : vector<8x32xf32> to vector<1x32xf32>
    %16 = vector.extract_strided_slice %11 {offsets = [4, 0], sizes = [1, 32], strides = [1, 1]} : vector<8x32xf32> to vector<1x32xf32>
    %17 = vector.extract_strided_slice %11 {offsets = [5, 0], sizes = [1, 32], strides = [1, 1]} : vector<8x32xf32> to vector<1x32xf32>
    %18 = vector.extract_strided_slice %11 {offsets = [6, 0], sizes = [1, 32], strides = [1, 1]} : vector<8x32xf32> to vector<1x32xf32>
    %19 = vector.extract_strided_slice %11 {offsets = [7, 0], sizes = [1, 32], strides = [1, 1]} : vector<8x32xf32> to vector<1x32xf32>
    %c0_21 = arith.constant 0 : index
    %c0_22 = arith.constant 0 : index
    %20 = vector.load %arg5[%c0_21, %c0_22] : memref<1x96xf32, #tpu.memory_space<vmem>>, vector<1x96xf32>
    %21 = vector.shape_cast %20 : vector<1x96xf32> to vector<1x96xf32>
    %22 = vector.broadcast %21 : vector<1x96xf32> to vector<8x96xf32>
    %c0_23 = arith.constant 0 : index
    %c0_24 = arith.constant 0 : index
    %23 = vector.load %arg7[%c0_23, %c0_24] : memref<1x32xf32, #tpu.memory_space<vmem>>, vector<1x32xf32>
    %24 = vector.shape_cast %23 : vector<1x32xf32> to vector<1x32xf32>
    %25 = vector.broadcast %24 : vector<1x32xf32> to vector<8x32xf32>
    %c0_25 = arith.constant 0 : index
    %c0_26 = arith.constant 0 : index
    %26 = vector.load %arg11[%c0_25, %c0_26] : memref<1x32xf32, #tpu.memory_space<vmem>>, vector<1x32xf32>
    %27 = vector.shape_cast %26 : vector<1x32xf32> to vector<1x32xf32>
    %28 = vector.broadcast %27 : vector<1x32xf32> to vector<8x32xf32>
    %c0_27 = arith.constant 0 : index
    %c0_28 = arith.constant 0 : index
    %29 = vector.load %arg13[%c0_27, %c0_28] : memref<1x32xf32, #tpu.memory_space<vmem>>, vector<1x32xf32>
    %30 = vector.shape_cast %29 : vector<1x32xf32> to vector<1x32xf32>
    %31 = vector.broadcast %30 : vector<1x32xf32> to vector<8x32xf32>
    %c0_29 = arith.constant 0 : index
    %c0_30 = arith.constant 0 : index
    %32 = vector.load %arg15[%c0_29, %c0_30] : memref<1x64xf32, #tpu.memory_space<vmem>>, vector<1x64xf32>
    %33 = vector.shape_cast %32 : vector<1x64xf32> to vector<1x64xf32>
    %34 = vector.broadcast %33 : vector<1x64xf32> to vector<8x64xf32>
    %c0_31 = arith.constant 0 : index
    %c0_32 = arith.constant 0 : index
    %35 = vector.load %arg17[%c0_31, %c0_32] : memref<1x32xf32, #tpu.memory_space<vmem>>, vector<1x32xf32>
    %36 = vector.shape_cast %35 : vector<1x32xf32> to vector<1x32xf32>
    %37 = vector.broadcast %36 : vector<1x32xf32> to vector<8x32xf32>
    %c0_33 = arith.constant 0 : index
    %c0_34 = arith.constant 0 : index
    %38 = vector.load %arg8[%c0_33, %c0_34] : memref<32x64xf32, #tpu.memory_space<vmem>>, vector<32x64xf32>
    %cst = arith.constant dense<0.000000e+00> : vector<8x64xf32>
    %39 = tpu.matmul %3, %38, %cst {dimension_numbers = #tpu.dot_dimension_numbers<[1], [0], [0], [1], [0, 0, 1, 1], [], []>, precision = #tpu.contract_precision<fp32>} : vector<8x32xf32>, vector<32x64xf32>, vector<8x64xf32> -> vector<8x64xf32>
    %c0_35 = arith.constant 0 : index
    %c0_36 = arith.constant 0 : index
    %40 = vector.load %arg9[%c0_35, %c0_36] : memref<1x64xf32, #tpu.memory_space<vmem>>, vector<1x64xf32>
    %41 = vector.broadcast %40 : vector<1x64xf32> to vector<8x64xf32>
    %42 = arith.addf %39, %41 : vector<8x64xf32>
    %cst_37 = arith.constant dense<0.000000e+00> : vector<8xf32>
    %43 = vector.multi_reduction <add>, %1, %cst_37 [1] : vector<8x32xf32> to vector<8xf32>
    %44 = vector.shape_cast %43 : vector<8xf32> to vector<8x1xf32>
    %45 = arith.mulf %1, %1 : vector<8x32xf32>
    %cst_38 = arith.constant dense<0.000000e+00> : vector<8xf32>
    %46 = vector.multi_reduction <add>, %45, %cst_38 [1] : vector<8x32xf32> to vector<8xf32>
    %47 = vector.shape_cast %46 : vector<8xf32> to vector<8x1xf32>
    %cst_39 = arith.constant 3.125000e-02 : f32
    %48 = vector.broadcast %cst_39 : f32 to vector<8x1xf32>
    %49 = arith.mulf %44, %48 : vector<8x1xf32>
    %50 = arith.mulf %44, %49 : vector<8x1xf32>
    %51 = arith.subf %47, %50 : vector<8x1xf32>
    %cst_40 = arith.constant 0.000000e+00 : f32
    %52 = vector.broadcast %cst_40 : f32 to vector<8x1xf32>
    %53 = arith.maximumf %51, %52 : vector<8x1xf32>
    %cst_41 = arith.constant 0.0322580636 : f32
    %54 = vector.broadcast %cst_41 : f32 to vector<8x1xf32>
    %55 = arith.mulf %53, %54 : vector<8x1xf32>
    %56 = vector.broadcast %49 : vector<8x1xf32> to vector<8x32xf32>
    %57 = arith.subf %1, %56 : vector<8x32xf32>
    %58 = vector.broadcast %12 : vector<1x32xf32> to vector<8x32xf32>
    %59 = arith.mulf %58, %57 : vector<8x32xf32>
    %60 = math.sqrt %55 : vector<8x1xf32>
    %cst_42 = arith.constant 9.99999997E-7 : f32
    %61 = vector.broadcast %cst_42 : f32 to vector<8x1xf32>
    %62 = arith.addf %60, %61 : vector<8x1xf32>
    %63 = vector.broadcast %62 : vector<8x1xf32> to vector<8x32xf32>
    %64 = arith.divf %59, %63 : vector<8x32xf32>
    %65 = vector.broadcast %13 : vector<1x32xf32> to vector<8x32xf32>
    %66 = arith.addf %64, %65 : vector<8x32xf32>
    %cst_43 = arith.constant dense<0.000000e+00> : vector<8x96xf32>
    %67 = tpu.matmul %66, %5, %cst_43 {dimension_numbers = #tpu.dot_dimension_numbers<[1], [0], [0], [1], [0, 0, 1, 1], [], []>, precision = #tpu.contract_precision<fp32>} : vector<8x32xf32>, vector<32x96xf32>, vector<8x96xf32> -> vector<8x96xf32>
    %68 = arith.addf %67, %22 : vector<8x96xf32>
    %69 = vector.extract_strided_slice %68 {offsets = [0, 0], sizes = [8, 8], strides = [1, 1]} : vector<8x96xf32> to vector<8x8xf32>
    %70 = vector.extract_strided_slice %68 {offsets = [0, 32], sizes = [8, 8], strides = [1, 1]} : vector<8x96xf32> to vector<8x8xf32>
    %71 = vector.extract_strided_slice %68 {offsets = [0, 64], sizes = [8, 8], strides = [1, 1]} : vector<8x96xf32> to vector<8x8xf32>
    %cst_44 = arith.constant dense<0.000000e+00> : vector<8x8xf32>
    %72 = tpu.matmul %69, %70, %cst_44 {dimension_numbers = #tpu.dot_dimension_numbers<[1], [1], [0], [0], [0, 0, 1, 0], [], []>, precision = #tpu.contract_precision<fp32>} : vector<8x8xf32>, vector<8x8xf32>, vector<8x8xf32> -> vector<8x8xf32>
    %cst_45 = arith.constant 0.353553385 : f32
    %73 = vector.broadcast %cst_45 : f32 to vector<8x8xf32>
    %74 = arith.mulf %72, %73 : vector<8x8xf32>
    %75 = arith.addf %74, %4 : vector<8x8xf32>
    %cst_46 = arith.constant dense<0xFF800000> : vector<8xf32>
    %76 = vector.multi_reduction <maximumf>, %75, %cst_46 [1] : vector<8x8xf32> to vector<8xf32>
    %77 = vector.shape_cast %76 : vector<8xf32> to vector<8x1xf32>
    %78 = vector.broadcast %77 : vector<8x1xf32> to vector<8x8xf32>
    %79 = arith.subf %75, %78 : vector<8x8xf32>
    %80 = math.exp %79 : vector<8x8xf32>
    %cst_47 = arith.constant dense<0.000000e+00> : vector<8xf32>
    %81 = vector.multi_reduction <add>, %80, %cst_47 [1] : vector<8x8xf32> to vector<8xf32>
    %82 = vector.shape_cast %81 : vector<8xf32> to vector<8x1xf32>
    %cst_48 = arith.constant 1.000000e+00 : f32
    %83 = vector.broadcast %cst_48 : f32 to vector<8x1xf32>
    %84 = arith.divf %83, %82 : vector<8x1xf32>
    %85 = vector.broadcast %84 : vector<8x1xf32> to vector<8x8xf32>
    %86 = arith.mulf %80, %85 : vector<8x8xf32>
    %cst_49 = arith.constant dense<0.000000e+00> : vector<8x8xf32>
    %87 = tpu.matmul %86, %71, %cst_49 {dimension_numbers = #tpu.dot_dimension_numbers<[1], [0], [0], [1], [0, 0, 1, 1], [], []>, precision = #tpu.contract_precision<fp32>} : vector<8x8xf32>, vector<8x8xf32>, vector<8x8xf32> -> vector<8x8xf32>
    %88 = vector.extract_strided_slice %7 {offsets = [0, 0], sizes = [8, 32], strides = [1, 1]} : vector<32x32xf32> to vector<8x32xf32>
    %cst_50 = arith.constant dense<0.000000e+00> : vector<8x32xf32>
    %89 = tpu.matmul %87, %88, %cst_50 {dimension_numbers = #tpu.dot_dimension_numbers<[1], [0], [0], [1], [0, 0, 1, 1], [], []>, precision = #tpu.contract_precision<fp32>} : vector<8x8xf32>, vector<8x32xf32>, vector<8x32xf32> -> vector<8x32xf32>
    %90 = arith.addf %28, %89 : vector<8x32xf32>
    %91 = vector.extract_strided_slice %68 {offsets = [0, 8], sizes = [8, 8], strides = [1, 1]} : vector<8x96xf32> to vector<8x8xf32>
    %92 = vector.extract_strided_slice %68 {offsets = [0, 40], sizes = [8, 8], strides = [1, 1]} : vector<8x96xf32> to vector<8x8xf32>
    %93 = vector.extract_strided_slice %68 {offsets = [0, 72], sizes = [8, 8], strides = [1, 1]} : vector<8x96xf32> to vector<8x8xf32>
    %cst_51 = arith.constant dense<0.000000e+00> : vector<8x8xf32>
    %94 = tpu.matmul %91, %92, %cst_51 {dimension_numbers = #tpu.dot_dimension_numbers<[1], [1], [0], [0], [0, 0, 1, 0], [], []>, precision = #tpu.contract_precision<fp32>} : vector<8x8xf32>, vector<8x8xf32>, vector<8x8xf32> -> vector<8x8xf32>
    %cst_52 = arith.constant 0.353553385 : f32
    %95 = vector.broadcast %cst_52 : f32 to vector<8x8xf32>
    %96 = arith.mulf %94, %95 : vector<8x8xf32>
    %97 = arith.addf %96, %4 : vector<8x8xf32>
    %cst_53 = arith.constant dense<0xFF800000> : vector<8xf32>
    %98 = vector.multi_reduction <maximumf>, %97, %cst_53 [1] : vector<8x8xf32> to vector<8xf32>
    %99 = vector.shape_cast %98 : vector<8xf32> to vector<8x1xf32>
    %100 = vector.broadcast %99 : vector<8x1xf32> to vector<8x8xf32>
    %101 = arith.subf %97, %100 : vector<8x8xf32>
    %102 = math.exp %101 : vector<8x8xf32>
    %cst_54 = arith.constant dense<0.000000e+00> : vector<8xf32>
    %103 = vector.multi_reduction <add>, %102, %cst_54 [1] : vector<8x8xf32> to vector<8xf32>
    %104 = vector.shape_cast %103 : vector<8xf32> to vector<8x1xf32>
    %cst_55 = arith.constant 1.000000e+00 : f32
    %105 = vector.broadcast %cst_55 : f32 to vector<8x1xf32>
    %106 = arith.divf %105, %104 : vector<8x1xf32>
    %107 = vector.broadcast %106 : vector<8x1xf32> to vector<8x8xf32>
    %108 = arith.mulf %102, %107 : vector<8x8xf32>
    %cst_56 = arith.constant dense<0.000000e+00> : vector<8x8xf32>
    %109 = tpu.matmul %108, %93, %cst_56 {dimension_numbers = #tpu.dot_dimension_numbers<[1], [0], [0], [1], [0, 0, 1, 1], [], []>, precision = #tpu.contract_precision<fp32>} : vector<8x8xf32>, vector<8x8xf32>, vector<8x8xf32> -> vector<8x8xf32>
    %110 = vector.extract_strided_slice %7 {offsets = [8, 0], sizes = [8, 32], strides = [1, 1]} : vector<32x32xf32> to vector<8x32xf32>
    %cst_57 = arith.constant dense<0.000000e+00> : vector<8x32xf32>
    %111 = tpu.matmul %109, %110, %cst_57 {dimension_numbers = #tpu.dot_dimension_numbers<[1], [0], [0], [1], [0, 0, 1, 1], [], []>, precision = #tpu.contract_precision<fp32>} : vector<8x8xf32>, vector<8x32xf32>, vector<8x32xf32> -> vector<8x32xf32>
    %112 = arith.addf %90, %111 : vector<8x32xf32>
    %113 = vector.extract_strided_slice %68 {offsets = [0, 16], sizes = [8, 8], strides = [1, 1]} : vector<8x96xf32> to vector<8x8xf32>
    %114 = vector.extract_strided_slice %68 {offsets = [0, 48], sizes = [8, 8], strides = [1, 1]} : vector<8x96xf32> to vector<8x8xf32>
    %115 = vector.extract_strided_slice %68 {offsets = [0, 80], sizes = [8, 8], strides = [1, 1]} : vector<8x96xf32> to vector<8x8xf32>
    %cst_58 = arith.constant dense<0.000000e+00> : vector<8x8xf32>
    %116 = tpu.matmul %113, %114, %cst_58 {dimension_numbers = #tpu.dot_dimension_numbers<[1], [1], [0], [0], [0, 0, 1, 0], [], []>, precision = #tpu.contract_precision<fp32>} : vector<8x8xf32>, vector<8x8xf32>, vector<8x8xf32> -> vector<8x8xf32>
    %cst_59 = arith.constant 0.353553385 : f32
    %117 = vector.broadcast %cst_59 : f32 to vector<8x8xf32>
    %118 = arith.mulf %116, %117 : vector<8x8xf32>
    %119 = arith.addf %118, %4 : vector<8x8xf32>
    %cst_60 = arith.constant dense<0xFF800000> : vector<8xf32>
    %120 = vector.multi_reduction <maximumf>, %119, %cst_60 [1] : vector<8x8xf32> to vector<8xf32>
    %121 = vector.shape_cast %120 : vector<8xf32> to vector<8x1xf32>
    %122 = vector.broadcast %121 : vector<8x1xf32> to vector<8x8xf32>
    %123 = arith.subf %119, %122 : vector<8x8xf32>
    %124 = math.exp %123 : vector<8x8xf32>
    %cst_61 = arith.constant dense<0.000000e+00> : vector<8xf32>
    %125 = vector.multi_reduction <add>, %124, %cst_61 [1] : vector<8x8xf32> to vector<8xf32>
    %126 = vector.shape_cast %125 : vector<8xf32> to vector<8x1xf32>
    %cst_62 = arith.constant 1.000000e+00 : f32
    %127 = vector.broadcast %cst_62 : f32 to vector<8x1xf32>
    %128 = arith.divf %127, %126 : vector<8x1xf32>
    %129 = vector.broadcast %128 : vector<8x1xf32> to vector<8x8xf32>
    %130 = arith.mulf %124, %129 : vector<8x8xf32>
    %cst_63 = arith.constant dense<0.000000e+00> : vector<8x8xf32>
    %131 = tpu.matmul %130, %115, %cst_63 {dimension_numbers = #tpu.dot_dimension_numbers<[1], [0], [0], [1], [0, 0, 1, 1], [], []>, precision = #tpu.contract_precision<fp32>} : vector<8x8xf32>, vector<8x8xf32>, vector<8x8xf32> -> vector<8x8xf32>
    %132 = vector.extract_strided_slice %7 {offsets = [16, 0], sizes = [8, 32], strides = [1, 1]} : vector<32x32xf32> to vector<8x32xf32>
    %cst_64 = arith.constant dense<0.000000e+00> : vector<8x32xf32>
    %133 = tpu.matmul %131, %132, %cst_64 {dimension_numbers = #tpu.dot_dimension_numbers<[1], [0], [0], [1], [0, 0, 1, 1], [], []>, precision = #tpu.contract_precision<fp32>} : vector<8x8xf32>, vector<8x32xf32>, vector<8x32xf32> -> vector<8x32xf32>
    %134 = arith.addf %112, %133 : vector<8x32xf32>
    %135 = vector.extract_strided_slice %68 {offsets = [0, 24], sizes = [8, 8], strides = [1, 1]} : vector<8x96xf32> to vector<8x8xf32>
    %136 = vector.extract_strided_slice %68 {offsets = [0, 56], sizes = [8, 8], strides = [1, 1]} : vector<8x96xf32> to vector<8x8xf32>
    %137 = vector.extract_strided_slice %68 {offsets = [0, 88], sizes = [8, 8], strides = [1, 1]} : vector<8x96xf32> to vector<8x8xf32>
    %cst_65 = arith.constant dense<0.000000e+00> : vector<8x8xf32>
    %138 = tpu.matmul %135, %136, %cst_65 {dimension_numbers = #tpu.dot_dimension_numbers<[1], [1], [0], [0], [0, 0, 1, 0], [], []>, precision = #tpu.contract_precision<fp32>} : vector<8x8xf32>, vector<8x8xf32>, vector<8x8xf32> -> vector<8x8xf32>
    %cst_66 = arith.constant 0.353553385 : f32
    %139 = vector.broadcast %cst_66 : f32 to vector<8x8xf32>
    %140 = arith.mulf %138, %139 : vector<8x8xf32>
    %141 = arith.addf %140, %4 : vector<8x8xf32>
    %cst_67 = arith.constant dense<0xFF800000> : vector<8xf32>
    %142 = vector.multi_reduction <maximumf>, %141, %cst_67 [1] : vector<8x8xf32> to vector<8xf32>
    %143 = vector.shape_cast %142 : vector<8xf32> to vector<8x1xf32>
    %144 = vector.broadcast %143 : vector<8x1xf32> to vector<8x8xf32>
    %145 = arith.subf %141, %144 : vector<8x8xf32>
    %146 = math.exp %145 : vector<8x8xf32>
    %cst_68 = arith.constant dense<0.000000e+00> : vector<8xf32>
    %147 = vector.multi_reduction <add>, %146, %cst_68 [1] : vector<8x8xf32> to vector<8xf32>
    %148 = vector.shape_cast %147 : vector<8xf32> to vector<8x1xf32>
    %cst_69 = arith.constant 1.000000e+00 : f32
    %149 = vector.broadcast %cst_69 : f32 to vector<8x1xf32>
    %150 = arith.divf %149, %148 : vector<8x1xf32>
    %151 = vector.broadcast %150 : vector<8x1xf32> to vector<8x8xf32>
    %152 = arith.mulf %146, %151 : vector<8x8xf32>
    %cst_70 = arith.constant dense<0.000000e+00> : vector<8x8xf32>
    %153 = tpu.matmul %152, %137, %cst_70 {dimension_numbers = #tpu.dot_dimension_numbers<[1], [0], [0], [1], [0, 0, 1, 1], [], []>, precision = #tpu.contract_precision<fp32>} : vector<8x8xf32>, vector<8x8xf32>, vector<8x8xf32> -> vector<8x8xf32>
    %154 = vector.extract_strided_slice %7 {offsets = [24, 0], sizes = [8, 32], strides = [1, 1]} : vector<32x32xf32> to vector<8x32xf32>
    %cst_71 = arith.constant dense<0.000000e+00> : vector<8x32xf32>
    %155 = tpu.matmul %153, %154, %cst_71 {dimension_numbers = #tpu.dot_dimension_numbers<[1], [0], [0], [1], [0, 0, 1, 1], [], []>, precision = #tpu.contract_precision<fp32>} : vector<8x8xf32>, vector<8x32xf32>, vector<8x32xf32> -> vector<8x32xf32>
    %156 = arith.addf %134, %155 : vector<8x32xf32>
    %157 = arith.addf %1, %156 : vector<8x32xf32>
    %cst_72 = arith.constant dense<0.000000e+00> : vector<8xf32>
    %158 = vector.multi_reduction <add>, %157, %cst_72 [1] : vector<8x32xf32> to vector<8xf32>
    %159 = vector.shape_cast %158 : vector<8xf32> to vector<8x1xf32>
    %160 = arith.mulf %157, %157 : vector<8x32xf32>
    %cst_73 = arith.constant dense<0.000000e+00> : vector<8xf32>
    %161 = vector.multi_reduction <add>, %160, %cst_73 [1] : vector<8x32xf32> to vector<8xf32>
    %162 = vector.shape_cast %161 : vector<8xf32> to vector<8x1xf32>
    %cst_74 = arith.constant 3.125000e-02 : f32
    %163 = vector.broadcast %cst_74 : f32 to vector<8x1xf32>
    %164 = arith.mulf %159, %163 : vector<8x1xf32>
    %165 = arith.mulf %159, %164 : vector<8x1xf32>
    %166 = arith.subf %162, %165 : vector<8x1xf32>
    %cst_75 = arith.constant 0.000000e+00 : f32
    %167 = vector.broadcast %cst_75 : f32 to vector<8x1xf32>
    %168 = arith.maximumf %166, %167 : vector<8x1xf32>
    %cst_76 = arith.constant 0.0322580636 : f32
    %169 = vector.broadcast %cst_76 : f32 to vector<8x1xf32>
    %170 = arith.mulf %168, %169 : vector<8x1xf32>
    %171 = vector.broadcast %164 : vector<8x1xf32> to vector<8x32xf32>
    %172 = arith.subf %157, %171 : vector<8x32xf32>
    %173 = vector.broadcast %14 : vector<1x32xf32> to vector<8x32xf32>
    %174 = arith.mulf %173, %172 : vector<8x32xf32>
    %175 = math.sqrt %170 : vector<8x1xf32>
    %cst_77 = arith.constant 9.99999997E-7 : f32
    %176 = vector.broadcast %cst_77 : f32 to vector<8x1xf32>
    %177 = arith.addf %175, %176 : vector<8x1xf32>
    %178 = vector.broadcast %177 : vector<8x1xf32> to vector<8x32xf32>
    %179 = arith.divf %174, %178 : vector<8x32xf32>
    %180 = vector.broadcast %15 : vector<1x32xf32> to vector<8x32xf32>
    %181 = arith.addf %179, %180 : vector<8x32xf32>
    %cst_78 = arith.constant dense<0.000000e+00> : vector<8x32xf32>
    %182 = tpu.matmul %181, %6, %cst_78 {dimension_numbers = #tpu.dot_dimension_numbers<[1], [0], [0], [1], [0, 0, 1, 1], [], []>, precision = #tpu.contract_precision<fp32>} : vector<8x32xf32>, vector<32x32xf32>, vector<8x32xf32> -> vector<8x32xf32>
    %183 = arith.addf %182, %25 : vector<8x32xf32>
    %184 = vector.extract_strided_slice %183 {offsets = [0, 0], sizes = [8, 8], strides = [1, 1]} : vector<8x32xf32> to vector<8x8xf32>
    %185 = vector.extract_strided_slice %42 {offsets = [0, 0], sizes = [8, 8], strides = [1, 1]} : vector<8x64xf32> to vector<8x8xf32>
    %186 = vector.extract_strided_slice %42 {offsets = [0, 32], sizes = [8, 8], strides = [1, 1]} : vector<8x64xf32> to vector<8x8xf32>
    %cst_79 = arith.constant dense<0.000000e+00> : vector<8x8xf32>
    %187 = tpu.matmul %184, %185, %cst_79 {dimension_numbers = #tpu.dot_dimension_numbers<[1], [1], [0], [0], [0, 0, 1, 0], [], []>, precision = #tpu.contract_precision<fp32>} : vector<8x8xf32>, vector<8x8xf32>, vector<8x8xf32> -> vector<8x8xf32>
    %cst_80 = arith.constant 0.353553385 : f32
    %188 = vector.broadcast %cst_80 : f32 to vector<8x8xf32>
    %189 = arith.mulf %187, %188 : vector<8x8xf32>
    %cst_81 = arith.constant dense<0xFF800000> : vector<8xf32>
    %190 = vector.multi_reduction <maximumf>, %189, %cst_81 [1] : vector<8x8xf32> to vector<8xf32>
    %191 = vector.shape_cast %190 : vector<8xf32> to vector<8x1xf32>
    %192 = vector.broadcast %191 : vector<8x1xf32> to vector<8x8xf32>
    %193 = arith.subf %189, %192 : vector<8x8xf32>
    %194 = math.exp %193 : vector<8x8xf32>
    %cst_82 = arith.constant dense<0.000000e+00> : vector<8xf32>
    %195 = vector.multi_reduction <add>, %194, %cst_82 [1] : vector<8x8xf32> to vector<8xf32>
    %196 = vector.shape_cast %195 : vector<8xf32> to vector<8x1xf32>
    %cst_83 = arith.constant 1.000000e+00 : f32
    %197 = vector.broadcast %cst_83 : f32 to vector<8x1xf32>
    %198 = arith.divf %197, %196 : vector<8x1xf32>
    %199 = vector.broadcast %198 : vector<8x1xf32> to vector<8x8xf32>
    %200 = arith.mulf %194, %199 : vector<8x8xf32>
    %cst_84 = arith.constant dense<0.000000e+00> : vector<8x8xf32>
    %201 = tpu.matmul %200, %186, %cst_84 {dimension_numbers = #tpu.dot_dimension_numbers<[1], [0], [0], [1], [0, 0, 1, 1], [], []>, precision = #tpu.contract_precision<fp32>} : vector<8x8xf32>, vector<8x8xf32>, vector<8x8xf32> -> vector<8x8xf32>
    %202 = vector.extract_strided_slice %8 {offsets = [0, 0], sizes = [8, 32], strides = [1, 1]} : vector<32x32xf32> to vector<8x32xf32>
    %cst_85 = arith.constant dense<0.000000e+00> : vector<8x32xf32>
    %203 = tpu.matmul %201, %202, %cst_85 {dimension_numbers = #tpu.dot_dimension_numbers<[1], [0], [0], [1], [0, 0, 1, 1], [], []>, precision = #tpu.contract_precision<fp32>} : vector<8x8xf32>, vector<8x32xf32>, vector<8x32xf32> -> vector<8x32xf32>
    %204 = arith.addf %31, %203 : vector<8x32xf32>
    %205 = vector.extract_strided_slice %183 {offsets = [0, 8], sizes = [8, 8], strides = [1, 1]} : vector<8x32xf32> to vector<8x8xf32>
    %206 = vector.extract_strided_slice %42 {offsets = [0, 8], sizes = [8, 8], strides = [1, 1]} : vector<8x64xf32> to vector<8x8xf32>
    %207 = vector.extract_strided_slice %42 {offsets = [0, 40], sizes = [8, 8], strides = [1, 1]} : vector<8x64xf32> to vector<8x8xf32>
    %cst_86 = arith.constant dense<0.000000e+00> : vector<8x8xf32>
    %208 = tpu.matmul %205, %206, %cst_86 {dimension_numbers = #tpu.dot_dimension_numbers<[1], [1], [0], [0], [0, 0, 1, 0], [], []>, precision = #tpu.contract_precision<fp32>} : vector<8x8xf32>, vector<8x8xf32>, vector<8x8xf32> -> vector<8x8xf32>
    %cst_87 = arith.constant 0.353553385 : f32
    %209 = vector.broadcast %cst_87 : f32 to vector<8x8xf32>
    %210 = arith.mulf %208, %209 : vector<8x8xf32>
    %cst_88 = arith.constant dense<0xFF800000> : vector<8xf32>
    %211 = vector.multi_reduction <maximumf>, %210, %cst_88 [1] : vector<8x8xf32> to vector<8xf32>
    %212 = vector.shape_cast %211 : vector<8xf32> to vector<8x1xf32>
    %213 = vector.broadcast %212 : vector<8x1xf32> to vector<8x8xf32>
    %214 = arith.subf %210, %213 : vector<8x8xf32>
    %215 = math.exp %214 : vector<8x8xf32>
    %cst_89 = arith.constant dense<0.000000e+00> : vector<8xf32>
    %216 = vector.multi_reduction <add>, %215, %cst_89 [1] : vector<8x8xf32> to vector<8xf32>
    %217 = vector.shape_cast %216 : vector<8xf32> to vector<8x1xf32>
    %cst_90 = arith.constant 1.000000e+00 : f32
    %218 = vector.broadcast %cst_90 : f32 to vector<8x1xf32>
    %219 = arith.divf %218, %217 : vector<8x1xf32>
    %220 = vector.broadcast %219 : vector<8x1xf32> to vector<8x8xf32>
    %221 = arith.mulf %215, %220 : vector<8x8xf32>
    %cst_91 = arith.constant dense<0.000000e+00> : vector<8x8xf32>
    %222 = tpu.matmul %221, %207, %cst_91 {dimension_numbers = #tpu.dot_dimension_numbers<[1], [0], [0], [1], [0, 0, 1, 1], [], []>, precision = #tpu.contract_precision<fp32>} : vector<8x8xf32>, vector<8x8xf32>, vector<8x8xf32> -> vector<8x8xf32>
    %223 = vector.extract_strided_slice %8 {offsets = [8, 0], sizes = [8, 32], strides = [1, 1]} : vector<32x32xf32> to vector<8x32xf32>
    %cst_92 = arith.constant dense<0.000000e+00> : vector<8x32xf32>
    %224 = tpu.matmul %222, %223, %cst_92 {dimension_numbers = #tpu.dot_dimension_numbers<[1], [0], [0], [1], [0, 0, 1, 1], [], []>, precision = #tpu.contract_precision<fp32>} : vector<8x8xf32>, vector<8x32xf32>, vector<8x32xf32> -> vector<8x32xf32>
    %225 = arith.addf %204, %224 : vector<8x32xf32>
    %226 = vector.extract_strided_slice %183 {offsets = [0, 16], sizes = [8, 8], strides = [1, 1]} : vector<8x32xf32> to vector<8x8xf32>
    %227 = vector.extract_strided_slice %42 {offsets = [0, 16], sizes = [8, 8], strides = [1, 1]} : vector<8x64xf32> to vector<8x8xf32>
    %228 = vector.extract_strided_slice %42 {offsets = [0, 48], sizes = [8, 8], strides = [1, 1]} : vector<8x64xf32> to vector<8x8xf32>
    %cst_93 = arith.constant dense<0.000000e+00> : vector<8x8xf32>
    %229 = tpu.matmul %226, %227, %cst_93 {dimension_numbers = #tpu.dot_dimension_numbers<[1], [1], [0], [0], [0, 0, 1, 0], [], []>, precision = #tpu.contract_precision<fp32>} : vector<8x8xf32>, vector<8x8xf32>, vector<8x8xf32> -> vector<8x8xf32>
    %cst_94 = arith.constant 0.353553385 : f32
    %230 = vector.broadcast %cst_94 : f32 to vector<8x8xf32>
    %231 = arith.mulf %229, %230 : vector<8x8xf32>
    %cst_95 = arith.constant dense<0xFF800000> : vector<8xf32>
    %232 = vector.multi_reduction <maximumf>, %231, %cst_95 [1] : vector<8x8xf32> to vector<8xf32>
    %233 = vector.shape_cast %232 : vector<8xf32> to vector<8x1xf32>
    %234 = vector.broadcast %233 : vector<8x1xf32> to vector<8x8xf32>
    %235 = arith.subf %231, %234 : vector<8x8xf32>
    %236 = math.exp %235 : vector<8x8xf32>
    %cst_96 = arith.constant dense<0.000000e+00> : vector<8xf32>
    %237 = vector.multi_reduction <add>, %236, %cst_96 [1] : vector<8x8xf32> to vector<8xf32>
    %238 = vector.shape_cast %237 : vector<8xf32> to vector<8x1xf32>
    %cst_97 = arith.constant 1.000000e+00 : f32
    %239 = vector.broadcast %cst_97 : f32 to vector<8x1xf32>
    %240 = arith.divf %239, %238 : vector<8x1xf32>
    %241 = vector.broadcast %240 : vector<8x1xf32> to vector<8x8xf32>
    %242 = arith.mulf %236, %241 : vector<8x8xf32>
    %cst_98 = arith.constant dense<0.000000e+00> : vector<8x8xf32>
    %243 = tpu.matmul %242, %228, %cst_98 {dimension_numbers = #tpu.dot_dimension_numbers<[1], [0], [0], [1], [0, 0, 1, 1], [], []>, precision = #tpu.contract_precision<fp32>} : vector<8x8xf32>, vector<8x8xf32>, vector<8x8xf32> -> vector<8x8xf32>
    %244 = vector.extract_strided_slice %8 {offsets = [16, 0], sizes = [8, 32], strides = [1, 1]} : vector<32x32xf32> to vector<8x32xf32>
    %cst_99 = arith.constant dense<0.000000e+00> : vector<8x32xf32>
    %245 = tpu.matmul %243, %244, %cst_99 {dimension_numbers = #tpu.dot_dimension_numbers<[1], [0], [0], [1], [0, 0, 1, 1], [], []>, precision = #tpu.contract_precision<fp32>} : vector<8x8xf32>, vector<8x32xf32>, vector<8x32xf32> -> vector<8x32xf32>
    %246 = arith.addf %225, %245 : vector<8x32xf32>
    %247 = vector.extract_strided_slice %183 {offsets = [0, 24], sizes = [8, 8], strides = [1, 1]} : vector<8x32xf32> to vector<8x8xf32>
    %248 = vector.extract_strided_slice %42 {offsets = [0, 24], sizes = [8, 8], strides = [1, 1]} : vector<8x64xf32> to vector<8x8xf32>
    %249 = vector.extract_strided_slice %42 {offsets = [0, 56], sizes = [8, 8], strides = [1, 1]} : vector<8x64xf32> to vector<8x8xf32>
    %cst_100 = arith.constant dense<0.000000e+00> : vector<8x8xf32>
    %250 = tpu.matmul %247, %248, %cst_100 {dimension_numbers = #tpu.dot_dimension_numbers<[1], [1], [0], [0], [0, 0, 1, 0], [], []>, precision = #tpu.contract_precision<fp32>} : vector<8x8xf32>, vector<8x8xf32>, vector<8x8xf32> -> vector<8x8xf32>
    %cst_101 = arith.constant 0.353553385 : f32
    %251 = vector.broadcast %cst_101 : f32 to vector<8x8xf32>
    %252 = arith.mulf %250, %251 : vector<8x8xf32>
    %cst_102 = arith.constant dense<0xFF800000> : vector<8xf32>
    %253 = vector.multi_reduction <maximumf>, %252, %cst_102 [1] : vector<8x8xf32> to vector<8xf32>
    %254 = vector.shape_cast %253 : vector<8xf32> to vector<8x1xf32>
    %255 = vector.broadcast %254 : vector<8x1xf32> to vector<8x8xf32>
    %256 = arith.subf %252, %255 : vector<8x8xf32>
    %257 = math.exp %256 : vector<8x8xf32>
    %cst_103 = arith.constant dense<0.000000e+00> : vector<8xf32>
    %258 = vector.multi_reduction <add>, %257, %cst_103 [1] : vector<8x8xf32> to vector<8xf32>
    %259 = vector.shape_cast %258 : vector<8xf32> to vector<8x1xf32>
    %cst_104 = arith.constant 1.000000e+00 : f32
    %260 = vector.broadcast %cst_104 : f32 to vector<8x1xf32>
    %261 = arith.divf %260, %259 : vector<8x1xf32>
    %262 = vector.broadcast %261 : vector<8x1xf32> to vector<8x8xf32>
    %263 = arith.mulf %257, %262 : vector<8x8xf32>
    %cst_105 = arith.constant dense<0.000000e+00> : vector<8x8xf32>
    %264 = tpu.matmul %263, %249, %cst_105 {dimension_numbers = #tpu.dot_dimension_numbers<[1], [0], [0], [1], [0, 0, 1, 1], [], []>, precision = #tpu.contract_precision<fp32>} : vector<8x8xf32>, vector<8x8xf32>, vector<8x8xf32> -> vector<8x8xf32>
    %265 = vector.extract_strided_slice %8 {offsets = [24, 0], sizes = [8, 32], strides = [1, 1]} : vector<32x32xf32> to vector<8x32xf32>
    %cst_106 = arith.constant dense<0.000000e+00> : vector<8x32xf32>
    %266 = tpu.matmul %264, %265, %cst_106 {dimension_numbers = #tpu.dot_dimension_numbers<[1], [0], [0], [1], [0, 0, 1, 1], [], []>, precision = #tpu.contract_precision<fp32>} : vector<8x8xf32>, vector<8x32xf32>, vector<8x32xf32> -> vector<8x32xf32>
    %267 = arith.addf %246, %266 : vector<8x32xf32>
    %268 = arith.addf %157, %267 : vector<8x32xf32>
    %cst_107 = arith.constant dense<0.000000e+00> : vector<8xf32>
    %269 = vector.multi_reduction <add>, %268, %cst_107 [1] : vector<8x32xf32> to vector<8xf32>
    %270 = vector.shape_cast %269 : vector<8xf32> to vector<8x1xf32>
    %271 = arith.mulf %268, %268 : vector<8x32xf32>
    %cst_108 = arith.constant dense<0.000000e+00> : vector<8xf32>
    %272 = vector.multi_reduction <add>, %271, %cst_108 [1] : vector<8x32xf32> to vector<8xf32>
    %273 = vector.shape_cast %272 : vector<8xf32> to vector<8x1xf32>
    %cst_109 = arith.constant 3.125000e-02 : f32
    %274 = vector.broadcast %cst_109 : f32 to vector<8x1xf32>
    %275 = arith.mulf %270, %274 : vector<8x1xf32>
    %276 = arith.mulf %270, %275 : vector<8x1xf32>
    %277 = arith.subf %273, %276 : vector<8x1xf32>
    %cst_110 = arith.constant 0.000000e+00 : f32
    %278 = vector.broadcast %cst_110 : f32 to vector<8x1xf32>
    %279 = arith.maximumf %277, %278 : vector<8x1xf32>
    %cst_111 = arith.constant 0.0322580636 : f32
    %280 = vector.broadcast %cst_111 : f32 to vector<8x1xf32>
    %281 = arith.mulf %279, %280 : vector<8x1xf32>
    %282 = vector.broadcast %275 : vector<8x1xf32> to vector<8x32xf32>
    %283 = arith.subf %268, %282 : vector<8x32xf32>
    %284 = vector.broadcast %16 : vector<1x32xf32> to vector<8x32xf32>
    %285 = arith.mulf %284, %283 : vector<8x32xf32>
    %286 = math.sqrt %281 : vector<8x1xf32>
    %cst_112 = arith.constant 9.99999997E-7 : f32
    %287 = vector.broadcast %cst_112 : f32 to vector<8x1xf32>
    %288 = arith.addf %286, %287 : vector<8x1xf32>
    %289 = vector.broadcast %288 : vector<8x1xf32> to vector<8x32xf32>
    %290 = arith.divf %285, %289 : vector<8x32xf32>
    %291 = vector.broadcast %17 : vector<1x32xf32> to vector<8x32xf32>
    %292 = arith.addf %290, %291 : vector<8x32xf32>
    %cst_113 = arith.constant dense<0.000000e+00> : vector<8x64xf32>
    %293 = tpu.matmul %292, %9, %cst_113 {dimension_numbers = #tpu.dot_dimension_numbers<[1], [0], [0], [1], [0, 0, 1, 1], [], []>, precision = #tpu.contract_precision<fp32>} : vector<8x32xf32>, vector<32x64xf32>, vector<8x64xf32> -> vector<8x64xf32>
    %294 = arith.addf %293, %34 : vector<8x64xf32>
    %cst_114 = arith.constant 0.000000e+00 : f32
    %295 = vector.broadcast %cst_114 : f32 to vector<8x64xf32>
    %296 = arith.maximumf %294, %295 : vector<8x64xf32>
    %cst_115 = arith.constant dense<0.000000e+00> : vector<8x32xf32>
    %297 = tpu.matmul %296, %10, %cst_115 {dimension_numbers = #tpu.dot_dimension_numbers<[1], [0], [0], [1], [0, 0, 1, 1], [], []>, precision = #tpu.contract_precision<fp32>} : vector<8x64xf32>, vector<64x32xf32>, vector<8x32xf32> -> vector<8x32xf32>
    %298 = arith.addf %268, %297 : vector<8x32xf32>
    %299 = arith.addf %298, %37 : vector<8x32xf32>
    %cst_116 = arith.constant dense<0.000000e+00> : vector<8xf32>
    %300 = vector.multi_reduction <add>, %299, %cst_116 [1] : vector<8x32xf32> to vector<8xf32>
    %301 = vector.shape_cast %300 : vector<8xf32> to vector<8x1xf32>
    %302 = arith.mulf %299, %299 : vector<8x32xf32>
    %cst_117 = arith.constant dense<0.000000e+00> : vector<8xf32>
    %303 = vector.multi_reduction <add>, %302, %cst_117 [1] : vector<8x32xf32> to vector<8xf32>
    %304 = vector.shape_cast %303 : vector<8xf32> to vector<8x1xf32>
    %cst_118 = arith.constant 3.125000e-02 : f32
    %305 = vector.broadcast %cst_118 : f32 to vector<8x1xf32>
    %306 = arith.mulf %301, %305 : vector<8x1xf32>
    %307 = arith.mulf %301, %306 : vector<8x1xf32>
    %308 = arith.subf %304, %307 : vector<8x1xf32>
    %cst_119 = arith.constant 0.000000e+00 : f32
    %309 = vector.broadcast %cst_119 : f32 to vector<8x1xf32>
    %310 = arith.maximumf %308, %309 : vector<8x1xf32>
    %cst_120 = arith.constant 0.0322580636 : f32
    %311 = vector.broadcast %cst_120 : f32 to vector<8x1xf32>
    %312 = arith.mulf %310, %311 : vector<8x1xf32>
    %313 = vector.broadcast %306 : vector<8x1xf32> to vector<8x32xf32>
    %314 = arith.subf %299, %313 : vector<8x32xf32>
    %315 = vector.broadcast %12 : vector<1x32xf32> to vector<8x32xf32>
    %316 = arith.mulf %315, %314 : vector<8x32xf32>
    %317 = math.sqrt %312 : vector<8x1xf32>
    %cst_121 = arith.constant 9.99999997E-7 : f32
    %318 = vector.broadcast %cst_121 : f32 to vector<8x1xf32>
    %319 = arith.addf %317, %318 : vector<8x1xf32>
    %320 = vector.broadcast %319 : vector<8x1xf32> to vector<8x32xf32>
    %321 = arith.divf %316, %320 : vector<8x32xf32>
    %322 = vector.broadcast %13 : vector<1x32xf32> to vector<8x32xf32>
    %323 = arith.addf %321, %322 : vector<8x32xf32>
    %cst_122 = arith.constant dense<0.000000e+00> : vector<8x96xf32>
    %324 = tpu.matmul %323, %5, %cst_122 {dimension_numbers = #tpu.dot_dimension_numbers<[1], [0], [0], [1], [0, 0, 1, 1], [], []>, precision = #tpu.contract_precision<fp32>} : vector<8x32xf32>, vector<32x96xf32>, vector<8x96xf32> -> vector<8x96xf32>
    %325 = arith.addf %324, %22 : vector<8x96xf32>
    %326 = vector.extract_strided_slice %325 {offsets = [0, 0], sizes = [8, 8], strides = [1, 1]} : vector<8x96xf32> to vector<8x8xf32>
    %327 = vector.extract_strided_slice %325 {offsets = [0, 32], sizes = [8, 8], strides = [1, 1]} : vector<8x96xf32> to vector<8x8xf32>
    %328 = vector.extract_strided_slice %325 {offsets = [0, 64], sizes = [8, 8], strides = [1, 1]} : vector<8x96xf32> to vector<8x8xf32>
    %cst_123 = arith.constant dense<0.000000e+00> : vector<8x8xf32>
    %329 = tpu.matmul %326, %327, %cst_123 {dimension_numbers = #tpu.dot_dimension_numbers<[1], [1], [0], [0], [0, 0, 1, 0], [], []>, precision = #tpu.contract_precision<fp32>} : vector<8x8xf32>, vector<8x8xf32>, vector<8x8xf32> -> vector<8x8xf32>
    %cst_124 = arith.constant 0.353553385 : f32
    %330 = vector.broadcast %cst_124 : f32 to vector<8x8xf32>
    %331 = arith.mulf %329, %330 : vector<8x8xf32>
    %332 = arith.addf %331, %4 : vector<8x8xf32>
    %cst_125 = arith.constant dense<0xFF800000> : vector<8xf32>
    %333 = vector.multi_reduction <maximumf>, %332, %cst_125 [1] : vector<8x8xf32> to vector<8xf32>
    %334 = vector.shape_cast %333 : vector<8xf32> to vector<8x1xf32>
    %335 = vector.broadcast %334 : vector<8x1xf32> to vector<8x8xf32>
    %336 = arith.subf %332, %335 : vector<8x8xf32>
    %337 = math.exp %336 : vector<8x8xf32>
    %cst_126 = arith.constant dense<0.000000e+00> : vector<8xf32>
    %338 = vector.multi_reduction <add>, %337, %cst_126 [1] : vector<8x8xf32> to vector<8xf32>
    %339 = vector.shape_cast %338 : vector<8xf32> to vector<8x1xf32>
    %cst_127 = arith.constant 1.000000e+00 : f32
    %340 = vector.broadcast %cst_127 : f32 to vector<8x1xf32>
    %341 = arith.divf %340, %339 : vector<8x1xf32>
    %342 = vector.broadcast %341 : vector<8x1xf32> to vector<8x8xf32>
    %343 = arith.mulf %337, %342 : vector<8x8xf32>
    %cst_128 = arith.constant dense<0.000000e+00> : vector<8x8xf32>
    %344 = tpu.matmul %343, %328, %cst_128 {dimension_numbers = #tpu.dot_dimension_numbers<[1], [0], [0], [1], [0, 0, 1, 1], [], []>, precision = #tpu.contract_precision<fp32>} : vector<8x8xf32>, vector<8x8xf32>, vector<8x8xf32> -> vector<8x8xf32>
    %345 = vector.extract_strided_slice %7 {offsets = [0, 0], sizes = [8, 32], strides = [1, 1]} : vector<32x32xf32> to vector<8x32xf32>
    %cst_129 = arith.constant dense<0.000000e+00> : vector<8x32xf32>
    %346 = tpu.matmul %344, %345, %cst_129 {dimension_numbers = #tpu.dot_dimension_numbers<[1], [0], [0], [1], [0, 0, 1, 1], [], []>, precision = #tpu.contract_precision<fp32>} : vector<8x8xf32>, vector<8x32xf32>, vector<8x32xf32> -> vector<8x32xf32>
    %347 = arith.addf %28, %346 : vector<8x32xf32>
    %348 = vector.extract_strided_slice %325 {offsets = [0, 8], sizes = [8, 8], strides = [1, 1]} : vector<8x96xf32> to vector<8x8xf32>
    %349 = vector.extract_strided_slice %325 {offsets = [0, 40], sizes = [8, 8], strides = [1, 1]} : vector<8x96xf32> to vector<8x8xf32>
    %350 = vector.extract_strided_slice %325 {offsets = [0, 72], sizes = [8, 8], strides = [1, 1]} : vector<8x96xf32> to vector<8x8xf32>
    %cst_130 = arith.constant dense<0.000000e+00> : vector<8x8xf32>
    %351 = tpu.matmul %348, %349, %cst_130 {dimension_numbers = #tpu.dot_dimension_numbers<[1], [1], [0], [0], [0, 0, 1, 0], [], []>, precision = #tpu.contract_precision<fp32>} : vector<8x8xf32>, vector<8x8xf32>, vector<8x8xf32> -> vector<8x8xf32>
    %cst_131 = arith.constant 0.353553385 : f32
    %352 = vector.broadcast %cst_131 : f32 to vector<8x8xf32>
    %353 = arith.mulf %351, %352 : vector<8x8xf32>
    %354 = arith.addf %353, %4 : vector<8x8xf32>
    %cst_132 = arith.constant dense<0xFF800000> : vector<8xf32>
    %355 = vector.multi_reduction <maximumf>, %354, %cst_132 [1] : vector<8x8xf32> to vector<8xf32>
    %356 = vector.shape_cast %355 : vector<8xf32> to vector<8x1xf32>
    %357 = vector.broadcast %356 : vector<8x1xf32> to vector<8x8xf32>
    %358 = arith.subf %354, %357 : vector<8x8xf32>
    %359 = math.exp %358 : vector<8x8xf32>
    %cst_133 = arith.constant dense<0.000000e+00> : vector<8xf32>
    %360 = vector.multi_reduction <add>, %359, %cst_133 [1] : vector<8x8xf32> to vector<8xf32>
    %361 = vector.shape_cast %360 : vector<8xf32> to vector<8x1xf32>
    %cst_134 = arith.constant 1.000000e+00 : f32
    %362 = vector.broadcast %cst_134 : f32 to vector<8x1xf32>
    %363 = arith.divf %362, %361 : vector<8x1xf32>
    %364 = vector.broadcast %363 : vector<8x1xf32> to vector<8x8xf32>
    %365 = arith.mulf %359, %364 : vector<8x8xf32>
    %cst_135 = arith.constant dense<0.000000e+00> : vector<8x8xf32>
    %366 = tpu.matmul %365, %350, %cst_135 {dimension_numbers = #tpu.dot_dimension_numbers<[1], [0], [0], [1], [0, 0, 1, 1], [], []>, precision = #tpu.contract_precision<fp32>} : vector<8x8xf32>, vector<8x8xf32>, vector<8x8xf32> -> vector<8x8xf32>
    %367 = vector.extract_strided_slice %7 {offsets = [8, 0], sizes = [8, 32], strides = [1, 1]} : vector<32x32xf32> to vector<8x32xf32>
    %cst_136 = arith.constant dense<0.000000e+00> : vector<8x32xf32>
    %368 = tpu.matmul %366, %367, %cst_136 {dimension_numbers = #tpu.dot_dimension_numbers<[1], [0], [0], [1], [0, 0, 1, 1], [], []>, precision = #tpu.contract_precision<fp32>} : vector<8x8xf32>, vector<8x32xf32>, vector<8x32xf32> -> vector<8x32xf32>
    %369 = arith.addf %347, %368 : vector<8x32xf32>
    %370 = vector.extract_strided_slice %325 {offsets = [0, 16], sizes = [8, 8], strides = [1, 1]} : vector<8x96xf32> to vector<8x8xf32>
    %371 = vector.extract_strided_slice %325 {offsets = [0, 48], sizes = [8, 8], strides = [1, 1]} : vector<8x96xf32> to vector<8x8xf32>
    %372 = vector.extract_strided_slice %325 {offsets = [0, 80], sizes = [8, 8], strides = [1, 1]} : vector<8x96xf32> to vector<8x8xf32>
    %cst_137 = arith.constant dense<0.000000e+00> : vector<8x8xf32>
    %373 = tpu.matmul %370, %371, %cst_137 {dimension_numbers = #tpu.dot_dimension_numbers<[1], [1], [0], [0], [0, 0, 1, 0], [], []>, precision = #tpu.contract_precision<fp32>} : vector<8x8xf32>, vector<8x8xf32>, vector<8x8xf32> -> vector<8x8xf32>
    %cst_138 = arith.constant 0.353553385 : f32
    %374 = vector.broadcast %cst_138 : f32 to vector<8x8xf32>
    %375 = arith.mulf %373, %374 : vector<8x8xf32>
    %376 = arith.addf %375, %4 : vector<8x8xf32>
    %cst_139 = arith.constant dense<0xFF800000> : vector<8xf32>
    %377 = vector.multi_reduction <maximumf>, %376, %cst_139 [1] : vector<8x8xf32> to vector<8xf32>
    %378 = vector.shape_cast %377 : vector<8xf32> to vector<8x1xf32>
    %379 = vector.broadcast %378 : vector<8x1xf32> to vector<8x8xf32>
    %380 = arith.subf %376, %379 : vector<8x8xf32>
    %381 = math.exp %380 : vector<8x8xf32>
    %cst_140 = arith.constant dense<0.000000e+00> : vector<8xf32>
    %382 = vector.multi_reduction <add>, %381, %cst_140 [1] : vector<8x8xf32> to vector<8xf32>
    %383 = vector.shape_cast %382 : vector<8xf32> to vector<8x1xf32>
    %cst_141 = arith.constant 1.000000e+00 : f32
    %384 = vector.broadcast %cst_141 : f32 to vector<8x1xf32>
    %385 = arith.divf %384, %383 : vector<8x1xf32>
    %386 = vector.broadcast %385 : vector<8x1xf32> to vector<8x8xf32>
    %387 = arith.mulf %381, %386 : vector<8x8xf32>
    %cst_142 = arith.constant dense<0.000000e+00> : vector<8x8xf32>
    %388 = tpu.matmul %387, %372, %cst_142 {dimension_numbers = #tpu.dot_dimension_numbers<[1], [0], [0], [1], [0, 0, 1, 1], [], []>, precision = #tpu.contract_precision<fp32>} : vector<8x8xf32>, vector<8x8xf32>, vector<8x8xf32> -> vector<8x8xf32>
    %389 = vector.extract_strided_slice %7 {offsets = [16, 0], sizes = [8, 32], strides = [1, 1]} : vector<32x32xf32> to vector<8x32xf32>
    %cst_143 = arith.constant dense<0.000000e+00> : vector<8x32xf32>
    %390 = tpu.matmul %388, %389, %cst_143 {dimension_numbers = #tpu.dot_dimension_numbers<[1], [0], [0], [1], [0, 0, 1, 1], [], []>, precision = #tpu.contract_precision<fp32>} : vector<8x8xf32>, vector<8x32xf32>, vector<8x32xf32> -> vector<8x32xf32>
    %391 = arith.addf %369, %390 : vector<8x32xf32>
    %392 = vector.extract_strided_slice %325 {offsets = [0, 24], sizes = [8, 8], strides = [1, 1]} : vector<8x96xf32> to vector<8x8xf32>
    %393 = vector.extract_strided_slice %325 {offsets = [0, 56], sizes = [8, 8], strides = [1, 1]} : vector<8x96xf32> to vector<8x8xf32>
    %394 = vector.extract_strided_slice %325 {offsets = [0, 88], sizes = [8, 8], strides = [1, 1]} : vector<8x96xf32> to vector<8x8xf32>
    %cst_144 = arith.constant dense<0.000000e+00> : vector<8x8xf32>
    %395 = tpu.matmul %392, %393, %cst_144 {dimension_numbers = #tpu.dot_dimension_numbers<[1], [1], [0], [0], [0, 0, 1, 0], [], []>, precision = #tpu.contract_precision<fp32>} : vector<8x8xf32>, vector<8x8xf32>, vector<8x8xf32> -> vector<8x8xf32>
    %cst_145 = arith.constant 0.353553385 : f32
    %396 = vector.broadcast %cst_145 : f32 to vector<8x8xf32>
    %397 = arith.mulf %395, %396 : vector<8x8xf32>
    %398 = arith.addf %397, %4 : vector<8x8xf32>
    %cst_146 = arith.constant dense<0xFF800000> : vector<8xf32>
    %399 = vector.multi_reduction <maximumf>, %398, %cst_146 [1] : vector<8x8xf32> to vector<8xf32>
    %400 = vector.shape_cast %399 : vector<8xf32> to vector<8x1xf32>
    %401 = vector.broadcast %400 : vector<8x1xf32> to vector<8x8xf32>
    %402 = arith.subf %398, %401 : vector<8x8xf32>
    %403 = math.exp %402 : vector<8x8xf32>
    %cst_147 = arith.constant dense<0.000000e+00> : vector<8xf32>
    %404 = vector.multi_reduction <add>, %403, %cst_147 [1] : vector<8x8xf32> to vector<8xf32>
    %405 = vector.shape_cast %404 : vector<8xf32> to vector<8x1xf32>
    %cst_148 = arith.constant 1.000000e+00 : f32
    %406 = vector.broadcast %cst_148 : f32 to vector<8x1xf32>
    %407 = arith.divf %406, %405 : vector<8x1xf32>
    %408 = vector.broadcast %407 : vector<8x1xf32> to vector<8x8xf32>
    %409 = arith.mulf %403, %408 : vector<8x8xf32>
    %cst_149 = arith.constant dense<0.000000e+00> : vector<8x8xf32>
    %410 = tpu.matmul %409, %394, %cst_149 {dimension_numbers = #tpu.dot_dimension_numbers<[1], [0], [0], [1], [0, 0, 1, 1], [], []>, precision = #tpu.contract_precision<fp32>} : vector<8x8xf32>, vector<8x8xf32>, vector<8x8xf32> -> vector<8x8xf32>
    %411 = vector.extract_strided_slice %7 {offsets = [24, 0], sizes = [8, 32], strides = [1, 1]} : vector<32x32xf32> to vector<8x32xf32>
    %cst_150 = arith.constant dense<0.000000e+00> : vector<8x32xf32>
    %412 = tpu.matmul %410, %411, %cst_150 {dimension_numbers = #tpu.dot_dimension_numbers<[1], [0], [0], [1], [0, 0, 1, 1], [], []>, precision = #tpu.contract_precision<fp32>} : vector<8x8xf32>, vector<8x32xf32>, vector<8x32xf32> -> vector<8x32xf32>
    %413 = arith.addf %391, %412 : vector<8x32xf32>
    %414 = arith.addf %299, %413 : vector<8x32xf32>
    %cst_151 = arith.constant dense<0.000000e+00> : vector<8xf32>
    %415 = vector.multi_reduction <add>, %414, %cst_151 [1] : vector<8x32xf32> to vector<8xf32>
    %416 = vector.shape_cast %415 : vector<8xf32> to vector<8x1xf32>
    %417 = arith.mulf %414, %414 : vector<8x32xf32>
    %cst_152 = arith.constant dense<0.000000e+00> : vector<8xf32>
    %418 = vector.multi_reduction <add>, %417, %cst_152 [1] : vector<8x32xf32> to vector<8xf32>
    %419 = vector.shape_cast %418 : vector<8xf32> to vector<8x1xf32>
    %cst_153 = arith.constant 3.125000e-02 : f32
    %420 = vector.broadcast %cst_153 : f32 to vector<8x1xf32>
    %421 = arith.mulf %416, %420 : vector<8x1xf32>
    %422 = arith.mulf %416, %421 : vector<8x1xf32>
    %423 = arith.subf %419, %422 : vector<8x1xf32>
    %cst_154 = arith.constant 0.000000e+00 : f32
    %424 = vector.broadcast %cst_154 : f32 to vector<8x1xf32>
    %425 = arith.maximumf %423, %424 : vector<8x1xf32>
    %cst_155 = arith.constant 0.0322580636 : f32
    %426 = vector.broadcast %cst_155 : f32 to vector<8x1xf32>
    %427 = arith.mulf %425, %426 : vector<8x1xf32>
    %428 = vector.broadcast %421 : vector<8x1xf32> to vector<8x32xf32>
    %429 = arith.subf %414, %428 : vector<8x32xf32>
    %430 = vector.broadcast %14 : vector<1x32xf32> to vector<8x32xf32>
    %431 = arith.mulf %430, %429 : vector<8x32xf32>
    %432 = math.sqrt %427 : vector<8x1xf32>
    %cst_156 = arith.constant 9.99999997E-7 : f32
    %433 = vector.broadcast %cst_156 : f32 to vector<8x1xf32>
    %434 = arith.addf %432, %433 : vector<8x1xf32>
    %435 = vector.broadcast %434 : vector<8x1xf32> to vector<8x32xf32>
    %436 = arith.divf %431, %435 : vector<8x32xf32>
    %437 = vector.broadcast %15 : vector<1x32xf32> to vector<8x32xf32>
    %438 = arith.addf %436, %437 : vector<8x32xf32>
    %cst_157 = arith.constant dense<0.000000e+00> : vector<8x32xf32>
    %439 = tpu.matmul %438, %6, %cst_157 {dimension_numbers = #tpu.dot_dimension_numbers<[1], [0], [0], [1], [0, 0, 1, 1], [], []>, precision = #tpu.contract_precision<fp32>} : vector<8x32xf32>, vector<32x32xf32>, vector<8x32xf32> -> vector<8x32xf32>
    %440 = arith.addf %439, %25 : vector<8x32xf32>
    %441 = vector.extract_strided_slice %440 {offsets = [0, 0], sizes = [8, 8], strides = [1, 1]} : vector<8x32xf32> to vector<8x8xf32>
    %442 = vector.extract_strided_slice %42 {offsets = [0, 0], sizes = [8, 8], strides = [1, 1]} : vector<8x64xf32> to vector<8x8xf32>
    %443 = vector.extract_strided_slice %42 {offsets = [0, 32], sizes = [8, 8], strides = [1, 1]} : vector<8x64xf32> to vector<8x8xf32>
    %cst_158 = arith.constant dense<0.000000e+00> : vector<8x8xf32>
    %444 = tpu.matmul %441, %442, %cst_158 {dimension_numbers = #tpu.dot_dimension_numbers<[1], [1], [0], [0], [0, 0, 1, 0], [], []>, precision = #tpu.contract_precision<fp32>} : vector<8x8xf32>, vector<8x8xf32>, vector<8x8xf32> -> vector<8x8xf32>
    %cst_159 = arith.constant 0.353553385 : f32
    %445 = vector.broadcast %cst_159 : f32 to vector<8x8xf32>
    %446 = arith.mulf %444, %445 : vector<8x8xf32>
    %cst_160 = arith.constant dense<0xFF800000> : vector<8xf32>
    %447 = vector.multi_reduction <maximumf>, %446, %cst_160 [1] : vector<8x8xf32> to vector<8xf32>
    %448 = vector.shape_cast %447 : vector<8xf32> to vector<8x1xf32>
    %449 = vector.broadcast %448 : vector<8x1xf32> to vector<8x8xf32>
    %450 = arith.subf %446, %449 : vector<8x8xf32>
    %451 = math.exp %450 : vector<8x8xf32>
    %cst_161 = arith.constant dense<0.000000e+00> : vector<8xf32>
    %452 = vector.multi_reduction <add>, %451, %cst_161 [1] : vector<8x8xf32> to vector<8xf32>
    %453 = vector.shape_cast %452 : vector<8xf32> to vector<8x1xf32>
    %cst_162 = arith.constant 1.000000e+00 : f32
    %454 = vector.broadcast %cst_162 : f32 to vector<8x1xf32>
    %455 = arith.divf %454, %453 : vector<8x1xf32>
    %456 = vector.broadcast %455 : vector<8x1xf32> to vector<8x8xf32>
    %457 = arith.mulf %451, %456 : vector<8x8xf32>
    %cst_163 = arith.constant dense<0.000000e+00> : vector<8x8xf32>
    %458 = tpu.matmul %457, %443, %cst_163 {dimension_numbers = #tpu.dot_dimension_numbers<[1], [0], [0], [1], [0, 0, 1, 1], [], []>, precision = #tpu.contract_precision<fp32>} : vector<8x8xf32>, vector<8x8xf32>, vector<8x8xf32> -> vector<8x8xf32>
    %459 = vector.extract_strided_slice %8 {offsets = [0, 0], sizes = [8, 32], strides = [1, 1]} : vector<32x32xf32> to vector<8x32xf32>
    %cst_164 = arith.constant dense<0.000000e+00> : vector<8x32xf32>
    %460 = tpu.matmul %458, %459, %cst_164 {dimension_numbers = #tpu.dot_dimension_numbers<[1], [0], [0], [1], [0, 0, 1, 1], [], []>, precision = #tpu.contract_precision<fp32>} : vector<8x8xf32>, vector<8x32xf32>, vector<8x32xf32> -> vector<8x32xf32>
    %461 = arith.addf %31, %460 : vector<8x32xf32>
    %462 = vector.extract_strided_slice %440 {offsets = [0, 8], sizes = [8, 8], strides = [1, 1]} : vector<8x32xf32> to vector<8x8xf32>
    %463 = vector.extract_strided_slice %42 {offsets = [0, 8], sizes = [8, 8], strides = [1, 1]} : vector<8x64xf32> to vector<8x8xf32>
    %464 = vector.extract_strided_slice %42 {offsets = [0, 40], sizes = [8, 8], strides = [1, 1]} : vector<8x64xf32> to vector<8x8xf32>
    %cst_165 = arith.constant dense<0.000000e+00> : vector<8x8xf32>
    %465 = tpu.matmul %462, %463, %cst_165 {dimension_numbers = #tpu.dot_dimension_numbers<[1], [1], [0], [0], [0, 0, 1, 0], [], []>, precision = #tpu.contract_precision<fp32>} : vector<8x8xf32>, vector<8x8xf32>, vector<8x8xf32> -> vector<8x8xf32>
    %cst_166 = arith.constant 0.353553385 : f32
    %466 = vector.broadcast %cst_166 : f32 to vector<8x8xf32>
    %467 = arith.mulf %465, %466 : vector<8x8xf32>
    %cst_167 = arith.constant dense<0xFF800000> : vector<8xf32>
    %468 = vector.multi_reduction <maximumf>, %467, %cst_167 [1] : vector<8x8xf32> to vector<8xf32>
    %469 = vector.shape_cast %468 : vector<8xf32> to vector<8x1xf32>
    %470 = vector.broadcast %469 : vector<8x1xf32> to vector<8x8xf32>
    %471 = arith.subf %467, %470 : vector<8x8xf32>
    %472 = math.exp %471 : vector<8x8xf32>
    %cst_168 = arith.constant dense<0.000000e+00> : vector<8xf32>
    %473 = vector.multi_reduction <add>, %472, %cst_168 [1] : vector<8x8xf32> to vector<8xf32>
    %474 = vector.shape_cast %473 : vector<8xf32> to vector<8x1xf32>
    %cst_169 = arith.constant 1.000000e+00 : f32
    %475 = vector.broadcast %cst_169 : f32 to vector<8x1xf32>
    %476 = arith.divf %475, %474 : vector<8x1xf32>
    %477 = vector.broadcast %476 : vector<8x1xf32> to vector<8x8xf32>
    %478 = arith.mulf %472, %477 : vector<8x8xf32>
    %cst_170 = arith.constant dense<0.000000e+00> : vector<8x8xf32>
    %479 = tpu.matmul %478, %464, %cst_170 {dimension_numbers = #tpu.dot_dimension_numbers<[1], [0], [0], [1], [0, 0, 1, 1], [], []>, precision = #tpu.contract_precision<fp32>} : vector<8x8xf32>, vector<8x8xf32>, vector<8x8xf32> -> vector<8x8xf32>
    %480 = vector.extract_strided_slice %8 {offsets = [8, 0], sizes = [8, 32], strides = [1, 1]} : vector<32x32xf32> to vector<8x32xf32>
    %cst_171 = arith.constant dense<0.000000e+00> : vector<8x32xf32>
    %481 = tpu.matmul %479, %480, %cst_171 {dimension_numbers = #tpu.dot_dimension_numbers<[1], [0], [0], [1], [0, 0, 1, 1], [], []>, precision = #tpu.contract_precision<fp32>} : vector<8x8xf32>, vector<8x32xf32>, vector<8x32xf32> -> vector<8x32xf32>
    %482 = arith.addf %461, %481 : vector<8x32xf32>
    %483 = vector.extract_strided_slice %440 {offsets = [0, 16], sizes = [8, 8], strides = [1, 1]} : vector<8x32xf32> to vector<8x8xf32>
    %484 = vector.extract_strided_slice %42 {offsets = [0, 16], sizes = [8, 8], strides = [1, 1]} : vector<8x64xf32> to vector<8x8xf32>
    %485 = vector.extract_strided_slice %42 {offsets = [0, 48], sizes = [8, 8], strides = [1, 1]} : vector<8x64xf32> to vector<8x8xf32>
    %cst_172 = arith.constant dense<0.000000e+00> : vector<8x8xf32>
    %486 = tpu.matmul %483, %484, %cst_172 {dimension_numbers = #tpu.dot_dimension_numbers<[1], [1], [0], [0], [0, 0, 1, 0], [], []>, precision = #tpu.contract_precision<fp32>} : vector<8x8xf32>, vector<8x8xf32>, vector<8x8xf32> -> vector<8x8xf32>
    %cst_173 = arith.constant 0.353553385 : f32
    %487 = vector.broadcast %cst_173 : f32 to vector<8x8xf32>
    %488 = arith.mulf %486, %487 : vector<8x8xf32>
    %cst_174 = arith.constant dense<0xFF800000> : vector<8xf32>
    %489 = vector.multi_reduction <maximumf>, %488, %cst_174 [1] : vector<8x8xf32> to vector<8xf32>
    %490 = vector.shape_cast %489 : vector<8xf32> to vector<8x1xf32>
    %491 = vector.broadcast %490 : vector<8x1xf32> to vector<8x8xf32>
    %492 = arith.subf %488, %491 : vector<8x8xf32>
    %493 = math.exp %492 : vector<8x8xf32>
    %cst_175 = arith.constant dense<0.000000e+00> : vector<8xf32>
    %494 = vector.multi_reduction <add>, %493, %cst_175 [1] : vector<8x8xf32> to vector<8xf32>
    %495 = vector.shape_cast %494 : vector<8xf32> to vector<8x1xf32>
    %cst_176 = arith.constant 1.000000e+00 : f32
    %496 = vector.broadcast %cst_176 : f32 to vector<8x1xf32>
    %497 = arith.divf %496, %495 : vector<8x1xf32>
    %498 = vector.broadcast %497 : vector<8x1xf32> to vector<8x8xf32>
    %499 = arith.mulf %493, %498 : vector<8x8xf32>
    %cst_177 = arith.constant dense<0.000000e+00> : vector<8x8xf32>
    %500 = tpu.matmul %499, %485, %cst_177 {dimension_numbers = #tpu.dot_dimension_numbers<[1], [0], [0], [1], [0, 0, 1, 1], [], []>, precision = #tpu.contract_precision<fp32>} : vector<8x8xf32>, vector<8x8xf32>, vector<8x8xf32> -> vector<8x8xf32>
    %501 = vector.extract_strided_slice %8 {offsets = [16, 0], sizes = [8, 32], strides = [1, 1]} : vector<32x32xf32> to vector<8x32xf32>
    %cst_178 = arith.constant dense<0.000000e+00> : vector<8x32xf32>
    %502 = tpu.matmul %500, %501, %cst_178 {dimension_numbers = #tpu.dot_dimension_numbers<[1], [0], [0], [1], [0, 0, 1, 1], [], []>, precision = #tpu.contract_precision<fp32>} : vector<8x8xf32>, vector<8x32xf32>, vector<8x32xf32> -> vector<8x32xf32>
    %503 = arith.addf %482, %502 : vector<8x32xf32>
    %504 = vector.extract_strided_slice %440 {offsets = [0, 24], sizes = [8, 8], strides = [1, 1]} : vector<8x32xf32> to vector<8x8xf32>
    %505 = vector.extract_strided_slice %42 {offsets = [0, 24], sizes = [8, 8], strides = [1, 1]} : vector<8x64xf32> to vector<8x8xf32>
    %506 = vector.extract_strided_slice %42 {offsets = [0, 56], sizes = [8, 8], strides = [1, 1]} : vector<8x64xf32> to vector<8x8xf32>
    %cst_179 = arith.constant dense<0.000000e+00> : vector<8x8xf32>
    %507 = tpu.matmul %504, %505, %cst_179 {dimension_numbers = #tpu.dot_dimension_numbers<[1], [1], [0], [0], [0, 0, 1, 0], [], []>, precision = #tpu.contract_precision<fp32>} : vector<8x8xf32>, vector<8x8xf32>, vector<8x8xf32> -> vector<8x8xf32>
    %cst_180 = arith.constant 0.353553385 : f32
    %508 = vector.broadcast %cst_180 : f32 to vector<8x8xf32>
    %509 = arith.mulf %507, %508 : vector<8x8xf32>
    %cst_181 = arith.constant dense<0xFF800000> : vector<8xf32>
    %510 = vector.multi_reduction <maximumf>, %509, %cst_181 [1] : vector<8x8xf32> to vector<8xf32>
    %511 = vector.shape_cast %510 : vector<8xf32> to vector<8x1xf32>
    %512 = vector.broadcast %511 : vector<8x1xf32> to vector<8x8xf32>
    %513 = arith.subf %509, %512 : vector<8x8xf32>
    %514 = math.exp %513 : vector<8x8xf32>
    %cst_182 = arith.constant dense<0.000000e+00> : vector<8xf32>
    %515 = vector.multi_reduction <add>, %514, %cst_182 [1] : vector<8x8xf32> to vector<8xf32>
    %516 = vector.shape_cast %515 : vector<8xf32> to vector<8x1xf32>
    %cst_183 = arith.constant 1.000000e+00 : f32
    %517 = vector.broadcast %cst_183 : f32 to vector<8x1xf32>
    %518 = arith.divf %517, %516 : vector<8x1xf32>
    %519 = vector.broadcast %518 : vector<8x1xf32> to vector<8x8xf32>
    %520 = arith.mulf %514, %519 : vector<8x8xf32>
    %cst_184 = arith.constant dense<0.000000e+00> : vector<8x8xf32>
    %521 = tpu.matmul %520, %506, %cst_184 {dimension_numbers = #tpu.dot_dimension_numbers<[1], [0], [0], [1], [0, 0, 1, 1], [], []>, precision = #tpu.contract_precision<fp32>} : vector<8x8xf32>, vector<8x8xf32>, vector<8x8xf32> -> vector<8x8xf32>
    %522 = vector.extract_strided_slice %8 {offsets = [24, 0], sizes = [8, 32], strides = [1, 1]} : vector<32x32xf32> to vector<8x32xf32>
    %cst_185 = arith.constant dense<0.000000e+00> : vector<8x32xf32>
    %523 = tpu.matmul %521, %522, %cst_185 {dimension_numbers = #tpu.dot_dimension_numbers<[1], [0], [0], [1], [0, 0, 1, 1], [], []>, precision = #tpu.contract_precision<fp32>} : vector<8x8xf32>, vector<8x32xf32>, vector<8x32xf32> -> vector<8x32xf32>
    %524 = arith.addf %503, %523 : vector<8x32xf32>
    %525 = arith.addf %414, %524 : vector<8x32xf32>
    %cst_186 = arith.constant dense<0.000000e+00> : vector<8xf32>
    %526 = vector.multi_reduction <add>, %525, %cst_186 [1] : vector<8x32xf32> to vector<8xf32>
    %527 = vector.shape_cast %526 : vector<8xf32> to vector<8x1xf32>
    %528 = arith.mulf %525, %525 : vector<8x32xf32>
    %cst_187 = arith.constant dense<0.000000e+00> : vector<8xf32>
    %529 = vector.multi_reduction <add>, %528, %cst_187 [1] : vector<8x32xf32> to vector<8xf32>
    %530 = vector.shape_cast %529 : vector<8xf32> to vector<8x1xf32>
    %cst_188 = arith.constant 3.125000e-02 : f32
    %531 = vector.broadcast %cst_188 : f32 to vector<8x1xf32>
    %532 = arith.mulf %527, %531 : vector<8x1xf32>
    %533 = arith.mulf %527, %532 : vector<8x1xf32>
    %534 = arith.subf %530, %533 : vector<8x1xf32>
    %cst_189 = arith.constant 0.000000e+00 : f32
    %535 = vector.broadcast %cst_189 : f32 to vector<8x1xf32>
    %536 = arith.maximumf %534, %535 : vector<8x1xf32>
    %cst_190 = arith.constant 0.0322580636 : f32
    %537 = vector.broadcast %cst_190 : f32 to vector<8x1xf32>
    %538 = arith.mulf %536, %537 : vector<8x1xf32>
    %539 = vector.broadcast %532 : vector<8x1xf32> to vector<8x32xf32>
    %540 = arith.subf %525, %539 : vector<8x32xf32>
    %541 = vector.broadcast %16 : vector<1x32xf32> to vector<8x32xf32>
    %542 = arith.mulf %541, %540 : vector<8x32xf32>
    %543 = math.sqrt %538 : vector<8x1xf32>
    %cst_191 = arith.constant 9.99999997E-7 : f32
    %544 = vector.broadcast %cst_191 : f32 to vector<8x1xf32>
    %545 = arith.addf %543, %544 : vector<8x1xf32>
    %546 = vector.broadcast %545 : vector<8x1xf32> to vector<8x32xf32>
    %547 = arith.divf %542, %546 : vector<8x32xf32>
    %548 = vector.broadcast %17 : vector<1x32xf32> to vector<8x32xf32>
    %549 = arith.addf %547, %548 : vector<8x32xf32>
    %cst_192 = arith.constant dense<0.000000e+00> : vector<8x64xf32>
    %550 = tpu.matmul %549, %9, %cst_192 {dimension_numbers = #tpu.dot_dimension_numbers<[1], [0], [0], [1], [0, 0, 1, 1], [], []>, precision = #tpu.contract_precision<fp32>} : vector<8x32xf32>, vector<32x64xf32>, vector<8x64xf32> -> vector<8x64xf32>
    %551 = arith.addf %550, %34 : vector<8x64xf32>
    %cst_193 = arith.constant 0.000000e+00 : f32
    %552 = vector.broadcast %cst_193 : f32 to vector<8x64xf32>
    %553 = arith.maximumf %551, %552 : vector<8x64xf32>
    %cst_194 = arith.constant dense<0.000000e+00> : vector<8x32xf32>
    %554 = tpu.matmul %553, %10, %cst_194 {dimension_numbers = #tpu.dot_dimension_numbers<[1], [0], [0], [1], [0, 0, 1, 1], [], []>, precision = #tpu.contract_precision<fp32>} : vector<8x64xf32>, vector<64x32xf32>, vector<8x32xf32> -> vector<8x32xf32>
    %555 = arith.addf %525, %554 : vector<8x32xf32>
    %556 = arith.addf %555, %37 : vector<8x32xf32>
    %cst_195 = arith.constant dense<0.000000e+00> : vector<8xf32>
    %557 = vector.multi_reduction <add>, %556, %cst_195 [1] : vector<8x32xf32> to vector<8xf32>
    %558 = vector.shape_cast %557 : vector<8xf32> to vector<8x1xf32>
    %559 = arith.mulf %556, %556 : vector<8x32xf32>
    %cst_196 = arith.constant dense<0.000000e+00> : vector<8xf32>
    %560 = vector.multi_reduction <add>, %559, %cst_196 [1] : vector<8x32xf32> to vector<8xf32>
    %561 = vector.shape_cast %560 : vector<8xf32> to vector<8x1xf32>
    %cst_197 = arith.constant 3.125000e-02 : f32
    %562 = vector.broadcast %cst_197 : f32 to vector<8x1xf32>
    %563 = arith.mulf %558, %562 : vector<8x1xf32>
    %564 = arith.mulf %558, %563 : vector<8x1xf32>
    %565 = arith.subf %561, %564 : vector<8x1xf32>
    %cst_198 = arith.constant 0.000000e+00 : f32
    %566 = vector.broadcast %cst_198 : f32 to vector<8x1xf32>
    %567 = arith.maximumf %565, %566 : vector<8x1xf32>
    %cst_199 = arith.constant 0.0322580636 : f32
    %568 = vector.broadcast %cst_199 : f32 to vector<8x1xf32>
    %569 = arith.mulf %567, %568 : vector<8x1xf32>
    %570 = vector.broadcast %563 : vector<8x1xf32> to vector<8x32xf32>
    %571 = arith.subf %556, %570 : vector<8x32xf32>
    %572 = vector.broadcast %18 : vector<1x32xf32> to vector<8x32xf32>
    %573 = arith.mulf %572, %571 : vector<8x32xf32>
    %574 = math.sqrt %569 : vector<8x1xf32>
    %cst_200 = arith.constant 9.99999997E-7 : f32
    %575 = vector.broadcast %cst_200 : f32 to vector<8x1xf32>
    %576 = arith.addf %574, %575 : vector<8x1xf32>
    %577 = vector.broadcast %576 : vector<8x1xf32> to vector<8x32xf32>
    %578 = arith.divf %573, %577 : vector<8x32xf32>
    %579 = vector.broadcast %19 : vector<1x32xf32> to vector<8x32xf32>
    %580 = arith.addf %578, %579 : vector<8x32xf32>
    %c0_201 = arith.constant 0 : index
    %c0_202 = arith.constant 0 : index
    %c0_203 = arith.constant 0 : index
    %581 = vector.load %arg19[%c0_201, %c0_202, %c0_203] : memref<1x8x32xf32, #tpu.memory_space<vmem>>, vector<1x8x32xf32>
    %582 = vector.shape_cast %581 : vector<1x8x32xf32> to vector<8x32xf32>
    %583 = vector.shape_cast %580 : vector<8x32xf32> to vector<1x8x32xf32>
    tpu.vector_store %arg19[%c0_201, %c0_202, %c0_203], %583 {strides = array<i32>} : memref<1x8x32xf32, #tpu.memory_space<vmem>>, vector<1x8x32xf32>,
    return
  }
  func.func @transform_0(%arg0: i32) -> (i32, i32, i32) {
    %c0_i32 = arith.constant 0 : i32
    %c0_i32_0 = arith.constant 0 : i32
    %c0_i32_1 = arith.constant 0 : i32
    return %arg0, %c0_i32, %c0_i32_0 : i32, i32, i32
  }
  func.func @transform_1(%arg0: i32) -> (i32, i32, i32) {
    %c0_i32 = arith.constant 0 : i32
    %c0_i32_0 = arith.constant 0 : i32
    %c0_i32_1 = arith.constant 0 : i32
    return %arg0, %c0_i32, %c0_i32_0 : i32, i32, i32
  }
  func.func @transform_2(%arg0: i32) -> (i32, i32) {
    %c0_i32 = arith.constant 0 : i32
    %c0_i32_0 = arith.constant 0 : i32
    %c0_i32_1 = arith.constant 0 : i32
    return %c0_i32, %c0_i32_0 : i32, i32
  }
  func.func @transform_3(%arg0: i32) -> (i32, i32) {
    %c0_i32 = arith.constant 0 : i32
    %c0_i32_0 = arith.constant 0 : i32
    %c0_i32_1 = arith.constant 0 : i32
    return %c0_i32, %c0_i32_0 : i32, i32
  }
  func.func @transform_4(%arg0: i32) -> (i32, i32) {
    %c0_i32 = arith.constant 0 : i32
    %c0_i32_0 = arith.constant 0 : i32
    %c0_i32_1 = arith.constant 0 : i32
    return %c0_i32, %c0_i32_0 : i32, i32
  }
  func.func @transform_5(%arg0: i32) -> (i32, i32) {
    %c0_i32 = arith.constant 0 : i32
    %c0_i32_0 = arith.constant 0 : i32
    %c0_i32_1 = arith.constant 0 : i32
    return %c0_i32, %c0_i32_0 : i32, i32
  }
  func.func @transform_6(%arg0: i32) -> (i32, i32) {
    %c0_i32 = arith.constant 0 : i32
    %c0_i32_0 = arith.constant 0 : i32
    %c0_i32_1 = arith.constant 0 : i32
    return %c0_i32, %c0_i32_0 : i32, i32
  }
  func.func @transform_7(%arg0: i32) -> (i32, i32) {
    %c0_i32 = arith.constant 0 : i32
    %c0_i32_0 = arith.constant 0 : i32
    %c0_i32_1 = arith.constant 0 : i32
    return %c0_i32, %c0_i32_0 : i32, i32
  }
  func.func @transform_8(%arg0: i32) -> (i32, i32) {
    %c0_i32 = arith.constant 0 : i32
    %c0_i32_0 = arith.constant 0 : i32
    %c0_i32_1 = arith.constant 0 : i32
    return %c0_i32, %c0_i32_0 : i32, i32
  }
  func.func @transform_9(%arg0: i32) -> (i32, i32) {
    %c0_i32 = arith.constant 0 : i32
    %c0_i32_0 = arith.constant 0 : i32
    %c0_i32_1 = arith.constant 0 : i32
    return %c0_i32, %c0_i32_0 : i32, i32
  }
  func.func @transform_10(%arg0: i32) -> (i32, i32) {
    %c0_i32 = arith.constant 0 : i32
    %c0_i32_0 = arith.constant 0 : i32
    %c0_i32_1 = arith.constant 0 : i32
    return %c0_i32, %c0_i32_0 : i32, i32
  }
  func.func @transform_11(%arg0: i32) -> (i32, i32) {
    %c0_i32 = arith.constant 0 : i32
    %c0_i32_0 = arith.constant 0 : i32
    %c0_i32_1 = arith.constant 0 : i32
    return %c0_i32, %c0_i32_0 : i32, i32
  }
  func.func @transform_12(%arg0: i32) -> (i32, i32) {
    %c0_i32 = arith.constant 0 : i32
    %c0_i32_0 = arith.constant 0 : i32
    %c0_i32_1 = arith.constant 0 : i32
    return %c0_i32, %c0_i32_0 : i32, i32
  }
  func.func @transform_13(%arg0: i32) -> (i32, i32) {
    %c0_i32 = arith.constant 0 : i32
    %c0_i32_0 = arith.constant 0 : i32
    %c0_i32_1 = arith.constant 0 : i32
    return %c0_i32, %c0_i32_0 : i32, i32
  }
  func.func @transform_14(%arg0: i32) -> (i32, i32) {
    %c0_i32 = arith.constant 0 : i32
    %c0_i32_0 = arith.constant 0 : i32
    %c0_i32_1 = arith.constant 0 : i32
    return %c0_i32, %c0_i32_0 : i32, i32
  }
  func.func @transform_15(%arg0: i32) -> (i32, i32) {
    %c0_i32 = arith.constant 0 : i32
    %c0_i32_0 = arith.constant 0 : i32
    %c0_i32_1 = arith.constant 0 : i32
    return %c0_i32, %c0_i32_0 : i32, i32
  }
  func.func @transform_16(%arg0: i32) -> (i32, i32) {
    %c0_i32 = arith.constant 0 : i32
    %c0_i32_0 = arith.constant 0 : i32
    %c0_i32_1 = arith.constant 0 : i32
    return %c0_i32, %c0_i32_0 : i32, i32
  }
  func.func @transform_17(%arg0: i32) -> (i32, i32) {
    %c0_i32 = arith.constant 0 : i32
    %c0_i32_0 = arith.constant 0 : i32
    %c0_i32_1 = arith.constant 0 : i32
    return %c0_i32, %c0_i32_0 : i32, i32
  }
  func.func @transform_18(%arg0: i32) -> (i32, i32, i32) {
    %c0_i32 = arith.constant 0 : i32
    %c0_i32_0 = arith.constant 0 : i32
    %c0_i32_1 = arith.constant 0 : i32
    return %arg0, %c0_i32, %c0_i32_0 : i32, i32, i32
  }
}

</mosaic_0001>

<bundles_post_ra>
// kernel: tpu_custom_call.1
= control target key start
LH: loop header
LB: loop body
LE: loop exit
PB: predicated region body
PF: predicated region fallthrough
CT: control target
= control target key end

     0   :  { %s34014_s0 = inlined_call_operand.hbm [shape: f32[2,8,32], index: 0, kind: input, shape index: {}]   ;;  %s34015_s1 = inlined_call_operand.hbm [shape: f32[2,8,32], index: 1, kind: input, shape index: {}]   ;;  %s34016_s2 = inlined_call_operand.hbm [shape: f32[8,8], index: 2, kind: input, shape index: {}]   ;;  %s34017_s3 = inlined_call_operand.vmem [shape: f32[32,96], index: 3, kind: input, shape index: {}]   ;;  %s34018_s4 = inlined_call_operand.vmem [shape: f32[1,96], index: 4, kind: input, shape index: {}]   ;;  %s34019_s5 = inlined_call_operand.vmem [shape: f32[32,32], index: 5, kind: input, shape index: {}]   ;;  %s34020_s6 = inlined_call_operand.vmem [shape: f32[1,32], index: 6, kind: input, shape index: {}]   ;;  %s34021_s7 = inlined_call_operand.vmem [shape: f32[32,64], index: 7, kind: input, shape index: {}]   ;;  %s34022_s8 = inlined_call_operand.vmem [shape: f32[1,64], index: 8, kind: input, shape index: {}]   ;;  %s34023_s9 = inlined_call_operand.hbm [shape: f32[32,32], index: 9, kind: input, shape index: {}]   ;;  %s34024_s10 = inlined_call_operand.vmem [shape: f32[1,32], index: 10, kind: input, shape index: {}]   ;;  %s34025_s11 = inlined_call_operand.hbm [shape: f32[32,32], index: 11, kind: input, shape index: {}]   ;;  %s34026_s12 = inlined_call_operand.vmem [shape: f32[1,32], index: 12, kind: input, shape index: {}]   ;;  %s34027_s13 = inlined_call_operand.hbm [shape: f32[32,64], index: 13, kind: input, shape index: {}]   ;;  %s34028_s14 = inlined_call_operand.vmem [shape: f32[1,64], index: 14, kind: input, shape index: {}]   ;;  %s34029_s15 = inlined_call_operand.vmem [shape: f32[64,32], index: 15, kind: input, shape index: {}]   ;;  %s34030_s16 = inlined_call_operand.vmem [shape: f32[1,32], index: 16, kind: input, shape index: {}]   ;;  %s34031_s17 = inlined_call_operand.vmem [shape: f32[8,32], index: 17, kind: input, shape index: {}]   ;;  %s34032_s18 = inlined_call_operand.hbm [shape: f32[2,8,32], index: 18, kind: output, shape index: {}]  }
   0x1   :  { %34190 = sst [smem:[#allocation135_spill]] %s34014_s0 }
   0x2   :  { %34191 = sst [smem:[#allocation136_spill]] %s34015_s1 }
   0x3   :  { %34192 = sst [smem:[#allocation137_spill]] %s34016_s2 }
   0x4   :  { %34193 = sst [smem:[#allocation138_spill]] %s34023_s9 }
   0x5   :  { %34194 = sst [smem:[#allocation139_spill]] %s34025_s11 }
   0x6   :  { %34195 = sst [smem:[#allocation140_spill]] %s34026_s12 }
   0x7   :  { %34196 = sst [smem:[#allocation141_spill]] %s34027_s13 }
   0x8   :  { %34197 = sst [smem:[#allocation142_spill]] %s34028_s14 }
   0x9   :  { %34198 = sst [smem:[#allocation143_spill]] %s34029_s15 }
   0xa   :  { %34199 = sst [smem:[#allocation144_spill]] %s34030_s16 }
   0xb   :  { %34200 = sst [smem:[#allocation145_spill]] %s34032_s18 }
   0xc   :  { %23 = vsyncpa [#allocation3], 0 }
   0xd   :  { %25 = vsyncpa [#allocation3 + $0x1], 0 }
   0xe   :  { %26 = vsyncpa [#allocation6], 0 }
   0xf   :  { %28 = vsyncpa [#allocation6 + $0x1], 0 }
  0x10   :  { %29 = vsyncpa [#allocation9], 0 }
  0x11   :  { %30 = vsyncpa [#allocation12], 0 }
  0x12   :  { %31 = vsyncpa [#allocation4], 0 }
  0x13   :  { %33 = vsyncpa [#allocation4 + $0x1], 0  ;;  %s31135_s27 = smov 0   ;;  %s31137_s28 = smov 0  }
  0x14   :  { %s31139_s29 = smov 0   ;;  %s31141_s30 = smov 0  }
  0x15 LB: > { %34201 = sst [smem:[#allocation20_spill]] %s31004_s27  ;;  %s31018_s0 = smov [#allocation7]   ;;  %s31016_s30 = sphi %s31141_s30, %s34462_s30   ;;  %s31012_s29 = sphi %s31139_s29, %s34464_s29   ;;  %s31008_s28 = sphi %s31137_s28, %s34466_s28   ;;  %s31004_s27 = sphi %s31135_s27, %s34465_s27  }
  0x16   : > { %34202 = sst [smem:[#allocation21_spill]] %s31012_s29  ;;  %s471_s19 = sshll.u32 %s31018_s0, 4  ;;  %s472_s19 = int_to_ptr.vmem [resolvable:$true] %s471_s19 }
  0x17   : > { %s31156_s1 = sadd.s32 4294967295, %s31016_s30   ;;  %p27511_p0 = scmp.ge.s32.totalorder %s31016_s30, 1 }
  0x18   : > { %p34047_p1 = scmp.eq.s32.totalorder %s31156_s1, 0  ;;  %p458_p2 = scmp.lt.s32.totalorder %s31016_s30, 3 }
  0x19   : > { %s31019_s21 = smov [#allocation8]   ;;  %s31020_s23 = smov [#allocation10]  }
  0x1a   : > { %p31161_p3 = pnand %p27511_p0, %p458_p2  ;;  %s499_s22 = sshll.u32 %s31019_s21, 4  ;;  %s31168_s22 = int_to_ptr.vmem [resolvable:$true] %s499_s22 }
  0x1b   : > { %s515_s24 = sshll.u32 %s31020_s23, 4  ;;  %s30787_s25 = scalar_lea.vmem %s472_s19, 128  ;;  %s31176_s24 = int_to_ptr.vmem [resolvable:$true] %s515_s24 }
  0x1c   : > { %s34203_s20 = scalar_select %p31161_p3, 1, 0 }
  0x1d   : > { %p30586_p5 = pneg %p31161_p3  ;;  %p30788_p8 = scmp.ne.s32.totalorder %s472_s19, %s30787_s25 }
  0x1e   : > { %p30795_p11 = scmp.lt.s32.totalorder %s472_s19, %s472_s19  ;;  %p30796_p12 = scmp.lt.s32.totalorder %s30787_s25, %s30787_s25 }
  0x1f   : > { %p31172_p6 = pnand %p30586_p5, %p34047_p1 }
  0x20   : > { %p30797_p13 = por %p30796_p12, %p30795_p11 }
  0x21   : > { %p30778_p7 = pneg %p31172_p6 }
  0x23   : > { %p30790_p9 = pnand %p30788_p8, %p30778_p7 }
  0x25   : > { %p30791_p10 = pneg %p30790_p9 }
  0x27   : > { %p30798_p0 = pnand %p30797_p13, %p30791_p10 }
  0x29   : > { %30801 = shalt.err (!%p30798_p0)
}
  0x2a   : > { %s34205_s21 = sld [smem:[#allocation137_spill]]  ;;  %s30813_s23 = scalar_lea.vmem %s31168_s22, 512 }
  0x2b   : > { %p30814_p2 = scmp.ne.s32.totalorder %s31168_s22, %s30813_s23  ;;  %p30821_p9 = scmp.lt.s32.totalorder %s31168_s22, %s31168_s22 }
  0x2c   : > { %p30822_p10 = scmp.lt.s32.totalorder %s30813_s23, %s30813_s23 }
  0x2d   : > { %p30816_p5 = pnand %p30814_p2, %p30778_p7 }
  0x2e   : > { %p30823_p11 = por %p30822_p10, %p30821_p9 }
  0x2f   : > { %p30817_p8 = pneg %p30816_p5 }
  0x30   : > { %30589 = dma.hbm_to_vmem [thread:$0]  (!%p31172_p6), %s34205_s21, 128, %s472_s19, [#allocation6]  }
  0x31   : > { %p30824_p12 = pnand %p30823_p11, %p30817_p8 }
  0x33   : > { %30827 = shalt.err (!%p30824_p12)
}
  0x34   : > { %s31021_s25 = smov 128   ;;  %s31022_s19 = smov 8  }
  0x35   : > { %s34206_s9 = sld [smem:[#allocation138_spill]]  ;;  %s30839_s21 = scalar_lea.vmem %s31176_s24, 512 }
  0x36   : > { %p30840_p13 = scmp.ne.s32.totalorder %s31176_s24, %s30839_s21  ;;  %p30847_p5 = scmp.lt.s32.totalorder %s31176_s24, %s31176_s24 }
  0x37   : > { %p30848_p8 = scmp.lt.s32.totalorder %s30839_s21, %s30839_s21 }
  0x38   : > { %p30842_p0 = pnand %p30840_p13, %p30778_p7 }
  0x39   : > { %p30849_p9 = por %p30848_p8, %p30847_p5 }
  0x3a   : > { %p30843_p2 = pneg %p30842_p0 }
  0x3b   : > { %30592 = dma.hbm_to_vmem [thread:$0]  (!%p31172_p6), %s34206_s9, 512, %s31168_s22, [#allocation9], %s31021_s25, %s31021_s25, %s31022_s19  }
  0x3c   : > { %p30850_p10 = pnand %p30849_p9, %p30843_p2 }
  0x3e   : > { %30853 = shalt.err (!%p30850_p10)
}
  0x3f   : > { %s34207_s11 = sld [smem:[#allocation139_spill]]  ;;  %s31023_s22 = smov [#allocation11]  }
  0x40   : > { %s531_s26 = sshll.u32 %s31023_s22, 4  ;;  %s532_s26 = int_to_ptr.vmem [resolvable:$true] %s531_s26 }
  0x41   : > { %s30865_s0 = scalar_lea.vmem %s532_s26, 512  ;;  %p30873_p0 = scmp.lt.s32.totalorder %s532_s26, %s532_s26 }
  0x42   : > { %p30866_p11 = scmp.ne.s32.totalorder %s532_s26, %s30865_s0  ;;  %p30874_p2 = scmp.lt.s32.totalorder %s30865_s0, %s30865_s0 }
  0x44   : > { %p30868_p12 = pnand %p30866_p11, %p30778_p7  ;;  %p30875_p5 = por %p30874_p2, %p30873_p0 }
  0x45   : > { %30595 = dma.hbm_to_vmem [thread:$0]  (!%p31172_p6), %s34207_s11, 512, %s31176_s24, [#allocation9], %s31021_s25, %s31021_s25, %s31022_s19  }
  0x46   : > { %p30869_p13 = pneg %p30868_p12 }
  0x48   : > { %p30876_p8 = pnand %p30875_p5, %p30869_p13 }
  0x4a   : > { %30879 = shalt.err (!%p30876_p8)
}
  0x4b   : > { %s34208_s13 = sld [smem:[#allocation141_spill]]  ;;  %s27510_s24 = sadd.s32 4294967294, %s31016_s30  }
  0x4c   : > { %s31224_s2 = sadd.s32 1, %s31016_s30   ;;  %s46_s22 = sadd.s32 1, %s31012_s29 }
  0x4d   : > { %34209 = sst [smem:[#allocation22_spill]] %s31224_s2  ;;  %s43_s23 = ssub.s32 %s31016_s30, %s31224_s2 }
  0x4e   : > { %p44_p7 = scmp.eq.s32.totalorder %s43_s23, 0  ;;  %p53_p9 = scmp.ne.s32.totalorder %s31012_s29, %s31008_s28 }
  0x4f   : > { %p54_p10 = scmp.eq.s32.totalorder %s31016_s30, 0  ;;  %p59_p11 = scmp.ne.s32.totalorder %s31008_s28, %s31004_s27 }
  0x50   : > { %s31235_s0 = scalar_select %p44_p7, %s31012_s29, %s46_s22  }
  0x51   : > { %30598 = dma.hbm_to_vmem [thread:$0]  (!%p31172_p6), %s34208_s13, 512, %s532_s26, [#allocation12], %s31021_s25, %s31021_s25, %s31022_s19  }
  0x52   : > { %34210 = sst [smem:[#allocation23_spill]] %s31235_s0  ;;  %p31237_p12 = por %p54_p10, %p53_p9 }
  0x53   : > { %p31243_p6 = por %p34047_p1, %p59_p11  ;;  %p445_p13 = scmp.eq.s32.totalorder %s31156_s1, 1 }
  0x54   : > { %p451_p0 = scmp.eq.s32.totalorder %s27510_s24, 1  ;;  %p30614_p2 = scmp.lt.s32.totalorder %s31016_s30, 2 }
  0x55   : > { %s34212_s25 = scalar_select %p31243_p6, 1, 0 }
  0x56   : > { %s557_s19 = sand.u32 1, %s31012_s29   ;;  %p31250_p5 = por %p445_p13, %p53_p9 }
  0x57   : > { %p31254_p8 = por %p451_p0, %p59_p11  ;;  %s31258_s23 = sshll.u32 %s557_s19, 3 }
  0x58   : > { %s34213_s26 = scalar_select %p31250_p5, 1, 0 }
  0x59   : > { %s34215_s18 = scalar_select %p31254_p8, 1, 0 }
  0x5a   : > { %34214 = sst [smem:[#allocation24_spill]] %s34213_s26  ;;  %s27518_s22 = sshll.u32 %s31016_s30, 7 }
  0x5b   : > { %34216 = sst [smem:[#allocation25_spill]] %s34215_s18  ;;  %s561_s24 = scalar_lea.vmem [#allocation2], %s31258_s23 }
  0x5c   : > { %s34217_s13 = sld [smem:[#allocation135_spill]]  ;;  %s568_s29 = sshll.u32 %s561_s24, 4  ;;  %s31267_s29 = int_to_ptr.vmem [resolvable:$true] %s568_s29 }
  0x5d   : > { %p31271_p7 = pnand %p30614_p2, %p31237_p12  ;;  %s34219_s26 = sld [smem:[#allocation136_spill]] }
  0x5e   : > { %s575_s11 = sand.u32 1, %s31016_s30   ;;  %s558_s16 = scalar_lea.sflag [#allocation3], %s557_s19 }
  0x5f   : > { %p30882_p10 = pneg %p31271_p7 }
  0x62   : > { %s31264_s0 = scalar_lea.hbm %s34217_s13, %s27518_s22  ;;  %s30885_s15 = scalar_lea.hbm %s34217_s13, 256 }
  0x63   : > { %s31278_s9 = scalar_lea.hbm %s34219_s26, %s27518_s22  ;;  %s30880_s14 = scalar_lea.hbm %s31264_s0, 128 }
  0x64   : > { %p30881_p9 = scmp.ne.s32.totalorder %s31264_s0, %s30880_s14  ;;  %p30886_p13 = scmp.lt.s32.totalorder %s31264_s0, %s34217_s13 }
  0x65   : > { %p30887_p0 = scmp.lt.s32.totalorder %s30885_s15, %s30880_s14 }
  0x66   : > { %p30883_p11 = pnand %p30882_p10, %p30881_p9 }
  0x67   : > { %p30888_p2 = por %p30887_p0, %p30886_p13 }
  0x68   : > { %p30884_p12 = pneg %p30883_p11 }
  0x6a   : > { %p30889_p4 = pnand %p30888_p2, %p30884_p12 }
  0x6c   : > { %30892 = shalt.err (!%p30889_p4)
}
  0x6d   : > { %s30893_s19 = scalar_lea.vmem %s31267_s29, 128  ;;  %s31024_s18 = smov [#allocation2]  }
  0x6e   : > { %p30894_p1 = scmp.ne.s32.totalorder %s31267_s29, %s30893_s19  ;;  %s30898_s22 = sshll.u32 %s31024_s18, 4  ;;  %s30899_s22 = int_to_ptr.vmem [resolvable:$false] %s30898_s22 }
  0x6f   : > { %s30900_s21 = scalar_lea.vmem %s30899_s22, 256  ;;  %p30901_p8 = scmp.lt.s32.totalorder %s31267_s29, %s30899_s22 }
  0x70   : > { %p30896_p9 = pnand %p30894_p1, %p30882_p10  ;;  %p30902_p5 = scmp.lt.s32.totalorder %s30900_s21, %s30893_s19 }
  0x72   : > { %p30897_p11 = pneg %p30896_p9  ;;  %p30903_p6 = por %p30902_p5, %p30901_p8 }
  0x74   : > { %p30904_p13 = pnand %p30903_p6, %p30897_p11 }
  0x76   : > { %30907 = shalt.err (!%p30904_p13)
}
  0x77   : > { %30602 = dma.hbm_to_vmem [thread:$0]  (!%p31271_p7), %s31264_s0, 128, %s31267_s29, %s558_s16  }
  0x78   : > { %s579_s12 = scalar_lea.vmem [#allocation5], %s31258_s23  ;;  %s576_s15 = scalar_lea.sflag [#allocation6], %s575_s11 }
  0x79   : > { %s586_s14 = sshll.u32 %s579_s12, 4  ;;  %s30908_s24 = scalar_lea.hbm %s31278_s9, 128  ;;  %s587_s14 = int_to_ptr.vmem [resolvable:$true] %s586_s14 }
  0x7a   : > { %p30909_p1 = scmp.ne.s32.totalorder %s31278_s9, %s30908_s24  ;;  %s30913_s18 = scalar_lea.hbm %s34219_s26, 256 }
  0x7b   : > { %p30914_p5 = scmp.lt.s32.totalorder %s31278_s9, %s34219_s26  ;;  %p30915_p8 = scmp.lt.s32.totalorder %s30913_s18, %s30908_s24 }
  0x7c   : > { %p30911_p4 = pnand %p30909_p1, %p30882_p10 }
  0x7d   : > { %p30916_p12 = por %p30915_p8, %p30914_p5 }
  0x7e   : > { %p30912_p6 = pneg %p30911_p4 }
  0x80   : > { %p30917_p0 = pnand %p30916_p12, %p30912_p6 }
  0x82   : > { %30920 = shalt.err (!%p30917_p0)
}
  0x83   : > { %s30921_s16 = scalar_lea.vmem %s587_s14, 128  ;;  %s31025_s29 = smov [#allocation5]  }
  0x84   : > { %p30922_p2 = scmp.ne.s32.totalorder %s587_s14, %s30921_s16  ;;  %s30926_s0 = sshll.u32 %s31025_s29, 4  ;;  %s30927_s0 = int_to_ptr.vmem [resolvable:$false] %s30926_s0 }
  0x85   : > { %s30928_s23 = scalar_lea.vmem %s30927_s0, 256  ;;  %p30929_p13 = scmp.lt.s32.totalorder %s587_s14, %s30927_s0 }
  0x86   : > { %p30924_p9 = pnand %p30922_p2, %p30882_p10  ;;  %p30930_p1 = scmp.lt.s32.totalorder %s30928_s23, %s30921_s16 }
  0x88   : > { %p30925_p11 = pneg %p30924_p9  ;;  %p30931_p4 = por %p30930_p1, %p30929_p13 }
  0x8a   : > { %p30932_p3 = pnand %p30931_p4, %p30925_p11 }
  0x8c   : > { %30935 = shalt.err (!%p30932_p3)
}
  0x8d   : > { %30605 = dma.hbm_to_vmem [thread:$0]  (!%p31271_p7), %s31278_s9, 128, %s587_s14, %s576_s15  }
  0x8e   : > { %p34220_p6 = scmp.ne.s32.totalorder %s34203_s20, 0 }
  0x90   : > { %595 = sbr.rel (%p34220_p6) target bundleno = 16548 (0x40a4), region = 92 }
  0x95   : > { %s31329_s11 = sand.u32 1, %s31008_s28   ;;  %p34221_p10 = scmp.ne.s32.totalorder %s34212_s25, 0 }
  0x96   : > { %s31332_s12 = sshll.u32 %s31329_s11, 3  ;;  %s598_s24 = scalar_lea.sflag [#allocation3], %s31329_s11 }
  0x97   : > { %s601_s27 = scalar_lea.vmem [#allocation2], %s31332_s12 }
  0x98   : > { %30979 = dma.done.wait (%p34221_p10), %s598_s24, 128  }
  0x99   : > { %30981 = vsyncadd (%p34221_p10), %s598_s24, 4294967168  ;;  %s606_s20 = sand.u32 1, %s31156_s1   ;;  %s610_s9 = scalar_lea.vmem [#allocation5], %s31332_s12 }
  0x9a   : > { %s607_s2 = scalar_lea.sflag [#allocation6], %s606_s20 }
  0x9b   : > { %30983 = dma.done.wait (%p34221_p10), %s607_s2, 128  }
  0x9c   : > { %30985 = vsyncadd (%p34221_p10), %s607_s2, 4294967168  ;;  %p34222_p3 = scmp.eq.s32.totalorder %s31156_s1, 0 }
  0x9e   : > { %30987 = dma.done.wait (%p34222_p3), [#allocation6], 128   ;;  %p34223_p7 = pmov %p34222_p3 }
  0x9f   : > { %p34224_p5 = pmov %p34222_p3 }
  0xa0   : > { %30989 = vsyncadd (%p34223_p7), [#allocation6], 4294967168 }
  0xa1   : > { %30991 = dma.done.wait (%p34224_p5), [#allocation9], 1024   ;;  %p34225_p8 = pmov %p34222_p3 }
  0xa2   : > { %p34226_p12 = pmov %p34222_p3 }
  0xa3   : > { %30993 = vsyncadd (%p34225_p8), [#allocation9], 4294966272 }
  0xa4   : > { %30995 = dma.done.wait (%p34226_p12), [#allocation12], 512   ;;  %p34227_p0 = pmov %p34222_p3 }
  0xa5   : > { %vm769_vm0 = vcmask 261120   ;;  %v31360_v0 = vld [vmem:[%s601_s27] sm:$0xff]  ;;  %v761_v4 = vld [vmem:[%s34021_s7 + $0x18] sm:$0xff]  ;;  %v760_v6 = vld [vmem:[%s34021_s7 + $0x10] sm:$0xff]  ;;  %v34058_v19 = vmov 0.0   ;;  %vm31027_vm1 = vmmov 0  }
  0xa6   : > { %30997 = vsyncadd (%p34227_p0), [#allocation12], 4294966784  ;;  %v1258_v1 = vsel %vm769_vm0, %v31360_v0, 0.0  ;;  %v1261_v2 = vmul.f32 %v31360_v0, %v31360_v0  ;;  %v31370_v5 = vand.u32 4294901760, %v761_v4  ;;  %v31375_v7 = vand.u32 4294901760, %v760_v6  ;;  %v759_v9 = vld [vmem:[%s34021_s7 + $0x8] sm:$0xff]  ;;  %28434 = vmatprep.subr.mxu0 %v34058_v19  ;;  %28445 = vmatprep.subr.mxu1 %v34058_v19 }
  0xa7   : > { %1259 = vadd.xlane.f32.xlu0 %v1258_v1  ;;  %v31384_v11 = vand.u32 4294901760, %v759_v9  ;;  %v685_v13 = vld [vmem:[%s610_s9] sm:$0xff]  ;;  %v758_v14 = vld [vmem:[%s34021_s7] sm:$0xff]  ;;  %28442 = vmatprep.mubr.msk.f32.mxu0 %vm31027_vm1, %v34058_v19  ;;  %v688_v38 = vld [vmem:[%s34017_s3 + $0x8] sm:$0xff]  ;;  %s31028_s16 = smov 96   ;;  %vm1782_vm4 = vcmask 64512  }
  0xa8   : > { %v1262_v3 = vsel %vm769_vm0, %v1261_v2, 0.0  ;;  %v31378_v8 = vsub.f32 %v761_v4, %v31370_v5  ;;  %v31387_v12 = vsub.f32 %v760_v6, %v31375_v7  ;;  %v771_v15 = vsel %vm769_vm0, %v685_v13, 0  ;;  %28435 = vmatpush3.msra.mxu0 %v31370_v5  ;;  %28453 = vmatprep.mubr.msk.f32.mxu1 %vm31027_vm1, %v34058_v19  ;;  %v690_v36 = vld [vmem:[%s34017_s3 + $0x18] sm:$0xff]  ;;  %v689_v37 = vld [vmem:[%s34017_s3 + $0x10] sm:$0xff]  ;;  %v687_v42 = vld [vmem:[%s34017_s3] sm:$0xff]  ;;  %s31029_s29 = smov 64  }
  0xa9   : > { %v31397_v18 = vand.u32 4294901760, %v758_v14  ;;  %v31402_v20 = vsub.f32 %v759_v9, %v31384_v11  ;;  %v31404_v21 = vand.u32 4294901760, %v771_v15  ;;  %28436 = vmatprep.subr.mxu0 %v34058_v19  ;;  %v31460_v39 = vand.u32 4294901760, %v690_v36  ;;  %v715_v13 = vld [vmem:[%s34031_s17] sm:$0xff]  ;;  %s31030_s0 = smov 88   ;;  %s31031_s23 = smov 120  }
  0xaa   : > { %v879_v10 = vand.u32 4294901760, %v31378_v8  ;;  %v886_v17 = vand.u32 4294901760, %v31387_v12  ;;  %28437 = vmatpush3.msra.mxu0 %v31375_v7  ;;  %v31462_v40 = vand.u32 4294901760, %v689_v37  ;;  %v31464_v41 = vand.u32 4294901760, %v688_v38  ;;  %s34053_s24 = smov 56   ;;  %s31033_s20 = smov 80  }
  0xab   : > { %1263 = vadd.xlane.f32.xlu0 %v1262_v3  ;;  %v31411_v24 = vsub.f32 %v758_v14, %v31397_v18  ;;  %v893_v25 = vand.u32 4294901760, %v31402_v20  ;;  %v31416_v26 = vsub.f32 %v771_v15, %v31404_v21  ;;  %28438 = vmatprep.subr.mxu0 %v34058_v19  ;;  %v31475_v43 = vsub.f32 %v690_v36, %v31460_v39  ;;  %s31034_s2 = smov 112   ;;  %s34052_s14 = smov 48  }
  0xac   : > { %v880_v16 = vsub.f32 %v31378_v8, %v879_v10  ;;  %v887_v23 = vsub.f32 %v31387_v12, %v886_v17  ;;  %28439 = vmatpush3.msra.mxu0 %v31384_v11  ;;  %v31478_v44 = vsub.f32 %v689_v37, %v31462_v40  ;;  %v31480_v45 = vand.u32 4294901760, %v687_v42  ;;  %s31036_s15 = smov 72   ;;  %s31037_s19 = smov 104  }
  0xad   : > { %v900_v28 = vand.u32 4294901760, %v31411_v24  ;;  %v894_v29 = vsub.f32 %v31402_v20, %v893_v25  ;;  %v844_v30 = vand.u32 4294901760, %v31416_v26  ;;  %28440 = vmatprep.subr.mxu0 %v34058_v19  ;;  %v31487_v46 = vand.u32 4294901760, %v31475_v43  ;;  %s34051_s18 = smov 40   ;;  %s34292_s9 = sld [smem:[#allocation140_spill]] }
  0xae   : > { %v881_v22 = vand.u32 4294901760, %v880_v16  ;;  %v888_v27 = vand.u32 4294901760, %v887_v23  ;;  %28441 = vmatpush3.msra.mxu0 %v31397_v18  ;;  %v31490_v47 = vsub.f32 %v688_v38, %v31464_v41  ;;  %v31499_v48 = vand.u32 4294901760, %v31478_v44  ;;  %s34331_s22 = sld [smem:[#allocation143_spill]]  ;;  %s683_s21 = scalar_lea.vmem [#allocation13], %s31332_s12 }
  0xaf   : > { %v901_v31 = vsub.f32 %v31411_v24, %v900_v28  ;;  %v895_v32 = vand.u32 4294901760, %v894_v29  ;;  %v845_v33 = vsub.f32 %v31416_v26, %v844_v30  ;;  %28456 = vmatprep.subr.mxu0 %v34058_v19  ;;  %v31502_v49 = vsub.f32 %v687_v42, %v31480_v45 }
  0xb0   : > { %28446 = vmatpush3.msra.mxu1 %v881_v22  ;;  %v1401_v50 = vsub.f32 %v31475_v43, %v31487_v46  ;;  %v31511_v51 = vand.u32 4294901760, %v31490_v47  ;;  %v1408_v52 = vsub.f32 %v31478_v44, %v31499_v48  ;;  %vm13778_vm9 = vcmask 523264  }
  0xb1   : > { %28447 = vmatprep.subr.mxu1 %v34058_v19  ;;  %v902_v34 = vand.u32 4294901760, %v901_v31  ;;  %v846_v35 = vand.u32 4294901760, %v845_v33  ;;  %v31521_v53 = vand.u32 4294901760, %v31502_v49 }
  0xb2   : > { %28448 = vmatpush3.msra.mxu1 %v888_v27  ;;  %v31529_v54 = vand.u32 4294901760, %v1401_v50  ;;  %v1415_v55 = vsub.f32 %v31490_v47, %v31511_v51  ;;  %v31538_v56 = vand.u32 4294901760, %v1408_v52 }
  0xb3   : > { %28449 = vmatprep.subr.mxu1 %v34058_v19  ;;  %28443 = vmatmul.mubr.f32.vlgmr.msra.gmra.mxu0 %v846_v35  ;;  %v1422_v57 = vsub.f32 %v31502_v49, %v31521_v53 }
  0xb4   : > { %28450 = vmatpush3.msra.mxu1 %v895_v32  ;;  %28457 = vmatpush3.msra.mxu0 %v31378_v8  ;;  %v31545_v58 = vand.u32 4294901760, %v1415_v55 }
  0xb5   : > { %28451 = vmatprep.subr.mxu1 %v34058_v19  ;;  %28458 = vmatprep.subr.mxu0 %v34058_v19  ;;  %v31552_v59 = vand.u32 4294901760, %v1422_v57 }
  0xb6   : > { %28452 = vmatpush3.msra.mxu1 %v902_v34  ;;  %28459 = vmatpush3.msra.mxu0 %v31387_v12 }
  0xb7   : > { %28467 = vmatprep.subr.mxu1 %v34058_v19  ;;  %28454 = vmatmul.mubr.f32.vlgmr.msra.gmra.mxu1 %v31404_v21 }
  0xb8   : > { %28468 = vmatpush3.msra.mxu1 %v31370_v5  ;;  %28460 = vmatprep.subr.mxu0 %v34058_v19 }
  0xb9   : > { %28469 = vmatprep.subr.mxu1 %v34058_v19  ;;  %28461 = vmatpush3.msra.mxu0 %v31402_v20 }
  0xba   : > { %28470 = vmatpush3.msra.mxu1 %v31375_v7  ;;  %28462 = vmatprep.subr.mxu0 %v34058_v19 }
  0xbb   : > { %28471 = vmatprep.subr.mxu1 %v34058_v19  ;;  %28463 = vmatpush3.msra.mxu0 %v31411_v24 }
  0xbc   : > { %28472 = vmatpush3.msra.mxu1 %v31384_v11  ;;  %28464 = vmatprep.mubr.msk.f32.mxu0 %vm31027_vm1, %v34058_v19 }
  0xbd   : > { %28473 = vmatprep.subr.mxu1 %v34058_v19  ;;  %28478 = vmatprep.subr.mxu0 %v34058_v19 }
  0xbe   : > { %28465 = vmatmul.mubr.f32.vlgmr.msra.gmra.mxu0 %v31416_v26  ;;  %28474 = vmatpush3.msra.mxu1 %v31397_v18 }
  0xbf   : > { %28479 = vmatpush3.msra.mxu0 %v879_v10  ;;  %28475 = vmatprep.mubr.msk.f32.mxu1 %vm31027_vm1, %v34058_v19 }
  0xc0   : > { %28480 = vmatprep.subr.mxu0 %v34058_v19  ;;  %28489 = vmatprep.subr.mxu1 %v34058_v19 }
  0xc1   : > { %28476 = vmatmul.mubr.f32.vlgmr.msra.gmra.mxu1 %v844_v30  ;;  %28481 = vmatpush3.msra.mxu0 %v886_v17 }
  0xc2   : > { %28490 = vmatpush3.msra.mxu1 %v31370_v5  ;;  %28482 = vmatprep.subr.mxu0 %v34058_v19 }
  0xc3   : > { %28491 = vmatprep.subr.mxu1 %v34058_v19  ;;  %28483 = vmatpush3.msra.mxu0 %v893_v25 }
  0xc4   : > { %28492 = vmatpush3.msra.mxu1 %v31375_v7  ;;  %28484 = vmatprep.subr.mxu0 %v34058_v19  ;;  %v1271_v7 = vlaneseq }
  0xc5   : > { %28493 = vmatprep.subr.mxu1 %v34058_v19  ;;  %28485 = vmatpush3.msra.mxu0 %v900_v28  ;;  %v27535_v28 = vld [vmem:[%s34022_s8] ss:$0 sm:$0xff] }
  0xc6   : > { %28486 = vmatprep.mubr.msk.f32.mxu0 %vm31027_vm1, %v34058_v19  ;;  %28494 = vmatpush3.msra.mxu1 %v31384_v11  ;;  %v31569_v11 = vshrl.u32 %v1271_v7, 7 }
  0xc7   : > { %28487 = vmatmul.mubr.f32.vlgmr.msra.gmra.mxu0 %v31404_v21  ;;  %28495 = vmatprep.subr.mxu1 %v34058_v19 }
  0xc8   : > { %28496 = vmatpush3.msra.mxu1 %v31397_v18  ;;  %28497 = vmatprep.mubr.msk.f32.mxu1 %vm31027_vm1, %v34058_v19  ;;  %34228 = vst [vmem:[#allocation26_spill] sm:$0xff] %v31569_v11  ;;  %v1273_v12 = vsub.s32 0, %v31569_v11  ;;  %v1288_v16 = vsub.s32 1, %v31569_v11 }
  0xc9   : > { %28498 = vmatmul.mubr.f32.vlgmr.msra.gmra.mxu1 %v31404_v21  ;;  %28511 = vmatprep.subr.mxu1 %v34058_v19 }
  0xca   : > { %28512 = vmatpush3.msra.mxu1 %v31529_v54  ;;  %28500 = vmatprep.subr.mxu0 %v34058_v19  ;;  %v31575_v14 = vrot.slane %v715_v13, %v1273_v12  ;;  %v31580_v18 = vrot.slane %v715_v13, %v1288_v16 }
  0xcb   : > { %28513 = vmatprep.subr.mxu1 %v34058_v19  ;;  %28519 = vmatprep.mubr.msk.f32.mxu1 %vm31027_vm1, %v34058_v19 }
  0xcc   : > { %28514 = vmatpush3.msra.mxu1 %v31538_v56  ;;  %28501 = vmatpush3.msra.mxu0 %v31460_v39 }
  0xcd   : > { %28515 = vmatprep.subr.mxu1 %v34058_v19  ;;  %28502 = vmatprep.subr.mxu0 %v34058_v19 }
  0xce   : > { %28516 = vmatpush3.msra.mxu1 %v31545_v58  ;;  %28503 = vmatpush3.msra.mxu0 %v31462_v40 }
  0xcf   : > { %28517 = vmatprep.subr.mxu1 %v34058_v19  ;;  %28504 = vmatprep.subr.mxu0 %v34058_v19 }
  0xd0   : > { %28518 = vmatpush3.msra.mxu1 %v31552_v59  ;;  %28505 = vmatpush3.msra.mxu0 %v31464_v41 }
  0xd1   : > { %28533 = vmatprep.subr.mxu1 %v34058_v19  ;;  %28506 = vmatprep.subr.mxu0 %v34058_v19 }
  0xd2   : > { %28507 = vmatpush3.msra.mxu0 %v31480_v45  ;;  %28508 = vmatprep.mubr.msk.f32.mxu0 %vm31027_vm1, %v34058_v19 }
  0xd3   : > { %28522 = vmatprep.subr.mxu0 %v34058_v19 }
 0x130   : > { %v1260_v60 = vpop.xlane.xlu0 %1259 }
 0x131   : > { %v1265_v61 = vmul.f32 0.03125, %v1260_v60 }
 0x133   : > { %v1266_v62 = vmul.f32 %v1265_v61, %v1260_v60  ;;  %v1270_v15 = vsub.f32 %v31360_v0, %v1265_v61 }
 0x134   : > { %v1264_v63 = vpop.xlane.xlu0 %1263 }
 0x135   : > { %v1267_v1 = vsub.f32 %v1264_v63, %v1266_v62  ;;  %v1275_v17 = vmul.f32 %v31575_v14, %v1270_v15 }
 0x137   : > { %v1268_v2 = vmax.f32 %v1267_v1, 0.0 }
 0x139   : > { %v1269_v3 = vmul.f32 0.032258064, %v1268_v2 }
 0x13b   : > { %30671 = vrsqrt.f32 %v1269_v3  ;;  %vm1278_vm2 = vcmp.eq.f32.partialorder %v1269_v3, inf  ;;  %v1281_v6 = vand.u32 2147483648, %v1269_v3  ;;  %vm1280_vm3 = vcmp.eq.f32.partialorder %v1269_v3, 0.0 }
 0x148   : > { %v30672_v4 = vpop.eup %30671 }
 0x149   : > { %v1277_v5 = vmul.f32 %v30672_v4, %v1269_v3 }
 0x14b   : > { %v1279_v8 = vsel %vm1278_vm2, %v1269_v3, %v1277_v5 }
 0x14c   : > { %v1282_v9 = vsel %vm1280_vm3, %v1281_v6, %v1279_v8  ;;  %v27529_v6 = vld [vmem:[%s34018_s4] ss:$0 sm:$0xff] }
 0x14d   : > { %v1283_v10 = vadd.f32 1e-06, %v1282_v9 }
 0x14f   : > { %30673 = vrcp.f32 %v1283_v10 }
 0x15c   : > { %v30674_v20 = vpop.eup %30673 }
 0x15d   : > { %v1285_v21 = vmul.f32 %v30674_v20, %v1275_v17 }
 0x15f   : > { %v1290_v22 = vadd.f32 %v31580_v18, %v1285_v21 }
 0x161   : > { %v1292_v23 = vsel %vm769_vm0, %v1290_v22, 0 }
 0x162   : > { %v1363_v24 = vand.u32 4294901760, %v1292_v23 }
 0x164   : > { %v1364_v25 = vsub.f32 %v1292_v23, %v1363_v24  ;;  %28520 = vmatmul.mubr.f32.vlgmr.msra.gmra.mxu1 %v1363_v24 }
 0x165   : > { %28534 = vmatpush3.msra.mxu1 %v31460_v39  ;;  %28541 = vmatprep.mubr.msk.f32.mxu1 %vm31027_vm1, %v34058_v19 }
 0x166   : > { %28535 = vmatprep.subr.mxu1 %v34058_v19  ;;  %v1365_v0 = vand.u32 4294901760, %v1364_v25 }
 0x167   : > { %28536 = vmatpush3.msra.mxu1 %v31462_v40 }
 0x168   : > { %28537 = vmatprep.subr.mxu1 %v34058_v19  ;;  %v1366_v26 = vsub.f32 %v1364_v25, %v1365_v0 }
 0x169   : > { %28538 = vmatpush3.msra.mxu1 %v31464_v41 }
 0x16a   : > { %28539 = vmatprep.subr.mxu1 %v34058_v19  ;;  %v1367_v27 = vand.u32 4294901760, %v1366_v26 }
 0x16b   : > { %28540 = vmatpush3.msra.mxu1 %v31480_v45 }
 0x16c   : > { %28542 = vmatmul.mubr.f32.vlgmr.msra.gmra.mxu1 %v1365_v0  ;;  %28555 = vmatprep.subr.mxu1 %v34058_v19 }
 0x16d   : > { %28509 = vmatmul.mubr.f32.vlgmr.msra.gmra.mxu0 %v1367_v27  ;;  %28556 = vmatpush3.msra.mxu1 %v31460_v39 }
 0x16e   : > { %28523 = vmatpush3.msra.mxu0 %v31475_v43  ;;  %28557 = vmatprep.subr.mxu1 %v34058_v19 }
 0x16f   : > { %28524 = vmatprep.subr.mxu0 %v34058_v19  ;;  %28558 = vmatpush3.msra.mxu1 %v31462_v40 }
 0x170   : > { %28525 = vmatpush3.msra.mxu0 %v31478_v44  ;;  %28559 = vmatprep.subr.mxu1 %v34058_v19 }
 0x171   : > { %28526 = vmatprep.subr.mxu0 %v34058_v19  ;;  %28560 = vmatpush3.msra.mxu1 %v31464_v41 }
 0x172   : > { %28527 = vmatpush3.msra.mxu0 %v31490_v47  ;;  %28561 = vmatprep.subr.mxu1 %v34058_v19 }
 0x173   : > { %28528 = vmatprep.subr.mxu0 %v34058_v19  ;;  %28530 = vmatprep.mubr.msk.f32.mxu0 %vm31027_vm1, %v34058_v19  ;;  %v848_v29 = vpop.f32.mrf.mxu0 }
 0x174   : > { %28529 = vmatpush3.msra.mxu0 %v31502_v49  ;;  %28562 = vmatpush3.msra.mxu1 %v31480_v45  ;;  %v849_v30 = vadd.f32 %v27535_v28, %v848_v29 }
 0x175   : > { %28563 = vmatprep.mubr.msk.f32.mxu1 %vm31027_vm1, %v34058_v19  ;;  %28531 = vmatmul.mubr.f32.vlgmr.msra.gmra.mxu0 %v1364_v25  ;;  %v28444_v31 = vpop.f32.mrf.mxu0 }
 0x176   : > { %28544 = vmatprep.subr.mxu0 %v34058_v19  ;;  %28564 = vmatmul.mubr.f32.vlgmr.msra.gmra.mxu1 %v1363_v24 }
 0x177   : > { %28545 = vmatpush3.msra.mxu0 %v31487_v46  ;;  %28552 = vmatprep.mubr.msk.f32.mxu0 %vm31027_vm1, %v34058_v19  ;;  %v939_v32 = vpop.f32.mrf.mxu1 }
 0x178   : > { %28546 = vmatprep.subr.mxu0 %v34058_v19  ;;  %28571 = vmatprep.subr.mxu1 %v34058_v19  ;;  %v940_v33 = vadd.f32 %v939_v32, %v849_v30 }
 0x179   : > { %28547 = vmatpush3.msra.mxu0 %v31499_v48  ;;  %28573 = vmatprep.mubr.msk.f32.mxu1 %vm31027_vm1, %v34058_v19  ;;  %v28455_v34 = vpop.f32.mrf.mxu1 }
 0x17a   : > { %28548 = vmatprep.subr.mxu0 %v34058_v19 }
 0x17b   : > { %28549 = vmatpush3.msra.mxu0 %v31511_v51 }
 0x17c   : > { %28550 = vmatprep.subr.mxu0 %v34058_v19 }
 0x17d   : > { %28551 = vmatpush3.msra.mxu0 %v31521_v53 }
 0x17e   : > { %28553 = vmatmul.mubr.f32.vlgmr.msra.gmra.mxu0 %v1363_v24  ;;  %28566 = vmatprep.subr.mxu0 %v34058_v19  ;;  %v1019_v35 = vpop.f32.mrf.mxu0 }
 0x17f   : > { %28568 = vmatprep.mubr.msk.f32.mxu0 %vm31027_vm1, %v34058_v19  ;;  %v1020_v36 = vadd.f32 %v1019_v35, %v940_v33 }
 0x180   : > { %v28466_v37 = vpop.f32.mrf.mxu0 }
 0x181   : > { %v1096_v38 = vpop.f32.mrf.mxu1 }
 0x182   : > { %v1097_v42 = vadd.f32 %v1096_v38, %v1020_v36 }
 0x183   : > { %v28477_v50 = vpop.f32.mrf.mxu1 }
 0x187   : > { %v1179_v52 = vpop.f32.mrf.mxu0 }
 0x188   : > { %v1180_v55 = vadd.f32 %v1179_v52, %v1097_v42 }
 0x189   : > { %v1254_v57 = vpop.f32.mrf.mxu1  ;;  %v28488_v60 = vpop.f32.mrf.mxu0 }
 0x18a   : > { %v31631_v61 = vadd.f32 %v1254_v57, %v1180_v55 }
 0x18b   : > { %v28499_v62 = vpop.f32.mrf.mxu1 }
 0x224   : > { %v1460_v63 = vpop.f32.mrf.mxu1 }
 0x226   : > { %v28521_v1 = vpop.f32.mrf.mxu1 }
 0x22c   : > { %v1617_v2 = vpop.f32.mrf.mxu1 }
 0x22d   : > { %v1369_v3 = vpop.f32.mrf.mxu0 }
 0x22e   : > { %v28543_v4 = vpop.f32.mrf.mxu1  ;;  %v1370_v7 = vadd.f32 %v27529_v6, %v1369_v3  ;;  %v31661_v6 = vld [vmem:[#allocation7] sm:$0xff] }
 0x22f   : > { %v28510_v5 = vpop.f32.mrf.mxu0 }
 0x230   : > { %v1461_v10 = vadd.f32 %v1460_v63, %v1370_v7 }
 0x235   : > { %v1540_v8 = vpop.f32.mrf.mxu0 }
 0x236   : > { %v1775_v9 = vpop.f32.mrf.mxu1  ;;  %v1541_v15 = vadd.f32 %v1540_v8, %v1461_v10 }
 0x237   : > { %v28532_v12 = vpop.f32.mrf.mxu0 }
 0x238   : > { %v28565_v13 = vpop.f32.mrf.mxu1  ;;  %v1618_v16 = vadd.f32 %v1617_v2, %v1541_v15 }
 0x23e   : > { %v1700_v17 = vpop.f32.mrf.mxu0 }
 0x23f   : > { %v1701_v20 = vadd.f32 %v1700_v17, %v1618_v16 }
 0x240   : > { %v28554_v21 = vpop.f32.mrf.mxu0 }
 0x241   : > { %v31636_v22 = vadd.f32 %v1775_v9, %v1701_v20 }
 0x243   : > { %1780 = vrot.lane.b32.xlu1 %v31636_v22, %s31028_s16  ;;  %v1783_v23 = vsel %vm1782_vm4, %v31636_v22, 0 }
 0x244   : > { %v1853_v24 = vand.u32 4294901760, %v1783_v23 }
 0x246   : > { %v1854_v25 = vsub.f32 %v1783_v23, %v1853_v24 }
 0x248   : > { %v1855_v0 = vand.u32 4294901760, %v1854_v25 }
 0x24a   : > { %v1856_v28 = vsub.f32 %v1854_v25, %v1855_v0 }
 0x24c   : > { %v1857_v31 = vand.u32 4294901760, %v1856_v28 }
 0x2b5   : > { %v1781_v26 = vpop.permute.xlu1 %1780 }
 0x2b6   : > { %v1785_v27 = vsel %vm1782_vm4, %v1781_v26, 0 }
 0x2b7   : > { %v1818_v29 = vand.u32 4294901760, %v1785_v27 }
 0x2b9   : > { %v1895_v30 = vsub.f32 %v1785_v27, %v1818_v29  ;;  %28567 = vmatpush3.xpose.msra.mxu0 %v1818_v29 }
 0x2ba   : > { %28576 = vmatprep.subr.mxu0 %v34058_v19 }
 0x2bb   : > { %v1896_v32 = vand.u32 4294901760, %v1895_v30 }
 0x2bc   : > { %28569 = vmatmul.mubr.f32.vlgmr.msra.gmra.mxu0 %v1857_v31 }
 0x2bd   : > { %v1897_v33 = vsub.f32 %v1895_v30, %v1896_v32  ;;  %28577 = vmatpush3.xpose.msra.mxu0 %v1895_v30  ;;  %28578 = vmatprep.mubr.msk.f32.mxu0 %vm31027_vm1, %v34058_v19 }
 0x2be   : > { %28586 = vmatprep.subr.mxu0 %v34058_v19 }
 0x2bf   : > { %v1898_v34 = vand.u32 4294901760, %v1897_v33 }
 0x2c0   : > { %28579 = vmatmul.mubr.f32.vlgmr.msra.gmra.mxu0 %v1854_v25 }
 0x2c1   : > { %28572 = vmatpush3.xpose.msra.mxu1 %v1898_v34  ;;  %28587 = vmatpush3.xpose.msra.mxu0 %v1896_v32  ;;  %v695_v34 = vld [vmem:[#allocation8] sm:$0xff] }
 0x2c2   : > { %28588 = vmatprep.mubr.msk.f32.mxu0 %vm31027_vm1, %v34058_v19  ;;  %28581 = vmatprep.subr.mxu1 %v34058_v19 }
 0x2c3   : > { %28596 = vmatprep.subr.mxu0 %v34058_v19 }
 0x2c4   : > { %28574 = vmatmul.mubr.f32.vlgmr.msra.gmra.mxu1 %v1853_v24  ;;  %28589 = vmatmul.mubr.f32.vlgmr.msra.gmra.mxu0 %v1853_v24 }
 0x2c5   : > { %28582 = vmatpush3.xpose.msra.mxu1 %v1818_v29  ;;  %28583 = vmatprep.mubr.msk.f32.mxu1 %vm31027_vm1, %v34058_v19 }
 0x2c6   : > { %28591 = vmatprep.subr.mxu1 %v34058_v19  ;;  %28598 = vmatprep.mubr.msk.f32.mxu0 %vm31027_vm1, %v34058_v19 }
 0x2c8   : > { %28584 = vmatmul.mubr.f32.vlgmr.msra.gmra.mxu1 %v1855_v0 }
 0x2c9   : > { %28592 = vmatpush3.xpose.msra.mxu1 %v1818_v29  ;;  %28593 = vmatprep.mubr.msk.f32.mxu1 %vm31027_vm1, %v34058_v19 }
 0x2ca   : > { %28601 = vmatprep.subr.mxu1 %v34058_v19 }
 0x2cc   : > { %28594 = vmatmul.mubr.f32.vlgmr.msra.gmra.mxu1 %v1853_v24 }
 0x2cd   : > { %28603 = vmatprep.mubr.msk.f32.mxu1 %vm31027_vm1, %v34058_v19 }
 0x37c   : > { %v1859_v35 = vpop.f32.mrf.mxu0 }
 0x37e   : > { %v28570_v36 = vpop.f32.mrf.mxu0 }
 0x380   : > { %v2009_v37 = vpop.f32.mrf.mxu0 }
 0x382   : > { %v28580_v38 = vpop.f32.mrf.mxu0 }
 0x384   : > { %v1935_v42 = vpop.f32.mrf.mxu1  ;;  %v2157_v50 = vpop.f32.mrf.mxu0 }
 0x385   : > { %v1936_v52 = vadd.f32 %v1935_v42, %v1859_v35  ;;  %v31691_v35 = vand.u32 4294901760, %v695_v34 }
 0x386   : > { %v28575_v55 = vpop.f32.mrf.mxu1  ;;  %v28590_v57 = vpop.f32.mrf.mxu0 }
 0x387   : > { %v2010_v60 = vadd.f32 %v2009_v37, %v1936_v52  ;;  %34229 = vst [vmem:[#allocation27_spill] sm:$0xff] %v31691_v35  ;;  %v31694_v36 = vsub.f32 %v695_v34, %v31691_v35 }
 0x388   : > { %v2083_v62 = vpop.f32.mrf.mxu1 }
 0x389   : > { %v2084_v63 = vadd.f32 %v2083_v62, %v2010_v60  ;;  %34230 = vst [vmem:[#allocation28_spill] sm:$0xff] %v31694_v36  ;;  %v31699_v37 = vand.u32 4294901760, %v31694_v36 }
 0x38a   : > { %v28585_v1 = vpop.f32.mrf.mxu1 }
 0x38b   : > { %v2158_v2 = vadd.f32 %v2157_v50, %v2084_v63  ;;  %34231 = vst [vmem:[#allocation29_spill] sm:$0xff] %v31699_v37  ;;  %v2812_v38 = vsub.f32 %v31694_v36, %v31699_v37 }
 0x38c   : > { %v2229_v3 = vpop.f32.mrf.mxu1 }
 0x38d   : > { %v2230_v4 = vadd.f32 %v2229_v3, %v2158_v2  ;;  %v31703_v42 = vand.u32 4294901760, %v2812_v38 }
 0x38e   : > { %v28595_v5 = vpop.f32.mrf.mxu1 }
 0x38f   : > { %v2233_v7 = vmul.f32 0.35355338, %v2230_v4  ;;  %34232 = vst [vmem:[#allocation30_spill] sm:$0xff] %v31703_v42 }
 0x391   : > { %v2234_v8 = vadd.f32 %v2233_v7, %v31661_v6 }
 0x393   : > { %v2235_v9 = vsel %vm1782_vm4, %v2234_v8, -inf }
 0x394   : > { %2236 = vmax.xlane.f32.xlu1 %v2235_v9 }
 0x41d   : > { %v2237_v10 = vpop.xlane.xlu1 %2236 }
 0x41e   : > { %v2238_v12 = vsub.f32 %v2234_v8, %v2237_v10 }
 0x420   : > { %v2239_v13 = vmul.f32 1.442695, %v2238_v12 }
 0x422   : > { %30675 = vpow2.f32 %v2239_v13 }
 0x42f   : > { %v30676_v15 = vpop.eup %30675 }
 0x430   : > { %v2241_v16 = vsel %vm1782_vm4, %v30676_v15, 0.0 }
 0x431   : > { %2242 = vadd.xlane.f32.xlu0 %v2241_v16 }
 0x447   : > { %2247 = vrot.lane.b32.xlu0 %v31636_v22, %s31029_s29 }
 0x44b   : > { %3151 = vrot.lane.b32.xlu0 %v31636_v22, %s31030_s0 }
 0x44f   : > { %3149 = vrot.lane.b32.xlu0 %v31636_v22, %s31031_s23 }
 0x4ba   : > { %v2243_v17 = vpop.xlane.xlu0 %2242 }
 0x4bb   : > { %30677 = vrcp.f32 %v2243_v17 }
 0x4be   : > { %v2248_v20 = vpop.permute.xlu0 %2247 }
 0x4bf   : > { %v2284_v21 = vand.u32 4294901760, %v2248_v20 }
 0x4c1   : > { %v2361_v23 = vsub.f32 %v2248_v20, %v2284_v21  ;;  %28597 = vmatpush3.msra.mxu0 %v2284_v21 }
 0x4c2   : > { %28606 = vmatprep.subr.mxu0 %v34058_v19  ;;  %v3152_v63 = vpop.permute.xlu0 %3151 }
 0x4c3   : > { %v2362_v24 = vand.u32 4294901760, %v2361_v23  ;;  %v3155_v4 = vsel %vm1782_vm4, %v3152_v63, 0 }
 0x4c4   : > { %v3188_v9 = vand.u32 4294901760, %v3155_v4 }
 0x4c5   : > { %v2363_v25 = vsub.f32 %v2361_v23, %v2362_v24 }
 0x4c6   : > { %v3265_v16 = vsub.f32 %v3155_v4, %v3188_v9  ;;  %v3150_v20 = vpop.permute.xlu0 %3149 }
 0x4c7   : > { %v2364_v0 = vand.u32 4294901760, %v2363_v25  ;;  %v3153_v25 = vsel %vm1782_vm4, %v3150_v20, 0 }
 0x4c8   : > { %v30678_v26 = vpop.eup %30677 }
 0x4c9   : > { %28602 = vmatpush3.msra.mxu1 %v2364_v0  ;;  %v2246_v27 = vmul.f32 %v30678_v26, %v30676_v15  ;;  %v3223_v26 = vand.u32 4294901760, %v3153_v25 }
 0x4ca   : > { %28611 = vmatprep.subr.mxu1 %v34058_v19 }
 0x4cb   : > { %v2251_v28 = vsel %vm1782_vm4, %v2246_v27, 0 }
 0x4cc   : > { %v2319_v29 = vand.u32 4294901760, %v2251_v28 }
 0x4ce   : > { %v2320_v30 = vsub.f32 %v2251_v28, %v2319_v29  ;;  %28604 = vmatmul.mubr.f32.vlgmr.msra.gmra.mxu1 %v2319_v29 }
 0x4cf   : > { %28612 = vmatpush3.msra.mxu1 %v2284_v21  ;;  %28613 = vmatprep.mubr.msk.f32.mxu1 %vm31027_vm1, %v34058_v19 }
 0x4d0   : > { %28621 = vmatprep.subr.mxu1 %v34058_v19  ;;  %v2321_v31 = vand.u32 4294901760, %v2320_v30 }
 0x4d2   : > { %28614 = vmatmul.mubr.f32.vlgmr.msra.gmra.mxu1 %v2321_v31  ;;  %v2322_v32 = vsub.f32 %v2320_v30, %v2321_v31 }
 0x4d3   : > { %28622 = vmatpush3.msra.mxu1 %v2284_v21  ;;  %28623 = vmatprep.mubr.msk.f32.mxu1 %vm31027_vm1, %v34058_v19 }
 0x4d4   : > { %v2323_v33 = vand.u32 4294901760, %v2322_v32  ;;  %28631 = vmatprep.subr.mxu1 %v34058_v19 }
 0x4d6   : > { %28599 = vmatmul.mubr.f32.vlgmr.msra.gmra.mxu0 %v2323_v33  ;;  %28624 = vmatmul.mubr.f32.vlgmr.msra.gmra.mxu1 %v2319_v29 }
 0x4d7   : > { %28607 = vmatpush3.msra.mxu0 %v2361_v23  ;;  %28608 = vmatprep.mubr.msk.f32.mxu0 %vm31027_vm1, %v34058_v19 }
 0x4d8   : > { %28616 = vmatprep.subr.mxu0 %v34058_v19  ;;  %28633 = vmatprep.mubr.msk.f32.mxu1 %vm31027_vm1, %v34058_v19 }
 0x4d9   : > { %28632 = vmatpush3.msra.mxu1 %v31703_v42 }
 0x4da   : > { %28609 = vmatmul.mubr.f32.vlgmr.msra.gmra.mxu0 %v2320_v30  ;;  %28641 = vmatprep.subr.mxu1 %v34058_v19  ;;  %v3224_v30 = vsub.f32 %v3153_v25, %v3223_v26 }
 0x4db   : > { %28617 = vmatpush3.msra.mxu0 %v2362_v24  ;;  %28618 = vmatprep.mubr.msk.f32.mxu0 %vm31027_vm1, %v34058_v19  ;;  %v3266_v24 = vand.u32 4294901760, %v3265_v16 }
 0x4dc   : > { %28626 = vmatprep.subr.mxu0 %v34058_v19  ;;  %v3225_v33 = vand.u32 4294901760, %v3224_v30 }
 0x4dd   : > { %v3267_v28 = vsub.f32 %v3265_v16, %v3266_v24 }
 0x4de   : > { %28619 = vmatmul.mubr.f32.vlgmr.msra.gmra.mxu0 %v2319_v29  ;;  %v3226_v34 = vsub.f32 %v3224_v30, %v3225_v33 }
 0x4df   : > { %28628 = vmatprep.mubr.msk.f32.mxu0 %vm31027_vm1, %v34058_v19  ;;  %28627 = vmatpush3.msra.mxu0 %v31691_v35  ;;  %v3268_v32 = vand.u32 4294901760, %v3267_v28 }
 0x4e0   : > { %28636 = vmatprep.subr.mxu0 %v34058_v19  ;;  %v3227_v38 = vand.u32 4294901760, %v3226_v34 }
 0x58e   : > { %v2401_v50 = vpop.f32.mrf.mxu1 }
 0x590   : > { %v28605_v52 = vpop.f32.mrf.mxu1 }
 0x592   : > { %v2549_v55 = vpop.f32.mrf.mxu1 }
 0x594   : > { %v28615_v57 = vpop.f32.mrf.mxu1 }
 0x596   : > { %v2325_v60 = vpop.f32.mrf.mxu0  ;;  %v2695_v62 = vpop.f32.mrf.mxu1 }
 0x597   : > { %v2402_v3 = vadd.f32 %v2401_v50, %v2325_v60 }
 0x598   : > { %v28600_v1 = vpop.f32.mrf.mxu0  ;;  %v28625_v2 = vpop.f32.mrf.mxu1 }
 0x59a   : > { %v2475_v5 = vpop.f32.mrf.mxu0 }
 0x59b   : > { %v2476_v7 = vadd.f32 %v2475_v5, %v2402_v3 }
 0x59c   : > { %v28610_v8 = vpop.f32.mrf.mxu0 }
 0x59d   : > { %v2550_v10 = vadd.f32 %v2549_v55, %v2476_v7 }
 0x59e   : > { %v2623_v12 = vpop.f32.mrf.mxu0 }
 0x59f   : > { %v2624_v13 = vadd.f32 %v2623_v12, %v2550_v10 }
 0x5a0   : > { %v28620_v15 = vpop.f32.mrf.mxu0 }
 0x5a1   : > { %v2696_v17 = vadd.f32 %v2695_v62, %v2624_v13 }
 0x5a3   : > { %v2700_v21 = vsel %vm1782_vm4, %v2696_v17, 0 }
 0x5a4   : > { %v2768_v23 = vand.u32 4294901760, %v2700_v21 }
 0x5a6   : > { %v2769_v0 = vsub.f32 %v2700_v21, %v2768_v23  ;;  %28634 = vmatmul.mubr.f32.vlgmr.msra.gmra.mxu1 %v2768_v23 }
 0x5a7   : > { %28642 = vmatpush3.msra.mxu1 %v31691_v35  ;;  %28643 = vmatprep.mubr.msk.f32.mxu1 %vm31027_vm1, %v34058_v19 }
 0x5a8   : > { %v2770_v27 = vand.u32 4294901760, %v2769_v0  ;;  %28651 = vmatprep.subr.mxu1 %v34058_v19 }
 0x5aa   : > { %28644 = vmatmul.mubr.f32.vlgmr.msra.gmra.mxu1 %v2770_v27  ;;  %v2771_v29 = vsub.f32 %v2769_v0, %v2770_v27 }
 0x5ab   : > { %28652 = vmatpush3.msra.mxu1 %v31691_v35  ;;  %28653 = vmatprep.mubr.msk.f32.mxu1 %vm31027_vm1, %v34058_v19 }
 0x5ac   : > { %28661 = vmatprep.subr.mxu1 %v34058_v19  ;;  %v2772_v31 = vand.u32 4294901760, %v2771_v29 }
 0x5ae   : > { %28629 = vmatmul.mubr.f32.vlgmr.msra.gmra.mxu0 %v2772_v31  ;;  %28654 = vmatmul.mubr.f32.vlgmr.msra.gmra.mxu1 %v2768_v23 }
 0x5af   : > { %28662 = vmatpush3.xpose.msra.mxu1 %v3268_v32  ;;  %28637 = vmatpush3.msra.mxu0 %v31694_v36 }
 0x5b0   : > { %28638 = vmatprep.mubr.msk.f32.mxu0 %vm31027_vm1, %v34058_v19  ;;  %28663 = vmatprep.mubr.msk.f32.mxu1 %vm31027_vm1, %v34058_v19 }
 0x5b1   : > { %28671 = vmatprep.subr.mxu1 %v34058_v19  ;;  %28646 = vmatprep.subr.mxu0 %v34058_v19 }
 0x5b2   : > { %28639 = vmatmul.mubr.f32.vlgmr.msra.gmra.mxu0 %v2769_v0  ;;  %28664 = vmatmul.mubr.f32.vlgmr.msra.gmra.mxu1 %v3223_v26 }
 0x5b3   : > { %28672 = vmatpush3.xpose.msra.mxu1 %v3188_v9  ;;  %28647 = vmatpush3.msra.mxu0 %v31699_v37 }
 0x5b4   : > { %28648 = vmatprep.mubr.msk.f32.mxu0 %vm31027_vm1, %v34058_v19  ;;  %28656 = vmatprep.subr.mxu0 %v34058_v19 }
 0x5b5   : > { %28673 = vmatprep.mubr.msk.f32.mxu1 %vm31027_vm1, %v34058_v19  ;;  %28681 = vmatprep.subr.mxu1 %v34058_v19 }
 0x5b6   : > { %28649 = vmatmul.mubr.f32.vlgmr.msra.gmra.mxu0 %v2768_v23  ;;  %28674 = vmatmul.mubr.f32.vlgmr.msra.gmra.mxu1 %v3225_v33 }
 0x5b7   : > { %28657 = vmatpush3.xpose.msra.mxu0 %v3188_v9  ;;  %28682 = vmatpush3.xpose.msra.mxu1 %v3188_v9 }
 0x5b8   : > { %28658 = vmatprep.mubr.msk.f32.mxu0 %vm31027_vm1, %v34058_v19  ;;  %28666 = vmatprep.subr.mxu0 %v34058_v19 }
 0x5b9   : > { %28683 = vmatprep.mubr.msk.f32.mxu1 %vm31027_vm1, %v34058_v19  ;;  %28691 = vmatprep.subr.mxu1 %v34058_v19 }
 0x5ba   : > { %28659 = vmatmul.mubr.f32.vlgmr.msra.gmra.mxu0 %v3227_v38  ;;  %28684 = vmatmul.mubr.f32.vlgmr.msra.gmra.mxu1 %v3223_v26 }
 0x5bb   : > { %28667 = vmatpush3.xpose.msra.mxu0 %v3265_v16  ;;  %28668 = vmatprep.mubr.msk.f32.mxu0 %vm31027_vm1, %v34058_v19 }
 0x5bc   : > { %28676 = vmatprep.subr.mxu0 %v34058_v19  ;;  %28693 = vmatprep.mubr.msk.f32.mxu1 %vm31027_vm1, %v34058_v19 }
 0x5be   : > { %28669 = vmatmul.mubr.f32.vlgmr.msra.gmra.mxu0 %v3224_v30 }
 0x5bf   : > { %28677 = vmatpush3.xpose.msra.mxu0 %v3266_v24  ;;  %28678 = vmatprep.mubr.msk.f32.mxu0 %vm31027_vm1, %v34058_v19 }
 0x5c0   : > { %28686 = vmatprep.subr.mxu0 %v34058_v19 }
 0x5c2   : > { %28679 = vmatmul.mubr.f32.vlgmr.msra.gmra.mxu0 %v3223_v26 }
 0x5c3   : > { %28688 = vmatprep.mubr.msk.f32.mxu0 %vm31027_vm1, %v34058_v19 }
 0x666   : > { %v2850_v50 = vpop.f32.mrf.mxu1 }
 0x668   : > { %v28635_v52 = vpop.f32.mrf.mxu1 }
 0x66a   : > { %v2998_v55 = vpop.f32.mrf.mxu1 }
 0x66c   : > { %v28645_v57 = vpop.f32.mrf.mxu1 }
 0x66e   : > { %v2774_v60 = vpop.f32.mrf.mxu0  ;;  %v3144_v62 = vpop.f32.mrf.mxu1 }
 0x66f   : > { %v2851_v63 = vadd.f32 %v2850_v50, %v2774_v60 }
 0x670   : > { %v28630_v1 = vpop.f32.mrf.mxu0  ;;  %v28655_v2 = vpop.f32.mrf.mxu1 }
 0x672   : > { %v2924_v3 = vpop.f32.mrf.mxu0  ;;  %v3305_v4 = vpop.f32.mrf.mxu1 }
 0x673   : > { %v2925_v5 = vadd.f32 %v2924_v3, %v2851_v63 }
 0x674   : > { %v28640_v7 = vpop.f32.mrf.mxu0  ;;  %v28665_v8 = vpop.f32.mrf.mxu1 }
 0x675   : > { %v2999_v9 = vadd.f32 %v2998_v55, %v2925_v5 }
 0x676   : > { %v3072_v10 = vpop.f32.mrf.mxu0  ;;  %v3453_v12 = vpop.f32.mrf.mxu1 }
 0x677   : > { %v3073_v13 = vadd.f32 %v3072_v10, %v2999_v9 }
 0x678   : > { %v28650_v15 = vpop.f32.mrf.mxu0  ;;  %v28675_v16 = vpop.f32.mrf.mxu1 }
 0x679   : > { %v31748_v17 = vadd.f32 %v3144_v62, %v3073_v13 }
 0x67a   : > { %v3229_v20 = vpop.f32.mrf.mxu0  ;;  %v3599_v21 = vpop.f32.mrf.mxu1 }
 0x67b   : > { %v3306_v25 = vadd.f32 %v3305_v4, %v3229_v20  ;;  %v696_v20 = vld [vmem:[#allocation8 + $0x8] sm:$0xff] }
 0x67c   : > { %v28660_v23 = vpop.f32.mrf.mxu0  ;;  %v28685_v24 = vpop.f32.mrf.mxu1 }
 0x67e   : > { %v3379_v0 = vpop.f32.mrf.mxu0 }
 0x67f   : > { %v3380_v26 = vadd.f32 %v3379_v0, %v3306_v25 }
 0x680   : > { %v28670_v27 = vpop.f32.mrf.mxu0 }
 0x681   : > { %v3454_v28 = vadd.f32 %v3453_v12, %v3380_v26 }
 0x682   : > { %v3527_v29 = vpop.f32.mrf.mxu0 }
 0x683   : > { %v3528_v30 = vadd.f32 %v3527_v29, %v3454_v28 }
 0x684   : > { %v28680_v31 = vpop.f32.mrf.mxu0 }
 0x685   : > { %v3600_v32 = vadd.f32 %v3599_v21, %v3528_v30  ;;  %v31778_v21 = vand.u32 4294901760, %v696_v20 }
 0x687   : > { %v3603_v33 = vmul.f32 0.35355338, %v3600_v32  ;;  %34233 = vst [vmem:[#allocation31_spill] sm:$0xff] %v31778_v21  ;;  %v31781_v23 = vsub.f32 %v696_v20, %v31778_v21 }
 0x689   : > { %v3604_v34 = vadd.f32 %v3603_v33, %v31661_v6  ;;  %34234 = vst [vmem:[#allocation32_spill] sm:$0xff] %v31781_v23  ;;  %v31786_v24 = vand.u32 4294901760, %v31781_v23 }
 0x68b   : > { %v3605_v38 = vsel %vm1782_vm4, %v3604_v34, -inf  ;;  %34235 = vst [vmem:[#allocation33_spill] sm:$0xff] %v31786_v24  ;;  %v4182_v25 = vsub.f32 %v31781_v23, %v31786_v24 }
 0x68c   : > { %3606 = vmax.xlane.f32.xlu1 %v3605_v38 }
 0x68d   : > { %v31790_v0 = vand.u32 4294901760, %v4182_v25 }
 0x68f   : > { %34236 = vst [vmem:[#allocation34_spill] sm:$0xff] %v31790_v0 }
 0x69d   : > { %3617 = vrot.lane.b32.xlu1 %v31636_v22, %s34053_s24 }
 0x6a1   : > { %4521 = vrot.lane.b32.xlu1 %v31636_v22, %s31033_s20 }
 0x6a5   : > { %4519 = vrot.lane.b32.xlu1 %v31636_v22, %s31034_s2 }
 0x715   : > { %v3607_v50 = vpop.xlane.xlu1 %3606 }
 0x716   : > { %v3608_v52 = vsub.f32 %v3604_v34, %v3607_v50 }
 0x718   : > { %v3609_v55 = vmul.f32 1.442695, %v3608_v52 }
 0x719   : > { %v3618_v57 = vpop.permute.xlu1 %3617 }
 0x71a   : > { %30679 = vpow2.f32 %v3609_v55  ;;  %v3654_v60 = vand.u32 4294901760, %v3618_v57 }
 0x71c   : > { %v3731_v62 = vsub.f32 %v3618_v57, %v3654_v60  ;;  %28687 = vmatpush3.msra.mxu0 %v3654_v60 }
 0x71d   : > { %28696 = vmatprep.subr.mxu0 %v34058_v19  ;;  %v4522_v32 = vpop.permute.xlu1 %4521 }
 0x71e   : > { %v3732_v63 = vand.u32 4294901760, %v3731_v62  ;;  %v4525_v50 = vsel %vm1782_vm4, %v4522_v32, 0 }
 0x720   : > { %v3733_v1 = vsub.f32 %v3731_v62, %v3732_v63 }
 0x722   : > { %v3734_v2 = vand.u32 4294901760, %v3733_v1 }
 0x724   : > { %28692 = vmatpush3.msra.mxu1 %v3734_v2 }
 0x725   : > { %28701 = vmatprep.subr.mxu1 %v34058_v19 }
 0x727   : > { %v30680_v3 = vpop.eup %30679 }
 0x728   : > { %v3611_v4 = vsel %vm1782_vm4, %v30680_v3, 0.0 }
 0x729   : > { %3612 = vadd.xlane.f32.xlu0 %v3611_v4 }
 0x7b2   : > { %v3613_v5 = vpop.xlane.xlu0 %3612 }
 0x7b3   : > { %30681 = vrcp.f32 %v3613_v5  ;;  %v4520_v5 = vpop.permute.xlu1 %4519 }
 0x7c0   : > { %v30682_v7 = vpop.eup %30681 }
 0x7c1   : > { %v3616_v8 = vmul.f32 %v30682_v7, %v30680_v3 }
 0x7c3   : > { %v3621_v9 = vsel %vm1782_vm4, %v3616_v8, 0 }
 0x7c4   : > { %v3689_v10 = vand.u32 4294901760, %v3621_v9 }
 0x7c6   : > { %v3690_v12 = vsub.f32 %v3621_v9, %v3689_v10  ;;  %28694 = vmatmul.mubr.f32.vlgmr.msra.gmra.mxu1 %v3689_v10 }
 0x7c7   : > { %28702 = vmatpush3.msra.mxu1 %v3654_v60  ;;  %28703 = vmatprep.mubr.msk.f32.mxu1 %vm31027_vm1, %v34058_v19 }
 0x7c8   : > { %28711 = vmatprep.subr.mxu1 %v34058_v19  ;;  %v3691_v13 = vand.u32 4294901760, %v3690_v12 }
 0x7ca   : > { %28704 = vmatmul.mubr.f32.vlgmr.msra.gmra.mxu1 %v3691_v13  ;;  %v3692_v15 = vsub.f32 %v3690_v12, %v3691_v13 }
 0x7cb   : > { %28712 = vmatpush3.msra.mxu1 %v3654_v60  ;;  %28713 = vmatprep.mubr.msk.f32.mxu1 %vm31027_vm1, %v34058_v19  ;;  %v4558_v60 = vand.u32 4294901760, %v4525_v50 }
 0x7cc   : > { %v3693_v16 = vand.u32 4294901760, %v3692_v15  ;;  %28721 = vmatprep.subr.mxu1 %v34058_v19 }
 0x7cd   : > { %v4635_v3 = vsub.f32 %v4525_v50, %v4558_v60 }
 0x7ce   : > { %28689 = vmatmul.mubr.f32.vlgmr.msra.gmra.mxu0 %v3693_v16  ;;  %28714 = vmatmul.mubr.f32.vlgmr.msra.gmra.mxu1 %v3689_v10 }
 0x7cf   : > { %28697 = vmatpush3.msra.mxu0 %v3731_v62  ;;  %28698 = vmatprep.mubr.msk.f32.mxu0 %vm31027_vm1, %v34058_v19  ;;  %v4636_v9 = vand.u32 4294901760, %v4635_v3 }
 0x7d0   : > { %28706 = vmatprep.subr.mxu0 %v34058_v19  ;;  %28723 = vmatprep.mubr.msk.f32.mxu1 %vm31027_vm1, %v34058_v19 }
 0x7d1   : > { %28722 = vmatpush3.msra.mxu1 %v31790_v0  ;;  %v4637_v16 = vsub.f32 %v4635_v3, %v4636_v9 }
 0x7d2   : > { %28699 = vmatmul.mubr.f32.vlgmr.msra.gmra.mxu0 %v3690_v12  ;;  %28731 = vmatprep.subr.mxu1 %v34058_v19 }
 0x7d3   : > { %28707 = vmatpush3.msra.mxu0 %v3732_v63  ;;  %28708 = vmatprep.mubr.msk.f32.mxu0 %vm31027_vm1, %v34058_v19 }
 0x7d4   : > { %28716 = vmatprep.subr.mxu0 %v34058_v19 }
 0x7d6   : > { %28709 = vmatmul.mubr.f32.vlgmr.msra.gmra.mxu0 %v3689_v10  ;;  %v4523_v10 = vsel %vm1782_vm4, %v4520_v5, 0 }
 0x7d7   : > { %28718 = vmatprep.mubr.msk.f32.mxu0 %vm31027_vm1, %v34058_v19  ;;  %28717 = vmatpush3.msra.mxu0 %v31778_v21  ;;  %v4593_v13 = vand.u32 4294901760, %v4523_v10 }
 0x7d8   : > { %28726 = vmatprep.subr.mxu0 %v34058_v19 }
 0x7d9   : > { %v4594_v25 = vsub.f32 %v4523_v10, %v4593_v13 }
 0x886   : > { %v3771_v26 = vpop.f32.mrf.mxu1 }
 0x888   : > { %v28695_v27 = vpop.f32.mrf.mxu1 }
 0x889   : > { %v4638_v27 = vand.u32 4294901760, %v4637_v16 }
 0x88a   : > { %v3919_v28 = vpop.f32.mrf.mxu1 }
 0x88c   : > { %v28705_v29 = vpop.f32.mrf.mxu1 }
 0x88e   : > { %v3695_v30 = vpop.f32.mrf.mxu0  ;;  %v4065_v31 = vpop.f32.mrf.mxu1 }
 0x88f   : > { %v3772_v38 = vadd.f32 %v3771_v26, %v3695_v30 }
 0x890   : > { %v28690_v33 = vpop.f32.mrf.mxu0  ;;  %v28715_v34 = vpop.f32.mrf.mxu1 }
 0x892   : > { %v3845_v52 = vpop.f32.mrf.mxu0 }
 0x893   : > { %v3846_v55 = vadd.f32 %v3845_v52, %v3772_v38 }
 0x894   : > { %v28700_v57 = vpop.f32.mrf.mxu0 }
 0x895   : > { %v3920_v62 = vadd.f32 %v3919_v28, %v3846_v55  ;;  %v4595_v28 = vand.u32 4294901760, %v4594_v25 }
 0x896   : > { %v3993_v63 = vpop.f32.mrf.mxu0 }
 0x897   : > { %v3994_v1 = vadd.f32 %v3993_v63, %v3920_v62  ;;  %v4596_v29 = vsub.f32 %v4594_v25, %v4595_v28 }
 0x898   : > { %v28710_v2 = vpop.f32.mrf.mxu0 }
 0x899   : > { %v4066_v4 = vadd.f32 %v4065_v31, %v3994_v1  ;;  %v4597_v30 = vand.u32 4294901760, %v4596_v29 }
 0x89b   : > { %v4070_v7 = vsel %vm1782_vm4, %v4066_v4, 0  ;;  %v27531_v4 = vld [vmem:[%s34024_s10] ss:$0 sm:$0xff] }
 0x89c   : > { %v4138_v8 = vand.u32 4294901760, %v4070_v7 }
 0x89e   : > { %v4139_v12 = vsub.f32 %v4070_v7, %v4138_v8  ;;  %28724 = vmatmul.mubr.f32.vlgmr.msra.gmra.mxu1 %v4138_v8 }
 0x89f   : > { %28732 = vmatpush3.msra.mxu1 %v31778_v21  ;;  %28733 = vmatprep.mubr.msk.f32.mxu1 %vm31027_vm1, %v34058_v19 }
 0x8a0   : > { %v4140_v15 = vand.u32 4294901760, %v4139_v12  ;;  %28741 = vmatprep.subr.mxu1 %v34058_v19 }
 0x8a2   : > { %28734 = vmatmul.mubr.f32.vlgmr.msra.gmra.mxu1 %v4140_v15  ;;  %v4141_v20 = vsub.f32 %v4139_v12, %v4140_v15 }
 0x8a3   : > { %28742 = vmatpush3.msra.mxu1 %v31778_v21  ;;  %28743 = vmatprep.mubr.msk.f32.mxu1 %vm31027_vm1, %v34058_v19 }
 0x8a4   : > { %28751 = vmatprep.subr.mxu1 %v34058_v19  ;;  %v4142_v26 = vand.u32 4294901760, %v4141_v20 }
 0x8a6   : > { %28719 = vmatmul.mubr.f32.vlgmr.msra.gmra.mxu0 %v4142_v26  ;;  %28744 = vmatmul.mubr.f32.vlgmr.msra.gmra.mxu1 %v4138_v8 }
 0x8a7   : > { %28752 = vmatpush3.xpose.msra.mxu1 %v4638_v27  ;;  %28727 = vmatpush3.msra.mxu0 %v31781_v23 }
 0x8a8   : > { %28728 = vmatprep.mubr.msk.f32.mxu0 %vm31027_vm1, %v34058_v19  ;;  %28753 = vmatprep.mubr.msk.f32.mxu1 %vm31027_vm1, %v34058_v19 }
 0x8a9   : > { %28761 = vmatprep.subr.mxu1 %v34058_v19  ;;  %28736 = vmatprep.subr.mxu0 %v34058_v19 }
 0x8aa   : > { %28729 = vmatmul.mubr.f32.vlgmr.msra.gmra.mxu0 %v4139_v12  ;;  %28754 = vmatmul.mubr.f32.vlgmr.msra.gmra.mxu1 %v4593_v13  ;;  %v3148_v12 = vadd.f32 %v27531_v4, %v31748_v17 }
 0x8ab   : > { %28762 = vmatpush3.xpose.msra.mxu1 %v4558_v60  ;;  %28737 = vmatpush3.msra.mxu0 %v31786_v24 }
 0x8ac   : > { %28738 = vmatprep.mubr.msk.f32.mxu0 %vm31027_vm1, %v34058_v19  ;;  %28746 = vmatprep.subr.mxu0 %v34058_v19 }
 0x8ad   : > { %28763 = vmatprep.mubr.msk.f32.mxu1 %vm31027_vm1, %v34058_v19  ;;  %28771 = vmatprep.subr.mxu1 %v34058_v19 }
 0x8ae   : > { %28739 = vmatmul.mubr.f32.vlgmr.msra.gmra.mxu0 %v4138_v8  ;;  %28764 = vmatmul.mubr.f32.vlgmr.msra.gmra.mxu1 %v4595_v28 }
 0x8af   : > { %28747 = vmatpush3.xpose.msra.mxu0 %v4558_v60  ;;  %28772 = vmatpush3.xpose.msra.mxu1 %v4558_v60 }
 0x8b0   : > { %28748 = vmatprep.mubr.msk.f32.mxu0 %vm31027_vm1, %v34058_v19  ;;  %28756 = vmatprep.subr.mxu0 %v34058_v19 }
 0x8b1   : > { %28773 = vmatprep.mubr.msk.f32.mxu1 %vm31027_vm1, %v34058_v19  ;;  %28781 = vmatprep.subr.mxu1 %v34058_v19 }
 0x8b2   : > { %28749 = vmatmul.mubr.f32.vlgmr.msra.gmra.mxu0 %v4597_v30  ;;  %28774 = vmatmul.mubr.f32.vlgmr.msra.gmra.mxu1 %v4593_v13 }
 0x8b3   : > { %28757 = vmatpush3.xpose.msra.mxu0 %v4635_v3  ;;  %28758 = vmatprep.mubr.msk.f32.mxu0 %vm31027_vm1, %v34058_v19 }
 0x8b4   : > { %28766 = vmatprep.subr.mxu0 %v34058_v19  ;;  %28783 = vmatprep.mubr.msk.f32.mxu1 %vm31027_vm1, %v34058_v19 }
 0x8b6   : > { %28759 = vmatmul.mubr.f32.vlgmr.msra.gmra.mxu0 %v4594_v25 }
 0x8b7   : > { %28767 = vmatpush3.xpose.msra.mxu0 %v4636_v9  ;;  %28768 = vmatprep.mubr.msk.f32.mxu0 %vm31027_vm1, %v34058_v19 }
 0x8b8   : > { %28776 = vmatprep.subr.mxu0 %v34058_v19 }
 0x8ba   : > { %28769 = vmatmul.mubr.f32.vlgmr.msra.gmra.mxu0 %v4593_v13 }
 0x8bb   : > { %28778 = vmatprep.mubr.msk.f32.mxu0 %vm31027_vm1, %v34058_v19 }
 0x95e   : > { %v4220_v31 = vpop.f32.mrf.mxu1 }
 0x960   : > { %v28725_v32 = vpop.f32.mrf.mxu1 }
 0x962   : > { %v4368_v33 = vpop.f32.mrf.mxu1 }
 0x964   : > { %v28735_v34 = vpop.f32.mrf.mxu1 }
 0x966   : > { %v4144_v38 = vpop.f32.mrf.mxu0  ;;  %v4514_v50 = vpop.f32.mrf.mxu1 }
 0x967   : > { %v4221_v52 = vadd.f32 %v4220_v31, %v4144_v38 }
 0x968   : > { %v28720_v55 = vpop.f32.mrf.mxu0  ;;  %v28745_v57 = vpop.f32.mrf.mxu1 }
 0x96a   : > { %v4294_v60 = vpop.f32.mrf.mxu0  ;;  %v4675_v62 = vpop.f32.mrf.mxu1 }
 0x96b   : > { %v4295_v63 = vadd.f32 %v4294_v60, %v4221_v52 }
 0x96c   : > { %v28730_v1 = vpop.f32.mrf.mxu0  ;;  %v28755_v2 = vpop.f32.mrf.mxu1 }
 0x96d   : > { %v4369_v3 = vadd.f32 %v4368_v33, %v4295_v63 }
 0x96e   : > { %v4442_v5 = vpop.f32.mrf.mxu0  ;;  %v4823_v7 = vpop.f32.mrf.mxu1 }
 0x96f   : > { %v4443_v8 = vadd.f32 %v4442_v5, %v4369_v3 }
 0x970   : > { %v28740_v9 = vpop.f32.mrf.mxu0  ;;  %v28765_v10 = vpop.f32.mrf.mxu1 }
 0x971   : > { %v4515_v13 = vadd.f32 %v4514_v50, %v4443_v8 }
 0x972   : > { %v4599_v15 = vpop.f32.mrf.mxu0  ;;  %v4969_v16 = vpop.f32.mrf.mxu1 }
 0x973   : > { %v31839_v20 = vadd.f32 %v4515_v13, %v3148_v12  ;;  %v4676_v27 = vadd.f32 %v4675_v62, %v4599_v15 }
 0x974   : > { %v28750_v25 = vpop.f32.mrf.mxu0  ;;  %v28775_v26 = vpop.f32.mrf.mxu1 }
 0x975   : > { %v697_v26 = vld [vmem:[#allocation8 + $0x10] sm:$0xff] }
 0x976   : > { %v4749_v28 = vpop.f32.mrf.mxu0 }
 0x977   : > { %v4750_v29 = vadd.f32 %v4749_v28, %v4676_v27  ;;  %v31869_v27 = vand.u32 4294901760, %v697_v26 }
 0x978   : > { %v28760_v30 = vpop.f32.mrf.mxu0 }
 0x979   : > { %v4824_v31 = vadd.f32 %v4823_v7, %v4750_v29  ;;  %34237 = vst [vmem:[#allocation35_spill] sm:$0xff] %v31869_v27  ;;  %v31872_v28 = vsub.f32 %v697_v26, %v31869_v27 }
 0x97a   : > { %v4897_v32 = vpop.f32.mrf.mxu0 }
 0x97b   : > { %v4898_v33 = vadd.f32 %v4897_v32, %v4824_v31  ;;  %34238 = vst [vmem:[#allocation36_spill] sm:$0xff] %v31872_v28  ;;  %v31877_v29 = vand.u32 4294901760, %v31872_v28 }
 0x97c   : > { %v28770_v34 = vpop.f32.mrf.mxu0 }
 0x97d   : > { %v4970_v38 = vadd.f32 %v4969_v16, %v4898_v33  ;;  %34239 = vst [vmem:[#allocation37_spill] sm:$0xff] %v31877_v29  ;;  %v5552_v30 = vsub.f32 %v31872_v28, %v31877_v29 }
 0x97f   : > { %v4973_v52 = vmul.f32 0.35355338, %v4970_v38  ;;  %v31881_v31 = vand.u32 4294901760, %v5552_v30 }
 0x981   : > { %v4974_v55 = vadd.f32 %v4973_v52, %v31661_v6  ;;  %34240 = vst [vmem:[#allocation38_spill] sm:$0xff] %v31881_v31 }
 0x983   : > { %v4975_v17 = vsel %vm1782_vm4, %v4974_v55, -inf }
 0x984   : > { %4976 = vmax.xlane.f32.xlu1 %v4975_v17 }
 0xa0d   : > { %v4977_v50 = vpop.xlane.xlu1 %4976 }
 0xa0e   : > { %v4978_v57 = vsub.f32 %v4974_v55, %v4977_v50 }
 0xa10   : > { %v4979_v60 = vmul.f32 1.442695, %v4978_v57 }
 0xa12   : > { %30683 = vpow2.f32 %v4979_v60 }
 0xa1f   : > { %v30684_v63 = vpop.eup %30683 }
 0xa20   : > { %v4981_v62 = vsel %vm1782_vm4, %v30684_v63, 0.0 }
 0xa21   : > { %4982 = vadd.xlane.f32.xlu0 %v4981_v62 }
 0xa37   : > { %4987 = vrot.lane.b32.xlu0 %v31636_v22, %s34052_s14  ;;  %s34340_s14 = sld [smem:[#allocation142_spill]] }
 0xa3b   : > { %5891 = vrot.lane.b32.xlu0 %v31636_v22, %s31036_s15 }
 0xa3f   : > { %5889 = vrot.lane.b32.xlu0 %v31636_v22, %s31037_s19 }
 0xaaa   : > { %v4983_v6 = vpop.xlane.xlu0 %4982 }
 0xaab   : > { %30685 = vrcp.f32 %v4983_v6 }
 0xaae   : > { %v4988_v1 = vpop.permute.xlu0 %4987 }
 0xaaf   : > { %v5024_v2 = vand.u32 4294901760, %v4988_v1 }
 0xab1   : > { %v5101_v3 = vsub.f32 %v4988_v1, %v5024_v2  ;;  %28777 = vmatpush3.msra.mxu0 %v5024_v2 }
 0xab2   : > { %28786 = vmatprep.subr.mxu0 %v34058_v19  ;;  %v5892_v17 = vpop.permute.xlu0 %5891 }
 0xab3   : > { %v5102_v4 = vand.u32 4294901760, %v5101_v3 }
 0xab5   : > { %v5103_v5 = vsub.f32 %v5101_v3, %v5102_v4 }
 0xab7   : > { %v5104_v7 = vand.u32 4294901760, %v5103_v5 }
 0xab8   : > { %v30686_v8 = vpop.eup %30685 }
 0xab9   : > { %28782 = vmatpush3.msra.mxu1 %v5104_v7  ;;  %v4986_v9 = vmul.f32 %v30686_v8, %v30684_v63  ;;  %v5895_v63 = vsel %vm1782_vm4, %v5892_v17, 0 }
 0xaba   : > { %28791 = vmatprep.subr.mxu1 %v34058_v19 }
 0xabb   : > { %v4991_v10 = vsel %vm1782_vm4, %v4986_v9, 0 }
 0xabc   : > { %v5059_v12 = vand.u32 4294901760, %v4991_v10 }
 0xabe   : > { %v5060_v13 = vsub.f32 %v4991_v10, %v5059_v12  ;;  %28784 = vmatmul.mubr.f32.vlgmr.msra.gmra.mxu1 %v5059_v12  ;;  %v5890_v10 = vpop.permute.xlu0 %5889 }
 0xabf   : > { %28792 = vmatpush3.msra.mxu1 %v5024_v2  ;;  %28793 = vmatprep.mubr.msk.f32.mxu1 %vm31027_vm1, %v34058_v19 }
 0xac0   : > { %28801 = vmatprep.subr.mxu1 %v34058_v19  ;;  %v5061_v15 = vand.u32 4294901760, %v5060_v13 }
 0xac2   : > { %28794 = vmatmul.mubr.f32.vlgmr.msra.gmra.mxu1 %v5061_v15  ;;  %v5062_v16 = vsub.f32 %v5060_v13, %v5061_v15 }
 0xac3   : > { %28802 = vmatpush3.msra.mxu1 %v5024_v2  ;;  %28803 = vmatprep.mubr.msk.f32.mxu1 %vm31027_vm1, %v34058_v19  ;;  %v5928_v2 = vand.u32 4294901760, %v5895_v63 }
 0xac4   : > { %v5063_v25 = vand.u32 4294901760, %v5062_v16  ;;  %28811 = vmatprep.subr.mxu1 %v34058_v19  ;;  %v5893_v16 = vsel %vm1782_vm4, %v5890_v10, 0 }
 0xac5   : > { %v6005_v8 = vsub.f32 %v5895_v63, %v5928_v2  ;;  %v5963_v26 = vand.u32 4294901760, %v5893_v16 }
 0xac6   : > { %28779 = vmatmul.mubr.f32.vlgmr.msra.gmra.mxu0 %v5063_v25  ;;  %28804 = vmatmul.mubr.f32.vlgmr.msra.gmra.mxu1 %v5059_v12 }
 0xac7   : > { %28787 = vmatpush3.msra.mxu0 %v5101_v3  ;;  %28788 = vmatprep.mubr.msk.f32.mxu0 %vm31027_vm1, %v34058_v19  ;;  %v6006_v15 = vand.u32 4294901760, %v6005_v8 }
 0xac8   : > { %28796 = vmatprep.subr.mxu0 %v34058_v19  ;;  %28813 = vmatprep.mubr.msk.f32.mxu1 %vm31027_vm1, %v34058_v19 }
 0xac9   : > { %28812 = vmatpush3.msra.mxu1 %v31881_v31 }
 0xaca   : > { %28789 = vmatmul.mubr.f32.vlgmr.msra.gmra.mxu0 %v5060_v13  ;;  %28821 = vmatprep.subr.mxu1 %v34058_v19 }
 0xacb   : > { %28797 = vmatpush3.msra.mxu0 %v5102_v4  ;;  %28798 = vmatprep.mubr.msk.f32.mxu0 %vm31027_vm1, %v34058_v19 }
 0xacc   : > { %28806 = vmatprep.subr.mxu0 %v34058_v19 }
 0xace   : > { %28799 = vmatmul.mubr.f32.vlgmr.msra.gmra.mxu0 %v5059_v12 }
 0xacf   : > { %28808 = vmatprep.mubr.msk.f32.mxu0 %vm31027_vm1, %v34058_v19  ;;  %28807 = vmatpush3.msra.mxu0 %v31869_v27 }
 0xad0   : > { %28816 = vmatprep.subr.mxu0 %v34058_v19 }
 0xb7e   : > { %v5141_v32 = vpop.f32.mrf.mxu1 }
 0xb80   : > { %v28785_v33 = vpop.f32.mrf.mxu1 }
 0xb82   : > { %v5289_v34 = vpop.f32.mrf.mxu1 }
 0xb84   : > { %v28795_v38 = vpop.f32.mrf.mxu1 }
 0xb86   : > { %v5065_v52 = vpop.f32.mrf.mxu0  ;;  %v5435_v55 = vpop.f32.mrf.mxu1 }
 0xb87   : > { %v5142_v60 = vadd.f32 %v5141_v32, %v5065_v52  ;;  %v6007_v32 = vsub.f32 %v6005_v8, %v6006_v15 }
 0xb88   : > { %v28780_v50 = vpop.f32.mrf.mxu0  ;;  %v28805_v57 = vpop.f32.mrf.mxu1 }
 0xb89   : > { %v6008_v52 = vand.u32 4294901760, %v6007_v32 }
 0xb8a   : > { %v5215_v62 = vpop.f32.mrf.mxu0 }
 0xb8b   : > { %v5216_v6 = vadd.f32 %v5215_v62, %v5142_v60 }
 0xb8c   : > { %v28790_v1 = vpop.f32.mrf.mxu0 }
 0xb8d   : > { %v5290_v3 = vadd.f32 %v5289_v34, %v5216_v6  ;;  %v5964_v34 = vsub.f32 %v5893_v16, %v5963_v26 }
 0xb8e   : > { %v5363_v4 = vpop.f32.mrf.mxu0 }
 0xb8f   : > { %v5364_v5 = vadd.f32 %v5363_v4, %v5290_v3 }
 0xb90   : > { %v28800_v7 = vpop.f32.mrf.mxu0 }
 0xb91   : > { %v5436_v9 = vadd.f32 %v5435_v55, %v5364_v5  ;;  %v5965_v55 = vand.u32 4294901760, %v5964_v34 }
 0xb93   : > { %v5440_v12 = vsel %vm1782_vm4, %v5436_v9, 0  ;;  %v5966_v17 = vsub.f32 %v5964_v34, %v5965_v55 }
 0xb94   : > { %v5508_v13 = vand.u32 4294901760, %v5440_v12 }
 0xb95   : > { %v5967_v50 = vand.u32 4294901760, %v5966_v17 }
 0xb96   : > { %v5509_v25 = vsub.f32 %v5440_v12, %v5508_v13  ;;  %28814 = vmatmul.mubr.f32.vlgmr.msra.gmra.mxu1 %v5508_v13 }
 0xb97   : > { %28822 = vmatpush3.msra.mxu1 %v31869_v27  ;;  %28823 = vmatprep.mubr.msk.f32.mxu1 %vm31027_vm1, %v34058_v19 }
 0xb98   : > { %v5510_v30 = vand.u32 4294901760, %v5509_v25  ;;  %28831 = vmatprep.subr.mxu1 %v34058_v19 }
 0xb9a   : > { %28824 = vmatmul.mubr.f32.vlgmr.msra.gmra.mxu1 %v5510_v30  ;;  %v5511_v33 = vsub.f32 %v5509_v25, %v5510_v30 }
 0xb9b   : > { %28832 = vmatpush3.msra.mxu1 %v31869_v27  ;;  %28833 = vmatprep.mubr.msk.f32.mxu1 %vm31027_vm1, %v34058_v19 }
 0xb9c   : > { %28841 = vmatprep.subr.mxu1 %v34058_v19  ;;  %v5512_v38 = vand.u32 4294901760, %v5511_v33 }
 0xb9e   : > { %28809 = vmatmul.mubr.f32.vlgmr.msra.gmra.mxu0 %v5512_v38  ;;  %28834 = vmatmul.mubr.f32.vlgmr.msra.gmra.mxu1 %v5508_v13 }
 0xb9f   : > { %28842 = vmatpush3.xpose.msra.mxu1 %v6008_v52  ;;  %28817 = vmatpush3.msra.mxu0 %v31872_v28 }
 0xba0   : > { %28818 = vmatprep.mubr.msk.f32.mxu0 %vm31027_vm1, %v34058_v19  ;;  %28843 = vmatprep.mubr.msk.f32.mxu1 %vm31027_vm1, %v34058_v19 }
 0xba1   : > { %28851 = vmatprep.subr.mxu1 %v34058_v19  ;;  %28826 = vmatprep.subr.mxu0 %v34058_v19 }
 0xba2   : > { %28819 = vmatmul.mubr.f32.vlgmr.msra.gmra.mxu0 %v5509_v25  ;;  %28844 = vmatmul.mubr.f32.vlgmr.msra.gmra.mxu1 %v5963_v26 }
 0xba3   : > { %28852 = vmatpush3.xpose.msra.mxu1 %v5928_v2  ;;  %28827 = vmatpush3.msra.mxu0 %v31877_v29 }
 0xba4   : > { %28828 = vmatprep.mubr.msk.f32.mxu0 %vm31027_vm1, %v34058_v19  ;;  %28836 = vmatprep.subr.mxu0 %v34058_v19 }
 0xba5   : > { %28853 = vmatprep.mubr.msk.f32.mxu1 %vm31027_vm1, %v34058_v19  ;;  %28861 = vmatprep.subr.mxu1 %v34058_v19 }
 0xba6   : > { %28829 = vmatmul.mubr.f32.vlgmr.msra.gmra.mxu0 %v5508_v13  ;;  %28854 = vmatmul.mubr.f32.vlgmr.msra.gmra.mxu1 %v5965_v55 }
 0xba7   : > { %28837 = vmatpush3.xpose.msra.mxu0 %v5928_v2  ;;  %28862 = vmatpush3.xpose.msra.mxu1 %v5928_v2 }
 0xba8   : > { %28838 = vmatprep.mubr.msk.f32.mxu0 %vm31027_vm1, %v34058_v19  ;;  %28846 = vmatprep.subr.mxu0 %v34058_v19 }
 0xba9   : > { %28863 = vmatprep.mubr.msk.f32.mxu1 %vm31027_vm1, %v34058_v19  ;;  %28871 = vmatprep.subr.mxu1 %v34058_v19 }
 0xbaa   : > { %28839 = vmatmul.mubr.f32.vlgmr.msra.gmra.mxu0 %v5967_v50  ;;  %28864 = vmatmul.mubr.f32.vlgmr.msra.gmra.mxu1 %v5963_v26 }
 0xbab   : > { %28847 = vmatpush3.xpose.msra.mxu0 %v6005_v8  ;;  %28848 = vmatprep.mubr.msk.f32.mxu0 %vm31027_vm1, %v34058_v19 }
 0xbac   : > { %28856 = vmatprep.subr.mxu0 %v34058_v19  ;;  %28873 = vmatprep.mubr.msk.f32.mxu1 %vm31027_vm1, %v34058_v19 }
 0xbae   : > { %28849 = vmatmul.mubr.f32.vlgmr.msra.gmra.mxu0 %v5964_v34 }
 0xbaf   : > { %28857 = vmatpush3.xpose.msra.mxu0 %v6006_v15  ;;  %28858 = vmatprep.mubr.msk.f32.mxu0 %vm31027_vm1, %v34058_v19 }
 0xbb0   : > { %28866 = vmatprep.subr.mxu0 %v34058_v19 }
 0xbb2   : > { %28859 = vmatmul.mubr.f32.vlgmr.msra.gmra.mxu0 %v5963_v26 }
 0xbb3   : > { %28868 = vmatprep.mubr.msk.f32.mxu0 %vm31027_vm1, %v34058_v19 }
 0xc56   : > { %v5590_v57 = vpop.f32.mrf.mxu1 }
 0xc58   : > { %v28815_v60 = vpop.f32.mrf.mxu1 }
 0xc5a   : > { %v5738_v63 = vpop.f32.mrf.mxu1 }
 0xc5c   : > { %v28825_v62 = vpop.f32.mrf.mxu1 }
 0xc5e   : > { %v5514_v6 = vpop.f32.mrf.mxu0  ;;  %v5884_v1 = vpop.f32.mrf.mxu1 }
 0xc5f   : > { %v5591_v2 = vadd.f32 %v5590_v57, %v5514_v6 }
 0xc60   : > { %v28810_v3 = vpop.f32.mrf.mxu0  ;;  %v28835_v4 = vpop.f32.mrf.mxu1 }
 0xc61   : > { %v30763_v4 = vld [vmem:[#allocation7] sm:$0xff] }
 0xc62   : > { %v5664_v5 = vpop.f32.mrf.mxu0  ;;  %v6045_v7 = vpop.f32.mrf.mxu1 }
 0xc63   : > { %v5665_v8 = vadd.f32 %v5664_v5, %v5591_v2 }
 0xc64   : > { %v28820_v9 = vpop.f32.mrf.mxu0  ;;  %v28845_v10 = vpop.f32.mrf.mxu1 }
 0xc65   : > { %v5739_v12 = vadd.f32 %v5738_v63, %v5665_v8 }
 0xc66   : > { %v5812_v13 = vpop.f32.mrf.mxu0  ;;  %v6193_v15 = vpop.f32.mrf.mxu1 }
 0xc67   : > { %v5813_v16 = vadd.f32 %v5812_v13, %v5739_v12 }
 0xc68   : > { %v28830_v25 = vpop.f32.mrf.mxu0  ;;  %v28855_v26 = vpop.f32.mrf.mxu1 }
 0xc69   : > { %v5885_v30 = vadd.f32 %v5884_v1, %v5813_v16 }
 0xc6a   : > { %v5969_v32 = vpop.f32.mrf.mxu0  ;;  %v6339_v33 = vpop.f32.mrf.mxu1 }
 0xc6b   : > { %v31927_v34 = vadd.f32 %v5885_v30, %v31839_v20  ;;  %v6046_v55 = vadd.f32 %v6045_v7, %v5969_v32 }
 0xc6c   : > { %v28840_v38 = vpop.f32.mrf.mxu0  ;;  %v28865_v52 = vpop.f32.mrf.mxu1 }
 0xc6e   : > { %v6119_v17 = vpop.f32.mrf.mxu0 }
 0xc6f   : > { %v6120_v50 = vadd.f32 %v6119_v17, %v6046_v55 }
 0xc70   : > { %v28850_v57 = vpop.f32.mrf.mxu0 }
 0xc71   : > { %v6194_v60 = vadd.f32 %v6193_v15, %v6120_v50  ;;  %v698_v57 = vld [vmem:[#allocation8 + $0x18] sm:$0xff] }
 0xc72   : > { %v6267_v62 = vpop.f32.mrf.mxu0 }
 0xc73   : > { %v6268_v63 = vadd.f32 %v6267_v62, %v6194_v60  ;;  %v31952_v60 = vand.u32 4294901760, %v698_v57 }
 0xc74   : > { %v28860_v6 = vpop.f32.mrf.mxu0 }
 0xc75   : > { %v6340_v2 = vadd.f32 %v6339_v33, %v6268_v63  ;;  %34241 = vst [vmem:[#allocation39_spill] sm:$0xff] %v31952_v60  ;;  %v31955_v62 = vsub.f32 %v698_v57, %v31952_v60 }
 0xc77   : > { %v6343_v3 = vmul.f32 0.35355338, %v6340_v2  ;;  %34242 = vst [vmem:[#allocation40_spill] sm:$0xff] %v31955_v62  ;;  %v31960_v63 = vand.u32 4294901760, %v31955_v62 }
 0xc79   : > { %v6344_v5 = vadd.f32 %v30763_v4, %v6343_v3  ;;  %34243 = vst [vmem:[#allocation41_spill] sm:$0xff] %v31960_v63  ;;  %v6922_v6 = vsub.f32 %v31955_v62, %v31960_v63 }
 0xc7b   : > { %v6345_v1 = vsel %vm1782_vm4, %v6344_v5, -inf  ;;  %v31964_v2 = vand.u32 4294901760, %v6922_v6 }
 0xc7c   : > { %6346 = vmax.xlane.f32.xlu1 %v6345_v1 }
 0xc7d   : > { %34244 = vst [vmem:[#allocation42_spill] sm:$0xff] %v31964_v2 }
 0xc8d   : > { %6357 = vrot.lane.b32.xlu1 %v31636_v22, %s34051_s18  ;;  %s27366_s18 = scalar_lea.sflag [#allocation4], %s31329_s11 }
 0xd05   : > { %v6347_v20 = vpop.xlane.xlu1 %6346 }
 0xd06   : > { %v6348_v7 = vsub.f32 %v6344_v5, %v6347_v20 }
 0xd08   : > { %v6349_v8 = vmul.f32 1.442695, %v6348_v7 }
 0xd09   : > { %v6358_v9 = vpop.permute.xlu1 %6357 }
 0xd0a   : > { %30687 = vpow2.f32 %v6349_v8  ;;  %v6394_v10 = vand.u32 4294901760, %v6358_v9 }
 0xd0c   : > { %v6471_v12 = vsub.f32 %v6358_v9, %v6394_v10  ;;  %28867 = vmatpush3.msra.mxu0 %v6394_v10 }
 0xd0d   : > { %28876 = vmatprep.subr.mxu0 %v34058_v19 }
 0xd0e   : > { %v6472_v13 = vand.u32 4294901760, %v6471_v12 }
 0xd10   : > { %v6473_v15 = vsub.f32 %v6471_v12, %v6472_v13 }
 0xd12   : > { %v6474_v16 = vand.u32 4294901760, %v6473_v15 }
 0xd14   : > { %28872 = vmatpush3.msra.mxu1 %v6474_v16 }
 0xd15   : > { %28881 = vmatprep.subr.mxu1 %v34058_v19 }
 0xd17   : > { %v30688_v25 = vpop.eup %30687 }
 0xd18   : > { %v6351_v26 = vsel %vm1782_vm4, %v30688_v25, 0.0 }
 0xd19   : > { %6352 = vadd.xlane.f32.xlu0 %v6351_v26 }
 0xda2   : > { %v6353_v22 = vpop.xlane.xlu0 %6352 }
 0xda3   : > { %30689 = vrcp.f32 %v6353_v22 }
 0xdb0   : > { %v30690_v30 = vpop.eup %30689 }
 0xdb1   : > { %v6356_v32 = vmul.f32 %v30690_v30, %v30688_v25 }
 0xdb3   : > { %v6361_v33 = vsel %vm1782_vm4, %v6356_v32, 0 }
 0xdb4   : > { %v6429_v38 = vand.u32 4294901760, %v6361_v33 }
 0xdb6   : > { %v6430_v52 = vsub.f32 %v6361_v33, %v6429_v38  ;;  %28874 = vmatmul.mubr.f32.vlgmr.msra.gmra.mxu1 %v6429_v38 }
 0xdb7   : > { %28882 = vmatpush3.msra.mxu1 %v6394_v10  ;;  %28883 = vmatprep.mubr.msk.f32.mxu1 %vm31027_vm1, %v34058_v19 }
 0xdb8   : > { %28891 = vmatprep.subr.mxu1 %v34058_v19  ;;  %v6431_v55 = vand.u32 4294901760, %v6430_v52 }
 0xdba   : > { %28884 = vmatmul.mubr.f32.vlgmr.msra.gmra.mxu1 %v6431_v55  ;;  %v6432_v17 = vsub.f32 %v6430_v52, %v6431_v55 }
 0xdbb   : > { %28892 = vmatpush3.msra.mxu1 %v6394_v10  ;;  %28893 = vmatprep.mubr.msk.f32.mxu1 %vm31027_vm1, %v34058_v19 }
 0xdbc   : > { %v6433_v50 = vand.u32 4294901760, %v6432_v17  ;;  %28901 = vmatprep.subr.mxu1 %v34058_v19 }
 0xdbe   : > { %28869 = vmatmul.mubr.f32.vlgmr.msra.gmra.mxu0 %v6433_v50  ;;  %28894 = vmatmul.mubr.f32.vlgmr.msra.gmra.mxu1 %v6429_v38 }
 0xdbf   : > { %28877 = vmatpush3.msra.mxu0 %v6471_v12  ;;  %28878 = vmatprep.mubr.msk.f32.mxu0 %vm31027_vm1, %v34058_v19 }
 0xdc0   : > { %28886 = vmatprep.subr.mxu0 %v34058_v19  ;;  %28903 = vmatprep.mubr.msk.f32.mxu1 %vm31027_vm1, %v34058_v19 }
 0xdc1   : > { %28902 = vmatpush3.msra.mxu1 %v31964_v2 }
 0xdc2   : > { %28879 = vmatmul.mubr.f32.vlgmr.msra.gmra.mxu0 %v6430_v52  ;;  %28911 = vmatprep.subr.mxu1 %v34058_v19 }
 0xdc3   : > { %28887 = vmatpush3.msra.mxu0 %v6472_v13  ;;  %28888 = vmatprep.mubr.msk.f32.mxu0 %vm31027_vm1, %v34058_v19 }
 0xdc4   : > { %28896 = vmatprep.subr.mxu0 %v34058_v19 }
 0xdc6   : > { %28889 = vmatmul.mubr.f32.vlgmr.msra.gmra.mxu0 %v6429_v38 }
 0xdc7   : > { %28898 = vmatprep.mubr.msk.f32.mxu0 %vm31027_vm1, %v34058_v19  ;;  %28897 = vmatpush3.msra.mxu0 %v31952_v60 }
 0xdc8   : > { %28906 = vmatprep.subr.mxu0 %v34058_v19 }
 0xe76   : > { %v6511_v3 = vpop.f32.mrf.mxu1 }
 0xe78   : > { %v28875_v4 = vpop.f32.mrf.mxu1 }
 0xe7a   : > { %v6659_v5 = vpop.f32.mrf.mxu1 }
 0xe7c   : > { %v28885_v1 = vpop.f32.mrf.mxu1 }
 0xe7e   : > { %v6435_v20 = vpop.f32.mrf.mxu0  ;;  %v6805_v7 = vpop.f32.mrf.mxu1 }
 0xe7f   : > { %v6512_v10 = vadd.f32 %v6511_v3, %v6435_v20 }
 0xe80   : > { %v28870_v8 = vpop.f32.mrf.mxu0  ;;  %v28895_v9 = vpop.f32.mrf.mxu1 }
 0xe82   : > { %v6585_v12 = vpop.f32.mrf.mxu0 }
 0xe83   : > { %v6586_v13 = vadd.f32 %v6585_v12, %v6512_v10 }
 0xe84   : > { %v28880_v15 = vpop.f32.mrf.mxu0 }
 0xe85   : > { %v6660_v16 = vadd.f32 %v6659_v5, %v6586_v13 }
 0xe86   : > { %v6733_v25 = vpop.f32.mrf.mxu0 }
 0xe87   : > { %v6734_v26 = vadd.f32 %v6733_v25, %v6660_v16 }
 0xe88   : > { %v28890_v22 = vpop.f32.mrf.mxu0 }
 0xe89   : > { %v6806_v30 = vadd.f32 %v6805_v7, %v6734_v26  ;;  %v30764_v22 = vld [vmem:[%s601_s27] sm:$0xff]  ;;  %s34341_s27 = sld [smem:[#allocation144_spill]] }
 0xe8b   : > { %v6810_v32 = vsel %vm1782_vm4, %v6806_v30, 0 }
 0xe8c   : > { %v6878_v33 = vand.u32 4294901760, %v6810_v32 }
 0xe8e   : > { %v6879_v38 = vsub.f32 %v6810_v32, %v6878_v33  ;;  %28904 = vmatmul.mubr.f32.vlgmr.msra.gmra.mxu1 %v6878_v33 }
 0xe8f   : > { %28912 = vmatpush3.msra.mxu1 %v31952_v60  ;;  %28913 = vmatprep.mubr.msk.f32.mxu1 %vm31027_vm1, %v34058_v19  ;;  %s34342_s25 = smov %s34341_s27 }
 0xe90   : > { %v6880_v52 = vand.u32 4294901760, %v6879_v38  ;;  %28921 = vmatprep.subr.mxu1 %v34058_v19 }
 0xe92   : > { %28914 = vmatmul.mubr.f32.vlgmr.msra.gmra.mxu1 %v6880_v52  ;;  %v6881_v55 = vsub.f32 %v6879_v38, %v6880_v52  ;;  %v693_v52 = vld [vmem:[%s34019_s5 + $0x10] sm:$0xff] }
 0xe93   : > { %28922 = vmatpush3.msra.mxu1 %v31952_v60  ;;  %28923 = vmatprep.mubr.msk.f32.mxu1 %vm31027_vm1, %v34058_v19 }
 0xe94   : > { %v6882_v17 = vand.u32 4294901760, %v6881_v55  ;;  %28937 = vmatprep.subr.mxu1 %v34058_v19  ;;  %v692_v55 = vld [vmem:[%s34019_s5 + $0x8] sm:$0xff] }
 0xe96   : > { %28899 = vmatmul.mubr.f32.vlgmr.msra.gmra.mxu0 %v6882_v17  ;;  %28924 = vmatmul.mubr.f32.vlgmr.msra.gmra.mxu1 %v6878_v33 }
 0xe97   : > { %28907 = vmatpush3.msra.mxu0 %v31955_v62  ;;  %28908 = vmatprep.mubr.msk.f32.mxu0 %vm31027_vm1, %v34058_v19 }
 0xe98   : > { %28916 = vmatprep.subr.mxu0 %v34058_v19  ;;  %28945 = vmatprep.mubr.msk.f32.mxu1 %vm31027_vm1, %v34058_v19 }
 0xe9a   : > { %28909 = vmatmul.mubr.f32.vlgmr.msra.gmra.mxu0 %v6879_v38 }
 0xe9b   : > { %28917 = vmatpush3.msra.mxu0 %v31960_v63  ;;  %28918 = vmatprep.mubr.msk.f32.mxu0 %vm31027_vm1, %v34058_v19 }
 0xe9c   : > { %28926 = vmatprep.subr.mxu0 %v34058_v19 }
 0xe9e   : > { %28919 = vmatmul.mubr.f32.vlgmr.msra.gmra.mxu0 %v6878_v33 }
 0xe9f   : > { %28934 = vmatprep.mubr.msk.f32.mxu0 %vm31027_vm1, %v34058_v19 }
 0xf4e   : > { %v6960_v50 = vpop.f32.mrf.mxu1 }
 0xf50   : > { %v28905_v57 = vpop.f32.mrf.mxu1 }
 0xf51   : > { %v32014_v57 = vand.u32 4294901760, %v692_v55 }
 0xf52   : > { %v7108_v6 = vpop.f32.mrf.mxu1 }
 0xf53   : > { %34247 = vst [vmem:[#allocation45_spill] sm:$0xff] %v32014_v57 }
 0xf54   : > { %v28915_v3 = vpop.f32.mrf.mxu1 }
 0xf56   : > { %v6884_v4 = vpop.f32.mrf.mxu0  ;;  %v7254_v5 = vpop.f32.mrf.mxu1 }
 0xf57   : > { %v6961_v7 = vadd.f32 %v6960_v50, %v6884_v4  ;;  %v32012_v50 = vand.u32 4294901760, %v693_v52 }
 0xf58   : > { %v28900_v1 = vpop.f32.mrf.mxu0  ;;  %v28925_v20 = vpop.f32.mrf.mxu1 }
 0xf59   : > { %34246 = vst [vmem:[#allocation44_spill] sm:$0xff] %v32012_v50  ;;  %v32028_v1 = vsub.f32 %v692_v55, %v32014_v57 }
 0xf5a   : > { %v7034_v8 = vpop.f32.mrf.mxu0 }
 0xf5b   : > { %v7035_v9 = vadd.f32 %v7034_v8, %v6961_v7  ;;  %34251 = vst [vmem:[#allocation49_spill] sm:$0xff] %v32028_v1 }
 0xf5c   : > { %v28910_v10 = vpop.f32.mrf.mxu0 }
 0xf5d   : > { %v7109_v12 = vadd.f32 %v7108_v6, %v7035_v9  ;;  %v691_v6 = vld [vmem:[%s34019_s5] sm:$0xff]  ;;  %v32042_v9 = vand.u32 4294901760, %v32028_v1 }
 0xf5e   : > { %v7182_v13 = vpop.f32.mrf.mxu0  ;;  %v32019_v3 = vand.u32 4294901760, %v691_v6 }
 0xf5f   : > { %v7183_v15 = vadd.f32 %v7182_v13, %v7109_v12  ;;  %34255 = vst [vmem:[#allocation53_spill] sm:$0xff] %v32042_v9 }
 0xf60   : > { %v28920_v16 = vpop.f32.mrf.mxu0  ;;  %34248 = vst [vmem:[#allocation46_spill] sm:$0xff] %v32019_v3  ;;  %v32032_v20 = vsub.f32 %v691_v6, %v32019_v3 }
 0xf61   : > { %v7255_v25 = vadd.f32 %v7254_v5, %v7183_v15  ;;  %v32025_v5 = vsub.f32 %v693_v52, %v32012_v50  ;;  %v7417_v15 = vsub.f32 %v32028_v1, %v32042_v9 }
 0xf62   : > { %34252 = vst [vmem:[#allocation50_spill] sm:$0xff] %v32032_v20  ;;  %v32046_v10 = vand.u32 4294901760, %v32032_v20 }
 0xf63   : > { %v7258_v26 = vadd.f32 %v7255_v25, %v31927_v34  ;;  %v694_v34 = vld [vmem:[%s34019_s5 + $0x18] sm:$0xff]  ;;  %34250 = vst [vmem:[#allocation48_spill] sm:$0xff] %v32025_v5  ;;  %v32039_v8 = vand.u32 4294901760, %v32025_v5 }
 0xf64   : > { %v32010_v17 = vand.u32 4294901760, %v694_v34  ;;  %34256 = vst [vmem:[#allocation54_spill] sm:$0xff] %v32046_v10 }
 0xf65   : > { %v31992_v30 = vadd.f32 %v30764_v22, %v7258_v26  ;;  %34254 = vst [vmem:[#allocation52_spill] sm:$0xff] %v32039_v8  ;;  %v7410_v13 = vsub.f32 %v32025_v5, %v32039_v8  ;;  %v7424_v26 = vsub.f32 %v32032_v20, %v32046_v10  ;;  %v32066_v22 = vand.u32 4294901760, %v7417_v15 }
 0xf66   : > { %34245 = vst [vmem:[#allocation43_spill] sm:$0xff] %v32010_v17  ;;  %v32022_v4 = vsub.f32 %v694_v34, %v32010_v17  ;;  %28927 = vmatpush3.msra.mxu0 %v32010_v17 }
 0xf67   : > { %v7260_v32 = vsel %vm769_vm0, %v31992_v30, 0.0  ;;  %v7263_v33 = vmul.f32 %v31992_v30, %v31992_v30  ;;  %28928 = vmatprep.subr.mxu0 %v34058_v19  ;;  %v32059_v25 = vand.u32 4294901760, %v7410_v13  ;;  %34259 = vst [vmem:[#allocation57_spill] sm:$0xff] %v32066_v22 }
 0xf68   : > { %7261 = vadd.xlane.f32.xlu1 %v7260_v32  ;;  %34249 = vst [vmem:[#allocation47_spill] sm:$0xff] %v32022_v4  ;;  %v32036_v7 = vand.u32 4294901760, %v32022_v4  ;;  %28929 = vmatpush3.msra.mxu0 %v32012_v50  ;;  %v32070_v32 = vand.u32 4294901760, %v7424_v26 }
 0xf69   : > { %v7264_v38 = vsel %vm769_vm0, %v7263_v33, 0.0  ;;  %28930 = vmatprep.subr.mxu0 %v34058_v19  ;;  %34258 = vst [vmem:[#allocation56_spill] sm:$0xff] %v32059_v25 }
 0xf6a   : > { %7265 = vadd.xlane.f32.xlu0 %v7264_v38  ;;  %34253 = vst [vmem:[#allocation51_spill] sm:$0xff] %v32036_v7  ;;  %v7403_v12 = vsub.f32 %v32022_v4, %v32036_v7  ;;  %28931 = vmatpush3.msra.mxu0 %v32014_v57  ;;  %34260 = vst [vmem:[#allocation58_spill] sm:$0xff] %v32070_v32 }
 0xf6b   : > { %28932 = vmatprep.subr.mxu0 %v34058_v19 }
 0xf6c   : > { %v32057_v16 = vand.u32 4294901760, %v7403_v12  ;;  %28933 = vmatpush3.msra.mxu0 %v32019_v3 }
 0xf6d   : > { %28948 = vmatprep.subr.mxu0 %v34058_v19 }
 0xf6e   : > { %34257 = vst [vmem:[#allocation55_spill] sm:$0xff] %v32057_v16  ;;  %28938 = vmatpush3.msra.mxu1 %v32057_v16 }
 0xf6f   : > { %28939 = vmatprep.subr.mxu1 %v34058_v19 }
 0xf70   : > { %28940 = vmatpush3.msra.mxu1 %v32059_v25 }
 0xf71   : > { %28941 = vmatprep.subr.mxu1 %v34058_v19 }
 0xf72   : > { %28942 = vmatpush3.msra.mxu1 %v32066_v22 }
 0xf73   : > { %28943 = vmatprep.subr.mxu1 %v34058_v19 }
 0xf74   : > { %28944 = vmatpush3.msra.mxu1 %v32070_v32  ;;  %v7275_v32 = vsub.s32 2, %v31569_v11 }
 0xf75   : > { %28959 = vmatprep.subr.mxu1 %v34058_v19 }
 0xf79   : > { %9150 = vrot.lane.b32.xlu1 %v31631_v61, %s31031_s23 }
 0xff1   : > { %v7262_v33 = vpop.xlane.xlu1 %7261 }
 0xff2   : > { %v7267_v38 = vmul.f32 0.03125, %v7262_v33 }
 0xff3   : > { %v7266_v52 = vpop.xlane.xlu0 %7265 }
 0xff4   : > { %v7268_v34 = vmul.f32 %v7267_v38, %v7262_v33  ;;  %v30765_v33 = vld [vmem:[%s34031_s17] sm:$0xff] }
 0xff5   : > { %v32081_v19 = vrot.slane %v30765_v33, %v7275_v32 }
 0xff6   : > { %v7269_v55 = vsub.f32 %v7266_v52, %v7268_v34  ;;  %v7272_v34 = vsub.f32 %v31992_v30, %v7267_v38  ;;  %v7290_v52 = vsub.s32 3, %v31569_v11  ;;  %v34263_v38 = vmov 0.0  }
 0xff7   : > { %34261 = vst [vmem:[#allocation59_spill] sm:$0xff] %v32081_v19 }
 0xff8   : > { %v7270_v6 = vmax.f32 %v7269_v55, 0.0  ;;  %v7277_v55 = vmul.f32 %v32081_v19, %v7272_v34 }
 0xffa   : > { %v7271_v12 = vmul.f32 0.032258064, %v7270_v6  ;;  %v32086_v6 = vrot.slane %v30765_v33, %v7290_v52 }
 0xffc   : > { %30691 = vrsqrt.f32 %v7271_v12  ;;  %vm7280_vm5 = vcmp.eq.f32.partialorder %v7271_v12, inf  ;;  %v7283_v26 = vand.u32 2147483648, %v7271_v12  ;;  %vm7282_vm6 = vcmp.eq.f32.partialorder %v7271_v12, 0.0  ;;  %34262 = vst [vmem:[#allocation60_spill] sm:$0xff] %v32086_v6 }
0x1009   : > { %v30692_v13 = vpop.eup %30691 }
0x100a   : > { %v7279_v15 = vmul.f32 %v30692_v13, %v7271_v12 }
0x100c   : > { %v7281_v63 = vsel %vm7280_vm5, %v7271_v12, %v7279_v15  ;;  %v7785_v15 = vsel %vm1782_vm4, %v31631_v61, 0 }
0x100d   : > { %v7284_v22 = vsel %vm7282_vm6, %v7283_v26, %v7281_v63  ;;  %v32096_v33 = vand.u32 4294901760, %v7785_v15 }
0x100e   : > { %v7285_v25 = vadd.f32 1e-06, %v7284_v22 }
0x100f   : > { %34264 = vst [vmem:[#allocation61_spill] sm:$0xff] %v32096_v33 }
0x1010   : > { %30693 = vrcp.f32 %v7285_v25 }
0x101d   : > { %v30694_v12 = vpop.eup %30693 }
0x101e   : > { %v7287_v63 = vmul.f32 %v30694_v12, %v7277_v55  ;;  %v32103_v55 = vsub.f32 %v7785_v15, %v32096_v33 }
0x1020   : > { %v7292_v25 = vadd.f32 %v32086_v6, %v7287_v63  ;;  %34265 = vst [vmem:[#allocation62_spill] sm:$0xff] %v32103_v55  ;;  %v32111_v12 = vand.u32 4294901760, %v32103_v55 }
0x1022   : > { %v7294_v22 = vsel %vm769_vm0, %v7292_v25, 0  ;;  %34266 = vst [vmem:[#allocation63_spill] sm:$0xff] %v32111_v12  ;;  %v7897_v63 = vsub.f32 %v32103_v55, %v32111_v12 }
0x1023   : > { %v7365_v13 = vand.u32 4294901760, %v7294_v22 }
0x1024   : > { %v32131_v25 = vand.u32 4294901760, %v7897_v63  ;;  %v27530_v63 = vld [vmem:[%s34020_s6] ss:$0 sm:$0xff] }
0x1025   : > { %v7366_v32 = vsub.f32 %v7294_v22, %v7365_v13  ;;  %28946 = vmatmul.mubr.f32.vlgmr.msra.gmra.mxu1 %v7365_v13 }
0x1026   : > { %28960 = vmatpush3.msra.mxu1 %v32010_v17  ;;  %28967 = vmatprep.mubr.msk.f32.mxu1 %vm31027_vm1, %v34263_v38  ;;  %34267 = vst [vmem:[#allocation64_spill] sm:$0xff] %v32131_v25 }
0x1027   : > { %28961 = vmatprep.subr.mxu1 %v34263_v38  ;;  %v7367_v26 = vand.u32 4294901760, %v7366_v32 }
0x1028   : > { %28962 = vmatpush3.msra.mxu1 %v32012_v50 }
0x1029   : > { %28963 = vmatprep.subr.mxu1 %v34263_v38  ;;  %v7368_v34 = vsub.f32 %v7366_v32, %v7367_v26 }
0x102a   : > { %28964 = vmatpush3.msra.mxu1 %v32014_v57 }
0x102b   : > { %28965 = vmatprep.subr.mxu1 %v34263_v38  ;;  %v7369_v52 = vand.u32 4294901760, %v7368_v34 }
0x102c   : > { %28966 = vmatpush3.msra.mxu1 %v32019_v3 }
0x102d   : > { %28968 = vmatmul.mubr.f32.vlgmr.msra.gmra.mxu1 %v7367_v26  ;;  %28981 = vmatprep.subr.mxu1 %v34263_v38 }
0x102e   : > { %28935 = vmatmul.mubr.f32.vlgmr.msra.gmra.mxu0 %v7369_v52  ;;  %28982 = vmatpush3.msra.mxu1 %v32010_v17 }
0x102f   : > { %28949 = vmatpush3.msra.mxu0 %v32022_v4  ;;  %28983 = vmatprep.subr.mxu1 %v34263_v38 }
0x1030   : > { %28950 = vmatprep.subr.mxu0 %v34263_v38  ;;  %28984 = vmatpush3.msra.mxu1 %v32012_v50 }
0x1031   : > { %28951 = vmatpush3.msra.mxu0 %v32025_v5  ;;  %28985 = vmatprep.subr.mxu1 %v34263_v38 }
0x1032   : > { %28952 = vmatprep.subr.mxu0 %v34263_v38  ;;  %28986 = vmatpush3.msra.mxu1 %v32014_v57 }
0x1033   : > { %28953 = vmatpush3.msra.mxu0 %v32028_v1  ;;  %28987 = vmatprep.subr.mxu1 %v34263_v38 }
0x1034   : > { %28954 = vmatprep.subr.mxu0 %v34263_v38  ;;  %28956 = vmatprep.mubr.msk.f32.mxu0 %vm31027_vm1, %v34263_v38 }
0x1035   : > { %28955 = vmatpush3.msra.mxu0 %v32032_v20  ;;  %28988 = vmatpush3.msra.mxu1 %v32019_v3 }
0x1036   : > { %28989 = vmatprep.mubr.msk.f32.mxu1 %vm31027_vm1, %v34263_v38  ;;  %28957 = vmatmul.mubr.f32.vlgmr.msra.gmra.mxu0 %v7366_v32 }
0x1037   : > { %28970 = vmatprep.subr.mxu0 %v34263_v38  ;;  %28990 = vmatmul.mubr.f32.vlgmr.msra.gmra.mxu1 %v7365_v13 }
0x1038   : > { %28997 = vmatprep.subr.mxu1 %v34263_v38  ;;  %28971 = vmatpush3.msra.mxu0 %v32036_v7 }
0x1039   : > { %28998 = vmatpush3.xpose.msra.mxu1 %v32131_v25  ;;  %28972 = vmatprep.subr.mxu0 %v34263_v38 }
0x103a   : > { %28973 = vmatpush3.msra.mxu0 %v32039_v8  ;;  %28978 = vmatprep.mubr.msk.f32.mxu0 %vm31027_vm1, %v34263_v38 }
0x103b   : > { %28974 = vmatprep.subr.mxu0 %v34263_v38  ;;  %28999 = vmatprep.mubr.msk.f32.mxu1 %vm31027_vm1, %v34263_v38 }
0x103c   : > { %28975 = vmatpush3.msra.mxu0 %v32042_v9  ;;  %29007 = vmatprep.subr.mxu1 %v34263_v38 }
0x103d   : > { %28976 = vmatprep.subr.mxu0 %v34263_v38 }
0x103e   : > { %28977 = vmatpush3.msra.mxu0 %v32046_v10 }
0x103f   : > { %28979 = vmatmul.mubr.f32.vlgmr.msra.gmra.mxu0 %v7365_v13  ;;  %28992 = vmatprep.subr.mxu0 %v34263_v38 }
0x1040   : > { %28993 = vmatpush3.xpose.msra.mxu0 %v32096_v33  ;;  %28994 = vmatprep.mubr.msk.f32.mxu0 %vm31027_vm1, %v34263_v38 }
0x1041   : > { %29002 = vmatprep.subr.mxu0 %v34263_v38 }
0x10e5   : > { %v7462_v22 = vpop.f32.mrf.mxu1 }
0x10e7   : > { %v28947_v15 = vpop.f32.mrf.mxu1 }
0x10ed   : > { %v7619_v32 = vpop.f32.mrf.mxu1 }
0x10ee   : > { %v7371_v26 = vpop.f32.mrf.mxu0 }
0x10ef   : > { %v28969_v34 = vpop.f32.mrf.mxu1  ;;  %v7372_v13 = vadd.f32 %v27530_v63, %v7371_v26 }
0x10f0   : > { %v28936_v52 = vpop.f32.mrf.mxu0 }
0x10f1   : > { %v7463_v8 = vadd.f32 %v7462_v22, %v7372_v13 }
0x10f6   : > { %v7542_v10 = vpop.f32.mrf.mxu0 }
0x10f7   : > { %v7777_v9 = vpop.f32.mrf.mxu1  ;;  %v7543_v20 = vadd.f32 %v7542_v10, %v7463_v8 }
0x10f8   : > { %v28958_v25 = vpop.f32.mrf.mxu0 }
0x10f9   : > { %v28991_v7 = vpop.f32.mrf.mxu1  ;;  %v7620_v1 = vadd.f32 %v7619_v32, %v7543_v20 }
0x10ff   : > { %v7702_v5 = vpop.f32.mrf.mxu0 }
0x1100   : > { %v7703_v4 = vadd.f32 %v7702_v5, %v7620_v1 }
0x1101   : > { %v28980_v6 = vpop.f32.mrf.mxu0 }
0x1102   : > { %v32155_v15 = vadd.f32 %v7777_v9, %v7703_v4 }
0x1104   : > { %v7782_v34 = vsel %vm1782_vm4, %v32155_v15, 0 }
0x1105   : > { %v7853_v52 = vand.u32 4294901760, %v7782_v34 }
0x1107   : > { %v7854_v19 = vsub.f32 %v7782_v34, %v7853_v52  ;;  %29000 = vmatmul.mubr.f32.vlgmr.msra.gmra.mxu1 %v7853_v52 }
0x1108   : > { %29008 = vmatpush3.xpose.msra.mxu1 %v32096_v33  ;;  %29009 = vmatprep.mubr.msk.f32.mxu1 %vm31027_vm1, %v34263_v38 }
0x1109   : > { %29017 = vmatprep.subr.mxu1 %v34263_v38  ;;  %v7855_v7 = vand.u32 4294901760, %v7854_v19 }
0x110b   : > { %29010 = vmatmul.mubr.f32.vlgmr.msra.gmra.mxu1 %v7855_v7  ;;  %v7856_v20 = vsub.f32 %v7854_v19, %v7855_v7 }
0x110c   : > { %29018 = vmatpush3.xpose.msra.mxu1 %v32096_v33  ;;  %29019 = vmatprep.mubr.msk.f32.mxu1 %vm31027_vm1, %v34263_v38 }
0x110d   : > { %v7857_v4 = vand.u32 4294901760, %v7856_v20  ;;  %29027 = vmatprep.subr.mxu1 %v34263_v38 }
0x110f   : > { %28995 = vmatmul.mubr.f32.vlgmr.msra.gmra.mxu0 %v7857_v4  ;;  %29020 = vmatmul.mubr.f32.vlgmr.msra.gmra.mxu1 %v7853_v52 }
0x1110   : > { %29003 = vmatpush3.xpose.msra.mxu0 %v32103_v55  ;;  %29004 = vmatprep.mubr.msk.f32.mxu0 %vm31027_vm1, %v34263_v38 }
0x1111   : > { %29012 = vmatprep.subr.mxu0 %v34263_v38  ;;  %29029 = vmatprep.mubr.msk.f32.mxu1 %vm31027_vm1, %v34263_v38 }
0x1113   : > { %29005 = vmatmul.mubr.f32.vlgmr.msra.gmra.mxu0 %v7854_v19 }
0x1114   : > { %29013 = vmatpush3.xpose.msra.mxu0 %v32111_v12  ;;  %29014 = vmatprep.mubr.msk.f32.mxu0 %vm31027_vm1, %v34263_v38 }
0x1115   : > { %29022 = vmatprep.subr.mxu0 %v34263_v38 }
0x1117   : > { %29015 = vmatmul.mubr.f32.vlgmr.msra.gmra.mxu0 %v7853_v52 }
0x1118   : > { %29024 = vmatprep.mubr.msk.f32.mxu0 %vm31027_vm1, %v34263_v38 }
0x11c7   : > { %v7935_v5 = vpop.f32.mrf.mxu1 }
0x11c9   : > { %v29001_v1 = vpop.f32.mrf.mxu1 }
0x11cb   : > { %v8083_v8 = vpop.f32.mrf.mxu1 }
0x11cd   : > { %v29011_v9 = vpop.f32.mrf.mxu1 }
0x11cf   : > { %v7859_v10 = vpop.f32.mrf.mxu0  ;;  %v8229_v6 = vpop.f32.mrf.mxu1 }
0x11d0   : > { %v7936_v19 = vadd.f32 %v7935_v5, %v7859_v10 }
0x11d1   : > { %v28996_v25 = vpop.f32.mrf.mxu0  ;;  %v29021_v22 = vpop.f32.mrf.mxu1 }
0x11d3   : > { %v8009_v32 = vpop.f32.mrf.mxu0 }
0x11d4   : > { %v8010_v26 = vadd.f32 %v8009_v32, %v7936_v19 }
0x11d5   : > { %v29006_v63 = vpop.f32.mrf.mxu0 }
0x11d6   : > { %v8084_v13 = vadd.f32 %v8083_v8, %v8010_v26 }
0x11d7   : > { %v8157_v34 = vpop.f32.mrf.mxu0 }
0x11d8   : > { %v8158_v7 = vadd.f32 %v8157_v34, %v8084_v13 }
0x11d9   : > { %v29016_v20 = vpop.f32.mrf.mxu0 }
0x11da   : > { %v8230_v52 = vadd.f32 %v8229_v6, %v8158_v7  ;;  %v699_v20 = vld [vmem:[#allocation10] sm:$0xff] }
0x11dc   : > { %v8233_v4 = vmul.f32 0.35355338, %v8230_v52  ;;  %v32222_v52 = vand.u32 4294901760, %v699_v20 }
0x11de   : > { %v8234_v12 = vsel %vm1782_vm4, %v8233_v4, -inf  ;;  %34272 = vst [vmem:[#allocation69_spill] sm:$0xff] %v32222_v52 }
0x11df   : > { %8235 = vmax.xlane.f32.xlu0 %v8234_v12 }
0x1268   : > { %v8236_v1 = vpop.xlane.xlu0 %8235 }
0x1269   : > { %v8237_v55 = vsub.f32 %v8233_v4, %v8236_v1  ;;  %v32225_v4 = vsub.f32 %v699_v20, %v32222_v52 }
0x126b   : > { %v8238_v9 = vmul.f32 1.442695, %v8237_v55  ;;  %34273 = vst [vmem:[#allocation70_spill] sm:$0xff] %v32225_v4  ;;  %v32230_v1 = vand.u32 4294901760, %v32225_v4 }
0x126d   : > { %30695 = vpow2.f32 %v8238_v9  ;;  %34274 = vst [vmem:[#allocation71_spill] sm:$0xff] %v32230_v1  ;;  %v8811_v9 = vsub.f32 %v32225_v4, %v32230_v1 }
0x127a   : > { %v30696_v33 = vpop.eup %30695 }
0x127b   : > { %v8240_v25 = vsel %vm1782_vm4, %v30696_v33, 0.0 }
0x127c   : > { %8241 = vadd.xlane.f32.xlu0 %v8240_v25  ;;  %v32234_v25 = vand.u32 4294901760, %v8811_v9 }
0x127e   : > { %34275 = vst [vmem:[#allocation72_spill] sm:$0xff] %v32234_v25 }
0x1292   : > { %8246 = vrot.lane.b32.xlu0 %v31631_v61, %s31028_s16 }
0x1296   : > { %9148 = vrot.lane.b32.xlu0 %v32155_v15, %s31031_s23 }
0x1305   : > { %v8242_v5 = vpop.xlane.xlu0 %8241 }
0x1306   : > { %30697 = vrcp.f32 %v8242_v5 }
0x1309   : > { %v8247_v8 = vpop.permute.xlu0 %8246 }
0x130a   : > { %v32185_v10 = vand.u32 4294901760, %v8247_v8 }
0x130c   : > { %34268 = vst [vmem:[#allocation65_spill] sm:$0xff] %v32185_v10  ;;  %v32188_v12 = vsub.f32 %v8247_v8, %v32185_v10  ;;  %29023 = vmatpush3.msra.mxu0 %v32185_v10 }
0x130d   : > { %29032 = vmatprep.subr.mxu0 %v34263_v38  ;;  %v9149_v57 = vpop.permute.xlu0 %9148 }
0x130e   : > { %34269 = vst [vmem:[#allocation66_spill] sm:$0xff] %v32188_v12  ;;  %v32193_v55 = vand.u32 4294901760, %v32188_v12 }
0x1310   : > { %34270 = vst [vmem:[#allocation67_spill] sm:$0xff] %v32193_v55  ;;  %v8362_v6 = vsub.f32 %v32188_v12, %v32193_v55 }
0x1312   : > { %v32197_v22 = vand.u32 4294901760, %v8362_v6 }
0x1313   : > { %v30698_v19 = vpop.eup %30697 }
0x1314   : > { %34271 = vst [vmem:[#allocation68_spill] sm:$0xff] %v32197_v22  ;;  %29028 = vmatpush3.msra.mxu1 %v32197_v22  ;;  %v8245_v32 = vmul.f32 %v30698_v19, %v30696_v33 }
0x1315   : > { %29037 = vmatprep.subr.mxu1 %v34263_v38 }
0x1316   : > { %v8250_v26 = vsel %vm1782_vm4, %v8245_v32, 0 }
0x1317   : > { %v8318_v63 = vand.u32 4294901760, %v8250_v26 }
0x1319   : > { %v8319_v13 = vsub.f32 %v8250_v26, %v8318_v63  ;;  %29030 = vmatmul.mubr.f32.vlgmr.msra.gmra.mxu1 %v8318_v63 }
0x131a   : > { %29038 = vmatpush3.msra.mxu1 %v32185_v10  ;;  %29039 = vmatprep.mubr.msk.f32.mxu1 %vm31027_vm1, %v34263_v38 }
0x131b   : > { %29047 = vmatprep.subr.mxu1 %v34263_v38  ;;  %v8320_v34 = vand.u32 4294901760, %v8319_v13 }
0x131d   : > { %29040 = vmatmul.mubr.f32.vlgmr.msra.gmra.mxu1 %v8320_v34  ;;  %v8321_v7 = vsub.f32 %v8319_v13, %v8320_v34 }
0x131e   : > { %29048 = vmatpush3.msra.mxu1 %v32185_v10  ;;  %29049 = vmatprep.mubr.msk.f32.mxu1 %vm31027_vm1, %v34263_v38 }
0x131f   : > { %v8322_v33 = vand.u32 4294901760, %v8321_v7  ;;  %29057 = vmatprep.subr.mxu1 %v34263_v38 }
0x1321   : > { %29025 = vmatmul.mubr.f32.vlgmr.msra.gmra.mxu0 %v8322_v33  ;;  %29050 = vmatmul.mubr.f32.vlgmr.msra.gmra.mxu1 %v8318_v63 }
0x1322   : > { %29033 = vmatpush3.msra.mxu0 %v32188_v12  ;;  %29034 = vmatprep.mubr.msk.f32.mxu0 %vm31027_vm1, %v34263_v38 }
0x1323   : > { %29042 = vmatprep.subr.mxu0 %v34263_v38  ;;  %29059 = vmatprep.mubr.msk.f32.mxu1 %vm31027_vm1, %v34263_v38 }
0x1324   : > { %29058 = vmatpush3.msra.mxu1 %v32234_v25 }
0x1325   : > { %29035 = vmatmul.mubr.f32.vlgmr.msra.gmra.mxu0 %v8319_v13  ;;  %29067 = vmatprep.subr.mxu1 %v34263_v38 }
0x1326   : > { %29043 = vmatpush3.msra.mxu0 %v32193_v55  ;;  %29044 = vmatprep.mubr.msk.f32.mxu0 %vm31027_vm1, %v34263_v38 }
0x1327   : > { %29052 = vmatprep.subr.mxu0 %v34263_v38 }
0x1329   : > { %29045 = vmatmul.mubr.f32.vlgmr.msra.gmra.mxu0 %v8318_v63  ;;  %v9151_v63 = vpop.permute.xlu1 %9150 }
0x132a   : > { %29054 = vmatprep.mubr.msk.f32.mxu0 %vm31027_vm1, %v34263_v38  ;;  %29053 = vmatpush3.msra.mxu0 %v32222_v52  ;;  %v9154_v33 = vsel %vm1782_vm4, %v9151_v63, 0 }
0x132b   : > { %29062 = vmatprep.subr.mxu0 %v34263_v38  ;;  %v32239_v12 = vand.u32 4294901760, %v9154_v33 }
0x132d   : > { %34276 = vst [vmem:[#allocation73_spill] sm:$0xff] %v32239_v12 }
0x13d9   : > { %v8400_v5 = vpop.f32.mrf.mxu1 }
0x13db   : > { %v29031_v8 = vpop.f32.mrf.mxu1 }
0x13dc   : > { %v32242_v8 = vsub.f32 %v9154_v33, %v32239_v12 }
0x13dd   : > { %v8548_v6 = vpop.f32.mrf.mxu1 }
0x13de   : > { %34277 = vst [vmem:[#allocation74_spill] sm:$0xff] %v32242_v8 }
0x13df   : > { %v29041_v19 = vpop.f32.mrf.mxu1 }
0x13e1   : > { %v8324_v32 = vpop.f32.mrf.mxu0  ;;  %v8694_v26 = vpop.f32.mrf.mxu1 }
0x13e2   : > { %v8401_v7 = vadd.f32 %v8400_v5, %v8324_v32  ;;  %v32246_v5 = vand.u32 4294901760, %v32242_v8  ;;  %v9152_v32 = vsel %vm1782_vm4, %v9149_v57, 0 }
0x13e3   : > { %v29026_v13 = vpop.f32.mrf.mxu0  ;;  %v29051_v34 = vpop.f32.mrf.mxu1 }
0x13e4   : > { %34278 = vst [vmem:[#allocation75_spill] sm:$0xff] %v32246_v5 }
0x13e5   : > { %v8474_v20 = vpop.f32.mrf.mxu0 }
0x13e6   : > { %v8475_v55 = vadd.f32 %v8474_v20, %v8401_v7 }
0x13e7   : > { %v29036_v9 = vpop.f32.mrf.mxu0 }
0x13e8   : > { %v8549_v25 = vadd.f32 %v8548_v6, %v8475_v55  ;;  %v9266_v55 = vsub.f32 %v32242_v8, %v32246_v5 }
0x13e9   : > { %v8622_v10 = vpop.f32.mrf.mxu0 }
0x13ea   : > { %v8623_v22 = vadd.f32 %v8622_v10, %v8549_v25  ;;  %v32259_v6 = vand.u32 4294901760, %v9266_v55 }
0x13eb   : > { %v29046_v3 = vpop.f32.mrf.mxu0 }
0x13ec   : > { %v8695_v19 = vadd.f32 %v8694_v26, %v8623_v22  ;;  %v9222_v3 = vand.u32 4294901760, %v9152_v32  ;;  %34279 = vst [vmem:[#allocation76_spill] sm:$0xff] %v32259_v6 }
0x13ee   : > { %v8699_v13 = vsel %vm1782_vm4, %v8695_v19, 0  ;;  %v9223_v57 = vsub.f32 %v9152_v32, %v9222_v3 }
0x13ef   : > { %v8767_v34 = vand.u32 4294901760, %v8699_v13 }
0x13f0   : > { %v9224_v26 = vand.u32 4294901760, %v9223_v57 }
0x13f1   : > { %v8768_v63 = vsub.f32 %v8699_v13, %v8767_v34  ;;  %29060 = vmatmul.mubr.f32.vlgmr.msra.gmra.mxu1 %v8767_v34 }
0x13f2   : > { %29068 = vmatpush3.msra.mxu1 %v32222_v52  ;;  %29069 = vmatprep.mubr.msk.f32.mxu1 %vm31027_vm1, %v34263_v38  ;;  %v9225_v7 = vsub.f32 %v9223_v57, %v9224_v26 }
0x13f3   : > { %v8769_v10 = vand.u32 4294901760, %v8768_v63  ;;  %29077 = vmatprep.subr.mxu1 %v34263_v38 }
0x13f4   : > { %v9226_v33 = vand.u32 4294901760, %v9225_v7 }
0x13f5   : > { %29070 = vmatmul.mubr.f32.vlgmr.msra.gmra.mxu1 %v8769_v10  ;;  %v8770_v22 = vsub.f32 %v8768_v63, %v8769_v10 }
0x13f6   : > { %29078 = vmatpush3.msra.mxu1 %v32222_v52  ;;  %29079 = vmatprep.mubr.msk.f32.mxu1 %vm31027_vm1, %v34263_v38 }
0x13f7   : > { %29087 = vmatprep.subr.mxu1 %v34263_v38  ;;  %v8771_v25 = vand.u32 4294901760, %v8770_v22 }
0x13f9   : > { %29055 = vmatmul.mubr.f32.vlgmr.msra.gmra.mxu0 %v8771_v25  ;;  %29080 = vmatmul.mubr.f32.vlgmr.msra.gmra.mxu1 %v8767_v34 }
0x13fa   : > { %29088 = vmatpush3.xpose.msra.mxu1 %v32259_v6  ;;  %29063 = vmatpush3.msra.mxu0 %v32225_v4 }
0x13fb   : > { %29064 = vmatprep.mubr.msk.f32.mxu0 %vm31027_vm1, %v34263_v38  ;;  %29089 = vmatprep.mubr.msk.f32.mxu1 %vm31027_vm1, %v34263_v38 }
0x13fc   : > { %29097 = vmatprep.subr.mxu1 %v34263_v38  ;;  %29072 = vmatprep.subr.mxu0 %v34263_v38 }
0x13fd   : > { %29065 = vmatmul.mubr.f32.vlgmr.msra.gmra.mxu0 %v8768_v63  ;;  %29090 = vmatmul.mubr.f32.vlgmr.msra.gmra.mxu1 %v9222_v3 }
0x13fe   : > { %29098 = vmatpush3.xpose.msra.mxu1 %v32239_v12  ;;  %29073 = vmatpush3.msra.mxu0 %v32230_v1 }
0x13ff   : > { %29074 = vmatprep.mubr.msk.f32.mxu0 %vm31027_vm1, %v34263_v38  ;;  %29082 = vmatprep.subr.mxu0 %v34263_v38 }
0x1400   : > { %29099 = vmatprep.mubr.msk.f32.mxu1 %vm31027_vm1, %v34263_v38  ;;  %29107 = vmatprep.subr.mxu1 %v34263_v38 }
0x1401   : > { %29075 = vmatmul.mubr.f32.vlgmr.msra.gmra.mxu0 %v8767_v34  ;;  %29100 = vmatmul.mubr.f32.vlgmr.msra.gmra.mxu1 %v9224_v26 }
0x1402   : > { %29083 = vmatpush3.xpose.msra.mxu0 %v32239_v12  ;;  %29108 = vmatpush3.xpose.msra.mxu1 %v32239_v12 }
0x1403   : > { %29084 = vmatprep.mubr.msk.f32.mxu0 %vm31027_vm1, %v34263_v38  ;;  %29092 = vmatprep.subr.mxu0 %v34263_v38 }
0x1404   : > { %29109 = vmatprep.mubr.msk.f32.mxu1 %vm31027_vm1, %v34263_v38  ;;  %29117 = vmatprep.subr.mxu1 %v34263_v38 }
0x1405   : > { %29085 = vmatmul.mubr.f32.vlgmr.msra.gmra.mxu0 %v9226_v33  ;;  %29110 = vmatmul.mubr.f32.vlgmr.msra.gmra.mxu1 %v9222_v3 }
0x1406   : > { %29093 = vmatpush3.xpose.msra.mxu0 %v32242_v8  ;;  %29094 = vmatprep.mubr.msk.f32.mxu0 %vm31027_vm1, %v34263_v38 }
0x1407   : > { %29102 = vmatprep.subr.mxu0 %v34263_v38  ;;  %29119 = vmatprep.mubr.msk.f32.mxu1 %vm31027_vm1, %v34263_v38 }
0x1409   : > { %29095 = vmatmul.mubr.f32.vlgmr.msra.gmra.mxu0 %v9223_v57 }
0x140a   : > { %29103 = vmatpush3.xpose.msra.mxu0 %v32246_v5  ;;  %29104 = vmatprep.mubr.msk.f32.mxu0 %vm31027_vm1, %v34263_v38 }
0x140b   : > { %29112 = vmatprep.subr.mxu0 %v34263_v38 }
0x140d   : > { %29105 = vmatmul.mubr.f32.vlgmr.msra.gmra.mxu0 %v9222_v3 }
0x140e   : > { %29114 = vmatprep.mubr.msk.f32.mxu0 %vm31027_vm1, %v34263_v38 }
0x14b1   : > { %v8849_v20 = vpop.f32.mrf.mxu1 }
0x14b3   : > { %v29061_v9 = vpop.f32.mrf.mxu1 }
0x14b5   : > { %v8997_v19 = vpop.f32.mrf.mxu1 }
0x14b7   : > { %v29071_v13 = vpop.f32.mrf.mxu1 }
0x14b9   : > { %v8773_v34 = vpop.f32.mrf.mxu0  ;;  %v9143_v32 = vpop.f32.mrf.mxu1 }
0x14ba   : > { %v8850_v63 = vadd.f32 %v8849_v20, %v8773_v34 }
0x14bb   : > { %v29056_v10 = vpop.f32.mrf.mxu0  ;;  %v29081_v55 = vpop.f32.mrf.mxu1 }
0x14bd   : > { %v8923_v22 = vpop.f32.mrf.mxu0  ;;  %v9304_v57 = vpop.f32.mrf.mxu1 }
0x14be   : > { %v8924_v25 = vadd.f32 %v8923_v22, %v8850_v63 }
0x14bf   : > { %v29066_v26 = vpop.f32.mrf.mxu0  ;;  %v29091_v7 = vpop.f32.mrf.mxu1 }
0x14c0   : > { %v8998_v33 = vadd.f32 %v8997_v19, %v8924_v25 }
0x14c1   : > { %v9071_v5 = vpop.f32.mrf.mxu0  ;;  %v9452_v3 = vpop.f32.mrf.mxu1 }
0x14c2   : > { %v9072_v8 = vadd.f32 %v9071_v5, %v8998_v33 }
0x14c3   : > { %v29076_v1 = vpop.f32.mrf.mxu0  ;;  %v29101_v12 = vpop.f32.mrf.mxu1 }
0x14c4   : > { %v32297_v4 = vadd.f32 %v9143_v32, %v9072_v8 }
0x14c5   : > { %v9228_v9 = vpop.f32.mrf.mxu0  ;;  %v9598_v13 = vpop.f32.mrf.mxu1 }
0x14c6   : > { %v9305_v20 = vadd.f32 %v9304_v57, %v9228_v9 }
0x14c7   : > { %v29086_v6 = vpop.f32.mrf.mxu0  ;;  %v29111_v52 = vpop.f32.mrf.mxu1 }
0x14c9   : > { %v9378_v34 = vpop.f32.mrf.mxu0 }
0x14ca   : > { %v9379_v10 = vadd.f32 %v9378_v34, %v9305_v20 }
0x14cb   : > { %v29096_v55 = vpop.f32.mrf.mxu0 }
0x14cc   : > { %v9453_v50 = vadd.f32 %v9452_v3, %v9379_v10 }
0x14cd   : > { %v9526_v63 = vpop.f32.mrf.mxu0 }
0x14ce   : > { %v9527_v22 = vadd.f32 %v9526_v63, %v9453_v50 }
0x14cf   : > { %v29106_v26 = vpop.f32.mrf.mxu0 }
0x14d0   : > { %v9599_v19 = vadd.f32 %v9598_v13, %v9527_v22 }
0x14d2   : > { %v9602_v25 = vmul.f32 0.35355338, %v9599_v19  ;;  %v700_v19 = vld [vmem:[#allocation10 + $0x8] sm:$0xff] }
0x14d4   : > { %v9603_v5 = vsel %vm1782_vm4, %v9602_v25, -inf }
0x14d5   : > { %9604 = vmax.xlane.f32.xlu0 %v9603_v5 }
0x14eb   : > { %9615 = vrot.lane.b32.xlu0 %v31631_v61, %s31030_s0 }
0x14ef   : > { %10517 = vrot.lane.b32.xlu0 %v32155_v15, %s31034_s2 }
0x155e   : > { %v9605_v12 = vpop.xlane.xlu0 %9604 }
0x155f   : > { %v9606_v52 = vsub.f32 %v9602_v25, %v9605_v12  ;;  %v32344_v25 = vand.u32 4294901760, %v700_v19 }
0x1561   : > { %v9607_v1 = vmul.f32 1.442695, %v9606_v52  ;;  %34284 = vst [vmem:[#allocation81_spill] sm:$0xff] %v32344_v25  ;;  %v32347_v5 = vsub.f32 %v700_v19, %v32344_v25 }
0x1562   : > { %v9616_v8 = vpop.permute.xlu0 %9615 }
0x1563   : > { %30699 = vpow2.f32 %v9607_v1  ;;  %v32304_v6 = vand.u32 4294901760, %v9616_v8  ;;  %34285 = vst [vmem:[#allocation82_spill] sm:$0xff] %v32347_v5  ;;  %v32352_v12 = vand.u32 4294901760, %v32347_v5 }
0x1565   : > { %34280 = vst [vmem:[#allocation77_spill] sm:$0xff] %v32304_v6  ;;  %v32307_v50 = vsub.f32 %v9616_v8, %v32304_v6  ;;  %29113 = vmatpush3.msra.mxu0 %v32304_v6  ;;  %34286 = vst [vmem:[#allocation83_spill] sm:$0xff] %v32352_v12  ;;  %v10180_v52 = vsub.f32 %v32347_v5, %v32352_v12 }
0x1566   : > { %29122 = vmatprep.subr.mxu0 %v34263_v38 }
0x1567   : > { %34281 = vst [vmem:[#allocation78_spill] sm:$0xff] %v32307_v50  ;;  %v32312_v32 = vand.u32 4294901760, %v32307_v50  ;;  %v32356_v1 = vand.u32 4294901760, %v10180_v52 }
0x1569   : > { %34282 = vst [vmem:[#allocation79_spill] sm:$0xff] %v32312_v32  ;;  %v9731_v57 = vsub.f32 %v32307_v50, %v32312_v32  ;;  %34287 = vst [vmem:[#allocation84_spill] sm:$0xff] %v32356_v1 }
0x156b   : > { %v32316_v7 = vand.u32 4294901760, %v9731_v57 }
0x156d   : > { %34283 = vst [vmem:[#allocation80_spill] sm:$0xff] %v32316_v7  ;;  %29118 = vmatpush3.msra.mxu1 %v32316_v7  ;;  %v10518_v7 = vpop.permute.xlu0 %10517 }
0x156e   : > { %29127 = vmatprep.subr.mxu1 %v34263_v38 }
0x1570   : > { %v30700_v33 = vpop.eup %30699 }
0x1571   : > { %v9609_v3 = vsel %vm1782_vm4, %v30700_v33, 0.0 }
0x1572   : > { %9610 = vadd.xlane.f32.xlu1 %v9609_v3 }
0x1583   : > { %10519 = vrot.lane.b32.xlu1 %v31631_v61, %s31034_s2 }
0x15fb   : > { %v9611_v9 = vpop.xlane.xlu1 %9610 }
0x15fc   : > { %30701 = vrcp.f32 %v9611_v9 }
0x1609   : > { %v30702_v13 = vpop.eup %30701 }
0x160a   : > { %v9614_v20 = vmul.f32 %v30702_v13, %v30700_v33 }
0x160c   : > { %v9619_v34 = vsel %vm1782_vm4, %v9614_v20, 0  ;;  %v10520_v20 = vpop.permute.xlu1 %10519 }
0x160d   : > { %v9687_v10 = vand.u32 4294901760, %v9619_v34 }
0x160f   : > { %v9688_v55 = vsub.f32 %v9619_v34, %v9687_v10  ;;  %29120 = vmatmul.mubr.f32.vlgmr.msra.gmra.mxu1 %v9687_v10 }
0x1610   : > { %29128 = vmatpush3.msra.mxu1 %v32304_v6  ;;  %29129 = vmatprep.mubr.msk.f32.mxu1 %vm31027_vm1, %v34263_v38 }
0x1611   : > { %29137 = vmatprep.subr.mxu1 %v34263_v38  ;;  %v9689_v63 = vand.u32 4294901760, %v9688_v55 }
0x1613   : > { %29130 = vmatmul.mubr.f32.vlgmr.msra.gmra.mxu1 %v9689_v63  ;;  %v9690_v22 = vsub.f32 %v9688_v55, %v9689_v63  ;;  %v10523_v63 = vsel %vm1782_vm4, %v10520_v20, 0 }
0x1614   : > { %29138 = vmatpush3.msra.mxu1 %v32304_v6  ;;  %29139 = vmatprep.mubr.msk.f32.mxu1 %vm31027_vm1, %v34263_v38  ;;  %v32361_v52 = vand.u32 4294901760, %v10523_v63 }
0x1615   : > { %v9691_v26 = vand.u32 4294901760, %v9690_v22  ;;  %29147 = vmatprep.subr.mxu1 %v34263_v38 }
0x1616   : > { %34288 = vst [vmem:[#allocation85_spill] sm:$0xff] %v32361_v52 }
0x1617   : > { %29115 = vmatmul.mubr.f32.vlgmr.msra.gmra.mxu0 %v9691_v26  ;;  %29140 = vmatmul.mubr.f32.vlgmr.msra.gmra.mxu1 %v9687_v10 }
0x1618   : > { %29123 = vmatpush3.msra.mxu0 %v32307_v50  ;;  %29124 = vmatprep.mubr.msk.f32.mxu0 %vm31027_vm1, %v34263_v38 }
0x1619   : > { %29132 = vmatprep.subr.mxu0 %v34263_v38  ;;  %29149 = vmatprep.mubr.msk.f32.mxu1 %vm31027_vm1, %v34263_v38 }
0x161a   : > { %29148 = vmatpush3.msra.mxu1 %v32356_v1 }
0x161b   : > { %29125 = vmatmul.mubr.f32.vlgmr.msra.gmra.mxu0 %v9688_v55  ;;  %29157 = vmatprep.subr.mxu1 %v34263_v38 }
0x161c   : > { %29133 = vmatpush3.msra.mxu0 %v32312_v32  ;;  %29134 = vmatprep.mubr.msk.f32.mxu0 %vm31027_vm1, %v34263_v38 }
0x161d   : > { %29142 = vmatprep.subr.mxu0 %v34263_v38 }
0x161f   : > { %29135 = vmatmul.mubr.f32.vlgmr.msra.gmra.mxu0 %v9687_v10 }
0x1620   : > { %29144 = vmatprep.mubr.msk.f32.mxu0 %vm31027_vm1, %v34263_v38  ;;  %29143 = vmatpush3.msra.mxu0 %v32344_v25 }
0x1621   : > { %29152 = vmatprep.subr.mxu0 %v34263_v38 }
0x16cf   : > { %v9769_v8 = vpop.f32.mrf.mxu1 }
0x16d1   : > { %v29121_v57 = vpop.f32.mrf.mxu1 }
0x16d2   : > { %v32364_v57 = vsub.f32 %v10523_v63, %v32361_v52 }
0x16d3   : > { %v9917_v33 = vpop.f32.mrf.mxu1 }
0x16d4   : > { %34289 = vst [vmem:[#allocation86_spill] sm:$0xff] %v32364_v57 }
0x16d5   : > { %v29131_v3 = vpop.f32.mrf.mxu1 }
0x16d7   : > { %v9693_v9 = vpop.f32.mrf.mxu0  ;;  %v10063_v13 = vpop.f32.mrf.mxu1 }
0x16d8   : > { %v9770_v55 = vadd.f32 %v9769_v8, %v9693_v9  ;;  %v10521_v8 = vsel %vm1782_vm4, %v10518_v7, 0  ;;  %v32369_v9 = vand.u32 4294901760, %v32364_v57 }
0x16d9   : > { %v29116_v34 = vpop.f32.mrf.mxu0  ;;  %v29141_v10 = vpop.f32.mrf.mxu1 }
0x16da   : > { %34290 = vst [vmem:[#allocation87_spill] sm:$0xff] %v32369_v9 }
0x16db   : > { %v9843_v22 = vpop.f32.mrf.mxu0 }
0x16dc   : > { %v9844_v26 = vadd.f32 %v9843_v22, %v9770_v55 }
0x16dd   : > { %v29126_v19 = vpop.f32.mrf.mxu0 }
0x16de   : > { %v9918_v32 = vadd.f32 %v9917_v33, %v9844_v26 }
0x16df   : > { %v9991_v1 = vpop.f32.mrf.mxu0 }
0x16e0   : > { %v9992_v50 = vadd.f32 %v9991_v1, %v9918_v32 }
0x16e1   : > { %v29136_v6 = vpop.f32.mrf.mxu0 }
0x16e2   : > { %v10064_v3 = vadd.f32 %v10063_v13, %v9992_v50  ;;  %v10591_v6 = vand.u32 4294901760, %v10521_v8  ;;  %v10635_v50 = vsub.f32 %v32364_v57, %v32369_v9 }
0x16e4   : > { %v10068_v34 = vsel %vm1782_vm4, %v10064_v3, 0  ;;  %v10592_v7 = vsub.f32 %v10521_v8, %v10591_v6  ;;  %v32381_v13 = vand.u32 4294901760, %v10635_v50 }
0x16e5   : > { %v10136_v10 = vand.u32 4294901760, %v10068_v34 }
0x16e6   : > { %34291 = vst [vmem:[#allocation88_spill] sm:$0xff] %v32381_v13  ;;  %v10593_v55 = vand.u32 4294901760, %v10592_v7 }
0x16e7   : > { %v10137_v20 = vsub.f32 %v10068_v34, %v10136_v10  ;;  %29150 = vmatmul.mubr.f32.vlgmr.msra.gmra.mxu1 %v10136_v10 }
0x16e8   : > { %29158 = vmatpush3.msra.mxu1 %v32344_v25  ;;  %29159 = vmatprep.mubr.msk.f32.mxu1 %vm31027_vm1, %v34263_v38  ;;  %v10594_v63 = vsub.f32 %v10592_v7, %v10593_v55 }
0x16e9   : > { %v10138_v32 = vand.u32 4294901760, %v10137_v20  ;;  %29167 = vmatprep.subr.mxu1 %v34263_v38 }
0x16ea   : > { %v10595_v22 = vand.u32 4294901760, %v10594_v63 }
0x16eb   : > { %v10139_v1 = vsub.f32 %v10137_v20, %v10138_v32  ;;  %29160 = vmatmul.mubr.f32.vlgmr.msra.gmra.mxu1 %v10138_v32 }
0x16ec   : > { %29168 = vmatpush3.msra.mxu1 %v32344_v25  ;;  %29169 = vmatprep.mubr.msk.f32.mxu1 %vm31027_vm1, %v34263_v38 }
0x16ed   : > { %v10140_v33 = vand.u32 4294901760, %v10139_v1  ;;  %29177 = vmatprep.subr.mxu1 %v34263_v38 }
0x16ef   : > { %29145 = vmatmul.mubr.f32.vlgmr.msra.gmra.mxu0 %v10140_v33  ;;  %29170 = vmatmul.mubr.f32.vlgmr.msra.gmra.mxu1 %v10136_v10 }
0x16f0   : > { %29178 = vmatpush3.xpose.msra.mxu1 %v32381_v13  ;;  %29153 = vmatpush3.msra.mxu0 %v32347_v5 }
0x16f1   : > { %29154 = vmatprep.mubr.msk.f32.mxu0 %vm31027_vm1, %v34263_v38  ;;  %29179 = vmatprep.mubr.msk.f32.mxu1 %vm31027_vm1, %v34263_v38 }
0x16f2   : > { %29187 = vmatprep.subr.mxu1 %v34263_v38  ;;  %29162 = vmatprep.subr.mxu0 %v34263_v38 }
0x16f3   : > { %29155 = vmatmul.mubr.f32.vlgmr.msra.gmra.mxu0 %v10137_v20  ;;  %29180 = vmatmul.mubr.f32.vlgmr.msra.gmra.mxu1 %v10591_v6 }
0x16f4   : > { %29188 = vmatpush3.xpose.msra.mxu1 %v32361_v52  ;;  %29163 = vmatpush3.msra.mxu0 %v32352_v12 }
0x16f5   : > { %29164 = vmatprep.mubr.msk.f32.mxu0 %vm31027_vm1, %v34263_v38  ;;  %29172 = vmatprep.subr.mxu0 %v34263_v38 }
0x16f6   : > { %29189 = vmatprep.mubr.msk.f32.mxu1 %vm31027_vm1, %v34263_v38  ;;  %29197 = vmatprep.subr.mxu1 %v34263_v38 }
0x16f7   : > { %29165 = vmatmul.mubr.f32.vlgmr.msra.gmra.mxu0 %v10136_v10  ;;  %29190 = vmatmul.mubr.f32.vlgmr.msra.gmra.mxu1 %v10593_v55 }
0x16f8   : > { %29173 = vmatpush3.xpose.msra.mxu0 %v32361_v52  ;;  %29198 = vmatpush3.xpose.msra.mxu1 %v32361_v52 }
0x16f9   : > { %29174 = vmatprep.mubr.msk.f32.mxu0 %vm31027_vm1, %v34263_v38  ;;  %29182 = vmatprep.subr.mxu0 %v34263_v38 }
0x16fa   : > { %29199 = vmatprep.mubr.msk.f32.mxu1 %vm31027_vm1, %v34263_v38  ;;  %29207 = vmatprep.subr.mxu1 %v34263_v38 }
0x16fb   : > { %29175 = vmatmul.mubr.f32.vlgmr.msra.gmra.mxu0 %v10595_v22  ;;  %29200 = vmatmul.mubr.f32.vlgmr.msra.gmra.mxu1 %v10591_v6 }
0x16fc   : > { %29183 = vmatpush3.xpose.msra.mxu0 %v32364_v57  ;;  %29184 = vmatprep.mubr.msk.f32.mxu0 %vm31027_vm1, %v34263_v38 }
0x16fd   : > { %29192 = vmatprep.subr.mxu0 %v34263_v38  ;;  %29209 = vmatprep.mubr.msk.f32.mxu1 %vm31027_vm1, %v34263_v38 }
0x16ff   : > { %29185 = vmatmul.mubr.f32.vlgmr.msra.gmra.mxu0 %v10592_v7 }
0x1700   : > { %29193 = vmatpush3.xpose.msra.mxu0 %v32369_v9  ;;  %29194 = vmatprep.mubr.msk.f32.mxu0 %vm31027_vm1, %v34263_v38 }
0x1701   : > { %29202 = vmatprep.subr.mxu0 %v34263_v38 }
0x1703   : > { %29195 = vmatmul.mubr.f32.vlgmr.msra.gmra.mxu0 %v10591_v6  ;;  %v27532_v6 = vld [vmem:[%s34292_s9] ss:$0 sm:$0xff] }
0x1704   : > { %29204 = vmatprep.mubr.msk.f32.mxu0 %vm31027_vm1, %v34263_v38  ;;  %v9147_v52 = vadd.f32 %v27532_v6, %v32297_v4 }
0x17a7   : > { %v10218_v26 = vpop.f32.mrf.mxu1 }
0x17a9   : > { %v29151_v19 = vpop.f32.mrf.mxu1 }
0x17ab   : > { %v10366_v3 = vpop.f32.mrf.mxu1 }
0x17ad   : > { %v29161_v34 = vpop.f32.mrf.mxu1 }
0x17af   : > { %v10142_v10 = vpop.f32.mrf.mxu0  ;;  %v10512_v8 = vpop.f32.mrf.mxu1 }
0x17b0   : > { %v10219_v20 = vadd.f32 %v10218_v26, %v10142_v10 }
0x17b1   : > { %v29146_v32 = vpop.f32.mrf.mxu0  ;;  %v29171_v50 = vpop.f32.mrf.mxu1 }
0x17b3   : > { %v10292_v1 = vpop.f32.mrf.mxu0  ;;  %v10673_v7 = vpop.f32.mrf.mxu1 }
0x17b4   : > { %v10293_v33 = vadd.f32 %v10292_v1, %v10219_v20 }
0x17b5   : > { %v29156_v55 = vpop.f32.mrf.mxu0  ;;  %v29181_v63 = vpop.f32.mrf.mxu1 }
0x17b6   : > { %v10367_v22 = vadd.f32 %v10366_v3, %v10293_v33 }
0x17b7   : > { %v10440_v9 = vpop.f32.mrf.mxu0  ;;  %v10821_v57 = vpop.f32.mrf.mxu1 }
0x17b8   : > { %v10441_v19 = vadd.f32 %v10440_v9, %v10367_v22 }
0x17b9   : > { %v29166_v12 = vpop.f32.mrf.mxu0  ;;  %v29191_v34 = vpop.f32.mrf.mxu1 }
0x17ba   : > { %v10513_v26 = vadd.f32 %v10512_v8, %v10441_v19 }
0x17bb   : > { %v10597_v10 = vpop.f32.mrf.mxu0  ;;  %v10967_v32 = vpop.f32.mrf.mxu1 }
0x17bc   : > { %v32423_v50 = vadd.f32 %v10513_v26, %v9147_v52  ;;  %v10674_v55 = vadd.f32 %v10673_v7, %v10597_v10 }
0x17bd   : > { %v29176_v20 = vpop.f32.mrf.mxu0  ;;  %v29201_v1 = vpop.f32.mrf.mxu1 }
0x17bf   : > { %v10747_v3 = vpop.f32.mrf.mxu0 }
0x17c0   : > { %v10748_v33 = vadd.f32 %v10747_v3, %v10674_v55 }
0x17c1   : > { %v29186_v63 = vpop.f32.mrf.mxu0 }
0x17c2   : > { %v10822_v5 = vadd.f32 %v10821_v57, %v10748_v33  ;;  %v701_v33 = vld [vmem:[#allocation10 + $0x10] sm:$0xff] }
0x17c3   : > { %v10895_v13 = vpop.f32.mrf.mxu0  ;;  %v32470_v63 = vand.u32 4294901760, %v701_v33 }
0x17c4   : > { %v10896_v25 = vadd.f32 %v10895_v13, %v10822_v5 }
0x17c5   : > { %v29196_v17 = vpop.f32.mrf.mxu0  ;;  %34297 = vst [vmem:[#allocation93_spill] sm:$0xff] %v32470_v63 }
0x17c6   : > { %v10968_v9 = vadd.f32 %v10967_v32, %v10896_v25 }
0x17c8   : > { %v10971_v12 = vmul.f32 0.35355338, %v10968_v9  ;;  %v32473_v9 = vsub.f32 %v701_v33, %v32470_v63 }
0x17ca   : > { %v10972_v22 = vsel %vm1782_vm4, %v10971_v12, -inf  ;;  %34298 = vst [vmem:[#allocation94_spill] sm:$0xff] %v32473_v9 }
0x17cb   : > { %10973 = vmax.xlane.f32.xlu1 %v10972_v22 }
0x17dc   : > { %11888 = vrot.lane.b32.xlu1 %v31631_v61, %s31037_s19 }
0x17e0   : > { %11886 = vrot.lane.b32.xlu1 %v32155_v15, %s31037_s19 }
0x1854   : > { %v10974_v4 = vpop.xlane.xlu1 %10973 }
0x1855   : > { %v10975_v52 = vsub.f32 %v10971_v12, %v10974_v4  ;;  %v32478_v12 = vand.u32 4294901760, %v32473_v9 }
0x1857   : > { %v10976_v8 = vmul.f32 1.442695, %v10975_v52  ;;  %34299 = vst [vmem:[#allocation95_spill] sm:$0xff] %v32478_v12  ;;  %v11549_v22 = vsub.f32 %v32473_v9, %v32478_v12 }
0x1859   : > { %30703 = vpow2.f32 %v10976_v8  ;;  %v32482_v4 = vand.u32 4294901760, %v11549_v22 }
0x185b   : > { %34300 = vst [vmem:[#allocation96_spill] sm:$0xff] %v32482_v4 }
0x1866   : > { %v30704_v7 = vpop.eup %30703 }
0x1867   : > { %v10978_v57 = vsel %vm1782_vm4, %v30704_v7, 0.0 }
0x1868   : > { %10979 = vadd.xlane.f32.xlu0 %v10978_v57 }
0x187e   : > { %10984 = vrot.lane.b32.xlu0 %v31631_v61, %s31033_s20 }
0x18f1   : > { %v10980_v17 = vpop.xlane.xlu0 %10979 }
0x18f2   : > { %30705 = vrcp.f32 %v10980_v17 }
0x18f5   : > { %v10985_v25 = vpop.permute.xlu0 %10984 }
0x18f6   : > { %v32433_v5 = vand.u32 4294901760, %v10985_v25 }
0x18f8   : > { %34293 = vst [vmem:[#allocation89_spill] sm:$0xff] %v32433_v5  ;;  %v32436_v13 = vsub.f32 %v10985_v25, %v32433_v5  ;;  %29203 = vmatpush3.msra.mxu0 %v32433_v5 }
0x18f9   : > { %29212 = vmatprep.subr.mxu0 %v34263_v38 }
0x18fa   : > { %34294 = vst [vmem:[#allocation90_spill] sm:$0xff] %v32436_v13  ;;  %v32441_v15 = vand.u32 4294901760, %v32436_v13 }
0x18fc   : > { %34295 = vst [vmem:[#allocation91_spill] sm:$0xff] %v32441_v15  ;;  %v11100_v6 = vsub.f32 %v32436_v13, %v32441_v15 }
0x18fe   : > { %v32445_v19 = vand.u32 4294901760, %v11100_v6  ;;  %v11889_v6 = vpop.permute.xlu1 %11888 }
0x18ff   : > { %v30706_v34 = vpop.eup %30705 }
0x1900   : > { %34296 = vst [vmem:[#allocation92_spill] sm:$0xff] %v32445_v19  ;;  %v10983_v26 = vmul.f32 %v30706_v34, %v30704_v7  ;;  %29208 = vmatpush3.msra.mxu1 %v32445_v19 }
0x1901   : > { %29217 = vmatprep.subr.mxu1 %v34263_v38 }
0x1902   : > { %v10988_v10 = vsel %vm1782_vm4, %v10983_v26, 0 }
0x1903   : > { %v11056_v32 = vand.u32 4294901760, %v10988_v10 }
0x1905   : > { %v11057_v20 = vsub.f32 %v10988_v10, %v11056_v32  ;;  %29210 = vmatmul.mubr.f32.vlgmr.msra.gmra.mxu1 %v11056_v32 }
0x1906   : > { %29218 = vmatpush3.msra.mxu1 %v32433_v5  ;;  %29219 = vmatprep.mubr.msk.f32.mxu1 %vm31027_vm1, %v34263_v38 }
0x1907   : > { %29227 = vmatprep.subr.mxu1 %v34263_v38  ;;  %v11058_v1 = vand.u32 4294901760, %v11057_v20 }
0x1909   : > { %29220 = vmatmul.mubr.f32.vlgmr.msra.gmra.mxu1 %v11058_v1  ;;  %v11059_v55 = vsub.f32 %v11057_v20, %v11058_v1 }
0x190a   : > { %29228 = vmatpush3.msra.mxu1 %v32433_v5  ;;  %29229 = vmatprep.mubr.msk.f32.mxu1 %vm31027_vm1, %v34263_v38 }
0x190b   : > { %v11060_v3 = vand.u32 4294901760, %v11059_v55  ;;  %29237 = vmatprep.subr.mxu1 %v34263_v38 }
0x190d   : > { %29205 = vmatmul.mubr.f32.vlgmr.msra.gmra.mxu0 %v11060_v3  ;;  %29230 = vmatmul.mubr.f32.vlgmr.msra.gmra.mxu1 %v11056_v32 }
0x190e   : > { %29213 = vmatpush3.msra.mxu0 %v32436_v13  ;;  %29214 = vmatprep.mubr.msk.f32.mxu0 %vm31027_vm1, %v34263_v38  ;;  %v11887_v13 = vpop.permute.xlu1 %11886 }
0x190f   : > { %29222 = vmatprep.subr.mxu0 %v34263_v38  ;;  %29239 = vmatprep.mubr.msk.f32.mxu1 %vm31027_vm1, %v34263_v38 }
0x1910   : > { %29238 = vmatpush3.msra.mxu1 %v32482_v4 }
0x1911   : > { %29215 = vmatmul.mubr.f32.vlgmr.msra.gmra.mxu0 %v11057_v20  ;;  %29247 = vmatprep.subr.mxu1 %v34263_v38 }
0x1912   : > { %29223 = vmatpush3.msra.mxu0 %v32441_v15  ;;  %29224 = vmatprep.mubr.msk.f32.mxu0 %vm31027_vm1, %v34263_v38 }
0x1913   : > { %29232 = vmatprep.subr.mxu0 %v34263_v38 }
0x1915   : > { %29225 = vmatmul.mubr.f32.vlgmr.msra.gmra.mxu0 %v11056_v32  ;;  %v11892_v32 = vsel %vm1782_vm4, %v11889_v6, 0 }
0x1916   : > { %29234 = vmatprep.mubr.msk.f32.mxu0 %vm31027_vm1, %v34263_v38  ;;  %29233 = vmatpush3.msra.mxu0 %v32470_v63  ;;  %v32487_v3 = vand.u32 4294901760, %v11892_v32 }
0x1917   : > { %29242 = vmatprep.subr.mxu0 %v34263_v38 }
0x1918   : > { %34301 = vst [vmem:[#allocation97_spill] sm:$0xff] %v32487_v3 }
0x19c5   : > { %v11138_v52 = vpop.f32.mrf.mxu1 }
0x19c7   : > { %v29211_v8 = vpop.f32.mrf.mxu1 }
0x19c8   : > { %v32490_v8 = vsub.f32 %v11892_v32, %v32487_v3 }
0x19c9   : > { %v11286_v7 = vpop.f32.mrf.mxu1 }
0x19ca   : > { %34302 = vst [vmem:[#allocation98_spill] sm:$0xff] %v32490_v8 }
0x19cb   : > { %v29221_v57 = vpop.f32.mrf.mxu1 }
0x19cd   : > { %v11062_v17 = vpop.f32.mrf.mxu0  ;;  %v11432_v25 = vpop.f32.mrf.mxu1 }
0x19ce   : > { %v11139_v10 = vadd.f32 %v11138_v52, %v11062_v17  ;;  %v32494_v52 = vand.u32 4294901760, %v32490_v8  ;;  %v11890_v17 = vsel %vm1782_vm4, %v11887_v13, 0 }
0x19cf   : > { %v29206_v34 = vpop.f32.mrf.mxu0  ;;  %v29231_v26 = vpop.f32.mrf.mxu1 }
0x19d0   : > { %34303 = vst [vmem:[#allocation99_spill] sm:$0xff] %v32494_v52 }
0x19d1   : > { %v11212_v20 = vpop.f32.mrf.mxu0 }
0x19d2   : > { %v11213_v1 = vadd.f32 %v11212_v20, %v11139_v10 }
0x19d3   : > { %v29216_v55 = vpop.f32.mrf.mxu0 }
0x19d4   : > { %v11287_v33 = vadd.f32 %v11286_v7, %v11213_v1 }
0x19d5   : > { %v11360_v22 = vpop.f32.mrf.mxu0 }
0x19d6   : > { %v11361_v15 = vadd.f32 %v11360_v22, %v11287_v33 }
0x19d7   : > { %v29226_v4 = vpop.f32.mrf.mxu0 }
0x19d8   : > { %v11433_v57 = vadd.f32 %v11432_v25, %v11361_v15  ;;  %v11960_v4 = vand.u32 4294901760, %v11890_v17  ;;  %v12004_v15 = vsub.f32 %v32490_v8, %v32494_v52 }
0x19da   : > { %v11437_v34 = vsel %vm1782_vm4, %v11433_v57, 0  ;;  %v11961_v13 = vsub.f32 %v11890_v17, %v11960_v4  ;;  %v32507_v32 = vand.u32 4294901760, %v12004_v15 }
0x19db   : > { %v11505_v26 = vand.u32 4294901760, %v11437_v34 }
0x19dc   : > { %34304 = vst [vmem:[#allocation100_spill] sm:$0xff] %v32507_v32  ;;  %v11962_v20 = vand.u32 4294901760, %v11961_v13 }
0x19dd   : > { %v11506_v6 = vsub.f32 %v11437_v34, %v11505_v26  ;;  %29240 = vmatmul.mubr.f32.vlgmr.msra.gmra.mxu1 %v11505_v26 }
0x19de   : > { %29248 = vmatpush3.msra.mxu1 %v32470_v63  ;;  %29249 = vmatprep.mubr.msk.f32.mxu1 %vm31027_vm1, %v34263_v38  ;;  %v11963_v1 = vsub.f32 %v11961_v13, %v11962_v20 }
0x19df   : > { %v11507_v7 = vand.u32 4294901760, %v11506_v6  ;;  %29257 = vmatprep.subr.mxu1 %v34263_v38 }
0x19e0   : > { %v11964_v55 = vand.u32 4294901760, %v11963_v1 }
0x19e1   : > { %v11508_v25 = vsub.f32 %v11506_v6, %v11507_v7  ;;  %29250 = vmatmul.mubr.f32.vlgmr.msra.gmra.mxu1 %v11507_v7 }
0x19e2   : > { %29258 = vmatpush3.msra.mxu1 %v32470_v63  ;;  %29259 = vmatprep.mubr.msk.f32.mxu1 %vm31027_vm1, %v34263_v38 }
0x19e3   : > { %v11509_v10 = vand.u32 4294901760, %v11508_v25  ;;  %29267 = vmatprep.subr.mxu1 %v34263_v38 }
0x19e5   : > { %29235 = vmatmul.mubr.f32.vlgmr.msra.gmra.mxu0 %v11509_v10  ;;  %29260 = vmatmul.mubr.f32.vlgmr.msra.gmra.mxu1 %v11505_v26 }
0x19e6   : > { %29268 = vmatpush3.xpose.msra.mxu1 %v32507_v32  ;;  %29243 = vmatpush3.msra.mxu0 %v32473_v9 }
0x19e7   : > { %29244 = vmatprep.mubr.msk.f32.mxu0 %vm31027_vm1, %v34263_v38  ;;  %29269 = vmatprep.mubr.msk.f32.mxu1 %vm31027_vm1, %v34263_v38 }
0x19e8   : > { %29277 = vmatprep.subr.mxu1 %v34263_v38  ;;  %29252 = vmatprep.subr.mxu0 %v34263_v38 }
0x19e9   : > { %29245 = vmatmul.mubr.f32.vlgmr.msra.gmra.mxu0 %v11506_v6  ;;  %29270 = vmatmul.mubr.f32.vlgmr.msra.gmra.mxu1 %v11960_v4 }
0x19ea   : > { %29278 = vmatpush3.xpose.msra.mxu1 %v32487_v3  ;;  %29253 = vmatpush3.msra.mxu0 %v32478_v12 }
0x19eb   : > { %29254 = vmatprep.mubr.msk.f32.mxu0 %vm31027_vm1, %v34263_v38  ;;  %29262 = vmatprep.subr.mxu0 %v34263_v38 }
0x19ec   : > { %29279 = vmatprep.mubr.msk.f32.mxu1 %vm31027_vm1, %v34263_v38  ;;  %29287 = vmatprep.subr.mxu1 %v34263_v38 }
0x19ed   : > { %29255 = vmatmul.mubr.f32.vlgmr.msra.gmra.mxu0 %v11505_v26  ;;  %29280 = vmatmul.mubr.f32.vlgmr.msra.gmra.mxu1 %v11962_v20 }
0x19ee   : > { %29263 = vmatpush3.xpose.msra.mxu0 %v32487_v3  ;;  %29288 = vmatpush3.xpose.msra.mxu1 %v32487_v3 }
0x19ef   : > { %29264 = vmatprep.mubr.msk.f32.mxu0 %vm31027_vm1, %v34263_v38  ;;  %29272 = vmatprep.subr.mxu0 %v34263_v38 }
0x19f0   : > { %29289 = vmatprep.mubr.msk.f32.mxu1 %vm31027_vm1, %v34263_v38  ;;  %29297 = vmatprep.subr.mxu1 %v34263_v38 }
0x19f1   : > { %29265 = vmatmul.mubr.f32.vlgmr.msra.gmra.mxu0 %v11964_v55  ;;  %29290 = vmatmul.mubr.f32.vlgmr.msra.gmra.mxu1 %v11960_v4 }
0x19f2   : > { %29273 = vmatpush3.xpose.msra.mxu0 %v32490_v8  ;;  %29274 = vmatprep.mubr.msk.f32.mxu0 %vm31027_vm1, %v34263_v38 }
0x19f3   : > { %29282 = vmatprep.subr.mxu0 %v34263_v38  ;;  %29299 = vmatprep.mubr.msk.f32.mxu1 %vm31027_vm1, %v34263_v38 }
0x19f5   : > { %29275 = vmatmul.mubr.f32.vlgmr.msra.gmra.mxu0 %v11961_v13 }
0x19f6   : > { %29283 = vmatpush3.xpose.msra.mxu0 %v32494_v52  ;;  %29284 = vmatprep.mubr.msk.f32.mxu0 %vm31027_vm1, %v34263_v38 }
0x19f7   : > { %29292 = vmatprep.subr.mxu0 %v34263_v38 }
0x19f9   : > { %29285 = vmatmul.mubr.f32.vlgmr.msra.gmra.mxu0 %v11960_v4 }
0x19fa   : > { %29294 = vmatprep.mubr.msk.f32.mxu0 %vm31027_vm1, %v34263_v38 }
0x1a9d   : > { %v11587_v33 = vpop.f32.mrf.mxu1 }
0x1a9f   : > { %v29241_v22 = vpop.f32.mrf.mxu1 }
0x1aa1   : > { %v11735_v57 = vpop.f32.mrf.mxu1 }
0x1aa3   : > { %v29251_v34 = vpop.f32.mrf.mxu1 }
0x1aa5   : > { %v11511_v26 = vpop.f32.mrf.mxu0  ;;  %v11881_v17 = vpop.f32.mrf.mxu1 }
0x1aa6   : > { %v11588_v6 = vadd.f32 %v11587_v33, %v11511_v26 }
0x1aa7   : > { %v29236_v7 = vpop.f32.mrf.mxu0  ;;  %v29261_v15 = vpop.f32.mrf.mxu1 }
0x1aa9   : > { %v11661_v25 = vpop.f32.mrf.mxu0  ;;  %v12042_v13 = vpop.f32.mrf.mxu1 }
0x1aaa   : > { %v11662_v10 = vadd.f32 %v11661_v25, %v11588_v6 }
0x1aab   : > { %v29246_v20 = vpop.f32.mrf.mxu0  ;;  %v29271_v1 = vpop.f32.mrf.mxu1 }
0x1aac   : > { %v11736_v55 = vadd.f32 %v11735_v57, %v11662_v10 }
0x1aad   : > { %v11809_v52 = vpop.f32.mrf.mxu0  ;;  %v12190_v4 = vpop.f32.mrf.mxu1 }
0x1aae   : > { %v11810_v8 = vadd.f32 %v11809_v52, %v11736_v55 }
0x1aaf   : > { %v29256_v12 = vpop.f32.mrf.mxu0  ;;  %v29281_v3 = vpop.f32.mrf.mxu1 }
0x1ab0   : > { %v11882_v9 = vadd.f32 %v11881_v17, %v11810_v8 }
0x1ab1   : > { %v11966_v22 = vpop.f32.mrf.mxu0  ;;  %v12336_v32 = vpop.f32.mrf.mxu1 }
0x1ab2   : > { %v32546_v34 = vadd.f32 %v11882_v9, %v32423_v50  ;;  %v12043_v7 = vadd.f32 %v12042_v13, %v11966_v22 }
0x1ab3   : > { %v29266_v33 = vpop.f32.mrf.mxu0  ;;  %v29291_v26 = vpop.f32.mrf.mxu1 }
0x1ab5   : > { %v12116_v15 = vpop.f32.mrf.mxu0 }
0x1ab6   : > { %v12117_v63 = vadd.f32 %v12116_v15, %v12043_v7 }
0x1ab7   : > { %v29276_v6 = vpop.f32.mrf.mxu0 }
0x1ab8   : > { %v12191_v25 = vadd.f32 %v12190_v4, %v12117_v63 }
0x1ab9   : > { %v12264_v20 = vpop.f32.mrf.mxu0 }
0x1aba   : > { %v12265_v57 = vadd.f32 %v12264_v20, %v12191_v25 }
0x1abb   : > { %v29286_v10 = vpop.f32.mrf.mxu0 }
0x1abc   : > { %v12337_v1 = vadd.f32 %v12336_v32, %v12265_v57  ;;  %v702_v10 = vld [vmem:[#allocation10 + $0x18] sm:$0xff] }
0x1abe   : > { %v12340_v52 = vmul.f32 0.35355338, %v12337_v1  ;;  %v32589_v1 = vand.u32 4294901760, %v702_v10 }
0x1ac0   : > { %v12341_v12 = vsel %vm1782_vm4, %v12340_v52, -inf  ;;  %34309 = vst [vmem:[#allocation105_spill] sm:$0xff] %v32589_v1 }
0x1ac1   : > { %12342 = vmax.xlane.f32.xlu0 %v12341_v12 }
0x1ad7   : > { %12353 = vrot.lane.b32.xlu0 %v31631_v61, %s31036_s15 }
0x1b4a   : > { %v12343_v50 = vpop.xlane.xlu0 %12342 }
0x1b4b   : > { %v12344_v9 = vsub.f32 %v12340_v52, %v12343_v50  ;;  %v32592_v52 = vsub.f32 %v702_v10, %v32589_v1 }
0x1b4d   : > { %v12345_v3 = vmul.f32 1.442695, %v12344_v9  ;;  %34310 = vst [vmem:[#allocation106_spill] sm:$0xff] %v32592_v52  ;;  %v32597_v12 = vand.u32 4294901760, %v32592_v52 }
0x1b4e   : > { %v12354_v8 = vpop.permute.xlu0 %12353 }
0x1b4f   : > { %30707 = vpow2.f32 %v12345_v3  ;;  %v32551_v17 = vand.u32 4294901760, %v12354_v8  ;;  %34311 = vst [vmem:[#allocation107_spill] sm:$0xff] %v32597_v12  ;;  %v12918_v50 = vsub.f32 %v32592_v52, %v32597_v12 }
0x1b51   : > { %34305 = vst [vmem:[#allocation101_spill] sm:$0xff] %v32551_v17  ;;  %v32554_v63 = vsub.f32 %v12354_v8, %v32551_v17  ;;  %29293 = vmatpush3.msra.mxu0 %v32551_v17  ;;  %v32601_v9 = vand.u32 4294901760, %v12918_v50 }
0x1b52   : > { %29302 = vmatprep.subr.mxu0 %v34263_v38 }
0x1b53   : > { %34306 = vst [vmem:[#allocation102_spill] sm:$0xff] %v32554_v63  ;;  %v32559_v32 = vand.u32 4294901760, %v32554_v63  ;;  %34312 = vst [vmem:[#allocation108_spill] sm:$0xff] %v32601_v9 }
0x1b55   : > { %34307 = vst [vmem:[#allocation103_spill] sm:$0xff] %v32559_v32  ;;  %v12469_v61 = vsub.f32 %v32554_v63, %v32559_v32 }
0x1b57   : > { %v32563_v13 = vand.u32 4294901760, %v12469_v61 }
0x1b59   : > { %34308 = vst [vmem:[#allocation104_spill] sm:$0xff] %v32563_v13  ;;  %29298 = vmatpush3.msra.mxu1 %v32563_v13 }
0x1b5a   : > { %29307 = vmatprep.subr.mxu1 %v34263_v38 }
0x1b5c   : > { %v30708_v55 = vpop.eup %30707 }
0x1b5d   : > { %v12347_v4 = vsel %vm1782_vm4, %v30708_v55, 0.0 }
0x1b5e   : > { %12348 = vadd.xlane.f32.xlu1 %v12347_v4 }
0x1be7   : > { %v12349_v22 = vpop.xlane.xlu1 %12348 }
0x1be8   : > { %30709 = vrcp.f32 %v12349_v22 }
0x1bf5   : > { %v30710_v33 = vpop.eup %30709 }
0x1bf6   : > { %v12352_v26 = vmul.f32 %v30710_v33, %v30708_v55 }
0x1bf8   : > { %v12357_v7 = vsel %vm1782_vm4, %v12352_v26, 0 }
0x1bf9   : > { %v12425_v15 = vand.u32 4294901760, %v12357_v7 }
0x1bfb   : > { %v12426_v6 = vsub.f32 %v12357_v7, %v12425_v15  ;;  %29300 = vmatmul.mubr.f32.vlgmr.msra.gmra.mxu1 %v12425_v15 }
0x1bfc   : > { %29308 = vmatpush3.msra.mxu1 %v32551_v17  ;;  %29309 = vmatprep.mubr.msk.f32.mxu1 %vm31027_vm1, %v34263_v38 }
0x1bfd   : > { %29317 = vmatprep.subr.mxu1 %v34263_v38  ;;  %v12427_v25 = vand.u32 4294901760, %v12426_v6 }
0x1bff   : > { %29310 = vmatmul.mubr.f32.vlgmr.msra.gmra.mxu1 %v12427_v25  ;;  %v12428_v20 = vsub.f32 %v12426_v6, %v12427_v25 }
0x1c00   : > { %29318 = vmatpush3.msra.mxu1 %v32551_v17  ;;  %29319 = vmatprep.mubr.msk.f32.mxu1 %vm31027_vm1, %v34263_v38 }
0x1c01   : > { %v12429_v57 = vand.u32 4294901760, %v12428_v20  ;;  %29327 = vmatprep.subr.mxu1 %v34263_v38 }
0x1c03   : > { %29295 = vmatmul.mubr.f32.vlgmr.msra.gmra.mxu0 %v12429_v57  ;;  %29320 = vmatmul.mubr.f32.vlgmr.msra.gmra.mxu1 %v12425_v15 }
0x1c04   : > { %29303 = vmatpush3.msra.mxu0 %v32554_v63  ;;  %29304 = vmatprep.mubr.msk.f32.mxu0 %vm31027_vm1, %v34263_v38 }
0x1c05   : > { %29312 = vmatprep.subr.mxu0 %v34263_v38  ;;  %29329 = vmatprep.mubr.msk.f32.mxu1 %vm31027_vm1, %v34263_v38 }
0x1c06   : > { %29328 = vmatpush3.msra.mxu1 %v32601_v9 }
0x1c07   : > { %29305 = vmatmul.mubr.f32.vlgmr.msra.gmra.mxu0 %v12426_v6  ;;  %29337 = vmatprep.subr.mxu1 %v34263_v38 }
0x1c08   : > { %29313 = vmatpush3.msra.mxu0 %v32559_v32  ;;  %29314 = vmatprep.mubr.msk.f32.mxu0 %vm31027_vm1, %v34263_v38 }
0x1c09   : > { %29322 = vmatprep.subr.mxu0 %v34263_v38 }
0x1c0b   : > { %29315 = vmatmul.mubr.f32.vlgmr.msra.gmra.mxu0 %v12425_v15 }
0x1c0c   : > { %29324 = vmatprep.mubr.msk.f32.mxu0 %vm31027_vm1, %v34263_v38  ;;  %29323 = vmatpush3.msra.mxu0 %v32589_v1 }
0x1c0d   : > { %29332 = vmatprep.subr.mxu0 %v34263_v38 }
0x1cbb   : > { %v12507_v3 = vpop.f32.mrf.mxu1 }
0x1cbd   : > { %v29301_v8 = vpop.f32.mrf.mxu1 }
0x1cbf   : > { %v12655_v61 = vpop.f32.mrf.mxu1 }
0x1cc1   : > { %v29311_v55 = vpop.f32.mrf.mxu1 }
0x1cc3   : > { %v12431_v4 = vpop.f32.mrf.mxu0  ;;  %v12801_v22 = vpop.f32.mrf.mxu1 }
0x1cc4   : > { %v12508_v7 = vadd.f32 %v12507_v3, %v12431_v4 }
0x1cc5   : > { %v29296_v33 = vpop.f32.mrf.mxu0  ;;  %v29321_v26 = vpop.f32.mrf.mxu1 }
0x1cc7   : > { %v12581_v15 = vpop.f32.mrf.mxu0 }
0x1cc8   : > { %v12582_v6 = vadd.f32 %v12581_v15, %v12508_v7 }
0x1cc9   : > { %v29306_v25 = vpop.f32.mrf.mxu0 }
0x1cca   : > { %v12656_v20 = vadd.f32 %v12655_v61, %v12582_v6 }
0x1ccb   : > { %v12729_v57 = vpop.f32.mrf.mxu0 }
0x1ccc   : > { %v12730_v10 = vadd.f32 %v12729_v57, %v12656_v20 }
0x1ccd   : > { %v29316_v50 = vpop.f32.mrf.mxu0 }
0x1cce   : > { %v12802_v32 = vadd.f32 %v12801_v22, %v12730_v10 }
0x1cd0   : > { %v12806_v9 = vsel %vm1782_vm4, %v12802_v32, 0 }
0x1cd1   : > { %v12874_v63 = vand.u32 4294901760, %v12806_v9 }
0x1cd3   : > { %v12875_v17 = vsub.f32 %v12806_v9, %v12874_v63  ;;  %29330 = vmatmul.mubr.f32.vlgmr.msra.gmra.mxu1 %v12874_v63 }
0x1cd4   : > { %29338 = vmatpush3.msra.mxu1 %v32589_v1  ;;  %29339 = vmatprep.mubr.msk.f32.mxu1 %vm31027_vm1, %v34263_v38 }
0x1cd5   : > { %v12876_v8 = vand.u32 4294901760, %v12875_v17  ;;  %29347 = vmatprep.subr.mxu1 %v34263_v38 }
0x1cd7   : > { %v12877_v3 = vsub.f32 %v12875_v17, %v12876_v8  ;;  %29340 = vmatmul.mubr.f32.vlgmr.msra.gmra.mxu1 %v12876_v8 }
0x1cd8   : > { %29348 = vmatpush3.msra.mxu1 %v32589_v1  ;;  %29349 = vmatprep.mubr.msk.f32.mxu1 %vm31027_vm1, %v34263_v38 }
0x1cd9   : > { %v12878_v61 = vand.u32 4294901760, %v12877_v3  ;;  %29363 = vmatprep.subr.mxu1 %v34263_v38 }
0x1cdb   : > { %29325 = vmatmul.mubr.f32.vlgmr.msra.gmra.mxu0 %v12878_v61  ;;  %29350 = vmatmul.mubr.f32.vlgmr.msra.gmra.mxu1 %v12874_v63 }
0x1cdc   : > { %29333 = vmatpush3.msra.mxu0 %v32592_v52  ;;  %29334 = vmatprep.mubr.msk.f32.mxu0 %vm31027_vm1, %v34263_v38 }
0x1cdd   : > { %29342 = vmatprep.subr.mxu0 %v34263_v38  ;;  %29371 = vmatprep.mubr.msk.f32.mxu1 %vm31027_vm1, %v34263_v38 }
0x1cdf   : > { %29335 = vmatmul.mubr.f32.vlgmr.msra.gmra.mxu0 %v12875_v17 }
0x1ce0   : > { %29343 = vmatpush3.msra.mxu0 %v32597_v12  ;;  %29344 = vmatprep.mubr.msk.f32.mxu0 %vm31027_vm1, %v34263_v38 }
0x1ce1   : > { %29352 = vmatprep.subr.mxu0 %v34263_v38 }
0x1ce3   : > { %29345 = vmatmul.mubr.f32.vlgmr.msra.gmra.mxu0 %v12874_v63 }
0x1ce4   : > { %29360 = vmatprep.mubr.msk.f32.mxu0 %vm31027_vm1, %v34263_v38 }
0x1d93   : > { %v12956_v32 = vpop.f32.mrf.mxu1 }
0x1d95   : > { %v29331_v9 = vpop.f32.mrf.mxu1 }
0x1d97   : > { %v13104_v55 = vpop.f32.mrf.mxu1 }
0x1d99   : > { %v29341_v4 = vpop.f32.mrf.mxu1 }
0x1d9a   : > { %v705_v4 = vld [vmem:[#allocation11 + $0x10] sm:$0xff] }
0x1d9b   : > { %v12880_v22 = vpop.f32.mrf.mxu0  ;;  %v13250_v33 = vpop.f32.mrf.mxu1 }
0x1d9c   : > { %v12957_v17 = vadd.f32 %v12956_v32, %v12880_v22  ;;  %v704_v22 = vld [vmem:[#allocation11 + $0x8] sm:$0xff] }
0x1d9d   : > { %v29326_v26 = vpop.f32.mrf.mxu0  ;;  %v29351_v7 = vpop.f32.mrf.mxu1 }
0x1d9f   : > { %v13030_v15 = vpop.f32.mrf.mxu0 }
0x1da0   : > { %v13031_v6 = vadd.f32 %v13030_v15, %v12957_v17 }
0x1da1   : > { %v29336_v25 = vpop.f32.mrf.mxu0 }
0x1da2   : > { %v13105_v20 = vadd.f32 %v13104_v55, %v13031_v6  ;;  %v706_v55 = vld [vmem:[#allocation11 + $0x18] sm:$0xff] }
0x1da3   : > { %v13178_v57 = vpop.f32.mrf.mxu0  ;;  %v32635_v26 = vand.u32 4294901760, %v706_v55 }
0x1da4   : > { %v13179_v10 = vadd.f32 %v13178_v57, %v13105_v20 }
0x1da5   : > { %v29346_v50 = vpop.f32.mrf.mxu0  ;;  %34313 = vst [vmem:[#allocation109_spill] sm:$0xff] %v32635_v26  ;;  %v32644_v17 = vsub.f32 %v706_v55, %v32635_v26  ;;  %29353 = vmatpush3.msra.mxu0 %v32635_v26 }
0x1da6   : > { %v13251_v63 = vadd.f32 %v13250_v33, %v13179_v10  ;;  %v32637_v33 = vand.u32 4294901760, %v705_v4  ;;  %29354 = vmatprep.subr.mxu0 %v34263_v38 }
0x1da7   : > { %34317 = vst [vmem:[#allocation113_spill] sm:$0xff] %v32644_v17  ;;  %v32658_v20 = vand.u32 4294901760, %v32644_v17 }
0x1da8   : > { %v13254_v8 = vadd.f32 %v13251_v63, %v32546_v34  ;;  %34314 = vst [vmem:[#allocation110_spill] sm:$0xff] %v32637_v33  ;;  %v32639_v34 = vand.u32 4294901760, %v704_v22  ;;  %v32647_v15 = vsub.f32 %v705_v4, %v32637_v33  ;;  %29355 = vmatpush3.msra.mxu0 %v32637_v33 }
0x1da9   : > { %34321 = vst [vmem:[#allocation117_spill] sm:$0xff] %v32658_v20  ;;  %29356 = vmatprep.subr.mxu0 %v34263_v38  ;;  %v13399_v63 = vsub.f32 %v32644_v17, %v32658_v20 }
0x1daa   : > { %v32628_v3 = vadd.f32 %v13254_v8, %v31992_v30  ;;  %34315 = vst [vmem:[#allocation111_spill] sm:$0xff] %v32639_v34  ;;  %v703_v30 = vld [vmem:[#allocation11] sm:$0xff]  ;;  %34318 = vst [vmem:[#allocation114_spill] sm:$0xff] %v32647_v15  ;;  %v32650_v6 = vsub.f32 %v704_v22, %v32639_v34  ;;  %v32661_v57 = vand.u32 4294901760, %v32647_v15  ;;  %29357 = vmatpush3.msra.mxu0 %v32639_v34 }
0x1dab   : > { %v32641_v7 = vand.u32 4294901760, %v703_v30  ;;  %29358 = vmatprep.subr.mxu0 %v34263_v38 }
0x1dac   : > { %v13256_v61 = vsel %vm769_vm0, %v32628_v3, 0.0  ;;  %v13259_v9 = vmul.f32 %v32628_v3, %v32628_v3  ;;  %34319 = vst [vmem:[#allocation115_spill] sm:$0xff] %v32650_v6  ;;  %34322 = vst [vmem:[#allocation118_spill] sm:$0xff] %v32661_v57  ;;  %v32664_v10 = vand.u32 4294901760, %v32650_v6  ;;  %v13406_v8 = vsub.f32 %v32647_v15, %v32661_v57 }
0x1dad   : > { %13257 = vadd.xlane.f32.xlu1 %v13256_v61  ;;  %34316 = vst [vmem:[#allocation112_spill] sm:$0xff] %v32641_v7  ;;  %v32654_v25 = vsub.f32 %v703_v30, %v32641_v7  ;;  %29359 = vmatpush3.msra.mxu0 %v32641_v7 }
0x1dae   : > { %v13260_v32 = vsel %vm769_vm0, %v13259_v9, 0.0  ;;  %34323 = vst [vmem:[#allocation119_spill] sm:$0xff] %v32664_v10  ;;  %v13413_v61 = vsub.f32 %v32650_v6, %v32664_v10  ;;  %v32679_v9 = vand.u32 4294901760, %v13399_v63  ;;  %29374 = vmatprep.subr.mxu0 %v34263_v38 }
0x1daf   : > { %34320 = vst [vmem:[#allocation116_spill] sm:$0xff] %v32654_v25  ;;  %v32668_v50 = vand.u32 4294901760, %v32654_v25 }
0x1db0   : > { %34325 = vst [vmem:[#allocation121_spill] sm:$0xff] %v32679_v9  ;;  %29364 = vmatpush3.msra.mxu1 %v32679_v9  ;;  %v32688_v4 = vand.u32 4294901760, %v13413_v61 }
0x1db1   : > { %13261 = vadd.xlane.f32.xlu1 %v13260_v32  ;;  %34324 = vst [vmem:[#allocation120_spill] sm:$0xff] %v32668_v50  ;;  %v32681_v32 = vand.u32 4294901760, %v13406_v8  ;;  %v13420_v55 = vsub.f32 %v32654_v25, %v32668_v50  ;;  %29365 = vmatprep.subr.mxu1 %v34263_v38 }
0x1db2   : > { %34327 = vst [vmem:[#allocation123_spill] sm:$0xff] %v32688_v4 }
0x1db3   : > { %34326 = vst [vmem:[#allocation122_spill] sm:$0xff] %v32681_v32  ;;  %29366 = vmatpush3.msra.mxu1 %v32681_v32  ;;  %v32692_v22 = vand.u32 4294901760, %v13420_v55 }
0x1db4   : > { %29367 = vmatprep.subr.mxu1 %v34263_v38 }
0x1db5   : > { %34328 = vst [vmem:[#allocation124_spill] sm:$0xff] %v32692_v22  ;;  %29368 = vmatpush3.msra.mxu1 %v32688_v4 }
0x1db6   : > { %29369 = vmatprep.subr.mxu1 %v34263_v38 }
0x1db7   : > { %29370 = vmatpush3.msra.mxu1 %v32692_v22  ;;  %v13271_v22 = vsub.s32 4, %v31569_v11 }
0x1db8   : > { %29385 = vmatprep.subr.mxu1 %v34263_v38 }
0x1e36   : > { %v13258_v30 = vpop.xlane.xlu1 %13257 }
0x1e37   : > { %v13263_v63 = vmul.f32 0.03125, %v13258_v30 }
0x1e39   : > { %v13264_v8 = vmul.f32 %v13263_v63, %v13258_v30  ;;  %v30766_v30 = vld [vmem:[%s34031_s17] sm:$0xff] }
0x1e3a   : > { %v13262_v61 = vpop.xlane.xlu1 %13261  ;;  %v32703_v19 = vrot.slane %v30766_v30, %v13271_v22 }
0x1e3b   : > { %v13265_v12 = vsub.f32 %v13262_v61, %v13264_v8 }
0x1e3c   : > { %34329 = vst [vmem:[#allocation125_spill] sm:$0xff] %v32703_v19 }
0x1e3d   : > { %v13266_v9 = vmax.f32 %v13265_v12, 0.0  ;;  %v13268_v12 = vsub.f32 %v32628_v3, %v13263_v63 }
0x1e3f   : > { %v13267_v52 = vmul.f32 0.032258064, %v13266_v9  ;;  %v13286_v9 = vsub.s32 5, %v31569_v11  ;;  %v13273_v8 = vmul.f32 %v32703_v19, %v13268_v12 }
0x1e41   : > { %30711 = vrsqrt.f32 %v13267_v52  ;;  %vm13276_vm7 = vcmp.eq.f32.partialorder %v13267_v52, inf  ;;  %v13279_v1 = vand.u32 2147483648, %v13267_v52  ;;  %vm13278_vm8 = vcmp.eq.f32.partialorder %v13267_v52, 0.0 }
0x1e42   : > { %v32708_v61 = vrot.slane %v30766_v30, %v13286_v9  ;;  %v714_v30 = vld [vmem:[%s34331_s22 + $0x38] sm:$0xff]  ;;  %v713_v9 = vld [vmem:[%s34331_s22 + $0x30] sm:$0xff] }
0x1e43   : > { %v32759_v12 = vand.u32 4294901760, %v714_v30 }
0x1e44   : > { %34330 = vst [vmem:[#allocation126_spill] sm:$0xff] %v32708_v61 }
0x1e4e   : > { %v30712_v55 = vpop.eup %30711 }
0x1e4f   : > { %v13275_v32 = vmul.f32 %v30712_v55, %v13267_v52 }
0x1e51   : > { %v13277_v13 = vsel %vm13276_vm7, %v13267_v52, %v13275_v32 }
0x1e52   : > { %v13280_v4 = vsel %vm13278_vm8, %v13279_v1, %v13277_v13 }
0x1e53   : > { %v13281_v5 = vadd.f32 1e-06, %v13280_v4 }
0x1e55   : > { %30713 = vrcp.f32 %v13281_v5 }
0x1e62   : > { %v30714_v52 = vpop.eup %30713 }
0x1e63   : > { %v13283_v13 = vmul.f32 %v30714_v52, %v13273_v8  ;;  %v32765_v8 = vsub.f32 %v714_v30, %v32759_v12  ;;  %v32767_v52 = vand.u32 4294901760, %v713_v9 }
0x1e65   : > { %v13288_v5 = vadd.f32 %v32708_v61, %v13283_v13  ;;  %v712_v13 = vld [vmem:[%s34331_s22 + $0x28] sm:$0xff] }
0x1e67   : > { %v13290_v1 = vsel %vm769_vm0, %v13288_v5, 0  ;;  %v32775_v5 = vand.u32 4294901760, %v32765_v8 }
0x1e68   : > { %v13361_v32 = vand.u32 4294901760, %v13290_v1 }
0x1e6a   : > { %v13362_v4 = vsub.f32 %v13290_v1, %v13361_v32  ;;  %29372 = vmatmul.mubr.f32.vlgmr.msra.gmra.mxu1 %v13361_v32  ;;  %v32778_v1 = vsub.f32 %v713_v9, %v32767_v52  ;;  %v710_v9 = vld [vmem:[%s34331_s22 + $0x18] sm:$0xff] }
0x1e6b   : > { %29386 = vmatpush3.msra.mxu1 %v32635_v26  ;;  %29393 = vmatprep.mubr.msk.f32.mxu1 %vm31027_vm1, %v34263_v38 }
0x1e6c   : > { %29387 = vmatprep.subr.mxu1 %v34263_v38  ;;  %v13363_v22 = vand.u32 4294901760, %v13362_v4 }
0x1e6d   : > { %29388 = vmatpush3.msra.mxu1 %v32637_v33 }
0x1e6e   : > { %29389 = vmatprep.subr.mxu1 %v34263_v38  ;;  %v13364_v63 = vsub.f32 %v13362_v4, %v13363_v22 }
0x1e6f   : > { %29390 = vmatpush3.msra.mxu1 %v32639_v34 }
0x1e70   : > { %29391 = vmatprep.subr.mxu1 %v34263_v38  ;;  %v13365_v55 = vand.u32 4294901760, %v13364_v63  ;;  %v32790_v63 = vand.u32 4294901760, %v32778_v1 }
0x1e71   : > { %29392 = vmatpush3.msra.mxu1 %v32641_v7 }
0x1e72   : > { %29394 = vmatmul.mubr.f32.vlgmr.msra.gmra.mxu1 %v13363_v22  ;;  %29407 = vmatprep.subr.mxu1 %v34263_v38  ;;  %v13885_v22 = vsub.f32 %v32765_v8, %v32775_v5 }
0x1e73   : > { %29361 = vmatmul.mubr.f32.vlgmr.msra.gmra.mxu0 %v13365_v55  ;;  %29408 = vmatpush3.msra.mxu1 %v32635_v26 }
0x1e74   : > { %29375 = vmatpush3.msra.mxu0 %v32644_v17  ;;  %29409 = vmatprep.subr.mxu1 %v34263_v38  ;;  %v32802_v11 = vand.u32 4294901760, %v13885_v22  ;;  %v708_v17 = vld [vmem:[%s34331_s22 + $0x8] sm:$0xff] }
0x1e75   : > { %29376 = vmatprep.subr.mxu0 %v34263_v38  ;;  %29410 = vmatpush3.msra.mxu1 %v32637_v33  ;;  %v32845_v19 = vand.u32 4294901760, %v708_v17 }
0x1e76   : > { %29377 = vmatpush3.msra.mxu0 %v32647_v15  ;;  %29411 = vmatprep.subr.mxu1 %v34263_v38  ;;  %34332 = vst [vmem:[#allocation127_spill] sm:$0xff] %v32802_v11 }
0x1e77   : > { %29378 = vmatprep.subr.mxu0 %v34263_v38  ;;  %29412 = vmatpush3.msra.mxu1 %v32639_v34 }
0x1e78   : > { %29379 = vmatpush3.msra.mxu0 %v32650_v6  ;;  %29413 = vmatprep.subr.mxu1 %v34263_v38 }
0x1e79   : > { %29380 = vmatprep.subr.mxu0 %v34263_v38  ;;  %29382 = vmatprep.mubr.msk.f32.mxu0 %vm31027_vm1, %v34263_v38 }
0x1e7a   : > { %29381 = vmatpush3.msra.mxu0 %v32654_v25  ;;  %29414 = vmatpush3.msra.mxu1 %v32641_v7  ;;  %v32863_v7 = vsub.f32 %v708_v17, %v32845_v19 }
0x1e7b   : > { %29415 = vmatprep.mubr.msk.f32.mxu1 %vm31027_vm1, %v34263_v38  ;;  %29383 = vmatmul.mubr.f32.vlgmr.msra.gmra.mxu0 %v13362_v4  ;;  %v711_v4 = vld [vmem:[%s34331_s22 + $0x20] sm:$0xff] }
0x1e7c   : > { %29396 = vmatprep.subr.mxu0 %v34263_v38  ;;  %29416 = vmatmul.mubr.f32.vlgmr.msra.gmra.mxu1 %v13361_v32  ;;  %v32795_v30 = vand.u32 4294901760, %v711_v4 }
0x1e7d   : > { %29397 = vmatpush3.msra.mxu0 %v32658_v20  ;;  %29404 = vmatprep.mubr.msk.f32.mxu0 %vm31027_vm1, %v34263_v38  ;;  %v709_v20 = vld [vmem:[%s34331_s22 + $0x10] sm:$0xff] }
0x1e7e   : > { %29398 = vmatprep.subr.mxu0 %v34263_v38  ;;  %29437 = vmatprep.subr.mxu1 %v34263_v38  ;;  %v32827_v6 = vand.u32 4294901760, %v709_v20 }
0x1e7f   : > { %29399 = vmatpush3.msra.mxu0 %v32661_v57  ;;  %29453 = vmatprep.mubr.msk.f32.mxu1 %vm31027_vm1, %v34263_v38  ;;  %v32813_v57 = vand.u32 4294901760, %v710_v9 }
0x1e80   : > { %29400 = vmatprep.subr.mxu0 %v34263_v38  ;;  %29438 = vmatpush3.msra.mxu1 %v32802_v11  ;;  %v32843_v61 = vsub.f32 %v709_v20, %v32827_v6 }
0x1e81   : > { %29401 = vmatpush3.msra.mxu0 %v32664_v10  ;;  %29439 = vmatprep.subr.mxu1 %v34263_v38  ;;  %v32831_v15 = vsub.f32 %v710_v9, %v32813_v57 }
0x1e82   : > { %29402 = vmatprep.subr.mxu0 %v34263_v38  ;;  %v32860_v20 = vand.u32 4294901760, %v32843_v61 }
0x1e83   : > { %29403 = vmatpush3.msra.mxu0 %v32668_v50  ;;  %v13892_v50 = vsub.f32 %v32778_v1, %v32790_v63  ;;  %v32850_v9 = vand.u32 4294901760, %v32831_v15 }
0x1e84   : > { %29405 = vmatmul.mubr.f32.vlgmr.msra.gmra.mxu0 %v13361_v32  ;;  %29418 = vmatprep.subr.mxu0 %v34263_v38  ;;  %v32780_v32 = vand.u32 4294901760, %v712_v13 }
0x1e85   : > { %29434 = vmatprep.mubr.msk.f32.mxu0 %vm31027_vm1, %v34263_v38  ;;  %29419 = vmatpush3.msra.mxu0 %v32759_v12  ;;  %v32820_v22 = vand.u32 4294901760, %v13892_v50  ;;  %v13913_v33 = vsub.f32 %v32831_v15, %v32850_v9 }
0x1e86   : > { %29420 = vmatprep.subr.mxu0 %v34263_v38  ;;  %v32793_v55 = vsub.f32 %v712_v13, %v32780_v32  ;;  %v32810_v13 = vsub.f32 %v711_v4, %v32795_v30 }
0x1e87   : > { %29421 = vmatpush3.msra.mxu0 %v32767_v52  ;;  %34333 = vst [vmem:[#allocation128_spill] sm:$0xff] %v32820_v22  ;;  %29440 = vmatpush3.msra.mxu1 %v32820_v22  ;;  %v32883_v26 = vand.u32 4294901760, %v13913_v33 }
0x1e88   : > { %29422 = vmatprep.subr.mxu0 %v34263_v38  ;;  %v32807_v10 = vand.u32 4294901760, %v32793_v55  ;;  %v32825_v4 = vand.u32 4294901760, %v32810_v13  ;;  %29441 = vmatprep.subr.mxu1 %v34263_v38 }
0x1e89   : > { %29423 = vmatpush3.msra.mxu0 %v32780_v32  ;;  %34336 = vst [vmem:[#allocation131_spill] sm:$0xff] %v32883_v26 }
0x1e8a   : > { %29424 = vmatprep.subr.mxu0 %v34263_v38  ;;  %v13899_v25 = vsub.f32 %v32793_v55, %v32807_v10  ;;  %v13906_v11 = vsub.f32 %v32810_v13, %v32825_v4 }
0x1e8b   : > { %29425 = vmatpush3.msra.mxu0 %v32795_v30 }
0x1e8c   : > { %29426 = vmatprep.subr.mxu0 %v34263_v38  ;;  %v32838_v50 = vand.u32 4294901760, %v13899_v25  ;;  %v707_v25 = vld [vmem:[%s34331_s22] sm:$0xff]  ;;  %v32857_v22 = vand.u32 4294901760, %v13906_v11  ;;  %v13920_v11 = vsub.f32 %v32843_v61, %v32860_v20 }
0x1e8d   : > { %29427 = vmatpush3.msra.mxu0 %v32813_v57  ;;  %v32865_v34 = vand.u32 4294901760, %v707_v25 }
0x1e8e   : > { %34334 = vst [vmem:[#allocation129_spill] sm:$0xff] %v32838_v50  ;;  %29428 = vmatprep.subr.mxu0 %v34263_v38  ;;  %29442 = vmatpush3.msra.mxu1 %v32838_v50  ;;  %34335 = vst [vmem:[#allocation130_spill] sm:$0xff] %v32857_v22  ;;  %v32876_v50 = vand.u32 4294901760, %v32863_v7  ;;  %v32886_v16 = vand.u32 4294901760, %v13920_v11 }
0x1e8f   : > { %29429 = vmatpush3.msra.mxu0 %v32827_v6  ;;  %29443 = vmatprep.subr.mxu1 %v34263_v38  ;;  %v32879_v17 = vsub.f32 %v707_v25, %v32865_v34 }
0x1e90   : > { %29430 = vmatprep.subr.mxu0 %v34263_v38  ;;  %29444 = vmatpush3.msra.mxu1 %v32857_v22  ;;  %34337 = vst [vmem:[#allocation132_spill] sm:$0xff] %v32886_v16  ;;  %v13927_v22 = vsub.f32 %v32863_v7, %v32876_v50 }
0x1e91   : > { %29431 = vmatpush3.msra.mxu0 %v32845_v19  ;;  %29445 = vmatprep.subr.mxu1 %v34263_v38  ;;  %v32891_v62 = vand.u32 4294901760, %v32879_v17 }
0x1e92   : > { %29432 = vmatprep.subr.mxu0 %v34263_v38  ;;  %29446 = vmatpush3.msra.mxu1 %v32883_v26  ;;  %v32896_v25 = vand.u32 4294901760, %v13927_v22 }
0x1e93   : > { %29433 = vmatpush3.msra.mxu0 %v32865_v34  ;;  %29447 = vmatprep.subr.mxu1 %v34263_v38  ;;  %v13934_v33 = vsub.f32 %v32879_v17, %v32891_v62 }
0x1e94   : > { %29456 = vmatprep.subr.mxu0 %v34263_v38  ;;  %34338 = vst [vmem:[#allocation133_spill] sm:$0xff] %v32896_v25  ;;  %29448 = vmatpush3.msra.mxu1 %v32886_v16  ;;  %v27533_v16 = vld [vmem:[%s34340_s14] ss:$0 sm:$0xff] }
0x1e95   : > { %29449 = vmatprep.subr.mxu1 %v34263_v38  ;;  %v32902_v11 = vand.u32 4294901760, %v13934_v33 }
0x1e96   : > { %29450 = vmatpush3.msra.mxu1 %v32896_v25 }
0x1e97   : > { %34339 = vst [vmem:[#allocation134_spill] sm:$0xff] %v32902_v11  ;;  %29451 = vmatprep.subr.mxu1 %v34263_v38 }
0x1e98   : > { %29452 = vmatpush3.msra.mxu1 %v32902_v11 }
0x1e99   : > { %29475 = vmatprep.subr.mxu1 %v34263_v38 }
0x1f2a   : > { %v13458_v26 = vpop.f32.mrf.mxu1 }
0x1f2c   : > { %v29373_v22 = vpop.f32.mrf.mxu1 }
0x1f32   : > { %v13615_v60 = vpop.f32.mrf.mxu1 }
0x1f33   : > { %v13367_v2 = vpop.f32.mrf.mxu0 }
0x1f34   : > { %v29395_v29 = vpop.f32.mrf.mxu1  ;;  %v13368_v33 = vadd.f32 %v27533_v16, %v13367_v2 }
0x1f35   : > { %v29362_v28 = vpop.f32.mrf.mxu0 }
0x1f36   : > { %v13459_v25 = vadd.f32 %v13458_v26, %v13368_v33  ;;  %v27534_v33 = vld [vmem:[%s34341_s27] ss:$0 sm:$0xff]  ;;  %s27379_s27 = sshll.u32 %s683_s21, 4  ;;  %s27380_s27 = int_to_ptr.vmem [resolvable:$true] %s27379_s27 }
0x1f3b   : > { %v13538_v27 = vpop.f32.mrf.mxu0 }
0x1f3c   : > { %v13773_v31 = vpop.f32.mrf.mxu1  ;;  %v13539_v21 = vadd.f32 %v13538_v27, %v13459_v25 }
0x1f3d   : > { %v29384_v24 = vpop.f32.mrf.mxu0 }
0x1f3e   : > { %v29417_v23 = vpop.f32.mrf.mxu1  ;;  %v13616_v11 = vadd.f32 %v13615_v60, %v13539_v21 }
0x1f44   : > { %v13698_v0 = vpop.f32.mrf.mxu0 }
0x1f45   : > { %v13699_v37 = vadd.f32 %v13698_v0, %v13616_v11 }
0x1f46   : > { %v29406_v36 = vpop.f32.mrf.mxu0 }
0x1f47   : > { %v13774_v22 = vadd.f32 %v13773_v31, %v13699_v37 }
0x1f49   : > { %v13777_v35 = vmax.f32 %v13774_v22, 0.0 }
0x1f4b   : > { %v13780_v28 = vsel %vm13778_vm9, %v13777_v35, 0 }
0x1f4c   : > { %v32912_v29 = vand.u32 4294901760, %v13780_v28 }
0x1f4e   : > { %v13856_v42 = vsub.f32 %v13780_v28, %v32912_v29  ;;  %29454 = vmatmul.mubr.f32.vlgmr.msra.gmra.mxu1 %v32912_v29 }
0x1f4f   : > { %29476 = vmatpush3.msra.mxu1 %v32759_v12  ;;  %29491 = vmatprep.mubr.msk.f32.mxu1 %vm31027_vm1, %v34263_v38 }
0x1f50   : > { %v13857_v21 = vand.u32 4294901760, %v13856_v42  ;;  %29477 = vmatprep.subr.mxu1 %v34263_v38 }
0x1f51   : > { %29478 = vmatpush3.msra.mxu1 %v32767_v52 }
0x1f52   : > { %v13858_v36 = vsub.f32 %v13856_v42, %v13857_v21  ;;  %29479 = vmatprep.subr.mxu1 %v34263_v38 }
0x1f53   : > { %29480 = vmatpush3.msra.mxu1 %v32780_v32 }
0x1f54   : > { %v13859_v35 = vand.u32 4294901760, %v13858_v36  ;;  %29481 = vmatprep.subr.mxu1 %v34263_v38 }
0x1f55   : > { %29482 = vmatpush3.msra.mxu1 %v32795_v30 }
0x1f56   : > { %29483 = vmatprep.subr.mxu1 %v34263_v38  ;;  %29435 = vmatmul.mubr.f32.vlgmr.msra.gmra.mxu0 %v13859_v35 }
0x1f57   : > { %29457 = vmatpush3.msra.mxu0 %v32765_v8  ;;  %29484 = vmatpush3.msra.mxu1 %v32813_v57 }
0x1f58   : > { %29458 = vmatprep.subr.mxu0 %v34263_v38  ;;  %29485 = vmatprep.subr.mxu1 %v34263_v38 }
0x1f59   : > { %29459 = vmatpush3.msra.mxu0 %v32778_v1  ;;  %29486 = vmatpush3.msra.mxu1 %v32827_v6 }
0x1f5a   : > { %29460 = vmatprep.subr.mxu0 %v34263_v38  ;;  %29487 = vmatprep.subr.mxu1 %v34263_v38 }
0x1f5b   : > { %29461 = vmatpush3.msra.mxu0 %v32793_v55  ;;  %29488 = vmatpush3.msra.mxu1 %v32845_v19 }
0x1f5c   : > { %29462 = vmatprep.subr.mxu0 %v34263_v38  ;;  %29489 = vmatprep.subr.mxu1 %v34263_v38 }
0x1f5d   : > { %29463 = vmatpush3.msra.mxu0 %v32810_v13  ;;  %29490 = vmatpush3.msra.mxu1 %v32865_v34 }
0x1f5e   : > { %29464 = vmatprep.subr.mxu0 %v34263_v38  ;;  %29492 = vmatmul.mubr.f32.vlgmr.msra.gmra.mxu1 %v13857_v21 }
0x1f5f   : > { %29513 = vmatprep.subr.mxu1 %v34263_v38  ;;  %29465 = vmatpush3.msra.mxu0 %v32831_v15 }
0x1f60   : > { %29514 = vmatpush3.msra.mxu1 %v32759_v12  ;;  %29466 = vmatprep.subr.mxu0 %v34263_v38 }
0x1f61   : > { %29515 = vmatprep.subr.mxu1 %v34263_v38  ;;  %29467 = vmatpush3.msra.mxu0 %v32843_v61 }
0x1f62   : > { %29516 = vmatpush3.msra.mxu1 %v32767_v52  ;;  %29468 = vmatprep.subr.mxu0 %v34263_v38 }
0x1f63   : > { %29517 = vmatprep.subr.mxu1 %v34263_v38  ;;  %29469 = vmatpush3.msra.mxu0 %v32863_v7 }
0x1f64   : > { %29518 = vmatpush3.msra.mxu1 %v32780_v32  ;;  %29470 = vmatprep.subr.mxu0 %v34263_v38 }
0x1f65   : > { %29519 = vmatprep.subr.mxu1 %v34263_v38  ;;  %29471 = vmatpush3.msra.mxu0 %v32879_v17 }
0x1f66   : > { %29472 = vmatprep.mubr.msk.f32.mxu0 %vm31027_vm1, %v34263_v38  ;;  %29520 = vmatpush3.msra.mxu1 %v32795_v30 }
0x1f67   : > { %29473 = vmatmul.mubr.f32.vlgmr.msra.gmra.mxu0 %v13856_v42  ;;  %29494 = vmatprep.subr.mxu0 %v34263_v38 }
0x1f68   : > { %29521 = vmatprep.subr.mxu1 %v34263_v38  ;;  %29495 = vmatpush3.msra.mxu0 %v32775_v5 }
0x1f69   : > { %29522 = vmatpush3.msra.mxu1 %v32813_v57  ;;  %29496 = vmatprep.subr.mxu0 %v34263_v38 }
0x1f6a   : > { %29523 = vmatprep.subr.mxu1 %v34263_v38  ;;  %29497 = vmatpush3.msra.mxu0 %v32790_v63 }
0x1f6b   : > { %29524 = vmatpush3.msra.mxu1 %v32827_v6  ;;  %29498 = vmatprep.subr.mxu0 %v34263_v38 }
0x1f6c   : > { %29525 = vmatprep.subr.mxu1 %v34263_v38  ;;  %29499 = vmatpush3.msra.mxu0 %v32807_v10 }
0x1f6d   : > { %29526 = vmatpush3.msra.mxu1 %v32845_v19  ;;  %29500 = vmatprep.subr.mxu0 %v34263_v38 }
0x1f6e   : > { %29527 = vmatprep.subr.mxu1 %v34263_v38  ;;  %29501 = vmatpush3.msra.mxu0 %v32825_v4 }
0x1f6f   : > { %29528 = vmatpush3.msra.mxu1 %v32865_v34  ;;  %29529 = vmatprep.mubr.msk.f32.mxu1 %vm31027_vm1, %v34263_v38 }
0x1f70   : > { %29502 = vmatprep.subr.mxu0 %v34263_v38  ;;  %29530 = vmatmul.mubr.f32.vlgmr.msra.gmra.mxu1 %v32912_v29 }
0x1f71   : > { %29503 = vmatpush3.msra.mxu0 %v32850_v9  ;;  %29510 = vmatprep.mubr.msk.f32.mxu0 %vm31027_vm1, %v34263_v38 }
0x1f72   : > { %29504 = vmatprep.subr.mxu0 %v34263_v38  ;;  %29543 = vmatprep.subr.mxu1 %v34263_v38 }
0x1f73   : > { %29505 = vmatpush3.msra.mxu0 %v32860_v20  ;;  %29544 = vmatpush3.msra.mxu1 %v31529_v54 }
0x1f74   : > { %29506 = vmatprep.subr.mxu0 %v34263_v38  ;;  %29545 = vmatprep.subr.mxu1 %v34263_v38 }
0x1f75   : > { %29507 = vmatpush3.msra.mxu0 %v32876_v50  ;;  %29546 = vmatpush3.msra.mxu1 %v31538_v56 }
0x1f76   : > { %29508 = vmatprep.subr.mxu0 %v34263_v38  ;;  %29547 = vmatprep.subr.mxu1 %v34263_v38 }
0x1f77   : > { %29509 = vmatpush3.msra.mxu0 %v32891_v62  ;;  %29548 = vmatpush3.msra.mxu1 %v31545_v58 }
0x1f78   : > { %29511 = vmatmul.mubr.f32.vlgmr.msra.gmra.mxu0 %v32912_v29  ;;  %29549 = vmatprep.subr.mxu1 %v34263_v38 }
0x1f79   : > { %29550 = vmatpush3.msra.mxu1 %v31552_v59  ;;  %29532 = vmatprep.subr.mxu0 %v34263_v38 }
0x1f7a   : > { %29551 = vmatprep.mubr.msk.f32.mxu1 %vm31027_vm1, %v34263_v38  ;;  %29565 = vmatprep.subr.mxu1 %v34263_v38 }
0x1f7b   : > { %29533 = vmatpush3.msra.mxu0 %v31460_v39  ;;  %29540 = vmatprep.mubr.msk.f32.mxu0 %vm31027_vm1, %v34263_v38 }
0x1f7c   : > { %29534 = vmatprep.subr.mxu0 %v34263_v38 }
0x1f7d   : > { %29535 = vmatpush3.msra.mxu0 %v31462_v40 }
0x1f7e   : > { %29536 = vmatprep.subr.mxu0 %v34263_v38 }
0x1f7f   : > { %29537 = vmatpush3.msra.mxu0 %v31464_v41 }
0x1f80   : > { %29538 = vmatprep.subr.mxu0 %v34263_v38 }
0x1f81   : > { %29539 = vmatpush3.msra.mxu0 %v31480_v45 }
0x1f82   : > { %29554 = vmatprep.subr.mxu0 %v34263_v38 }
0x200e   : > { %v13972_v54 = vpop.f32.mrf.mxu1 }
0x2010   : > { %v29455_v56 = vpop.f32.mrf.mxu1 }
0x2016   : > { %v13861_v58 = vpop.f32.mrf.mxu0 }
0x2017   : > { %v13973_v27 = vadd.f32 %v13972_v54, %v13861_v58 }
0x2018   : > { %v29436_v59 = vpop.f32.mrf.mxu0 }
0x201e   : > { %v14141_v37 = vpop.f32.mrf.mxu1 }
0x2020   : > { %v29493_v42 = vpop.f32.mrf.mxu1 }
0x2027   : > { %v14060_v23 = vpop.f32.mrf.mxu0 }
0x2028   : > { %v14061_v60 = vadd.f32 %v14060_v23, %v13973_v27 }
0x2029   : > { %v29474_v24 = vpop.f32.mrf.mxu0 }
0x202a   : > { %v14142_v2 = vadd.f32 %v14141_v37, %v14061_v60 }
0x2030   : > { %v14315_v0 = vpop.f32.mrf.mxu1 }
0x2032   : > { %v29531_v31 = vpop.f32.mrf.mxu1 }
0x2038   : > { %v14236_v16 = vpop.f32.mrf.mxu0 }
0x2039   : > { %v14237_v26 = vadd.f32 %v14236_v16, %v14142_v2 }
0x203a   : > { %v29512_v25 = vpop.f32.mrf.mxu0 }
0x203b   : > { %v14316_v11 = vadd.f32 %v14315_v0, %v14237_v26 }
0x203d   : > { %v14319_v22 = vadd.f32 %v14316_v11, %v32628_v3 }
0x203f   : > { %v33014_v28 = vadd.f32 %v27534_v33, %v14319_v22 }
0x2041   : > { %v14321_v29 = vsel %vm769_vm0, %v33014_v28, 0.0  ;;  %v14324_v21 = vmul.f32 %v33014_v28, %v33014_v28 }
0x2042   : > { %14322 = vadd.xlane.f32.xlu1 %v14321_v29 }
0x2043   : > { %v14325_v36 = vsel %vm769_vm0, %v14324_v21, 0.0 }
0x2046   : > { %14326 = vadd.xlane.f32.xlu1 %v14325_v36 }
0x20cb   : > { %v14323_v35 = vpop.xlane.xlu1 %14322 }
0x20cc   : > { %v14328_v54 = vmul.f32 0.03125, %v14323_v35 }
0x20ce   : > { %v14329_v56 = vmul.f32 %v14328_v54, %v14323_v35  ;;  %v14333_v60 = vsub.f32 %v33014_v28, %v14328_v54 }
0x20cf   : > { %v14327_v58 = vpop.xlane.xlu1 %14326 }
0x20d0   : > { %v14330_v59 = vsub.f32 %v14327_v58, %v14329_v56  ;;  %v14334_v2 = vmul.f32 %v14333_v60, %v31575_v14 }
0x20d2   : > { %v14331_v37 = vmax.f32 %v14330_v59, 0.0 }
0x20d4   : > { %v14332_v42 = vmul.f32 0.032258064, %v14331_v37 }
0x20d6   : > { %30715 = vrsqrt.f32 %v14332_v42  ;;  %vm14337_vm10 = vcmp.eq.f32.partialorder %v14332_v42, inf  ;;  %v14340_v24 = vand.u32 2147483648, %v14332_v42  ;;  %vm14339_vm11 = vcmp.eq.f32.partialorder %v14332_v42, 0.0 }
0x20e3   : > { %v30716_v3 = vpop.eup %30715 }
0x20e4   : > { %v14336_v23 = vmul.f32 %v30716_v3, %v14332_v42 }
0x20e6   : > { %v14338_v0 = vsel %vm14337_vm10, %v14332_v42, %v14336_v23 }
0x20e7   : > { %v14341_v27 = vsel %vm14339_vm11, %v14340_v24, %v14338_v0 }
0x20e8   : > { %v14342_v31 = vadd.f32 1e-06, %v14341_v27 }
0x20ea   : > { %30717 = vrcp.f32 %v14342_v31 }
0x20f7   : > { %v30718_v16 = vpop.eup %30717 }
0x20f8   : > { %v14344_v26 = vmul.f32 %v30718_v16, %v14334_v2 }
0x20fa   : > { %v14345_v25 = vadd.f32 %v14344_v26, %v31580_v18 }
0x20fc   : > { %v14347_v11 = vsel %vm769_vm0, %v14345_v25, 0 }
0x20fd   : > { %v14418_v33 = vand.u32 4294901760, %v14347_v11 }
0x20ff   : > { %v14419_v22 = vsub.f32 %v14347_v11, %v14418_v33  ;;  %29552 = vmatmul.mubr.f32.vlgmr.msra.gmra.mxu1 %v14418_v33 }
0x2100   : > { %29566 = vmatpush3.msra.mxu1 %v31460_v39  ;;  %29573 = vmatprep.mubr.msk.f32.mxu1 %vm31027_vm1, %v34263_v38 }
0x2101   : > { %29567 = vmatprep.subr.mxu1 %v34263_v38  ;;  %v14420_v29 = vand.u32 4294901760, %v14419_v22 }
0x2102   : > { %29568 = vmatpush3.msra.mxu1 %v31462_v40 }
0x2103   : > { %29569 = vmatprep.subr.mxu1 %v34263_v38  ;;  %v14421_v14 = vsub.f32 %v14419_v22, %v14420_v29 }
0x2104   : > { %29570 = vmatpush3.msra.mxu1 %v31464_v41 }
0x2105   : > { %29571 = vmatprep.subr.mxu1 %v34263_v38  ;;  %v14422_v18 = vand.u32 4294901760, %v14421_v14 }
0x2106   : > { %29572 = vmatpush3.msra.mxu1 %v31480_v45 }
0x2107   : > { %29574 = vmatmul.mubr.f32.vlgmr.msra.gmra.mxu1 %v14420_v29  ;;  %29587 = vmatprep.subr.mxu1 %v34263_v38 }
0x2108   : > { %29541 = vmatmul.mubr.f32.vlgmr.msra.gmra.mxu0 %v14422_v18  ;;  %29588 = vmatpush3.msra.mxu1 %v31460_v39 }
0x2109   : > { %29555 = vmatpush3.msra.mxu0 %v31475_v43  ;;  %29589 = vmatprep.subr.mxu1 %v34263_v38 }
0x210a   : > { %29556 = vmatprep.subr.mxu0 %v34263_v38  ;;  %29590 = vmatpush3.msra.mxu1 %v31462_v40 }
0x210b   : > { %29557 = vmatpush3.msra.mxu0 %v31478_v44  ;;  %29591 = vmatprep.subr.mxu1 %v34263_v38 }
0x210c   : > { %29558 = vmatprep.subr.mxu0 %v34263_v38  ;;  %29592 = vmatpush3.msra.mxu1 %v31464_v41 }
0x210d   : > { %29559 = vmatpush3.msra.mxu0 %v31490_v47  ;;  %29593 = vmatprep.subr.mxu1 %v34263_v38 }
0x210e   : > { %29560 = vmatprep.subr.mxu0 %v34263_v38  ;;  %29562 = vmatprep.mubr.msk.f32.mxu0 %vm31027_vm1, %v34263_v38 }
0x210f   : > { %29561 = vmatpush3.msra.mxu0 %v31502_v49  ;;  %29594 = vmatpush3.msra.mxu1 %v31480_v45 }
0x2110   : > { %29595 = vmatprep.mubr.msk.f32.mxu1 %vm31027_vm1, %v34263_v38  ;;  %29563 = vmatmul.mubr.f32.vlgmr.msra.gmra.mxu0 %v14419_v22 }
0x2111   : > { %29576 = vmatprep.subr.mxu0 %v34263_v38  ;;  %29596 = vmatmul.mubr.f32.vlgmr.msra.gmra.mxu1 %v14418_v33 }
0x2112   : > { %29577 = vmatpush3.msra.mxu0 %v31487_v46  ;;  %29584 = vmatprep.mubr.msk.f32.mxu0 %vm31027_vm1, %v34263_v38  ;;  %v30767_v46 = vld [vmem:[%s34018_s4] ss:$0 sm:$0xff] }
0x2113   : > { %29578 = vmatprep.subr.mxu0 %v34263_v38  ;;  %29603 = vmatprep.subr.mxu1 %v34263_v38 }
0x2114   : > { %29579 = vmatpush3.msra.mxu0 %v31499_v48  ;;  %29605 = vmatprep.mubr.msk.f32.mxu1 %vm31027_vm1, %v34263_v38 }
0x2115   : > { %29580 = vmatprep.subr.mxu0 %v34263_v38 }
0x2116   : > { %29581 = vmatpush3.msra.mxu0 %v31511_v51 }
0x2117   : > { %29582 = vmatprep.subr.mxu0 %v34263_v38 }
0x2118   : > { %29583 = vmatpush3.msra.mxu0 %v31521_v53 }
0x2119   : > { %29585 = vmatmul.mubr.f32.vlgmr.msra.gmra.mxu0 %v14418_v33  ;;  %29598 = vmatprep.subr.mxu0 %v34263_v38 }
0x211a   : > { %29600 = vmatprep.mubr.msk.f32.mxu0 %vm31027_vm1, %v34263_v38 }
0x21bf   : > { %v14515_v39 = vpop.f32.mrf.mxu1 }
0x21c1   : > { %v29553_v40 = vpop.f32.mrf.mxu1 }
0x21c7   : > { %v14672_v41 = vpop.f32.mrf.mxu1 }
0x21c8   : > { %v14424_v43 = vpop.f32.mrf.mxu0 }
0x21c9   : > { %v29575_v44 = vpop.f32.mrf.mxu1  ;;  %v14425_v47 = vadd.f32 %v30767_v46, %v14424_v43 }
0x21ca   : > { %v29542_v45 = vpop.f32.mrf.mxu0 }
0x21cb   : > { %v14516_v51 = vadd.f32 %v14515_v39, %v14425_v47 }
0x21d0   : > { %v14595_v48 = vpop.f32.mrf.mxu0 }
0x21d1   : > { %v14830_v49 = vpop.f32.mrf.mxu1  ;;  %v14596_v36 = vadd.f32 %v14595_v48, %v14516_v51 }
0x21d2   : > { %v29564_v53 = vpop.f32.mrf.mxu0 }
0x21d3   : > { %v29597_v21 = vpop.f32.mrf.mxu1  ;;  %v14673_v35 = vadd.f32 %v14672_v41, %v14596_v36 }
0x21d4   : > { %v33097_v21 = vld [vmem:[#allocation7] sm:$0xff] }
0x21d9   : > { %v14755_v54 = vpop.f32.mrf.mxu0 }
0x21da   : > { %v14756_v56 = vadd.f32 %v14755_v54, %v14673_v35 }
0x21db   : > { %v29586_v58 = vpop.f32.mrf.mxu0 }
0x21dc   : > { %v33072_v59 = vadd.f32 %v14830_v49, %v14756_v56 }
0x21de   : > { %14835 = vrot.lane.b32.xlu0 %v33072_v59, %s31028_s16  ;;  %v14837_v37 = vsel %vm1782_vm4, %v33072_v59, 0  ;;  %s34347_s16 = smov 56  }
0x21df   : > { %v14907_v42 = vand.u32 4294901760, %v14837_v37 }
0x21e1   : > { %v14908_v3 = vsub.f32 %v14837_v37, %v14907_v42 }
0x21e3   : > { %v14909_v23 = vand.u32 4294901760, %v14908_v3 }
0x21e5   : > { %v14910_v27 = vsub.f32 %v14908_v3, %v14909_v23 }
0x21e7   : > { %v14911_v2 = vand.u32 4294901760, %v14910_v27 }
0x2250   : > { %v14836_v24 = vpop.permute.xlu0 %14835 }
0x2251   : > { %v14839_v0 = vsel %vm1782_vm4, %v14836_v24, 0 }
0x2252   : > { %v14872_v31 = vand.u32 4294901760, %v14839_v0 }
0x2254   : > { %v14949_v60 = vsub.f32 %v14839_v0, %v14872_v31  ;;  %29599 = vmatpush3.xpose.msra.mxu0 %v14872_v31 }
0x2255   : > { %29608 = vmatprep.subr.mxu0 %v34263_v38 }
0x2256   : > { %v14950_v16 = vand.u32 4294901760, %v14949_v60 }
0x2257   : > { %29601 = vmatmul.mubr.f32.vlgmr.msra.gmra.mxu0 %v14911_v2 }
0x2258   : > { %v14951_v26 = vsub.f32 %v14949_v60, %v14950_v16  ;;  %29609 = vmatpush3.xpose.msra.mxu0 %v14949_v60  ;;  %29610 = vmatprep.mubr.msk.f32.mxu0 %vm31027_vm1, %v34263_v38 }
0x2259   : > { %29618 = vmatprep.subr.mxu0 %v34263_v38 }
0x225a   : > { %v14952_v25 = vand.u32 4294901760, %v14951_v26 }
0x225b   : > { %29611 = vmatmul.mubr.f32.vlgmr.msra.gmra.mxu0 %v14908_v3 }
0x225c   : > { %29604 = vmatpush3.xpose.msra.mxu1 %v14952_v25  ;;  %29619 = vmatpush3.xpose.msra.mxu0 %v14950_v16 }
0x225d   : > { %29620 = vmatprep.mubr.msk.f32.mxu0 %vm31027_vm1, %v34263_v38  ;;  %29613 = vmatprep.subr.mxu1 %v34263_v38 }
0x225e   : > { %29628 = vmatprep.subr.mxu0 %v34263_v38 }
0x225f   : > { %29606 = vmatmul.mubr.f32.vlgmr.msra.gmra.mxu1 %v14907_v42  ;;  %29621 = vmatmul.mubr.f32.vlgmr.msra.gmra.mxu0 %v14907_v42 }
0x2260   : > { %29614 = vmatpush3.xpose.msra.mxu1 %v14872_v31  ;;  %29615 = vmatprep.mubr.msk.f32.mxu1 %vm31027_vm1, %v34263_v38 }
0x2261   : > { %29623 = vmatprep.subr.mxu1 %v34263_v38  ;;  %29630 = vmatprep.mubr.msk.f32.mxu0 %vm31027_vm1, %v34263_v38 }
0x2263   : > { %29616 = vmatmul.mubr.f32.vlgmr.msra.gmra.mxu1 %v14909_v23 }
0x2264   : > { %29624 = vmatpush3.xpose.msra.mxu1 %v14872_v31  ;;  %29625 = vmatprep.mubr.msk.f32.mxu1 %vm31027_vm1, %v34263_v38 }
0x2265   : > { %29633 = vmatprep.subr.mxu1 %v34263_v38 }
0x2267   : > { %29626 = vmatmul.mubr.f32.vlgmr.msra.gmra.mxu1 %v14907_v42 }
0x2268   : > { %29635 = vmatprep.mubr.msk.f32.mxu1 %vm31027_vm1, %v34263_v38 }
0x2317   : > { %v14913_v11 = vpop.f32.mrf.mxu0 }
0x2319   : > { %v29602_v33 = vpop.f32.mrf.mxu0 }
0x231b   : > { %v15063_v22 = vpop.f32.mrf.mxu0 }
0x231d   : > { %v29612_v29 = vpop.f32.mrf.mxu0 }
0x231f   : > { %v14989_v14 = vpop.f32.mrf.mxu1  ;;  %v15211_v18 = vpop.f32.mrf.mxu0 }
0x2320   : > { %v14990_v39 = vadd.f32 %v14989_v14, %v14913_v11  ;;  %v34343_v14 = vld [vmem:[#allocation30_spill] sm:$0xff] }
0x2321   : > { %v29607_v40 = vpop.f32.mrf.mxu1  ;;  %v29622_v41 = vpop.f32.mrf.mxu0 }
0x2322   : > { %v15064_v43 = vadd.f32 %v15063_v22, %v14990_v39 }
0x2323   : > { %v15137_v44 = vpop.f32.mrf.mxu1 }
0x2324   : > { %v15138_v45 = vadd.f32 %v15137_v44, %v15064_v43 }
0x2325   : > { %v29617_v46 = vpop.f32.mrf.mxu1 }
0x2326   : > { %v15212_v47 = vadd.f32 %v15211_v18, %v15138_v45  ;;  %v34344_v18 = vld [vmem:[#allocation27_spill] sm:$0xff] }
0x2327   : > { %v15283_v48 = vpop.f32.mrf.mxu1 }
0x2328   : > { %v15284_v49 = vadd.f32 %v15283_v48, %v15212_v47 }
0x2329   : > { %v29627_v51 = vpop.f32.mrf.mxu1 }
0x232a   : > { %v15287_v53 = vmul.f32 0.35355338, %v15284_v49 }
0x232c   : > { %v15288_v36 = vadd.f32 %v33097_v21, %v15287_v53 }
0x232e   : > { %v15289_v35 = vsel %vm1782_vm4, %v15288_v36, -inf }
0x232f   : > { %15290 = vmax.xlane.f32.xlu1 %v15289_v35 }
0x2340   : > { %15301 = vrot.lane.b32.xlu1 %v33072_v59, %s31029_s29  ;;  %s31039_s29 = smov [#allocation13]  }
0x2344   : > { %16205 = vrot.lane.b32.xlu1 %v33072_v59, %s31030_s0  ;;  %s30940_s0 = sshll.u32 %s31039_s29, 4  ;;  %s30941_s0 = int_to_ptr.vmem [resolvable:$false] %s30940_s0 }
0x2345   : > { %p30943_p1 = scmp.lt.s32.totalorder %s27380_s27, %s30941_s0 }
0x2348   : > { %16203 = vrot.lane.b32.xlu1 %v33072_v59, %s31031_s23 }
0x23b8   : > { %v15291_v54 = vpop.xlane.xlu1 %15290 }
0x23b9   : > { %v15292_v56 = vsub.f32 %v15288_v36, %v15291_v54 }
0x23bb   : > { %v15293_v58 = vmul.f32 1.442695, %v15292_v56 }
0x23bc   : > { %v15302_v37 = vpop.permute.xlu1 %15301 }
0x23bd   : > { %30719 = vpow2.f32 %v15293_v58  ;;  %v15338_v42 = vand.u32 4294901760, %v15302_v37 }
0x23bf   : > { %v15415_v3 = vsub.f32 %v15302_v37, %v15338_v42  ;;  %29629 = vmatpush3.msra.mxu0 %v15338_v42 }
0x23c0   : > { %29638 = vmatprep.subr.mxu0 %v34263_v38  ;;  %v16206_v46 = vpop.permute.xlu1 %16205 }
0x23c1   : > { %v15416_v23 = vand.u32 4294901760, %v15415_v3  ;;  %v16209_v51 = vsel %vm1782_vm4, %v16206_v46, 0 }
0x23c2   : > { %v16242_v54 = vand.u32 4294901760, %v16209_v51 }
0x23c3   : > { %v15417_v24 = vsub.f32 %v15415_v3, %v15416_v23 }
0x23c5   : > { %v15418_v0 = vand.u32 4294901760, %v15417_v24  ;;  %v16204_v24 = vpop.permute.xlu1 %16203 }
0x23c7   : > { %29634 = vmatpush3.msra.mxu1 %v15418_v0 }
0x23c8   : > { %29643 = vmatprep.subr.mxu1 %v34263_v38 }
0x23ca   : > { %v30720_v27 = vpop.eup %30719 }
0x23cb   : > { %v15295_v31 = vsel %vm1782_vm4, %v30720_v27, 0.0 }
0x23cc   : > { %15296 = vadd.xlane.f32.xlu0 %v15295_v31 }
0x2455   : > { %v15297_v60 = vpop.xlane.xlu0 %15296 }
0x2456   : > { %30721 = vrcp.f32 %v15297_v60  ;;  %v16207_v60 = vsel %vm1782_vm4, %v16204_v24, 0 }
0x2463   : > { %v30722_v2 = vpop.eup %30721 }
0x2464   : > { %v15300_v16 = vmul.f32 %v30722_v2, %v30720_v27 }
0x2466   : > { %v15305_v26 = vsel %vm1782_vm4, %v15300_v16, 0  ;;  %v16277_v16 = vand.u32 4294901760, %v16207_v60 }
0x2467   : > { %v15373_v25 = vand.u32 4294901760, %v15305_v26 }
0x2469   : > { %v15374_v11 = vsub.f32 %v15305_v26, %v15373_v25  ;;  %29636 = vmatmul.mubr.f32.vlgmr.msra.gmra.mxu1 %v15373_v25 }
0x246a   : > { %29644 = vmatpush3.msra.mxu1 %v15338_v42  ;;  %29645 = vmatprep.mubr.msk.f32.mxu1 %vm31027_vm1, %v34263_v38 }
0x246b   : > { %29653 = vmatprep.subr.mxu1 %v34263_v38  ;;  %v15375_v33 = vand.u32 4294901760, %v15374_v11 }
0x246d   : > { %29646 = vmatmul.mubr.f32.vlgmr.msra.gmra.mxu1 %v15375_v33  ;;  %v15376_v22 = vsub.f32 %v15374_v11, %v15375_v33  ;;  %v16278_v33 = vsub.f32 %v16207_v60, %v16277_v16 }
0x246e   : > { %29654 = vmatpush3.msra.mxu1 %v15338_v42  ;;  %29655 = vmatprep.mubr.msk.f32.mxu1 %vm31027_vm1, %v34263_v38 }
0x246f   : > { %v15377_v29 = vand.u32 4294901760, %v15376_v22  ;;  %29663 = vmatprep.subr.mxu1 %v34263_v38 }
0x2471   : > { %29631 = vmatmul.mubr.f32.vlgmr.msra.gmra.mxu0 %v15377_v29  ;;  %29656 = vmatmul.mubr.f32.vlgmr.msra.gmra.mxu1 %v15373_v25 }
0x2472   : > { %29639 = vmatpush3.msra.mxu0 %v15415_v3  ;;  %29640 = vmatprep.mubr.msk.f32.mxu0 %vm31027_vm1, %v34263_v38  ;;  %v16319_v3 = vsub.f32 %v16209_v51, %v16242_v54 }
0x2473   : > { %29648 = vmatprep.subr.mxu0 %v34263_v38  ;;  %29664 = vmatpush3.msra.mxu1 %v34343_v14  ;;  %v34345_v14 = vld [vmem:[#allocation28_spill] sm:$0xff] }
0x2474   : > { %29665 = vmatprep.mubr.msk.f32.mxu1 %vm31027_vm1, %v34263_v38  ;;  %29673 = vmatprep.subr.mxu1 %v34263_v38  ;;  %v16320_v31 = vand.u32 4294901760, %v16319_v3 }
0x2475   : > { %29641 = vmatmul.mubr.f32.vlgmr.msra.gmra.mxu0 %v15374_v11 }
0x2476   : > { %29649 = vmatpush3.msra.mxu0 %v15416_v23  ;;  %29650 = vmatprep.mubr.msk.f32.mxu0 %vm31027_vm1, %v34263_v38 }
0x2477   : > { %29658 = vmatprep.subr.mxu0 %v34263_v38 }
0x2479   : > { %29651 = vmatmul.mubr.f32.vlgmr.msra.gmra.mxu0 %v15373_v25  ;;  %v16321_v25 = vsub.f32 %v16319_v3, %v16320_v31 }
0x247a   : > { %29659 = vmatpush3.msra.mxu0 %v34344_v18  ;;  %29660 = vmatprep.mubr.msk.f32.mxu0 %vm31027_vm1, %v34263_v38 }
0x247b   : > { %29668 = vmatprep.subr.mxu0 %v34263_v38  ;;  %v16322_v29 = vand.u32 4294901760, %v16321_v25 }
0x2529   : > { %v15455_v39 = vpop.f32.mrf.mxu1 }
0x252b   : > { %v29637_v40 = vpop.f32.mrf.mxu1 }
0x252d   : > { %v15603_v41 = vpop.f32.mrf.mxu1 }
0x252f   : > { %v29647_v43 = vpop.f32.mrf.mxu1 }
0x2531   : > { %v15379_v44 = vpop.f32.mrf.mxu0  ;;  %v15749_v45 = vpop.f32.mrf.mxu1 }
0x2532   : > { %v15456_v49 = vadd.f32 %v15455_v39, %v15379_v44  ;;  %v16279_v39 = vand.u32 4294901760, %v16278_v33 }
0x2533   : > { %v29632_v47 = vpop.f32.mrf.mxu0  ;;  %v29657_v48 = vpop.f32.mrf.mxu1 }
0x2534   : > { %v16280_v40 = vsub.f32 %v16278_v33, %v16279_v39 }
0x2535   : > { %v15529_v53 = vpop.f32.mrf.mxu0 }
0x2536   : > { %v15530_v36 = vadd.f32 %v15529_v53, %v15456_v49 }
0x2537   : > { %v29642_v35 = vpop.f32.mrf.mxu0 }
0x2538   : > { %v15604_v56 = vadd.f32 %v15603_v41, %v15530_v36  ;;  %v16281_v41 = vand.u32 4294901760, %v16280_v40 }
0x2539   : > { %v15677_v58 = vpop.f32.mrf.mxu0 }
0x253a   : > { %v15678_v37 = vadd.f32 %v15677_v58, %v15604_v56 }
0x253b   : > { %v29652_v42 = vpop.f32.mrf.mxu0 }
0x253c   : > { %v15750_v23 = vadd.f32 %v15749_v45, %v15678_v37 }
0x253e   : > { %v15754_v0 = vsel %vm1782_vm4, %v15750_v23, 0 }
0x253f   : > { %v15822_v27 = vand.u32 4294901760, %v15754_v0 }
0x2541   : > { %v15823_v2 = vsub.f32 %v15754_v0, %v15822_v27  ;;  %29666 = vmatmul.mubr.f32.vlgmr.msra.gmra.mxu1 %v15822_v27 }
0x2542   : > { %29674 = vmatpush3.msra.mxu1 %v34344_v18  ;;  %29675 = vmatprep.mubr.msk.f32.mxu1 %vm31027_vm1, %v34263_v38 }
0x2543   : > { %v15824_v26 = vand.u32 4294901760, %v15823_v2  ;;  %29683 = vmatprep.subr.mxu1 %v34263_v38 }
0x2545   : > { %v15825_v11 = vsub.f32 %v15823_v2, %v15824_v26  ;;  %29676 = vmatmul.mubr.f32.vlgmr.msra.gmra.mxu1 %v15824_v26 }
0x2546   : > { %29684 = vmatpush3.msra.mxu1 %v34344_v18  ;;  %29685 = vmatprep.mubr.msk.f32.mxu1 %vm31027_vm1, %v34263_v38  ;;  %v34346_v18 = vld [vmem:[#allocation29_spill] sm:$0xff] }
0x2547   : > { %v15826_v22 = vand.u32 4294901760, %v15825_v11  ;;  %29693 = vmatprep.subr.mxu1 %v34263_v38 }
0x2549   : > { %29661 = vmatmul.mubr.f32.vlgmr.msra.gmra.mxu0 %v15826_v22  ;;  %29686 = vmatmul.mubr.f32.vlgmr.msra.gmra.mxu1 %v15822_v27 }
0x254a   : > { %29694 = vmatpush3.xpose.msra.mxu1 %v16322_v29  ;;  %29669 = vmatpush3.msra.mxu0 %v34345_v14 }
0x254b   : > { %29670 = vmatprep.mubr.msk.f32.mxu0 %vm31027_vm1, %v34263_v38  ;;  %29695 = vmatprep.mubr.msk.f32.mxu1 %vm31027_vm1, %v34263_v38 }
0x254c   : > { %29703 = vmatprep.subr.mxu1 %v34263_v38  ;;  %29678 = vmatprep.subr.mxu0 %v34263_v38 }
0x254d   : > { %29671 = vmatmul.mubr.f32.vlgmr.msra.gmra.mxu0 %v15823_v2  ;;  %29696 = vmatmul.mubr.f32.vlgmr.msra.gmra.mxu1 %v16277_v16 }
0x254e   : > { %29704 = vmatpush3.xpose.msra.mxu1 %v16242_v54  ;;  %29679 = vmatpush3.msra.mxu0 %v34346_v18 }
0x254f   : > { %29680 = vmatprep.mubr.msk.f32.mxu0 %vm31027_vm1, %v34263_v38  ;;  %29688 = vmatprep.subr.mxu0 %v34263_v38 }
0x2550   : > { %29705 = vmatprep.mubr.msk.f32.mxu1 %vm31027_vm1, %v34263_v38  ;;  %29713 = vmatprep.subr.mxu1 %v34263_v38 }
0x2551   : > { %29681 = vmatmul.mubr.f32.vlgmr.msra.gmra.mxu0 %v15822_v27  ;;  %29706 = vmatmul.mubr.f32.vlgmr.msra.gmra.mxu1 %v16279_v39 }
0x2552   : > { %29689 = vmatpush3.xpose.msra.mxu0 %v16242_v54  ;;  %29714 = vmatpush3.xpose.msra.mxu1 %v16242_v54 }
0x2553   : > { %29690 = vmatprep.mubr.msk.f32.mxu0 %vm31027_vm1, %v34263_v38  ;;  %29698 = vmatprep.subr.mxu0 %v34263_v38 }
0x2554   : > { %29715 = vmatprep.mubr.msk.f32.mxu1 %vm31027_vm1, %v34263_v38  ;;  %29723 = vmatprep.subr.mxu1 %v34263_v38 }
0x2555   : > { %29691 = vmatmul.mubr.f32.vlgmr.msra.gmra.mxu0 %v16281_v41  ;;  %29716 = vmatmul.mubr.f32.vlgmr.msra.gmra.mxu1 %v16277_v16 }
0x2556   : > { %29699 = vmatpush3.xpose.msra.mxu0 %v16319_v3  ;;  %29700 = vmatprep.mubr.msk.f32.mxu0 %vm31027_vm1, %v34263_v38 }
0x2557   : > { %29708 = vmatprep.subr.mxu0 %v34263_v38  ;;  %29725 = vmatprep.mubr.msk.f32.mxu1 %vm31027_vm1, %v34263_v38 }
0x2559   : > { %29701 = vmatmul.mubr.f32.vlgmr.msra.gmra.mxu0 %v16278_v33 }
0x255a   : > { %29709 = vmatpush3.xpose.msra.mxu0 %v16320_v31  ;;  %29710 = vmatprep.mubr.msk.f32.mxu0 %vm31027_vm1, %v34263_v38 }
0x255b   : > { %29718 = vmatprep.subr.mxu0 %v34263_v38 }
0x255d   : > { %29711 = vmatmul.mubr.f32.vlgmr.msra.gmra.mxu0 %v16277_v16 }
0x255e   : > { %29720 = vmatprep.mubr.msk.f32.mxu0 %vm31027_vm1, %v34263_v38 }
0x2601   : > { %v15904_v43 = vpop.f32.mrf.mxu1 }
0x2603   : > { %v29667_v44 = vpop.f32.mrf.mxu1 }
0x2605   : > { %v16052_v45 = vpop.f32.mrf.mxu1 }
0x2607   : > { %v29677_v46 = vpop.f32.mrf.mxu1 }
0x2609   : > { %v15828_v47 = vpop.f32.mrf.mxu0  ;;  %v16198_v48 = vpop.f32.mrf.mxu1 }
0x260a   : > { %v15905_v49 = vadd.f32 %v15904_v43, %v15828_v47 }
0x260b   : > { %v29662_v51 = vpop.f32.mrf.mxu0  ;;  %v29687_v53 = vpop.f32.mrf.mxu1 }
0x260d   : > { %v15978_v36 = vpop.f32.mrf.mxu0  ;;  %v16359_v35 = vpop.f32.mrf.mxu1 }
0x260e   : > { %v15979_v54 = vadd.f32 %v15978_v36, %v15905_v49 }
0x260f   : > { %v29672_v56 = vpop.f32.mrf.mxu0  ;;  %v29697_v58 = vpop.f32.mrf.mxu1 }
0x2610   : > { %v16053_v37 = vadd.f32 %v16052_v45, %v15979_v54 }
0x2611   : > { %v16126_v42 = vpop.f32.mrf.mxu0  ;;  %v16507_v3 = vpop.f32.mrf.mxu1 }
0x2612   : > { %v16127_v23 = vadd.f32 %v16126_v42, %v16053_v37 }
0x2613   : > { %v29682_v24 = vpop.f32.mrf.mxu0  ;;  %v29707_v0 = vpop.f32.mrf.mxu1 }
0x2614   : > { %v33172_v27 = vadd.f32 %v16198_v48, %v16127_v23 }
0x2615   : > { %v16283_v31 = vpop.f32.mrf.mxu0  ;;  %v16653_v60 = vpop.f32.mrf.mxu1 }
0x2616   : > { %v16360_v26 = vadd.f32 %v16359_v35, %v16283_v31 }
0x2617   : > { %v29692_v2 = vpop.f32.mrf.mxu0  ;;  %v29717_v16 = vpop.f32.mrf.mxu1 }
0x2618   : > { %v34349_v2 = vld [vmem:[#allocation31_spill] sm:$0xff] }
0x2619   : > { %v16433_v25 = vpop.f32.mrf.mxu0 }
0x261a   : > { %v16434_v11 = vadd.f32 %v16433_v25, %v16360_v26 }
0x261b   : > { %v29702_v33 = vpop.f32.mrf.mxu0 }
0x261c   : > { %v16508_v22 = vadd.f32 %v16507_v3, %v16434_v11 }
0x261d   : > { %v16581_v29 = vpop.f32.mrf.mxu0 }
0x261e   : > { %v16582_v14 = vadd.f32 %v16581_v29, %v16508_v22 }
0x261f   : > { %v29712_v39 = vpop.f32.mrf.mxu0 }
0x2620   : > { %v16654_v18 = vadd.f32 %v16653_v60, %v16582_v14  ;;  %v34348_v60 = vld [vmem:[#allocation34_spill] sm:$0xff] }
0x2622   : > { %v16657_v40 = vmul.f32 0.35355338, %v16654_v18 }
0x2624   : > { %v16658_v41 = vadd.f32 %v33097_v21, %v16657_v40 }
0x2626   : > { %v16659_v43 = vsel %vm1782_vm4, %v16658_v41, -inf }
0x2627   : > { %16660 = vmax.xlane.f32.xlu1 %v16659_v43 }
0x26b0   : > { %v16661_v44 = vpop.xlane.xlu1 %16660 }
0x26b1   : > { %v16662_v45 = vsub.f32 %v16658_v41, %v16661_v44 }
0x26b3   : > { %v16663_v46 = vmul.f32 1.442695, %v16662_v45 }
0x26b5   : > { %30723 = vpow2.f32 %v16663_v46 }
0x26c2   : > { %v30724_v47 = vpop.eup %30723 }
0x26c3   : > { %v16665_v48 = vsel %vm1782_vm4, %v30724_v47, 0.0 }
0x26c4   : > { %16666 = vadd.xlane.f32.xlu0 %v16665_v48 }
0x26da   : > { %16671 = vrot.lane.b32.xlu0 %v33072_v59, %s34347_s16  ;;  %s30936_s16 = scalar_lea.vmem %s27380_s27, 128 }
0x26db   : > { %p30937_p2 = scmp.ne.s32.totalorder %s27380_s27, %s30936_s16 }
0x26de   : > { %17575 = vrot.lane.b32.xlu0 %v33072_v59, %s31033_s20  ;;  %s34352_s20 = smov 48  }
0x26e2   : > { %17573 = vrot.lane.b32.xlu0 %v33072_v59, %s31034_s2 }
0x274d   : > { %v16667_v49 = vpop.xlane.xlu0 %16666 }
0x274e   : > { %30725 = vrcp.f32 %v16667_v49 }
0x2751   : > { %v16672_v51 = vpop.permute.xlu0 %16671 }
0x2752   : > { %v16708_v53 = vand.u32 4294901760, %v16672_v51 }
0x2754   : > { %v16785_v36 = vsub.f32 %v16672_v51, %v16708_v53  ;;  %29719 = vmatpush3.msra.mxu0 %v16708_v53 }
0x2755   : > { %29728 = vmatprep.subr.mxu0 %v34263_v38  ;;  %v17576_v29 = vpop.permute.xlu0 %17575 }
0x2756   : > { %v16786_v35 = vand.u32 4294901760, %v16785_v36  ;;  %v17579_v40 = vsel %vm1782_vm4, %v17576_v29, 0 }
0x2757   : > { %v17612_v45 = vand.u32 4294901760, %v17579_v40 }
0x2758   : > { %v16787_v54 = vsub.f32 %v16785_v36, %v16786_v35 }
0x2759   : > { %v17689_v51 = vsub.f32 %v17579_v40, %v17612_v45 }
0x275a   : > { %v16788_v56 = vand.u32 4294901760, %v16787_v54 }
0x275b   : > { %v30726_v58 = vpop.eup %30725 }
0x275c   : > { %v16670_v37 = vmul.f32 %v30726_v58, %v30724_v47  ;;  %29724 = vmatpush3.msra.mxu1 %v16788_v56  ;;  %v17690_v56 = vand.u32 4294901760, %v17689_v51 }
0x275d   : > { %29733 = vmatprep.subr.mxu1 %v34263_v38 }
0x275e   : > { %v16675_v42 = vsel %vm1782_vm4, %v16670_v37, 0 }
0x275f   : > { %v16743_v3 = vand.u32 4294901760, %v16675_v42 }
0x2761   : > { %v16744_v23 = vsub.f32 %v16675_v42, %v16743_v3  ;;  %29726 = vmatmul.mubr.f32.vlgmr.msra.gmra.mxu1 %v16743_v3 }
0x2762   : > { %29734 = vmatpush3.msra.mxu1 %v16708_v53  ;;  %29735 = vmatprep.mubr.msk.f32.mxu1 %vm31027_vm1, %v34263_v38 }
0x2763   : > { %29743 = vmatprep.subr.mxu1 %v34263_v38  ;;  %v16745_v24 = vand.u32 4294901760, %v16744_v23 }
0x2765   : > { %29736 = vmatmul.mubr.f32.vlgmr.msra.gmra.mxu1 %v16745_v24  ;;  %v16746_v0 = vsub.f32 %v16744_v23, %v16745_v24 }
0x2766   : > { %29744 = vmatpush3.msra.mxu1 %v16708_v53  ;;  %29745 = vmatprep.mubr.msk.f32.mxu1 %vm31027_vm1, %v34263_v38 }
0x2767   : > { %v16747_v31 = vand.u32 4294901760, %v16746_v0  ;;  %29753 = vmatprep.subr.mxu1 %v34263_v38 }
0x2769   : > { %29721 = vmatmul.mubr.f32.vlgmr.msra.gmra.mxu0 %v16747_v31  ;;  %29746 = vmatmul.mubr.f32.vlgmr.msra.gmra.mxu1 %v16743_v3 }
0x276a   : > { %29729 = vmatpush3.msra.mxu0 %v16785_v36  ;;  %29730 = vmatprep.mubr.msk.f32.mxu0 %vm31027_vm1, %v34263_v38  ;;  %v17574_v36 = vpop.permute.xlu0 %17573 }
0x276b   : > { %29738 = vmatprep.subr.mxu0 %v34263_v38  ;;  %29754 = vmatpush3.msra.mxu1 %v34348_v60  ;;  %v17577_v58 = vsel %vm1782_vm4, %v17574_v36, 0 }
0x276c   : > { %29755 = vmatprep.mubr.msk.f32.mxu1 %vm31027_vm1, %v34263_v38  ;;  %29763 = vmatprep.subr.mxu1 %v34263_v38  ;;  %v17647_v42 = vand.u32 4294901760, %v17577_v58 }
0x276d   : > { %29731 = vmatmul.mubr.f32.vlgmr.msra.gmra.mxu0 %v16744_v23  ;;  %v17691_v23 = vsub.f32 %v17689_v51, %v17690_v56 }
0x276e   : > { %29739 = vmatpush3.msra.mxu0 %v16786_v35  ;;  %29740 = vmatprep.mubr.msk.f32.mxu0 %vm31027_vm1, %v34263_v38  ;;  %v17648_v0 = vsub.f32 %v17577_v58, %v17647_v42 }
0x276f   : > { %29748 = vmatprep.subr.mxu0 %v34263_v38  ;;  %v17692_v60 = vand.u32 4294901760, %v17691_v23 }
0x2771   : > { %29741 = vmatmul.mubr.f32.vlgmr.msra.gmra.mxu0 %v16743_v3 }
0x2772   : > { %29749 = vmatpush3.msra.mxu0 %v34349_v2  ;;  %29750 = vmatprep.mubr.msk.f32.mxu0 %vm31027_vm1, %v34263_v38 }
0x2773   : > { %29758 = vmatprep.subr.mxu0 %v34263_v38 }
0x2821   : > { %v16825_v16 = vpop.f32.mrf.mxu1 }
0x2823   : > { %v29727_v26 = vpop.f32.mrf.mxu1 }
0x2824   : > { %v17649_v26 = vand.u32 4294901760, %v17648_v0 }
0x2825   : > { %v16973_v25 = vpop.f32.mrf.mxu1 }
0x2827   : > { %v29737_v11 = vpop.f32.mrf.mxu1 }
0x2829   : > { %v16749_v33 = vpop.f32.mrf.mxu0  ;;  %v17119_v22 = vpop.f32.mrf.mxu1 }
0x282a   : > { %v16826_v18 = vadd.f32 %v16825_v16, %v16749_v33  ;;  %v34350_v16 = vld [vmem:[#allocation32_spill] sm:$0xff] }
0x282b   : > { %v29722_v14 = vpop.f32.mrf.mxu0  ;;  %v29747_v39 = vpop.f32.mrf.mxu1 }
0x282d   : > { %v16899_v41 = vpop.f32.mrf.mxu0 }
0x282e   : > { %v16900_v43 = vadd.f32 %v16899_v41, %v16826_v18 }
0x282f   : > { %v29732_v44 = vpop.f32.mrf.mxu0 }
0x2830   : > { %v16974_v46 = vadd.f32 %v16973_v25, %v16900_v43  ;;  %v17650_v25 = vsub.f32 %v17648_v0, %v17649_v26 }
0x2831   : > { %v17047_v47 = vpop.f32.mrf.mxu0 }
0x2832   : > { %v17048_v48 = vadd.f32 %v17047_v47, %v16974_v46  ;;  %v17651_v11 = vand.u32 4294901760, %v17650_v25 }
0x2833   : > { %v29742_v49 = vpop.f32.mrf.mxu0 }
0x2834   : > { %v17120_v53 = vadd.f32 %v17119_v22, %v17048_v48 }
0x2836   : > { %v17124_v35 = vsel %vm1782_vm4, %v17120_v53, 0 }
0x2837   : > { %v17192_v54 = vand.u32 4294901760, %v17124_v35 }
0x2839   : > { %v17193_v37 = vsub.f32 %v17124_v35, %v17192_v54  ;;  %29756 = vmatmul.mubr.f32.vlgmr.msra.gmra.mxu1 %v17192_v54 }
0x283a   : > { %29764 = vmatpush3.msra.mxu1 %v34349_v2  ;;  %29765 = vmatprep.mubr.msk.f32.mxu1 %vm31027_vm1, %v34263_v38 }
0x283b   : > { %v17194_v3 = vand.u32 4294901760, %v17193_v37  ;;  %29773 = vmatprep.subr.mxu1 %v34263_v38 }
0x283d   : > { %v17195_v24 = vsub.f32 %v17193_v37, %v17194_v3  ;;  %29766 = vmatmul.mubr.f32.vlgmr.msra.gmra.mxu1 %v17194_v3 }
0x283e   : > { %29774 = vmatpush3.msra.mxu1 %v34349_v2  ;;  %29775 = vmatprep.mubr.msk.f32.mxu1 %vm31027_vm1, %v34263_v38  ;;  %v34351_v2 = vld [vmem:[#allocation33_spill] sm:$0xff] }
0x283f   : > { %v17196_v31 = vand.u32 4294901760, %v17195_v24  ;;  %29783 = vmatprep.subr.mxu1 %v34263_v38 }
0x2841   : > { %29751 = vmatmul.mubr.f32.vlgmr.msra.gmra.mxu0 %v17196_v31  ;;  %29776 = vmatmul.mubr.f32.vlgmr.msra.gmra.mxu1 %v17192_v54 }
0x2842   : > { %29784 = vmatpush3.xpose.msra.mxu1 %v17692_v60  ;;  %29759 = vmatpush3.msra.mxu0 %v34350_v16 }
0x2843   : > { %29760 = vmatprep.mubr.msk.f32.mxu0 %vm31027_vm1, %v34263_v38  ;;  %29785 = vmatprep.mubr.msk.f32.mxu1 %vm31027_vm1, %v34263_v38 }
0x2844   : > { %29793 = vmatprep.subr.mxu1 %v34263_v38  ;;  %29768 = vmatprep.subr.mxu0 %v34263_v38 }
0x2845   : > { %29761 = vmatmul.mubr.f32.vlgmr.msra.gmra.mxu0 %v17193_v37  ;;  %29786 = vmatmul.mubr.f32.vlgmr.msra.gmra.mxu1 %v17647_v42 }
0x2846   : > { %29794 = vmatpush3.xpose.msra.mxu1 %v17612_v45  ;;  %29769 = vmatpush3.msra.mxu0 %v34351_v2 }
0x2847   : > { %29770 = vmatprep.mubr.msk.f32.mxu0 %vm31027_vm1, %v34263_v38  ;;  %29778 = vmatprep.subr.mxu0 %v34263_v38 }
0x2848   : > { %29795 = vmatprep.mubr.msk.f32.mxu1 %vm31027_vm1, %v34263_v38  ;;  %29803 = vmatprep.subr.mxu1 %v34263_v38 }
0x2849   : > { %29771 = vmatmul.mubr.f32.vlgmr.msra.gmra.mxu0 %v17192_v54  ;;  %29796 = vmatmul.mubr.f32.vlgmr.msra.gmra.mxu1 %v17649_v26 }
0x284a   : > { %29779 = vmatpush3.xpose.msra.mxu0 %v17612_v45  ;;  %29804 = vmatpush3.xpose.msra.mxu1 %v17612_v45 }
0x284b   : > { %29780 = vmatprep.mubr.msk.f32.mxu0 %vm31027_vm1, %v34263_v38  ;;  %29788 = vmatprep.subr.mxu0 %v34263_v38 }
0x284c   : > { %29805 = vmatprep.mubr.msk.f32.mxu1 %vm31027_vm1, %v34263_v38  ;;  %29813 = vmatprep.subr.mxu1 %v34263_v38 }
0x284d   : > { %29781 = vmatmul.mubr.f32.vlgmr.msra.gmra.mxu0 %v17651_v11  ;;  %29806 = vmatmul.mubr.f32.vlgmr.msra.gmra.mxu1 %v17647_v42 }
0x284e   : > { %29789 = vmatpush3.xpose.msra.mxu0 %v17689_v51  ;;  %29790 = vmatprep.mubr.msk.f32.mxu0 %vm31027_vm1, %v34263_v38 }
0x284f   : > { %29798 = vmatprep.subr.mxu0 %v34263_v38  ;;  %29815 = vmatprep.mubr.msk.f32.mxu1 %vm31027_vm1, %v34263_v38 }
0x2851   : > { %29791 = vmatmul.mubr.f32.vlgmr.msra.gmra.mxu0 %v17648_v0 }
0x2852   : > { %29799 = vmatpush3.xpose.msra.mxu0 %v17690_v56  ;;  %29800 = vmatprep.mubr.msk.f32.mxu0 %vm31027_vm1, %v34263_v38  ;;  %v30769_v56 = vld [vmem:[%s34024_s10] ss:$0 sm:$0xff] }
0x2853   : > { %29808 = vmatprep.subr.mxu0 %v34263_v38  ;;  %v16202_v58 = vadd.f32 %v30769_v56, %v33172_v27 }
0x2855   : > { %29801 = vmatmul.mubr.f32.vlgmr.msra.gmra.mxu0 %v17647_v42 }
0x2856   : > { %29810 = vmatprep.mubr.msk.f32.mxu0 %vm31027_vm1, %v34263_v38 }
0x28f9   : > { %v17274_v33 = vpop.f32.mrf.mxu1 }
0x28fb   : > { %v29757_v22 = vpop.f32.mrf.mxu1 }
0x28fd   : > { %v17422_v29 = vpop.f32.mrf.mxu1 }
0x28ff   : > { %v29767_v14 = vpop.f32.mrf.mxu1 }
0x2901   : > { %v17198_v39 = vpop.f32.mrf.mxu0  ;;  %v17568_v18 = vpop.f32.mrf.mxu1 }
0x2902   : > { %v17275_v40 = vadd.f32 %v17274_v33, %v17198_v39 }
0x2903   : > { %v29752_v41 = vpop.f32.mrf.mxu0  ;;  %v29777_v43 = vpop.f32.mrf.mxu1 }
0x2905   : > { %v17348_v44 = vpop.f32.mrf.mxu0  ;;  %v17729_v45 = vpop.f32.mrf.mxu1 }
0x2906   : > { %v17349_v46 = vadd.f32 %v17348_v44, %v17275_v40 }
0x2907   : > { %v29762_v47 = vpop.f32.mrf.mxu0  ;;  %v29787_v48 = vpop.f32.mrf.mxu1 }
0x2908   : > { %v17423_v49 = vadd.f32 %v17422_v29, %v17349_v46 }
0x2909   : > { %v17496_v51 = vpop.f32.mrf.mxu0  ;;  %v17877_v53 = vpop.f32.mrf.mxu1 }
0x290a   : > { %v17497_v36 = vadd.f32 %v17496_v51, %v17423_v49 }
0x290b   : > { %v29772_v35 = vpop.f32.mrf.mxu0  ;;  %v29797_v54 = vpop.f32.mrf.mxu1 }
0x290c   : > { %v17569_v37 = vadd.f32 %v17568_v18, %v17497_v36 }
0x290d   : > { %v17653_v42 = vpop.f32.mrf.mxu0  ;;  %v18023_v3 = vpop.f32.mrf.mxu1 }
0x290e   : > { %v33251_v23 = vadd.f32 %v17569_v37, %v16202_v58  ;;  %v17730_v31 = vadd.f32 %v17729_v45, %v17653_v42  ;;  %v34353_v42 = vld [vmem:[#allocation38_spill] sm:$0xff] }
0x290f   : > { %v29782_v24 = vpop.f32.mrf.mxu0  ;;  %v29807_v0 = vpop.f32.mrf.mxu1 }
0x2911   : > { %v17803_v60 = vpop.f32.mrf.mxu0 }
0x2912   : > { %v17804_v16 = vadd.f32 %v17803_v60, %v17730_v31 }
0x2913   : > { %v29792_v26 = vpop.f32.mrf.mxu0 }
0x2914   : > { %v17878_v2 = vadd.f32 %v17877_v53, %v17804_v16 }
0x2915   : > { %v17951_v25 = vpop.f32.mrf.mxu0 }
0x2916   : > { %v17952_v11 = vadd.f32 %v17951_v25, %v17878_v2 }
0x2917   : > { %v29802_v33 = vpop.f32.mrf.mxu0 }
0x2918   : > { %v18024_v22 = vadd.f32 %v18023_v3, %v17952_v11  ;;  %v34354_v3 = vld [vmem:[#allocation35_spill] sm:$0xff] }
0x291a   : > { %v18027_v29 = vmul.f32 0.35355338, %v18024_v22 }
0x291c   : > { %v18028_v14 = vadd.f32 %v33097_v21, %v18027_v29 }
0x291e   : > { %v18029_v27 = vsel %vm1782_vm4, %v18028_v14, -inf }
0x291f   : > { %18030 = vmax.xlane.f32.xlu1 %v18029_v27 }
0x2930   : > { %18041 = vrot.lane.b32.xlu1 %v33072_v59, %s34352_s20  ;;  %s34455_s20 = sld [smem:[#allocation24_spill]] }
0x2934   : > { %18945 = vrot.lane.b32.xlu1 %v33072_v59, %s31036_s15  ;;  %s34357_s15 = smov 40  }
0x2936   : > { %p34457_p9 = scmp.ne.s32.totalorder %s34455_s20, 0 }
0x2938   : > { %18943 = vrot.lane.b32.xlu1 %v33072_v59, %s31037_s19  ;;  %p30938_p11 = pnand %p30937_p2, %p34457_p9 }
0x293a   : > { %p30939_p13 = pneg %p30938_p11 }
0x29a8   : > { %v18031_v39 = vpop.xlane.xlu1 %18030 }
0x29a9   : > { %v18032_v18 = vsub.f32 %v18028_v14, %v18031_v39 }
0x29ab   : > { %v18033_v40 = vmul.f32 1.442695, %v18032_v18 }
0x29ac   : > { %v18042_v41 = vpop.permute.xlu1 %18041 }
0x29ad   : > { %30727 = vpow2.f32 %v18033_v40  ;;  %v18078_v43 = vand.u32 4294901760, %v18042_v41 }
0x29af   : > { %v18155_v44 = vsub.f32 %v18042_v41, %v18078_v43  ;;  %29809 = vmatpush3.msra.mxu0 %v18078_v43 }
0x29b0   : > { %29818 = vmatprep.subr.mxu0 %v34263_v38  ;;  %v18946_v2 = vpop.permute.xlu1 %18945 }
0x29b1   : > { %v18156_v21 = vand.u32 4294901760, %v18155_v44  ;;  %v18949_v22 = vsel %vm1782_vm4, %v18946_v2, 0 }
0x29b2   : > { %v18982_v39 = vand.u32 4294901760, %v18949_v22 }
0x29b3   : > { %v18157_v45 = vsub.f32 %v18155_v44, %v18156_v21 }
0x29b5   : > { %v18158_v46 = vand.u32 4294901760, %v18157_v45  ;;  %v18944_v45 = vpop.permute.xlu1 %18943 }
0x29b7   : > { %29814 = vmatpush3.msra.mxu1 %v18158_v46 }
0x29b8   : > { %29823 = vmatprep.subr.mxu1 %v34263_v38 }
0x29ba   : > { %v30728_v47 = vpop.eup %30727 }
0x29bb   : > { %v18035_v48 = vsel %vm1782_vm4, %v30728_v47, 0.0 }
0x29bc   : > { %18036 = vadd.xlane.f32.xlu0 %v18035_v48 }
0x2a45   : > { %v18037_v49 = vpop.xlane.xlu0 %18036 }
0x2a46   : > { %30729 = vrcp.f32 %v18037_v49  ;;  %v18947_v49 = vsel %vm1782_vm4, %v18944_v45, 0 }
0x2a53   : > { %v30730_v51 = vpop.eup %30729 }
0x2a54   : > { %v18040_v53 = vmul.f32 %v30730_v51, %v30728_v47 }
0x2a56   : > { %v18045_v36 = vsel %vm1782_vm4, %v18040_v53, 0  ;;  %v19017_v53 = vand.u32 4294901760, %v18947_v49 }
0x2a57   : > { %v18113_v35 = vand.u32 4294901760, %v18045_v36 }
0x2a59   : > { %v18114_v54 = vsub.f32 %v18045_v36, %v18113_v35  ;;  %29816 = vmatmul.mubr.f32.vlgmr.msra.gmra.mxu1 %v18113_v35 }
0x2a5a   : > { %29824 = vmatpush3.msra.mxu1 %v18078_v43  ;;  %29825 = vmatprep.mubr.msk.f32.mxu1 %vm31027_vm1, %v34263_v38 }
0x2a5b   : > { %29833 = vmatprep.subr.mxu1 %v34263_v38  ;;  %v18115_v56 = vand.u32 4294901760, %v18114_v54 }
0x2a5d   : > { %29826 = vmatmul.mubr.f32.vlgmr.msra.gmra.mxu1 %v18115_v56  ;;  %v18116_v58 = vsub.f32 %v18114_v54, %v18115_v56  ;;  %v19018_v56 = vsub.f32 %v18947_v49, %v19017_v53 }
0x2a5e   : > { %29834 = vmatpush3.msra.mxu1 %v18078_v43  ;;  %29835 = vmatprep.mubr.msk.f32.mxu1 %vm31027_vm1, %v34263_v38 }
0x2a5f   : > { %v18117_v37 = vand.u32 4294901760, %v18116_v58  ;;  %29843 = vmatprep.subr.mxu1 %v34263_v38 }
0x2a61   : > { %29811 = vmatmul.mubr.f32.vlgmr.msra.gmra.mxu0 %v18117_v37  ;;  %29836 = vmatmul.mubr.f32.vlgmr.msra.gmra.mxu1 %v18113_v35 }
0x2a62   : > { %29819 = vmatpush3.msra.mxu0 %v18155_v44  ;;  %29820 = vmatprep.mubr.msk.f32.mxu0 %vm31027_vm1, %v34263_v38  ;;  %v19059_v44 = vsub.f32 %v18949_v22, %v18982_v39 }
0x2a63   : > { %29828 = vmatprep.subr.mxu0 %v34263_v38  ;;  %29844 = vmatpush3.msra.mxu1 %v34353_v42  ;;  %v34355_v42 = vld [vmem:[#allocation36_spill] sm:$0xff] }
0x2a64   : > { %29845 = vmatprep.mubr.msk.f32.mxu1 %vm31027_vm1, %v34263_v38  ;;  %29853 = vmatprep.subr.mxu1 %v34263_v38  ;;  %v19060_v48 = vand.u32 4294901760, %v19059_v44 }
0x2a65   : > { %29821 = vmatmul.mubr.f32.vlgmr.msra.gmra.mxu0 %v18114_v54 }
0x2a66   : > { %29829 = vmatpush3.msra.mxu0 %v18156_v21  ;;  %29830 = vmatprep.mubr.msk.f32.mxu0 %vm31027_vm1, %v34263_v38 }
0x2a67   : > { %29838 = vmatprep.subr.mxu0 %v34263_v38 }
0x2a69   : > { %29831 = vmatmul.mubr.f32.vlgmr.msra.gmra.mxu0 %v18113_v35  ;;  %v19061_v35 = vsub.f32 %v19059_v44, %v19060_v48 }
0x2a6a   : > { %29839 = vmatpush3.msra.mxu0 %v34354_v3  ;;  %29840 = vmatprep.mubr.msk.f32.mxu0 %vm31027_vm1, %v34263_v38 }
0x2a6b   : > { %29848 = vmatprep.subr.mxu0 %v34263_v38  ;;  %v19062_v37 = vand.u32 4294901760, %v19061_v35 }
0x2b19   : > { %v18195_v24 = vpop.f32.mrf.mxu1 }
0x2b1b   : > { %v29817_v0 = vpop.f32.mrf.mxu1 }
0x2b1d   : > { %v18343_v31 = vpop.f32.mrf.mxu1 }
0x2b1f   : > { %v29827_v60 = vpop.f32.mrf.mxu1 }
0x2b21   : > { %v18119_v16 = vpop.f32.mrf.mxu0  ;;  %v18489_v26 = vpop.f32.mrf.mxu1 }
0x2b22   : > { %v18196_v33 = vadd.f32 %v18195_v24, %v18119_v16  ;;  %v19019_v24 = vand.u32 4294901760, %v19018_v56 }
0x2b23   : > { %v29812_v25 = vpop.f32.mrf.mxu0  ;;  %v29837_v11 = vpop.f32.mrf.mxu1 }
0x2b24   : > { %v19020_v0 = vsub.f32 %v19018_v56, %v19019_v24 }
0x2b25   : > { %v18269_v29 = vpop.f32.mrf.mxu0 }
0x2b26   : > { %v18270_v14 = vadd.f32 %v18269_v29, %v18196_v33 }
0x2b27   : > { %v29822_v27 = vpop.f32.mrf.mxu0 }
0x2b28   : > { %v18344_v18 = vadd.f32 %v18343_v31, %v18270_v14  ;;  %v19021_v31 = vand.u32 4294901760, %v19020_v0 }
0x2b29   : > { %v18417_v40 = vpop.f32.mrf.mxu0 }
0x2b2a   : > { %v18418_v41 = vadd.f32 %v18417_v40, %v18344_v18 }
0x2b2b   : > { %v29832_v43 = vpop.f32.mrf.mxu0 }
0x2b2c   : > { %v18490_v21 = vadd.f32 %v18489_v26, %v18418_v41 }
0x2b2e   : > { %v18494_v46 = vsel %vm1782_vm4, %v18490_v21, 0 }
0x2b2f   : > { %v18562_v47 = vand.u32 4294901760, %v18494_v46 }
0x2b31   : > { %v18563_v51 = vsub.f32 %v18494_v46, %v18562_v47  ;;  %29846 = vmatmul.mubr.f32.vlgmr.msra.gmra.mxu1 %v18562_v47 }
0x2b32   : > { %29854 = vmatpush3.msra.mxu1 %v34354_v3  ;;  %29855 = vmatprep.mubr.msk.f32.mxu1 %vm31027_vm1, %v34263_v38 }
0x2b33   : > { %v18564_v36 = vand.u32 4294901760, %v18563_v51  ;;  %29863 = vmatprep.subr.mxu1 %v34263_v38 }
0x2b35   : > { %v18565_v54 = vsub.f32 %v18563_v51, %v18564_v36  ;;  %29856 = vmatmul.mubr.f32.vlgmr.msra.gmra.mxu1 %v18564_v36 }
0x2b36   : > { %29864 = vmatpush3.msra.mxu1 %v34354_v3  ;;  %29865 = vmatprep.mubr.msk.f32.mxu1 %vm31027_vm1, %v34263_v38  ;;  %v34356_v3 = vld [vmem:[#allocation37_spill] sm:$0xff] }
0x2b37   : > { %v18566_v58 = vand.u32 4294901760, %v18565_v54  ;;  %29873 = vmatprep.subr.mxu1 %v34263_v38 }
0x2b39   : > { %29841 = vmatmul.mubr.f32.vlgmr.msra.gmra.mxu0 %v18566_v58  ;;  %29866 = vmatmul.mubr.f32.vlgmr.msra.gmra.mxu1 %v18562_v47 }
0x2b3a   : > { %29874 = vmatpush3.xpose.msra.mxu1 %v19062_v37  ;;  %29849 = vmatpush3.msra.mxu0 %v34355_v42 }
0x2b3b   : > { %29850 = vmatprep.mubr.msk.f32.mxu0 %vm31027_vm1, %v34263_v38  ;;  %29875 = vmatprep.mubr.msk.f32.mxu1 %vm31027_vm1, %v34263_v38 }
0x2b3c   : > { %29883 = vmatprep.subr.mxu1 %v34263_v38  ;;  %29858 = vmatprep.subr.mxu0 %v34263_v38 }
0x2b3d   : > { %29851 = vmatmul.mubr.f32.vlgmr.msra.gmra.mxu0 %v18563_v51  ;;  %29876 = vmatmul.mubr.f32.vlgmr.msra.gmra.mxu1 %v19017_v53 }
0x2b3e   : > { %29884 = vmatpush3.xpose.msra.mxu1 %v18982_v39  ;;  %29859 = vmatpush3.msra.mxu0 %v34356_v3 }
0x2b3f   : > { %29860 = vmatprep.mubr.msk.f32.mxu0 %vm31027_vm1, %v34263_v38  ;;  %29868 = vmatprep.subr.mxu0 %v34263_v38 }
0x2b40   : > { %29885 = vmatprep.mubr.msk.f32.mxu1 %vm31027_vm1, %v34263_v38  ;;  %29893 = vmatprep.subr.mxu1 %v34263_v38 }
0x2b41   : > { %29861 = vmatmul.mubr.f32.vlgmr.msra.gmra.mxu0 %v18562_v47  ;;  %29886 = vmatmul.mubr.f32.vlgmr.msra.gmra.mxu1 %v19019_v24 }
0x2b42   : > { %29869 = vmatpush3.xpose.msra.mxu0 %v18982_v39  ;;  %29894 = vmatpush3.xpose.msra.mxu1 %v18982_v39 }
0x2b43   : > { %29870 = vmatprep.mubr.msk.f32.mxu0 %vm31027_vm1, %v34263_v38  ;;  %29878 = vmatprep.subr.mxu0 %v34263_v38 }
0x2b44   : > { %29895 = vmatprep.mubr.msk.f32.mxu1 %vm31027_vm1, %v34263_v38  ;;  %29903 = vmatprep.subr.mxu1 %v34263_v38 }
0x2b45   : > { %29871 = vmatmul.mubr.f32.vlgmr.msra.gmra.mxu0 %v19021_v31  ;;  %29896 = vmatmul.mubr.f32.vlgmr.msra.gmra.mxu1 %v19017_v53 }
0x2b46   : > { %29879 = vmatpush3.xpose.msra.mxu0 %v19059_v44  ;;  %29880 = vmatprep.mubr.msk.f32.mxu0 %vm31027_vm1, %v34263_v38 }
0x2b47   : > { %29888 = vmatprep.subr.mxu0 %v34263_v38  ;;  %29905 = vmatprep.mubr.msk.f32.mxu1 %vm31027_vm1, %v34263_v38 }
0x2b49   : > { %29881 = vmatmul.mubr.f32.vlgmr.msra.gmra.mxu0 %v19018_v56 }
0x2b4a   : > { %29889 = vmatpush3.xpose.msra.mxu0 %v19060_v48  ;;  %29890 = vmatprep.mubr.msk.f32.mxu0 %vm31027_vm1, %v34263_v38 }
0x2b4b   : > { %29898 = vmatprep.subr.mxu0 %v34263_v38 }
0x2b4d   : > { %29891 = vmatmul.mubr.f32.vlgmr.msra.gmra.mxu0 %v19017_v53 }
0x2b4e   : > { %29900 = vmatprep.mubr.msk.f32.mxu0 %vm31027_vm1, %v34263_v38 }
0x2bf1   : > { %v18644_v60 = vpop.f32.mrf.mxu1 }
0x2bf3   : > { %v29847_v16 = vpop.f32.mrf.mxu1 }
0x2bf5   : > { %v18792_v26 = vpop.f32.mrf.mxu1 }
0x2bf7   : > { %v29857_v2 = vpop.f32.mrf.mxu1 }
0x2bf9   : > { %v18568_v25 = vpop.f32.mrf.mxu0  ;;  %v18938_v11 = vpop.f32.mrf.mxu1 }
0x2bfa   : > { %v18645_v33 = vadd.f32 %v18644_v60, %v18568_v25  ;;  %v30770_v60 = vld [vmem:[#allocation7] sm:$0xff] }
0x2bfb   : > { %v29842_v22 = vpop.f32.mrf.mxu0  ;;  %v29867_v29 = vpop.f32.mrf.mxu1 }
0x2bfd   : > { %v18718_v14 = vpop.f32.mrf.mxu0  ;;  %v19099_v27 = vpop.f32.mrf.mxu1 }
0x2bfe   : > { %v18719_v39 = vadd.f32 %v18718_v14, %v18645_v33 }
0x2bff   : > { %v29852_v18 = vpop.f32.mrf.mxu0  ;;  %v29877_v40 = vpop.f32.mrf.mxu1 }
0x2c00   : > { %v18793_v41 = vadd.f32 %v18792_v26, %v18719_v39 }
0x2c01   : > { %v18866_v43 = vpop.f32.mrf.mxu0  ;;  %v19247_v44 = vpop.f32.mrf.mxu1 }
0x2c02   : > { %v18867_v21 = vadd.f32 %v18866_v43, %v18793_v41 }
0x2c03   : > { %v29862_v45 = vpop.f32.mrf.mxu0  ;;  %v29887_v46 = vpop.f32.mrf.mxu1 }
0x2c04   : > { %v18939_v47 = vadd.f32 %v18938_v11, %v18867_v21 }
0x2c05   : > { %v19023_v48 = vpop.f32.mrf.mxu0  ;;  %v19393_v49 = vpop.f32.mrf.mxu1 }
0x2c06   : > { %v33327_v51 = vadd.f32 %v18939_v47, %v33251_v23  ;;  %v19100_v35 = vadd.f32 %v19099_v27, %v19023_v48  ;;  %v34358_v48 = vld [vmem:[#allocation42_spill] sm:$0xff] }
0x2c07   : > { %v29872_v53 = vpop.f32.mrf.mxu0  ;;  %v29897_v36 = vpop.f32.mrf.mxu1 }
0x2c09   : > { %v19173_v54 = vpop.f32.mrf.mxu0 }
0x2c0a   : > { %v19174_v56 = vadd.f32 %v19173_v54, %v19100_v35 }
0x2c0b   : > { %v29882_v58 = vpop.f32.mrf.mxu0 }
0x2c0c   : > { %v19248_v37 = vadd.f32 %v19247_v44, %v19174_v56 }
0x2c0d   : > { %v19321_v42 = vpop.f32.mrf.mxu0 }
0x2c0e   : > { %v19322_v24 = vadd.f32 %v19321_v42, %v19248_v37 }
0x2c0f   : > { %v29892_v3 = vpop.f32.mrf.mxu0 }
0x2c10   : > { %v19394_v0 = vadd.f32 %v19393_v49, %v19322_v24  ;;  %v34359_v49 = vld [vmem:[#allocation39_spill] sm:$0xff] }
0x2c12   : > { %v19397_v31 = vmul.f32 0.35355338, %v19394_v0 }
0x2c14   : > { %v19398_v16 = vadd.f32 %v30770_v60, %v19397_v31 }
0x2c16   : > { %v19399_v26 = vsel %vm1782_vm4, %v19398_v16, -inf }
0x2c17   : > { %19400 = vmax.xlane.f32.xlu1 %v19399_v26 }
0x2ca0   : > { %v19401_v2 = vpop.xlane.xlu1 %19400 }
0x2ca1   : > { %v19402_v23 = vsub.f32 %v19398_v16, %v19401_v2 }
0x2ca3   : > { %v19403_v25 = vmul.f32 1.442695, %v19402_v23 }
0x2ca5   : > { %30731 = vpow2.f32 %v19403_v25 }
0x2cb2   : > { %v30732_v11 = vpop.eup %30731 }
0x2cb3   : > { %v19405_v33 = vsel %vm1782_vm4, %v30732_v11, 0.0 }
0x2cb4   : > { %19406 = vadd.xlane.f32.xlu0 %v19405_v33 }
0x2cca   : > { %19411 = vrot.lane.b32.xlu0 %v33072_v59, %s34357_s15  ;;  %s27537_s15 = sshll.u32 %s31156_s1, 7  ;;  %s30942_s1 = scalar_lea.vmem %s30941_s0, 256 }
0x2ccb   : > { %p30944_p4 = scmp.lt.s32.totalorder %s30942_s1, %s30936_s16 }
0x2ccd   : > { %p30945_p6 = por %p30944_p4, %p30943_p1 }
0x2ccf   : > { %p30946_p10 = pnand %p30945_p6, %p30939_p13 }
0x2d3d   : > { %v19407_v22 = vpop.xlane.xlu0 %19406 }
0x2d3e   : > { %30733 = vrcp.f32 %v19407_v22 }
0x2d41   : > { %v19412_v29 = vpop.permute.xlu0 %19411 }
0x2d42   : > { %v19448_v14 = vand.u32 4294901760, %v19412_v29 }
0x2d44   : > { %v19525_v27 = vsub.f32 %v19412_v29, %v19448_v14  ;;  %29899 = vmatpush3.msra.mxu0 %v19448_v14 }
0x2d45   : > { %29908 = vmatprep.subr.mxu0 %v34263_v38 }
0x2d46   : > { %v19526_v39 = vand.u32 4294901760, %v19525_v27 }
0x2d48   : > { %v19527_v18 = vsub.f32 %v19525_v27, %v19526_v39 }
0x2d4a   : > { %v19528_v40 = vand.u32 4294901760, %v19527_v18  ;;  %v34362_v18 = vld [vmem:[#allocation56_spill] sm:$0xff] }
0x2d4b   : > { %v30734_v41 = vpop.eup %30733 }
0x2d4c   : > { %v19410_v43 = vmul.f32 %v30734_v41, %v30732_v11  ;;  %29904 = vmatpush3.msra.mxu1 %v19528_v40  ;;  %v34363_v40 = vld [vmem:[#allocation41_spill] sm:$0xff] }
0x2d4d   : > { %29913 = vmatprep.subr.mxu1 %v34263_v38  ;;  %v34364_v41 = vld [vmem:[#allocation57_spill] sm:$0xff] }
0x2d4e   : > { %v19415_v44 = vsel %vm1782_vm4, %v19410_v43, 0  ;;  %v34365_v43 = vld [vmem:[#allocation58_spill] sm:$0xff] }
0x2d4f   : > { %v19483_v21 = vand.u32 4294901760, %v19415_v44 }
0x2d51   : > { %v19484_v59 = vsub.f32 %v19415_v44, %v19483_v21  ;;  %29906 = vmatmul.mubr.f32.vlgmr.msra.gmra.mxu1 %v19483_v21  ;;  %v34366_v44 = vld [vmem:[#allocation43_spill] sm:$0xff] }
0x2d52   : > { %29914 = vmatpush3.msra.mxu1 %v19448_v14  ;;  %29915 = vmatprep.mubr.msk.f32.mxu1 %vm31027_vm1, %v34263_v38 }
0x2d53   : > { %29923 = vmatprep.subr.mxu1 %v34263_v38  ;;  %v19485_v45 = vand.u32 4294901760, %v19484_v59 }
0x2d55   : > { %29916 = vmatmul.mubr.f32.vlgmr.msra.gmra.mxu1 %v19485_v45  ;;  %v19486_v46 = vsub.f32 %v19484_v59, %v19485_v45  ;;  %v34369_v45 = vld [vmem:[#allocation46_spill] sm:$0xff] }
0x2d56   : > { %29924 = vmatpush3.msra.mxu1 %v19448_v14  ;;  %29925 = vmatprep.mubr.msk.f32.mxu1 %vm31027_vm1, %v34263_v38 }
0x2d57   : > { %v19487_v47 = vand.u32 4294901760, %v19486_v46  ;;  %29933 = vmatprep.subr.mxu1 %v34263_v38 }
0x2d59   : > { %29901 = vmatmul.mubr.f32.vlgmr.msra.gmra.mxu0 %v19487_v47  ;;  %29926 = vmatmul.mubr.f32.vlgmr.msra.gmra.mxu1 %v19483_v21 }
0x2d5a   : > { %29909 = vmatpush3.msra.mxu0 %v19525_v27  ;;  %29910 = vmatprep.mubr.msk.f32.mxu0 %vm31027_vm1, %v34263_v38  ;;  %v34360_v27 = vld [vmem:[#allocation40_spill] sm:$0xff] }
0x2d5b   : > { %29918 = vmatprep.subr.mxu0 %v34263_v38  ;;  %29934 = vmatpush3.msra.mxu1 %v34358_v48 }
0x2d5c   : > { %29935 = vmatprep.mubr.msk.f32.mxu1 %vm31027_vm1, %v34263_v38  ;;  %29943 = vmatprep.subr.mxu1 %v34263_v38 }
0x2d5d   : > { %29911 = vmatmul.mubr.f32.vlgmr.msra.gmra.mxu0 %v19484_v59  ;;  %v34368_v59 = vld [vmem:[#allocation45_spill] sm:$0xff] }
0x2d5e   : > { %29919 = vmatpush3.msra.mxu0 %v19526_v39  ;;  %29920 = vmatprep.mubr.msk.f32.mxu0 %vm31027_vm1, %v34263_v38  ;;  %v34361_v39 = vld [vmem:[#allocation55_spill] sm:$0xff] }
0x2d5f   : > { %29928 = vmatprep.subr.mxu0 %v34263_v38 }
0x2d61   : > { %29921 = vmatmul.mubr.f32.vlgmr.msra.gmra.mxu0 %v19483_v21  ;;  %v34367_v21 = vld [vmem:[#allocation44_spill] sm:$0xff] }
0x2d62   : > { %29929 = vmatpush3.msra.mxu0 %v34359_v49  ;;  %29930 = vmatprep.mubr.msk.f32.mxu0 %vm31027_vm1, %v34263_v38 }
0x2d63   : > { %29938 = vmatprep.subr.mxu0 %v34263_v38 }
0x2e11   : > { %v19565_v53 = vpop.f32.mrf.mxu1 }
0x2e13   : > { %v29907_v36 = vpop.f32.mrf.mxu1 }
0x2e15   : > { %v19713_v35 = vpop.f32.mrf.mxu1 }
0x2e17   : > { %v29917_v54 = vpop.f32.mrf.mxu1 }
0x2e19   : > { %v19489_v56 = vpop.f32.mrf.mxu0  ;;  %v19859_v58 = vpop.f32.mrf.mxu1 }
0x2e1a   : > { %v19566_v24 = vadd.f32 %v19565_v53, %v19489_v56 }
0x2e1b   : > { %v29902_v37 = vpop.f32.mrf.mxu0  ;;  %v29927_v42 = vpop.f32.mrf.mxu1 }
0x2e1d   : > { %v19639_v3 = vpop.f32.mrf.mxu0 }
0x2e1e   : > { %v19640_v0 = vadd.f32 %v19639_v3, %v19566_v24 }
0x2e1f   : > { %v29912_v31 = vpop.f32.mrf.mxu0 }
0x2e20   : > { %v19714_v60 = vadd.f32 %v19713_v35, %v19640_v0 }
0x2e21   : > { %v19787_v16 = vpop.f32.mrf.mxu0 }
0x2e22   : > { %v19788_v26 = vadd.f32 %v19787_v16, %v19714_v60 }
0x2e23   : > { %v29922_v2 = vpop.f32.mrf.mxu0 }
0x2e24   : > { %v19860_v23 = vadd.f32 %v19859_v58, %v19788_v26 }
0x2e26   : > { %v19864_v25 = vsel %vm1782_vm4, %v19860_v23, 0 }
0x2e27   : > { %v19932_v11 = vand.u32 4294901760, %v19864_v25 }
0x2e29   : > { %v19933_v33 = vsub.f32 %v19864_v25, %v19932_v11  ;;  %29936 = vmatmul.mubr.f32.vlgmr.msra.gmra.mxu1 %v19932_v11 }
0x2e2a   : > { %29944 = vmatpush3.msra.mxu1 %v34359_v49  ;;  %29945 = vmatprep.mubr.msk.f32.mxu1 %vm31027_vm1, %v34263_v38 }
0x2e2b   : > { %v19934_v22 = vand.u32 4294901760, %v19933_v33  ;;  %29953 = vmatprep.subr.mxu1 %v34263_v38 }
0x2e2d   : > { %v19935_v29 = vsub.f32 %v19933_v33, %v19934_v22  ;;  %29946 = vmatmul.mubr.f32.vlgmr.msra.gmra.mxu1 %v19934_v22 }
0x2e2e   : > { %29954 = vmatpush3.msra.mxu1 %v34359_v49  ;;  %29955 = vmatprep.mubr.msk.f32.mxu1 %vm31027_vm1, %v34263_v38 }
0x2e2f   : > { %v19936_v14 = vand.u32 4294901760, %v19935_v29  ;;  %29969 = vmatprep.subr.mxu1 %v34263_v38 }
0x2e31   : > { %29931 = vmatmul.mubr.f32.vlgmr.msra.gmra.mxu0 %v19936_v14  ;;  %29956 = vmatmul.mubr.f32.vlgmr.msra.gmra.mxu1 %v19932_v11 }
0x2e32   : > { %29939 = vmatpush3.msra.mxu0 %v34360_v27  ;;  %29940 = vmatprep.mubr.msk.f32.mxu0 %vm31027_vm1, %v34263_v38 }
0x2e33   : > { %29948 = vmatprep.subr.mxu0 %v34263_v38  ;;  %29970 = vmatpush3.msra.mxu1 %v34361_v39 }
0x2e34   : > { %29971 = vmatprep.subr.mxu1 %v34263_v38  ;;  %29977 = vmatprep.mubr.msk.f32.mxu1 %vm31027_vm1, %v34263_v38 }
0x2e35   : > { %29941 = vmatmul.mubr.f32.vlgmr.msra.gmra.mxu0 %v19933_v33  ;;  %29972 = vmatpush3.msra.mxu1 %v34362_v18 }
0x2e36   : > { %29949 = vmatpush3.msra.mxu0 %v34363_v40  ;;  %29950 = vmatprep.mubr.msk.f32.mxu0 %vm31027_vm1, %v34263_v38 }
0x2e37   : > { %29973 = vmatprep.subr.mxu1 %v34263_v38  ;;  %29958 = vmatprep.subr.mxu0 %v34263_v38 }
0x2e38   : > { %29974 = vmatpush3.msra.mxu1 %v34364_v41 }
0x2e39   : > { %29951 = vmatmul.mubr.f32.vlgmr.msra.gmra.mxu0 %v19932_v11  ;;  %29975 = vmatprep.subr.mxu1 %v34263_v38 }
0x2e3a   : > { %29976 = vmatpush3.msra.mxu1 %v34365_v43  ;;  %29959 = vmatpush3.msra.mxu0 %v34366_v44 }
0x2e3b   : > { %29991 = vmatprep.subr.mxu1 %v34263_v38  ;;  %29960 = vmatprep.subr.mxu0 %v34263_v38 }
0x2e3c   : > { %29961 = vmatpush3.msra.mxu0 %v34367_v21  ;;  %29966 = vmatprep.mubr.msk.f32.mxu0 %vm31027_vm1, %v34263_v38 }
0x2e3d   : > { %29962 = vmatprep.subr.mxu0 %v34263_v38 }
0x2e3e   : > { %29963 = vmatpush3.msra.mxu0 %v34368_v59 }
0x2e3f   : > { %29964 = vmatprep.subr.mxu0 %v34263_v38 }
0x2e40   : > { %29965 = vmatpush3.msra.mxu0 %v34369_v45 }
0x2e41   : > { %29980 = vmatprep.subr.mxu0 %v34263_v38 }
0x2ee9   : > { %v20014_v46 = vpop.f32.mrf.mxu1 }
0x2eeb   : > { %v29937_v47 = vpop.f32.mrf.mxu1 }
0x2eec   : > { %v34370_v47 = vld [vmem:[#allocation59_spill] sm:$0xff] }
0x2eed   : > { %v20162_v48 = vpop.f32.mrf.mxu1 }
0x2eef   : > { %v29947_v49 = vpop.f32.mrf.mxu1 }
0x2ef1   : > { %v19938_v53 = vpop.f32.mrf.mxu0  ;;  %v20308_v36 = vpop.f32.mrf.mxu1 }
0x2ef2   : > { %v20015_v56 = vadd.f32 %v20014_v46, %v19938_v53 }
0x2ef3   : > { %v29932_v35 = vpop.f32.mrf.mxu0  ;;  %v29957_v54 = vpop.f32.mrf.mxu1 }
0x2ef5   : > { %v20088_v58 = vpop.f32.mrf.mxu0 }
0x2ef6   : > { %v20089_v37 = vadd.f32 %v20088_v58, %v20015_v56 }
0x2ef7   : > { %v29942_v42 = vpop.f32.mrf.mxu0 }
0x2ef8   : > { %v20163_v24 = vadd.f32 %v20162_v48, %v20089_v37 }
0x2ef9   : > { %v20236_v3 = vpop.f32.mrf.mxu0 }
0x2efa   : > { %v20237_v0 = vadd.f32 %v20236_v3, %v20163_v24  ;;  %v34372_v3 = vld [vmem:[#allocation47_spill] sm:$0xff] }
0x2efb   : > { %v29952_v31 = vpop.f32.mrf.mxu0 }
0x2efc   : > { %v20309_v60 = vadd.f32 %v20308_v36, %v20237_v0  ;;  %v34371_v36 = vld [vmem:[#allocation60_spill] sm:$0xff]  ;;  %v34374_v31 = vld [vmem:[#allocation49_spill] sm:$0xff] }
0x2efd   : > { %v34373_v0 = vld [vmem:[#allocation48_spill] sm:$0xff] }
0x2efe   : > { %v20312_v16 = vadd.f32 %v20309_v60, %v33327_v51  ;;  %v34378_v60 = vld [vmem:[#allocation52_spill] sm:$0xff] }
0x2f00   : > { %v33395_v26 = vadd.f32 %v20312_v16, %v33014_v28  ;;  %v34380_v16 = vld [vmem:[#allocation54_spill] sm:$0xff] }
0x2f02   : > { %v20314_v2 = vsel %vm769_vm0, %v33395_v26, 0.0  ;;  %v20317_v23 = vmul.f32 %v33395_v26, %v33395_v26 }
0x2f03   : > { %20315 = vadd.xlane.f32.xlu0 %v20314_v2  ;;  %v34381_v2 = vld [vmem:[#allocation61_spill] sm:$0xff] }
0x2f04   : > { %v20318_v25 = vsel %vm769_vm0, %v20317_v23, 0.0 }
0x2f05   : > { %20319 = vadd.xlane.f32.xlu1 %v20318_v25 }
0x2f8c   : > { %v20316_v11 = vpop.xlane.xlu0 %20315 }
0x2f8d   : > { %v20321_v33 = vmul.f32 0.03125, %v20316_v11 }
0x2f8e   : > { %v20320_v29 = vpop.xlane.xlu1 %20319 }
0x2f8f   : > { %v20322_v22 = vmul.f32 %v20321_v33, %v20316_v11  ;;  %v20326_v46 = vsub.f32 %v33395_v26, %v20321_v33 }
0x2f91   : > { %v20323_v14 = vsub.f32 %v20320_v29, %v20322_v22  ;;  %v20327_v48 = vmul.f32 %v20326_v46, %v34370_v47 }
0x2f93   : > { %v20324_v27 = vmax.f32 %v20323_v14, 0.0  ;;  %v30771_v14 = vld [vmem:[%s34020_s6] ss:$0 sm:$0xff] }
0x2f95   : > { %v20325_v51 = vmul.f32 0.032258064, %v20324_v27 }
0x2f97   : > { %30735 = vrsqrt.f32 %v20325_v51  ;;  %vm20330_vm12 = vcmp.eq.f32.partialorder %v20325_v51, inf  ;;  %v20333_v18 = vand.u32 2147483648, %v20325_v51  ;;  %vm20332_vm13 = vcmp.eq.f32.partialorder %v20325_v51, 0.0 }
0x2fa4   : > { %v30736_v28 = vpop.eup %30735 }
0x2fa5   : > { %v20329_v39 = vmul.f32 %v30736_v28, %v20325_v51 }
0x2fa7   : > { %v20331_v40 = vsel %vm20330_vm12, %v20325_v51, %v20329_v39 }
0x2fa8   : > { %v20334_v41 = vsel %vm20332_vm13, %v20333_v18, %v20331_v40 }
0x2fa9   : > { %v20335_v43 = vadd.f32 1e-06, %v20334_v41 }
0x2fab   : > { %30737 = vrcp.f32 %v20335_v43 }
0x2fb8   : > { %v30738_v49 = vpop.eup %30737 }
0x2fb9   : > { %v20337_v53 = vmul.f32 %v30738_v49, %v20327_v48 }
0x2fbb   : > { %v20338_v35 = vadd.f32 %v20337_v53, %v34371_v36 }
0x2fbd   : > { %v20340_v54 = vsel %vm769_vm0, %v20338_v35, 0 }
0x2fbe   : > { %v20411_v56 = vand.u32 4294901760, %v20340_v54 }
0x2fc0   : > { %v20412_v58 = vsub.f32 %v20340_v54, %v20411_v56  ;;  %29978 = vmatmul.mubr.f32.vlgmr.msra.gmra.mxu1 %v20411_v56 }
0x2fc1   : > { %29992 = vmatpush3.msra.mxu1 %v34366_v44  ;;  %29999 = vmatprep.mubr.msk.f32.mxu1 %vm31027_vm1, %v34263_v38 }
0x2fc2   : > { %29993 = vmatprep.subr.mxu1 %v34263_v38  ;;  %v20413_v37 = vand.u32 4294901760, %v20412_v58 }
0x2fc3   : > { %29994 = vmatpush3.msra.mxu1 %v34367_v21 }
0x2fc4   : > { %29995 = vmatprep.subr.mxu1 %v34263_v38  ;;  %v20414_v42 = vsub.f32 %v20412_v58, %v20413_v37 }
0x2fc5   : > { %29996 = vmatpush3.msra.mxu1 %v34368_v59 }
0x2fc6   : > { %29997 = vmatprep.subr.mxu1 %v34263_v38  ;;  %v20415_v24 = vand.u32 4294901760, %v20414_v42  ;;  %v34383_v42 = vld [vmem:[#allocation68_spill] sm:$0xff] }
0x2fc7   : > { %29998 = vmatpush3.msra.mxu1 %v34369_v45 }
0x2fc8   : > { %30000 = vmatmul.mubr.f32.vlgmr.msra.gmra.mxu1 %v20413_v37  ;;  %30013 = vmatprep.subr.mxu1 %v34263_v38  ;;  %v34382_v37 = vld [vmem:[#allocation62_spill] sm:$0xff] }
0x2fc9   : > { %29967 = vmatmul.mubr.f32.vlgmr.msra.gmra.mxu0 %v20415_v24  ;;  %30014 = vmatpush3.msra.mxu1 %v34366_v44  ;;  %v34375_v44 = vld [vmem:[#allocation50_spill] sm:$0xff]  ;;  %v34384_v24 = vld [vmem:[#allocation63_spill] sm:$0xff] }
0x2fca   : > { %29981 = vmatpush3.msra.mxu0 %v34372_v3  ;;  %30015 = vmatprep.subr.mxu1 %v34263_v38  ;;  %v34385_v3 = vld [vmem:[#allocation65_spill] sm:$0xff] }
0x2fcb   : > { %29982 = vmatprep.subr.mxu0 %v34263_v38  ;;  %30016 = vmatpush3.msra.mxu1 %v34367_v21  ;;  %v34376_v21 = vld [vmem:[#allocation51_spill] sm:$0xff] }
0x2fcc   : > { %29983 = vmatpush3.msra.mxu0 %v34373_v0  ;;  %30017 = vmatprep.subr.mxu1 %v34263_v38 }
0x2fcd   : > { %29984 = vmatprep.subr.mxu0 %v34263_v38  ;;  %30018 = vmatpush3.msra.mxu1 %v34368_v59  ;;  %v34377_v59 = vld [vmem:[#allocation64_spill] sm:$0xff] }
0x2fce   : > { %29985 = vmatpush3.msra.mxu0 %v34374_v31  ;;  %30019 = vmatprep.subr.mxu1 %v34263_v38 }
0x2fcf   : > { %29986 = vmatprep.subr.mxu0 %v34263_v38  ;;  %29988 = vmatprep.mubr.msk.f32.mxu0 %vm31027_vm1, %v34263_v38 }
0x2fd0   : > { %29987 = vmatpush3.msra.mxu0 %v34375_v44  ;;  %30020 = vmatpush3.msra.mxu1 %v34369_v45  ;;  %v34379_v45 = vld [vmem:[#allocation53_spill] sm:$0xff] }
0x2fd1   : > { %30021 = vmatprep.mubr.msk.f32.mxu1 %vm31027_vm1, %v34263_v38  ;;  %29989 = vmatmul.mubr.f32.vlgmr.msra.gmra.mxu0 %v20412_v58 }
0x2fd2   : > { %30002 = vmatprep.subr.mxu0 %v34263_v38  ;;  %30022 = vmatmul.mubr.f32.vlgmr.msra.gmra.mxu1 %v20411_v56 }
0x2fd3   : > { %30029 = vmatprep.subr.mxu1 %v34263_v38  ;;  %30003 = vmatpush3.msra.mxu0 %v34376_v21 }
0x2fd4   : > { %30030 = vmatpush3.xpose.msra.mxu1 %v34377_v59  ;;  %30004 = vmatprep.subr.mxu0 %v34263_v38 }
0x2fd5   : > { %30005 = vmatpush3.msra.mxu0 %v34378_v60  ;;  %30010 = vmatprep.mubr.msk.f32.mxu0 %vm31027_vm1, %v34263_v38 }
0x2fd6   : > { %30006 = vmatprep.subr.mxu0 %v34263_v38  ;;  %30031 = vmatprep.mubr.msk.f32.mxu1 %vm31027_vm1, %v34263_v38 }
0x2fd7   : > { %30007 = vmatpush3.msra.mxu0 %v34379_v45  ;;  %30039 = vmatprep.subr.mxu1 %v34263_v38 }
0x2fd8   : > { %30008 = vmatprep.subr.mxu0 %v34263_v38 }
0x2fd9   : > { %30009 = vmatpush3.msra.mxu0 %v34380_v16 }
0x2fda   : > { %30011 = vmatmul.mubr.f32.vlgmr.msra.gmra.mxu0 %v20411_v56  ;;  %30024 = vmatprep.subr.mxu0 %v34263_v38 }
0x2fdb   : > { %30025 = vmatpush3.xpose.msra.mxu0 %v34381_v2  ;;  %30026 = vmatprep.mubr.msk.f32.mxu0 %vm31027_vm1, %v34263_v38 }
0x2fdc   : > { %30034 = vmatprep.subr.mxu0 %v34263_v38 }
0x3080   : > { %v20508_v23 = vpop.f32.mrf.mxu1 }
0x3082   : > { %v29979_v25 = vpop.f32.mrf.mxu1 }
0x3088   : > { %v20665_v11 = vpop.f32.mrf.mxu1 }
0x3089   : > { %v20417_v33 = vpop.f32.mrf.mxu0 }
0x308a   : > { %v30001_v22 = vpop.f32.mrf.mxu1  ;;  %v20418_v27 = vadd.f32 %v30771_v14, %v20417_v33 }
0x308b   : > { %v29968_v29 = vpop.f32.mrf.mxu0 }
0x308c   : > { %v20509_v39 = vadd.f32 %v20508_v23, %v20418_v27 }
0x3091   : > { %v20588_v51 = vpop.f32.mrf.mxu0 }
0x3092   : > { %v20823_v28 = vpop.f32.mrf.mxu1  ;;  %v20589_v41 = vadd.f32 %v20588_v51, %v20509_v39 }
0x3093   : > { %v29990_v18 = vpop.f32.mrf.mxu0 }
0x3094   : > { %v30023_v40 = vpop.f32.mrf.mxu1  ;;  %v20666_v43 = vadd.f32 %v20665_v11, %v20589_v41 }
0x309a   : > { %v20748_v46 = vpop.f32.mrf.mxu0 }
0x309b   : > { %v20749_v47 = vadd.f32 %v20748_v46, %v20666_v43 }
0x309c   : > { %v30012_v48 = vpop.f32.mrf.mxu0 }
0x309d   : > { %v33457_v49 = vadd.f32 %v20823_v28, %v20749_v47 }
0x309f   : > { %v20828_v53 = vsel %vm1782_vm4, %v33457_v49, 0 }
0x30a0   : > { %v20896_v36 = vand.u32 4294901760, %v20828_v53 }
0x30a2   : > { %v20897_v35 = vsub.f32 %v20828_v53, %v20896_v36  ;;  %30032 = vmatmul.mubr.f32.vlgmr.msra.gmra.mxu1 %v20896_v36 }
0x30a3   : > { %30040 = vmatpush3.xpose.msra.mxu1 %v34381_v2  ;;  %30041 = vmatprep.mubr.msk.f32.mxu1 %vm31027_vm1, %v34263_v38 }
0x30a4   : > { %30049 = vmatprep.subr.mxu1 %v34263_v38  ;;  %v20898_v54 = vand.u32 4294901760, %v20897_v35 }
0x30a6   : > { %30042 = vmatmul.mubr.f32.vlgmr.msra.gmra.mxu1 %v20898_v54  ;;  %v20899_v56 = vsub.f32 %v20897_v35, %v20898_v54 }
0x30a7   : > { %30050 = vmatpush3.xpose.msra.mxu1 %v34381_v2  ;;  %30051 = vmatprep.mubr.msk.f32.mxu1 %vm31027_vm1, %v34263_v38 }
0x30a8   : > { %30059 = vmatprep.subr.mxu1 %v34263_v38  ;;  %v20900_v58 = vand.u32 4294901760, %v20899_v56 }
0x30aa   : > { %30027 = vmatmul.mubr.f32.vlgmr.msra.gmra.mxu0 %v20900_v58  ;;  %30052 = vmatmul.mubr.f32.vlgmr.msra.gmra.mxu1 %v20896_v36 }
0x30ab   : > { %30035 = vmatpush3.xpose.msra.mxu0 %v34382_v37  ;;  %30060 = vmatpush3.msra.mxu1 %v34383_v42  ;;  %v34386_v37 = vld [vmem:[#allocation66_spill] sm:$0xff]  ;;  %v34387_v42 = vld [vmem:[#allocation72_spill] sm:$0xff] }
0x30ac   : > { %30036 = vmatprep.mubr.msk.f32.mxu0 %vm31027_vm1, %v34263_v38  ;;  %30044 = vmatprep.subr.mxu0 %v34263_v38 }
0x30ad   : > { %30061 = vmatprep.mubr.msk.f32.mxu1 %vm31027_vm1, %v34263_v38  ;;  %30069 = vmatprep.subr.mxu1 %v34263_v38 }
0x30ae   : > { %30037 = vmatmul.mubr.f32.vlgmr.msra.gmra.mxu0 %v20897_v35 }
0x30af   : > { %30045 = vmatpush3.xpose.msra.mxu0 %v34384_v24  ;;  %30046 = vmatprep.mubr.msk.f32.mxu0 %vm31027_vm1, %v34263_v38  ;;  %v34388_v24 = vld [vmem:[#allocation67_spill] sm:$0xff] }
0x30b0   : > { %30054 = vmatprep.subr.mxu0 %v34263_v38 }
0x30b2   : > { %30047 = vmatmul.mubr.f32.vlgmr.msra.gmra.mxu0 %v20896_v36 }
0x30b3   : > { %30055 = vmatpush3.msra.mxu0 %v34385_v3  ;;  %30056 = vmatprep.mubr.msk.f32.mxu0 %vm31027_vm1, %v34263_v38 }
0x30b4   : > { %30064 = vmatprep.subr.mxu0 %v34263_v38 }
0x3162   : > { %v20978_v0 = vpop.f32.mrf.mxu1 }
0x3164   : > { %v30033_v31 = vpop.f32.mrf.mxu1 }
0x3166   : > { %v21126_v44 = vpop.f32.mrf.mxu1 }
0x3168   : > { %v30043_v21 = vpop.f32.mrf.mxu1 }
0x316a   : > { %v20902_v59 = vpop.f32.mrf.mxu0  ;;  %v21272_v60 = vpop.f32.mrf.mxu1 }
0x316b   : > { %v20979_v2 = vadd.f32 %v20978_v0, %v20902_v59 }
0x316c   : > { %v30028_v45 = vpop.f32.mrf.mxu0  ;;  %v30053_v16 = vpop.f32.mrf.mxu1 }
0x316e   : > { %v21052_v23 = vpop.f32.mrf.mxu0 }
0x316f   : > { %v21053_v25 = vadd.f32 %v21052_v23, %v20979_v2 }
0x3170   : > { %v30038_v11 = vpop.f32.mrf.mxu0 }
0x3171   : > { %v21127_v33 = vadd.f32 %v21126_v44, %v21053_v25 }
0x3172   : > { %v21200_v22 = vpop.f32.mrf.mxu0 }
0x3173   : > { %v21201_v29 = vadd.f32 %v21200_v22, %v21127_v33 }
0x3174   : > { %v30048_v14 = vpop.f32.mrf.mxu0 }
0x3175   : > { %v21273_v27 = vadd.f32 %v21272_v60, %v21201_v29 }
0x3177   : > { %v21276_v51 = vmul.f32 0.35355338, %v21273_v27 }
0x3179   : > { %v21277_v28 = vsel %vm1782_vm4, %v21276_v51, -inf }
0x317a   : > { %21278 = vmax.xlane.f32.xlu1 %v21277_v28 }
0x3203   : > { %v21279_v39 = vpop.xlane.xlu1 %21278 }
0x3204   : > { %v21280_v18 = vsub.f32 %v21276_v51, %v21279_v39 }
0x3206   : > { %v21281_v40 = vmul.f32 1.442695, %v21280_v18 }
0x3208   : > { %30739 = vpow2.f32 %v21281_v40 }
0x3215   : > { %v30740_v41 = vpop.eup %30739 }
0x3216   : > { %v21283_v43 = vsel %vm1782_vm4, %v30740_v41, 0.0 }
0x3217   : > { %21284 = vadd.xlane.f32.xlu1 %v21283_v43 }
0x3228   : > { %22188 = vrot.lane.b32.xlu1 %v33457_v49, %s31031_s23 }
0x322c   : > { %23550 = vrot.lane.b32.xlu1 %v33457_v49, %s31034_s2 }
0x32a0   : > { %v21285_v46 = vpop.xlane.xlu1 %21284 }
0x32a1   : > { %30741 = vrcp.f32 %v21285_v46 }
0x32a4   : > { %v22189_v51 = vpop.permute.xlu1 %22188 }
0x32a5   : > { %v22190_v18 = vsel %vm1782_vm4, %v22189_v51, 0 }
0x32ae   : > { %v30742_v47 = vpop.eup %30741 }
0x32af   : > { %v21288_v48 = vmul.f32 %v30742_v47, %v30740_v41  ;;  %v22258_v41 = vand.u32 4294901760, %v22190_v18 }
0x32b1   : > { %v21290_v53 = vsel %vm1782_vm4, %v21288_v48, 0  ;;  %v22259_v47 = vsub.f32 %v22190_v18, %v22258_v41 }
0x32b2   : > { %v21358_v36 = vand.u32 4294901760, %v21290_v53 }
0x32b4   : > { %v21359_v35 = vsub.f32 %v21290_v53, %v21358_v36  ;;  %30062 = vmatmul.mubr.f32.vlgmr.msra.gmra.mxu1 %v21358_v36  ;;  %v34390_v53 = vld [vmem:[#allocation76_spill] sm:$0xff] }
0x32b5   : > { %30070 = vmatpush3.msra.mxu1 %v34385_v3  ;;  %30071 = vmatprep.mubr.msk.f32.mxu1 %vm31027_vm1, %v34263_v38 }
0x32b6   : > { %30079 = vmatprep.subr.mxu1 %v34263_v38  ;;  %v21360_v54 = vand.u32 4294901760, %v21359_v35 }
0x32b8   : > { %30072 = vmatmul.mubr.f32.vlgmr.msra.gmra.mxu1 %v21360_v54  ;;  %v21361_v56 = vsub.f32 %v21359_v35, %v21360_v54  ;;  %v34392_v54 = vld [vmem:[#allocation73_spill] sm:$0xff] }
0x32b9   : > { %30080 = vmatpush3.msra.mxu1 %v34385_v3  ;;  %30081 = vmatprep.mubr.msk.f32.mxu1 %vm31027_vm1, %v34263_v38  ;;  %v34389_v3 = vld [vmem:[#allocation69_spill] sm:$0xff] }
0x32ba   : > { %v21362_v58 = vand.u32 4294901760, %v21361_v56  ;;  %30089 = vmatprep.subr.mxu1 %v34263_v38  ;;  %v34393_v56 = vld [vmem:[#allocation71_spill] sm:$0xff] }
0x32bc   : > { %30057 = vmatmul.mubr.f32.vlgmr.msra.gmra.mxu0 %v21362_v58  ;;  %30082 = vmatmul.mubr.f32.vlgmr.msra.gmra.mxu1 %v21358_v36 }
0x32bd   : > { %30065 = vmatpush3.msra.mxu0 %v34386_v37  ;;  %30066 = vmatprep.mubr.msk.f32.mxu0 %vm31027_vm1, %v34263_v38 }
0x32be   : > { %30074 = vmatprep.subr.mxu0 %v34263_v38  ;;  %30090 = vmatpush3.msra.mxu1 %v34387_v42  ;;  %v34394_v42 = vld [vmem:[#allocation74_spill] sm:$0xff] }
0x32bf   : > { %30091 = vmatprep.mubr.msk.f32.mxu1 %vm31027_vm1, %v34263_v38  ;;  %30099 = vmatprep.subr.mxu1 %v34263_v38 }
0x32c0   : > { %30067 = vmatmul.mubr.f32.vlgmr.msra.gmra.mxu0 %v21359_v35  ;;  %v22260_v35 = vand.u32 4294901760, %v22259_v47 }
0x32c1   : > { %30075 = vmatpush3.msra.mxu0 %v34388_v24  ;;  %30076 = vmatprep.mubr.msk.f32.mxu0 %vm31027_vm1, %v34263_v38  ;;  %v34395_v24 = vld [vmem:[#allocation80_spill] sm:$0xff] }
0x32c2   : > { %30084 = vmatprep.subr.mxu0 %v34263_v38  ;;  %v22261_v58 = vsub.f32 %v22259_v47, %v22260_v35 }
0x32c4   : > { %30077 = vmatmul.mubr.f32.vlgmr.msra.gmra.mxu0 %v21358_v36  ;;  %v34391_v36 = vld [vmem:[#allocation70_spill] sm:$0xff]  ;;  %v22262_v37 = vand.u32 4294901760, %v22261_v58 }
0x32c5   : > { %30085 = vmatpush3.msra.mxu0 %v34389_v3  ;;  %30086 = vmatprep.mubr.msk.f32.mxu0 %vm31027_vm1, %v34263_v38 }
0x32c6   : > { %30094 = vmatprep.subr.mxu0 %v34263_v38 }
0x3374   : > { %v21440_v0 = vpop.f32.mrf.mxu1 }
0x3376   : > { %v30063_v31 = vpop.f32.mrf.mxu1 }
0x3378   : > { %v21588_v44 = vpop.f32.mrf.mxu1 }
0x337a   : > { %v30073_v21 = vpop.f32.mrf.mxu1 }
0x337c   : > { %v21364_v59 = vpop.f32.mrf.mxu0  ;;  %v21734_v60 = vpop.f32.mrf.mxu1 }
0x337d   : > { %v21441_v2 = vadd.f32 %v21440_v0, %v21364_v59  ;;  %v34397_v0 = vld [vmem:[#allocation77_spill] sm:$0xff] }
0x337e   : > { %v30058_v45 = vpop.f32.mrf.mxu0  ;;  %v30083_v16 = vpop.f32.mrf.mxu1 }
0x3380   : > { %v21514_v23 = vpop.f32.mrf.mxu0 }
0x3381   : > { %v21515_v25 = vadd.f32 %v21514_v23, %v21441_v2 }
0x3382   : > { %v30068_v11 = vpop.f32.mrf.mxu0 }
0x3383   : > { %v21589_v33 = vadd.f32 %v21588_v44, %v21515_v25 }
0x3384   : > { %v21662_v22 = vpop.f32.mrf.mxu0 }
0x3385   : > { %v21663_v29 = vadd.f32 %v21662_v22, %v21589_v33 }
0x3386   : > { %v30078_v14 = vpop.f32.mrf.mxu0 }
0x3387   : > { %v21735_v27 = vadd.f32 %v21734_v60, %v21663_v29 }
0x3389   : > { %v21739_v28 = vsel %vm1782_vm4, %v21735_v27, 0 }
0x338a   : > { %v21807_v39 = vand.u32 4294901760, %v21739_v28 }
0x338c   : > { %v21808_v40 = vsub.f32 %v21739_v28, %v21807_v39  ;;  %30092 = vmatmul.mubr.f32.vlgmr.msra.gmra.mxu1 %v21807_v39 }
0x338d   : > { %30100 = vmatpush3.msra.mxu1 %v34389_v3  ;;  %30101 = vmatprep.mubr.msk.f32.mxu1 %vm31027_vm1, %v34263_v38 }
0x338e   : > { %v21809_v43 = vand.u32 4294901760, %v21808_v40  ;;  %30109 = vmatprep.subr.mxu1 %v34263_v38 }
0x3390   : > { %v21810_v46 = vsub.f32 %v21808_v40, %v21809_v43  ;;  %30102 = vmatmul.mubr.f32.vlgmr.msra.gmra.mxu1 %v21809_v43 }
0x3391   : > { %30110 = vmatpush3.msra.mxu1 %v34389_v3  ;;  %30111 = vmatprep.mubr.msk.f32.mxu1 %vm31027_vm1, %v34263_v38  ;;  %v34396_v3 = vld [vmem:[#allocation75_spill] sm:$0xff] }
0x3392   : > { %v21811_v48 = vand.u32 4294901760, %v21810_v46  ;;  %30119 = vmatprep.subr.mxu1 %v34263_v38 }
0x3394   : > { %30087 = vmatmul.mubr.f32.vlgmr.msra.gmra.mxu0 %v21811_v48  ;;  %30112 = vmatmul.mubr.f32.vlgmr.msra.gmra.mxu1 %v21807_v39 }
0x3395   : > { %30120 = vmatpush3.xpose.msra.mxu1 %v34390_v53  ;;  %30095 = vmatpush3.msra.mxu0 %v34391_v36 }
0x3396   : > { %30096 = vmatprep.mubr.msk.f32.mxu0 %vm31027_vm1, %v34263_v38  ;;  %30121 = vmatprep.mubr.msk.f32.mxu1 %vm31027_vm1, %v34263_v38 }
0x3397   : > { %30129 = vmatprep.subr.mxu1 %v34263_v38  ;;  %30104 = vmatprep.subr.mxu0 %v34263_v38 }
0x3398   : > { %30097 = vmatmul.mubr.f32.vlgmr.msra.gmra.mxu0 %v21808_v40  ;;  %30122 = vmatmul.mubr.f32.vlgmr.msra.gmra.mxu1 %v22258_v41 }
0x3399   : > { %30130 = vmatpush3.xpose.msra.mxu1 %v34392_v54  ;;  %30105 = vmatpush3.msra.mxu0 %v34393_v56 }
0x339a   : > { %30106 = vmatprep.mubr.msk.f32.mxu0 %vm31027_vm1, %v34263_v38  ;;  %30114 = vmatprep.subr.mxu0 %v34263_v38 }
0x339b   : > { %30131 = vmatprep.mubr.msk.f32.mxu1 %vm31027_vm1, %v34263_v38  ;;  %30139 = vmatprep.subr.mxu1 %v34263_v38 }
0x339c   : > { %30107 = vmatmul.mubr.f32.vlgmr.msra.gmra.mxu0 %v21807_v39  ;;  %30132 = vmatmul.mubr.f32.vlgmr.msra.gmra.mxu1 %v22260_v35 }
0x339d   : > { %30115 = vmatpush3.xpose.msra.mxu0 %v34392_v54  ;;  %30140 = vmatpush3.xpose.msra.mxu1 %v34392_v54 }
0x339e   : > { %30116 = vmatprep.mubr.msk.f32.mxu0 %vm31027_vm1, %v34263_v38  ;;  %30124 = vmatprep.subr.mxu0 %v34263_v38 }
0x339f   : > { %30141 = vmatprep.mubr.msk.f32.mxu1 %vm31027_vm1, %v34263_v38  ;;  %30149 = vmatprep.subr.mxu1 %v34263_v38 }
0x33a0   : > { %30117 = vmatmul.mubr.f32.vlgmr.msra.gmra.mxu0 %v22262_v37  ;;  %30142 = vmatmul.mubr.f32.vlgmr.msra.gmra.mxu1 %v22258_v41 }
0x33a1   : > { %30125 = vmatpush3.xpose.msra.mxu0 %v34394_v42  ;;  %30150 = vmatpush3.msra.mxu1 %v34395_v24 }
0x33a2   : > { %30126 = vmatprep.mubr.msk.f32.mxu0 %vm31027_vm1, %v34263_v38  ;;  %30134 = vmatprep.subr.mxu0 %v34263_v38 }
0x33a3   : > { %30151 = vmatprep.mubr.msk.f32.mxu1 %vm31027_vm1, %v34263_v38  ;;  %30159 = vmatprep.subr.mxu1 %v34263_v38 }
0x33a4   : > { %30127 = vmatmul.mubr.f32.vlgmr.msra.gmra.mxu0 %v22259_v47 }
0x33a5   : > { %30135 = vmatpush3.xpose.msra.mxu0 %v34396_v3  ;;  %30136 = vmatprep.mubr.msk.f32.mxu0 %vm31027_vm1, %v34263_v38 }
0x33a6   : > { %30144 = vmatprep.subr.mxu0 %v34263_v38 }
0x33a8   : > { %30137 = vmatmul.mubr.f32.vlgmr.msra.gmra.mxu0 %v22258_v41 }
0x33a9   : > { %30145 = vmatpush3.msra.mxu0 %v34397_v0  ;;  %30146 = vmatprep.mubr.msk.f32.mxu0 %vm31027_vm1, %v34263_v38 }
0x33aa   : > { %30154 = vmatprep.subr.mxu0 %v34263_v38 }
0x344c   : > { %v21889_v31 = vpop.f32.mrf.mxu1 }
0x344e   : > { %v30093_v44 = vpop.f32.mrf.mxu1 }
0x3450   : > { %v22037_v21 = vpop.f32.mrf.mxu1 }
0x3452   : > { %v30103_v59 = vpop.f32.mrf.mxu1 }
0x3454   : > { %v21813_v60 = vpop.f32.mrf.mxu0  ;;  %v22183_v45 = vpop.f32.mrf.mxu1 }
0x3455   : > { %v21890_v16 = vadd.f32 %v21889_v31, %v21813_v60 }
0x3456   : > { %v30088_v2 = vpop.f32.mrf.mxu0  ;;  %v30113_v23 = vpop.f32.mrf.mxu1 }
0x3458   : > { %v21963_v25 = vpop.f32.mrf.mxu0  ;;  %v22340_v11 = vpop.f32.mrf.mxu1 }
0x3459   : > { %v21964_v33 = vadd.f32 %v21963_v25, %v21890_v16 }
0x345a   : > { %v30098_v22 = vpop.f32.mrf.mxu0  ;;  %v30123_v29 = vpop.f32.mrf.mxu1 }
0x345b   : > { %v22038_v14 = vadd.f32 %v22037_v21, %v21964_v33 }
0x345c   : > { %v22111_v27 = vpop.f32.mrf.mxu0  ;;  %v22488_v51 = vpop.f32.mrf.mxu1 }
0x345d   : > { %v22112_v28 = vadd.f32 %v22111_v27, %v22038_v14  ;;  %v34398_v14 = vld [vmem:[#allocation78_spill] sm:$0xff]  ;;  %v34399_v27 = vld [vmem:[#allocation84_spill] sm:$0xff] }
0x345e   : > { %v30108_v39 = vpop.f32.mrf.mxu0  ;;  %v30133_v18 = vpop.f32.mrf.mxu1 }
0x345f   : > { %v33566_v40 = vadd.f32 %v22183_v45, %v22112_v28 }
0x3460   : > { %v22264_v41 = vpop.f32.mrf.mxu0  ;;  %v22634_v43 = vpop.f32.mrf.mxu1 }
0x3461   : > { %v22341_v48 = vadd.f32 %v22340_v11, %v22264_v41 }
0x3462   : > { %v30118_v46 = vpop.f32.mrf.mxu0  ;;  %v30143_v47 = vpop.f32.mrf.mxu1 }
0x3464   : > { %v22414_v53 = vpop.f32.mrf.mxu0 }
0x3465   : > { %v22415_v36 = vadd.f32 %v22414_v53, %v22341_v48 }
0x3466   : > { %v30128_v35 = vpop.f32.mrf.mxu0 }
0x3467   : > { %v22489_v54 = vadd.f32 %v22488_v51, %v22415_v36  ;;  %v34401_v51 = vld [vmem:[#allocation81_spill] sm:$0xff] }
0x3468   : > { %v22562_v56 = vpop.f32.mrf.mxu0 }
0x3469   : > { %v22563_v58 = vadd.f32 %v22562_v56, %v22489_v54 }
0x346a   : > { %v30138_v37 = vpop.f32.mrf.mxu0 }
0x346b   : > { %v22635_v42 = vadd.f32 %v22634_v43, %v22563_v58 }
0x346d   : > { %v22638_v24 = vmul.f32 0.35355338, %v22635_v42 }
0x346f   : > { %v22639_v3 = vsel %vm1782_vm4, %v22638_v24, -inf }
0x3470   : > { %22640 = vmax.xlane.f32.xlu0 %v22639_v3  ;;  %v23551_v3 = vpop.permute.xlu1 %23550 }
0x34f9   : > { %v22641_v31 = vpop.xlane.xlu0 %22640 }
0x34fa   : > { %v22642_v44 = vsub.f32 %v22638_v24, %v22641_v31 }
0x34fc   : > { %v22643_v21 = vmul.f32 1.442695, %v22642_v44 }
0x34fe   : > { %30743 = vpow2.f32 %v22643_v21  ;;  %v23552_v21 = vsel %vm1782_vm4, %v23551_v3, 0 }
0x350b   : > { %v30744_v59 = vpop.eup %30743 }
0x350c   : > { %v22645_v60 = vsel %vm1782_vm4, %v30744_v59, 0.0 }
0x350d   : > { %22646 = vadd.xlane.f32.xlu0 %v22645_v60  ;;  %v23620_v60 = vand.u32 4294901760, %v23552_v21 }
0x3596   : > { %v22647_v45 = vpop.xlane.xlu0 %22646 }
0x3597   : > { %30745 = vrcp.f32 %v22647_v45 }
0x35a4   : > { %v30746_v16 = vpop.eup %30745 }
0x35a5   : > { %v22650_v2 = vmul.f32 %v30746_v16, %v30744_v59 }
0x35a7   : > { %v22652_v23 = vsel %vm1782_vm4, %v22650_v2, 0  ;;  %v23621_v2 = vsub.f32 %v23552_v21, %v23620_v60 }
0x35a8   : > { %v22720_v25 = vand.u32 4294901760, %v22652_v23 }
0x35aa   : > { %v22721_v11 = vsub.f32 %v22652_v23, %v22720_v25  ;;  %30152 = vmatmul.mubr.f32.vlgmr.msra.gmra.mxu1 %v22720_v25 }
0x35ab   : > { %30160 = vmatpush3.msra.mxu1 %v34397_v0  ;;  %30161 = vmatprep.mubr.msk.f32.mxu1 %vm31027_vm1, %v34263_v38 }
0x35ac   : > { %30169 = vmatprep.subr.mxu1 %v34263_v38  ;;  %v22722_v33 = vand.u32 4294901760, %v22721_v11 }
0x35ae   : > { %30162 = vmatmul.mubr.f32.vlgmr.msra.gmra.mxu1 %v22722_v33  ;;  %v22723_v22 = vsub.f32 %v22721_v11, %v22722_v33  ;;  %v23622_v33 = vand.u32 4294901760, %v23621_v2 }
0x35af   : > { %30170 = vmatpush3.msra.mxu1 %v34397_v0  ;;  %30171 = vmatprep.mubr.msk.f32.mxu1 %vm31027_vm1, %v34263_v38  ;;  %v34400_v0 = vld [vmem:[#allocation79_spill] sm:$0xff] }
0x35b0   : > { %v22724_v29 = vand.u32 4294901760, %v22723_v22  ;;  %30179 = vmatprep.subr.mxu1 %v34263_v38  ;;  %v34404_v22 = vld [vmem:[#allocation85_spill] sm:$0xff] }
0x35b2   : > { %30147 = vmatmul.mubr.f32.vlgmr.msra.gmra.mxu0 %v22724_v29  ;;  %30172 = vmatmul.mubr.f32.vlgmr.msra.gmra.mxu1 %v22720_v25  ;;  %v34405_v29 = vld [vmem:[#allocation83_spill] sm:$0xff] }
0x35b3   : > { %30155 = vmatpush3.msra.mxu0 %v34398_v14  ;;  %30156 = vmatprep.mubr.msk.f32.mxu0 %vm31027_vm1, %v34263_v38  ;;  %v23623_v14 = vsub.f32 %v23621_v2, %v23622_v33 }
0x35b4   : > { %30164 = vmatprep.subr.mxu0 %v34263_v38  ;;  %30180 = vmatpush3.msra.mxu1 %v34399_v27 }
0x35b5   : > { %30181 = vmatprep.mubr.msk.f32.mxu1 %vm31027_vm1, %v34263_v38  ;;  %30189 = vmatprep.subr.mxu1 %v34263_v38  ;;  %v23624_v27 = vand.u32 4294901760, %v23623_v14 }
0x35b6   : > { %30157 = vmatmul.mubr.f32.vlgmr.msra.gmra.mxu0 %v22721_v11  ;;  %v34403_v11 = vld [vmem:[#allocation82_spill] sm:$0xff] }
0x35b7   : > { %30165 = vmatpush3.msra.mxu0 %v34400_v0  ;;  %30166 = vmatprep.mubr.msk.f32.mxu0 %vm31027_vm1, %v34263_v38  ;;  %v34406_v0 = vld [vmem:[#allocation86_spill] sm:$0xff] }
0x35b8   : > { %30174 = vmatprep.subr.mxu0 %v34263_v38 }
0x35ba   : > { %30167 = vmatmul.mubr.f32.vlgmr.msra.gmra.mxu0 %v22720_v25  ;;  %v34402_v25 = vld [vmem:[#allocation88_spill] sm:$0xff] }
0x35bb   : > { %30175 = vmatpush3.msra.mxu0 %v34401_v51  ;;  %30176 = vmatprep.mubr.msk.f32.mxu0 %vm31027_vm1, %v34263_v38 }
0x35bc   : > { %30184 = vmatprep.subr.mxu0 %v34263_v38 }
0x366a   : > { %v22802_v28 = vpop.f32.mrf.mxu1 }
0x366c   : > { %v30153_v39 = vpop.f32.mrf.mxu1 }
0x366d   : > { %v34409_v39 = vld [vmem:[#allocation89_spill] sm:$0xff] }
0x366e   : > { %v22950_v18 = vpop.f32.mrf.mxu1 }
0x3670   : > { %v30163_v41 = vpop.f32.mrf.mxu1 }
0x3672   : > { %v22726_v43 = vpop.f32.mrf.mxu0  ;;  %v23096_v46 = vpop.f32.mrf.mxu1 }
0x3673   : > { %v22803_v53 = vadd.f32 %v22802_v28, %v22726_v43  ;;  %v34408_v28 = vld [vmem:[#allocation87_spill] sm:$0xff] }
0x3674   : > { %v30148_v47 = vpop.f32.mrf.mxu0  ;;  %v30173_v48 = vpop.f32.mrf.mxu1 }
0x3676   : > { %v22876_v36 = vpop.f32.mrf.mxu0 }
0x3677   : > { %v22877_v35 = vadd.f32 %v22876_v36, %v22803_v53 }
0x3678   : > { %v30158_v54 = vpop.f32.mrf.mxu0 }
0x3679   : > { %v22951_v56 = vadd.f32 %v22950_v18, %v22877_v35 }
0x367a   : > { %v23024_v58 = vpop.f32.mrf.mxu0 }
0x367b   : > { %v23025_v37 = vadd.f32 %v23024_v58, %v22951_v56 }
0x367c   : > { %v30168_v42 = vpop.f32.mrf.mxu0 }
0x367d   : > { %v23097_v24 = vadd.f32 %v23096_v46, %v23025_v37 }
0x367f   : > { %v23101_v31 = vsel %vm1782_vm4, %v23097_v24, 0 }
0x3680   : > { %v23169_v44 = vand.u32 4294901760, %v23101_v31 }
0x3682   : > { %v23170_v59 = vsub.f32 %v23101_v31, %v23169_v44  ;;  %30182 = vmatmul.mubr.f32.vlgmr.msra.gmra.mxu1 %v23169_v44 }
0x3683   : > { %30190 = vmatpush3.msra.mxu1 %v34401_v51  ;;  %30191 = vmatprep.mubr.msk.f32.mxu1 %vm31027_vm1, %v34263_v38 }
0x3684   : > { %v23171_v45 = vand.u32 4294901760, %v23170_v59  ;;  %30199 = vmatprep.subr.mxu1 %v34263_v38 }
0x3686   : > { %v23172_v16 = vsub.f32 %v23170_v59, %v23171_v45  ;;  %30192 = vmatmul.mubr.f32.vlgmr.msra.gmra.mxu1 %v23171_v45 }
0x3687   : > { %30200 = vmatpush3.msra.mxu1 %v34401_v51  ;;  %30201 = vmatprep.mubr.msk.f32.mxu1 %vm31027_vm1, %v34263_v38  ;;  %v34407_v51 = vld [vmem:[#allocation92_spill] sm:$0xff] }
0x3688   : > { %v23173_v23 = vand.u32 4294901760, %v23172_v16  ;;  %30209 = vmatprep.subr.mxu1 %v34263_v38 }
0x368a   : > { %30177 = vmatmul.mubr.f32.vlgmr.msra.gmra.mxu0 %v23173_v23  ;;  %30202 = vmatmul.mubr.f32.vlgmr.msra.gmra.mxu1 %v23169_v44 }
0x368b   : > { %30210 = vmatpush3.xpose.msra.mxu1 %v34402_v25  ;;  %30185 = vmatpush3.msra.mxu0 %v34403_v11 }
0x368c   : > { %30186 = vmatprep.mubr.msk.f32.mxu0 %vm31027_vm1, %v34263_v38  ;;  %30211 = vmatprep.mubr.msk.f32.mxu1 %vm31027_vm1, %v34263_v38 }
0x368d   : > { %30219 = vmatprep.subr.mxu1 %v34263_v38  ;;  %30194 = vmatprep.subr.mxu0 %v34263_v38 }
0x368e   : > { %30187 = vmatmul.mubr.f32.vlgmr.msra.gmra.mxu0 %v23170_v59  ;;  %30212 = vmatmul.mubr.f32.vlgmr.msra.gmra.mxu1 %v23620_v60 }
0x368f   : > { %30220 = vmatpush3.xpose.msra.mxu1 %v34404_v22  ;;  %30195 = vmatpush3.msra.mxu0 %v34405_v29 }
0x3690   : > { %30196 = vmatprep.mubr.msk.f32.mxu0 %vm31027_vm1, %v34263_v38  ;;  %30204 = vmatprep.subr.mxu0 %v34263_v38 }
0x3691   : > { %30221 = vmatprep.mubr.msk.f32.mxu1 %vm31027_vm1, %v34263_v38  ;;  %30229 = vmatprep.subr.mxu1 %v34263_v38 }
0x3692   : > { %30197 = vmatmul.mubr.f32.vlgmr.msra.gmra.mxu0 %v23169_v44  ;;  %30222 = vmatmul.mubr.f32.vlgmr.msra.gmra.mxu1 %v23622_v33 }
0x3693   : > { %30205 = vmatpush3.xpose.msra.mxu0 %v34404_v22  ;;  %30230 = vmatpush3.xpose.msra.mxu1 %v34404_v22 }
0x3694   : > { %30206 = vmatprep.mubr.msk.f32.mxu0 %vm31027_vm1, %v34263_v38  ;;  %30214 = vmatprep.subr.mxu0 %v34263_v38 }
0x3695   : > { %30231 = vmatprep.mubr.msk.f32.mxu1 %vm31027_vm1, %v34263_v38  ;;  %30239 = vmatprep.subr.mxu1 %v34263_v38 }
0x3696   : > { %30207 = vmatmul.mubr.f32.vlgmr.msra.gmra.mxu0 %v23624_v27  ;;  %30232 = vmatmul.mubr.f32.vlgmr.msra.gmra.mxu1 %v23620_v60 }
0x3697   : > { %30215 = vmatpush3.xpose.msra.mxu0 %v34406_v0  ;;  %30240 = vmatpush3.msra.mxu1 %v34407_v51 }
0x3698   : > { %30216 = vmatprep.mubr.msk.f32.mxu0 %vm31027_vm1, %v34263_v38  ;;  %30224 = vmatprep.subr.mxu0 %v34263_v38 }
0x3699   : > { %30241 = vmatprep.mubr.msk.f32.mxu1 %vm31027_vm1, %v34263_v38  ;;  %30249 = vmatprep.subr.mxu1 %v34263_v38 }
0x369a   : > { %30217 = vmatmul.mubr.f32.vlgmr.msra.gmra.mxu0 %v23621_v2 }
0x369b   : > { %30225 = vmatpush3.xpose.msra.mxu0 %v34408_v28  ;;  %30226 = vmatprep.mubr.msk.f32.mxu0 %vm31027_vm1, %v34263_v38 }
0x369c   : > { %30234 = vmatprep.subr.mxu0 %v34263_v38 }
0x369e   : > { %30227 = vmatmul.mubr.f32.vlgmr.msra.gmra.mxu0 %v23620_v60  ;;  %v30772_v60 = vld [vmem:[%s34292_s9] ss:$0 sm:$0xff] }
0x369f   : > { %30235 = vmatpush3.msra.mxu0 %v34409_v39  ;;  %30236 = vmatprep.mubr.msk.f32.mxu0 %vm31027_vm1, %v34263_v38  ;;  %v22187_v45 = vadd.f32 %v30772_v60, %v33566_v40 }
0x36a0   : > { %30244 = vmatprep.subr.mxu0 %v34263_v38 }
0x3742   : > { %v23251_v18 = vpop.f32.mrf.mxu1 }
0x3744   : > { %v30183_v41 = vpop.f32.mrf.mxu1 }
0x3746   : > { %v23399_v43 = vpop.f32.mrf.mxu1 }
0x3748   : > { %v30193_v46 = vpop.f32.mrf.mxu1 }
0x374a   : > { %v23175_v47 = vpop.f32.mrf.mxu0  ;;  %v23545_v48 = vpop.f32.mrf.mxu1 }
0x374b   : > { %v23252_v53 = vadd.f32 %v23251_v18, %v23175_v47 }
0x374c   : > { %v30178_v36 = vpop.f32.mrf.mxu0  ;;  %v30203_v35 = vpop.f32.mrf.mxu1 }
0x374e   : > { %v23325_v54 = vpop.f32.mrf.mxu0  ;;  %v23702_v56 = vpop.f32.mrf.mxu1 }
0x374f   : > { %v23326_v58 = vadd.f32 %v23325_v54, %v23252_v53 }
0x3750   : > { %v30188_v37 = vpop.f32.mrf.mxu0  ;;  %v30213_v42 = vpop.f32.mrf.mxu1 }
0x3751   : > { %v23400_v24 = vadd.f32 %v23399_v43, %v23326_v58 }
0x3752   : > { %v23473_v3 = vpop.f32.mrf.mxu0  ;;  %v23850_v31 = vpop.f32.mrf.mxu1 }
0x3753   : > { %v23474_v44 = vadd.f32 %v23473_v3, %v23400_v24 }
0x3754   : > { %v30198_v21 = vpop.f32.mrf.mxu0  ;;  %v30223_v59 = vpop.f32.mrf.mxu1 }
0x3755   : > { %v23546_v16 = vadd.f32 %v23545_v48, %v23474_v44  ;;  %v34411_v44 = vld [vmem:[#allocation96_spill] sm:$0xff]  ;;  %v34413_v21 = vld [vmem:[#allocation93_spill] sm:$0xff] }
0x3756   : > { %v23626_v2 = vpop.f32.mrf.mxu0  ;;  %v23996_v23 = vpop.f32.mrf.mxu1 }
0x3757   : > { %v33649_v25 = vadd.f32 %v23546_v16, %v22187_v45  ;;  %v23703_v22 = vadd.f32 %v23702_v56, %v23626_v2 }
0x3758   : > { %v30208_v11 = vpop.f32.mrf.mxu0  ;;  %v30233_v33 = vpop.f32.mrf.mxu1 }
0x375a   : > { %v23776_v29 = vpop.f32.mrf.mxu0 }
0x375b   : > { %v23777_v14 = vadd.f32 %v23776_v29, %v23703_v22 }
0x375c   : > { %v30218_v27 = vpop.f32.mrf.mxu0 }
0x375d   : > { %v23851_v0 = vadd.f32 %v23850_v31, %v23777_v14  ;;  %v34410_v31 = vld [vmem:[#allocation90_spill] sm:$0xff] }
0x375e   : > { %v23924_v51 = vpop.f32.mrf.mxu0 }
0x375f   : > { %v23925_v28 = vadd.f32 %v23924_v51, %v23851_v0 }
0x3760   : > { %v30228_v18 = vpop.f32.mrf.mxu0 }
0x3761   : > { %v23997_v41 = vadd.f32 %v23996_v23, %v23925_v28 }
0x3763   : > { %v24000_v43 = vmul.f32 0.35355338, %v23997_v41 }
0x3765   : > { %v24001_v46 = vsel %vm1782_vm4, %v24000_v43, -inf }
0x3766   : > { %24002 = vmax.xlane.f32.xlu0 %v24001_v46 }
0x377c   : > { %24912 = vrot.lane.b32.xlu0 %v33457_v49, %s31037_s19  ;;  %s34456_s19 = sld [smem:[#allocation145_spill]] }
0x3782   : > { %s27377_s24 = scalar_lea.hbm %s34456_s19, %s27537_s15 }
0x37ef   : > { %v24003_v40 = vpop.xlane.xlu0 %24002 }
0x37f0   : > { %v24004_v47 = vsub.f32 %v24000_v43, %v24003_v40 }
0x37f2   : > { %v24005_v48 = vmul.f32 1.442695, %v24004_v47 }
0x37f3   : > { %v24913_v43 = vpop.permute.xlu0 %24912 }
0x37f4   : > { %30747 = vpow2.f32 %v24005_v48  ;;  %v24914_v47 = vsel %vm1782_vm4, %v24913_v43, 0 }
0x3801   : > { %v30748_v53 = vpop.eup %30747 }
0x3802   : > { %v24007_v36 = vsel %vm1782_vm4, %v30748_v53, 0.0 }
0x3803   : > { %24008 = vadd.xlane.f32.xlu1 %v24007_v36 }
0x388c   : > { %v24009_v35 = vpop.xlane.xlu1 %24008 }
0x388d   : > { %30749 = vrcp.f32 %v24009_v35 }
0x389a   : > { %v30750_v54 = vpop.eup %30749 }
0x389b   : > { %v24012_v56 = vmul.f32 %v30750_v54, %v30748_v53  ;;  %v24982_v53 = vand.u32 4294901760, %v24914_v47 }
0x389d   : > { %v24014_v58 = vsel %vm1782_vm4, %v24012_v56, 0  ;;  %v24983_v54 = vsub.f32 %v24914_v47, %v24982_v53 }
0x389e   : > { %v24082_v37 = vand.u32 4294901760, %v24014_v58 }
0x38a0   : > { %v24083_v42 = vsub.f32 %v24014_v58, %v24082_v37  ;;  %30242 = vmatmul.mubr.f32.vlgmr.msra.gmra.mxu1 %v24082_v37  ;;  %v34414_v58 = vld [vmem:[#allocation100_spill] sm:$0xff] }
0x38a1   : > { %30250 = vmatpush3.msra.mxu1 %v34409_v39  ;;  %30251 = vmatprep.mubr.msk.f32.mxu1 %vm31027_vm1, %v34263_v38 }
0x38a2   : > { %30259 = vmatprep.subr.mxu1 %v34263_v38  ;;  %v24084_v49 = vand.u32 4294901760, %v24083_v42 }
0x38a4   : > { %30252 = vmatmul.mubr.f32.vlgmr.msra.gmra.mxu1 %v24084_v49  ;;  %v24085_v24 = vsub.f32 %v24083_v42, %v24084_v49  ;;  %v34416_v49 = vld [vmem:[#allocation97_spill] sm:$0xff] }
0x38a5   : > { %30260 = vmatpush3.msra.mxu1 %v34409_v39  ;;  %30261 = vmatprep.mubr.msk.f32.mxu1 %vm31027_vm1, %v34263_v38  ;;  %v34412_v39 = vld [vmem:[#allocation91_spill] sm:$0xff] }
0x38a6   : > { %v24086_v3 = vand.u32 4294901760, %v24085_v24  ;;  %30269 = vmatprep.subr.mxu1 %v34263_v38  ;;  %v34417_v24 = vld [vmem:[#allocation95_spill] sm:$0xff] }
0x38a8   : > { %30237 = vmatmul.mubr.f32.vlgmr.msra.gmra.mxu0 %v24086_v3  ;;  %30262 = vmatmul.mubr.f32.vlgmr.msra.gmra.mxu1 %v24082_v37 }
0x38a9   : > { %30245 = vmatpush3.msra.mxu0 %v34410_v31  ;;  %30246 = vmatprep.mubr.msk.f32.mxu0 %vm31027_vm1, %v34263_v38 }
0x38aa   : > { %30254 = vmatprep.subr.mxu0 %v34263_v38  ;;  %30270 = vmatpush3.msra.mxu1 %v34411_v44  ;;  %v34418_v44 = vld [vmem:[#allocation98_spill] sm:$0xff] }
0x38ab   : > { %30271 = vmatprep.mubr.msk.f32.mxu1 %vm31027_vm1, %v34263_v38  ;;  %30279 = vmatprep.subr.mxu1 %v34263_v38 }
0x38ac   : > { %30247 = vmatmul.mubr.f32.vlgmr.msra.gmra.mxu0 %v24083_v42  ;;  %v24984_v42 = vand.u32 4294901760, %v24983_v54 }
0x38ad   : > { %30255 = vmatpush3.msra.mxu0 %v34412_v39  ;;  %30256 = vmatprep.mubr.msk.f32.mxu0 %vm31027_vm1, %v34263_v38  ;;  %v34419_v39 = vld [vmem:[#allocation104_spill] sm:$0xff] }
0x38ae   : > { %30264 = vmatprep.subr.mxu0 %v34263_v38  ;;  %v24985_v3 = vsub.f32 %v24983_v54, %v24984_v42 }
0x38b0   : > { %30257 = vmatmul.mubr.f32.vlgmr.msra.gmra.mxu0 %v24082_v37  ;;  %v34415_v37 = vld [vmem:[#allocation94_spill] sm:$0xff]  ;;  %v24986_v31 = vand.u32 4294901760, %v24985_v3 }
0x38b1   : > { %30265 = vmatpush3.msra.mxu0 %v34413_v21  ;;  %30266 = vmatprep.mubr.msk.f32.mxu0 %vm31027_vm1, %v34263_v38 }
0x38b2   : > { %30274 = vmatprep.subr.mxu0 %v34263_v38 }
0x3960   : > { %v24164_v59 = vpop.f32.mrf.mxu1 }
0x3962   : > { %v30243_v60 = vpop.f32.mrf.mxu1 }
0x3964   : > { %v24312_v45 = vpop.f32.mrf.mxu1 }
0x3966   : > { %v30253_v16 = vpop.f32.mrf.mxu1 }
0x3968   : > { %v24088_v2 = vpop.f32.mrf.mxu0  ;;  %v24458_v23 = vpop.f32.mrf.mxu1 }
0x3969   : > { %v24165_v22 = vadd.f32 %v24164_v59, %v24088_v2  ;;  %v34421_v59 = vld [vmem:[#allocation101_spill] sm:$0xff] }
0x396a   : > { %v30238_v11 = vpop.f32.mrf.mxu0  ;;  %v30263_v33 = vpop.f32.mrf.mxu1 }
0x396c   : > { %v24238_v29 = vpop.f32.mrf.mxu0 }
0x396d   : > { %v24239_v14 = vadd.f32 %v24238_v29, %v24165_v22 }
0x396e   : > { %v30248_v27 = vpop.f32.mrf.mxu0 }
0x396f   : > { %v24313_v0 = vadd.f32 %v24312_v45, %v24239_v14 }
0x3970   : > { %v24386_v51 = vpop.f32.mrf.mxu0 }
0x3971   : > { %v24387_v28 = vadd.f32 %v24386_v51, %v24313_v0 }
0x3972   : > { %v30258_v18 = vpop.f32.mrf.mxu0 }
0x3973   : > { %v24459_v41 = vadd.f32 %v24458_v23, %v24387_v28 }
0x3975   : > { %v24463_v46 = vsel %vm1782_vm4, %v24459_v41, 0 }
0x3976   : > { %v24531_v40 = vand.u32 4294901760, %v24463_v46 }
0x3978   : > { %v24532_v48 = vsub.f32 %v24463_v46, %v24531_v40  ;;  %30272 = vmatmul.mubr.f32.vlgmr.msra.gmra.mxu1 %v24531_v40 }
0x3979   : > { %30280 = vmatpush3.msra.mxu1 %v34413_v21  ;;  %30281 = vmatprep.mubr.msk.f32.mxu1 %vm31027_vm1, %v34263_v38 }
0x397a   : > { %v24533_v36 = vand.u32 4294901760, %v24532_v48  ;;  %30289 = vmatprep.subr.mxu1 %v34263_v38 }
0x397c   : > { %v24534_v35 = vsub.f32 %v24532_v48, %v24533_v36  ;;  %30282 = vmatmul.mubr.f32.vlgmr.msra.gmra.mxu1 %v24533_v36 }
0x397d   : > { %30290 = vmatpush3.msra.mxu1 %v34413_v21  ;;  %30291 = vmatprep.mubr.msk.f32.mxu1 %vm31027_vm1, %v34263_v38  ;;  %v34420_v21 = vld [vmem:[#allocation99_spill] sm:$0xff] }
0x397e   : > { %v24535_v56 = vand.u32 4294901760, %v24534_v35  ;;  %30299 = vmatprep.subr.mxu1 %v34263_v38 }
0x3980   : > { %30267 = vmatmul.mubr.f32.vlgmr.msra.gmra.mxu0 %v24535_v56  ;;  %30292 = vmatmul.mubr.f32.vlgmr.msra.gmra.mxu1 %v24531_v40 }
0x3981   : > { %30300 = vmatpush3.xpose.msra.mxu1 %v34414_v58  ;;  %30275 = vmatpush3.msra.mxu0 %v34415_v37 }
0x3982   : > { %30276 = vmatprep.mubr.msk.f32.mxu0 %vm31027_vm1, %v34263_v38  ;;  %30301 = vmatprep.mubr.msk.f32.mxu1 %vm31027_vm1, %v34263_v38 }
0x3983   : > { %30309 = vmatprep.subr.mxu1 %v34263_v38  ;;  %30284 = vmatprep.subr.mxu0 %v34263_v38 }
0x3984   : > { %30277 = vmatmul.mubr.f32.vlgmr.msra.gmra.mxu0 %v24532_v48  ;;  %30302 = vmatmul.mubr.f32.vlgmr.msra.gmra.mxu1 %v24982_v53 }
0x3985   : > { %30310 = vmatpush3.xpose.msra.mxu1 %v34416_v49  ;;  %30285 = vmatpush3.msra.mxu0 %v34417_v24 }
0x3986   : > { %30286 = vmatprep.mubr.msk.f32.mxu0 %vm31027_vm1, %v34263_v38  ;;  %30294 = vmatprep.subr.mxu0 %v34263_v38 }
0x3987   : > { %30311 = vmatprep.mubr.msk.f32.mxu1 %vm31027_vm1, %v34263_v38  ;;  %30319 = vmatprep.subr.mxu1 %v34263_v38 }
0x3988   : > { %30287 = vmatmul.mubr.f32.vlgmr.msra.gmra.mxu0 %v24531_v40  ;;  %30312 = vmatmul.mubr.f32.vlgmr.msra.gmra.mxu1 %v24984_v42 }
0x3989   : > { %30295 = vmatpush3.xpose.msra.mxu0 %v34416_v49  ;;  %30320 = vmatpush3.xpose.msra.mxu1 %v34416_v49 }
0x398a   : > { %30296 = vmatprep.mubr.msk.f32.mxu0 %vm31027_vm1, %v34263_v38  ;;  %30304 = vmatprep.subr.mxu0 %v34263_v38 }
0x398b   : > { %30321 = vmatprep.mubr.msk.f32.mxu1 %vm31027_vm1, %v34263_v38  ;;  %30329 = vmatprep.subr.mxu1 %v34263_v38 }
0x398c   : > { %30297 = vmatmul.mubr.f32.vlgmr.msra.gmra.mxu0 %v24986_v31  ;;  %30322 = vmatmul.mubr.f32.vlgmr.msra.gmra.mxu1 %v24982_v53 }
0x398d   : > { %30305 = vmatpush3.xpose.msra.mxu0 %v34418_v44  ;;  %30330 = vmatpush3.msra.mxu1 %v34419_v39 }
0x398e   : > { %30306 = vmatprep.mubr.msk.f32.mxu0 %vm31027_vm1, %v34263_v38  ;;  %30314 = vmatprep.subr.mxu0 %v34263_v38 }
0x398f   : > { %30331 = vmatprep.mubr.msk.f32.mxu1 %vm31027_vm1, %v34263_v38  ;;  %30339 = vmatprep.subr.mxu1 %v34263_v38 }
0x3990   : > { %30307 = vmatmul.mubr.f32.vlgmr.msra.gmra.mxu0 %v24983_v54 }
0x3991   : > { %30315 = vmatpush3.xpose.msra.mxu0 %v34420_v21  ;;  %30316 = vmatprep.mubr.msk.f32.mxu0 %vm31027_vm1, %v34263_v38 }
0x3992   : > { %30324 = vmatprep.subr.mxu0 %v34263_v38 }
0x3994   : > { %30317 = vmatmul.mubr.f32.vlgmr.msra.gmra.mxu0 %v24982_v53 }
0x3995   : > { %30325 = vmatpush3.msra.mxu0 %v34421_v59  ;;  %30326 = vmatprep.mubr.msk.f32.mxu0 %vm31027_vm1, %v34263_v38 }
0x3996   : > { %30334 = vmatprep.subr.mxu0 %v34263_v38 }
0x3a38   : > { %v24613_v60 = vpop.f32.mrf.mxu1 }
0x3a3a   : > { %v30273_v45 = vpop.f32.mrf.mxu1 }
0x3a3c   : > { %v24761_v16 = vpop.f32.mrf.mxu1 }
0x3a3e   : > { %v30283_v2 = vpop.f32.mrf.mxu1 }
0x3a40   : > { %v24537_v23 = vpop.f32.mrf.mxu0  ;;  %v24907_v11 = vpop.f32.mrf.mxu1 }
0x3a41   : > { %v24614_v33 = vadd.f32 %v24613_v60, %v24537_v23 }
0x3a42   : > { %v30268_v22 = vpop.f32.mrf.mxu0  ;;  %v30293_v29 = vpop.f32.mrf.mxu1 }
0x3a44   : > { %v24687_v14 = vpop.f32.mrf.mxu0  ;;  %v25064_v27 = vpop.f32.mrf.mxu1 }
0x3a45   : > { %v24688_v0 = vadd.f32 %v24687_v14, %v24614_v33 }
0x3a46   : > { %v30278_v51 = vpop.f32.mrf.mxu0  ;;  %v30303_v28 = vpop.f32.mrf.mxu1 }
0x3a47   : > { %v24762_v18 = vadd.f32 %v24761_v16, %v24688_v0 }
0x3a48   : > { %v24835_v41 = vpop.f32.mrf.mxu0  ;;  %v25212_v43 = vpop.f32.mrf.mxu1 }
0x3a49   : > { %v24836_v46 = vadd.f32 %v24835_v41, %v24762_v18  ;;  %v34422_v18 = vld [vmem:[#allocation102_spill] sm:$0xff]  ;;  %v34423_v41 = vld [vmem:[#allocation108_spill] sm:$0xff] }
0x3a4a   : > { %v30288_v40 = vpop.f32.mrf.mxu0  ;;  %v30313_v47 = vpop.f32.mrf.mxu1 }
0x3a4b   : > { %v24908_v48 = vadd.f32 %v24907_v11, %v24836_v46 }
0x3a4c   : > { %v24988_v53 = vpop.f32.mrf.mxu0  ;;  %v25358_v36 = vpop.f32.mrf.mxu1 }
0x3a4d   : > { %v33731_v35 = vadd.f32 %v24908_v48, %v33649_v25  ;;  %v25065_v58 = vadd.f32 %v25064_v27, %v24988_v53 }
0x3a4e   : > { %v30298_v54 = vpop.f32.mrf.mxu0  ;;  %v30323_v56 = vpop.f32.mrf.mxu1 }
0x3a50   : > { %v25138_v37 = vpop.f32.mrf.mxu0 }
0x3a51   : > { %v25139_v42 = vadd.f32 %v25138_v37, %v25065_v58 }
0x3a52   : > { %v30308_v49 = vpop.f32.mrf.mxu0 }
0x3a53   : > { %v25213_v24 = vadd.f32 %v25212_v43, %v25139_v42  ;;  %v34425_v43 = vld [vmem:[#allocation105_spill] sm:$0xff] }
0x3a54   : > { %v25286_v3 = vpop.f32.mrf.mxu0 }
0x3a55   : > { %v25287_v31 = vadd.f32 %v25286_v3, %v25213_v24 }
0x3a56   : > { %v30318_v44 = vpop.f32.mrf.mxu0 }
0x3a57   : > { %v25359_v39 = vadd.f32 %v25358_v36, %v25287_v31 }
0x3a59   : > { %v25362_v21 = vmul.f32 0.35355338, %v25359_v39 }
0x3a5b   : > { %v25363_v60 = vsel %vm1782_vm4, %v25362_v21, -inf }
0x3a5c   : > { %25364 = vmax.xlane.f32.xlu0 %v25363_v60 }
0x3ae5   : > { %v25365_v45 = vpop.xlane.xlu0 %25364 }
0x3ae6   : > { %v25366_v16 = vsub.f32 %v25362_v21, %v25365_v45 }
0x3ae8   : > { %v25367_v2 = vmul.f32 1.442695, %v25366_v16 }
0x3aea   : > { %30751 = vpow2.f32 %v25367_v2 }
0x3af7   : > { %v30752_v25 = vpop.eup %30751 }
0x3af8   : > { %v25369_v23 = vsel %vm1782_vm4, %v30752_v25, 0.0 }
0x3af9   : > { %25370 = vadd.xlane.f32.xlu1 %v25369_v23  ;;  %v34426_v23 = vld [vmem:[#allocation106_spill] sm:$0xff] }
0x3b82   : > { %v25371_v11 = vpop.xlane.xlu1 %25370 }
0x3b83   : > { %30753 = vrcp.f32 %v25371_v11  ;;  %v34427_v11 = vld [vmem:[#allocation121_spill] sm:$0xff] }
0x3b90   : > { %v30754_v33 = vpop.eup %30753 }
0x3b91   : > { %v25374_v22 = vmul.f32 %v30754_v33, %v30752_v25  ;;  %v34428_v33 = vld [vmem:[#allocation122_spill] sm:$0xff] }
0x3b93   : > { %v25376_v29 = vsel %vm1782_vm4, %v25374_v22, 0  ;;  %v34429_v22 = vld [vmem:[#allocation107_spill] sm:$0xff] }
0x3b94   : > { %v25444_v14 = vand.u32 4294901760, %v25376_v29 }
0x3b96   : > { %v25445_v27 = vsub.f32 %v25376_v29, %v25444_v14  ;;  %30332 = vmatmul.mubr.f32.vlgmr.msra.gmra.mxu1 %v25444_v14  ;;  %v34430_v29 = vld [vmem:[#allocation123_spill] sm:$0xff] }
0x3b97   : > { %30340 = vmatpush3.msra.mxu1 %v34421_v59  ;;  %30341 = vmatprep.mubr.msk.f32.mxu1 %vm31027_vm1, %v34263_v38 }
0x3b98   : > { %30349 = vmatprep.subr.mxu1 %v34263_v38  ;;  %v25446_v0 = vand.u32 4294901760, %v25445_v27 }
0x3b9a   : > { %30342 = vmatmul.mubr.f32.vlgmr.msra.gmra.mxu1 %v25446_v0  ;;  %v25447_v51 = vsub.f32 %v25445_v27, %v25446_v0  ;;  %v34433_v0 = vld [vmem:[#allocation110_spill] sm:$0xff] }
0x3b9b   : > { %30350 = vmatpush3.msra.mxu1 %v34421_v59  ;;  %30351 = vmatprep.mubr.msk.f32.mxu1 %vm31027_vm1, %v34263_v38  ;;  %v34424_v59 = vld [vmem:[#allocation103_spill] sm:$0xff] }
0x3b9c   : > { %v25448_v28 = vand.u32 4294901760, %v25447_v51  ;;  %30359 = vmatprep.subr.mxu1 %v34263_v38  ;;  %v34434_v51 = vld [vmem:[#allocation111_spill] sm:$0xff] }
0x3b9e   : > { %30327 = vmatmul.mubr.f32.vlgmr.msra.gmra.mxu0 %v25448_v28  ;;  %30352 = vmatmul.mubr.f32.vlgmr.msra.gmra.mxu1 %v25444_v14  ;;  %v34435_v28 = vld [vmem:[#allocation112_spill] sm:$0xff] }
0x3b9f   : > { %30335 = vmatpush3.msra.mxu0 %v34422_v18  ;;  %30336 = vmatprep.mubr.msk.f32.mxu0 %vm31027_vm1, %v34263_v38 }
0x3ba0   : > { %30344 = vmatprep.subr.mxu0 %v34263_v38  ;;  %30360 = vmatpush3.msra.mxu1 %v34423_v41 }
0x3ba1   : > { %30361 = vmatprep.mubr.msk.f32.mxu1 %vm31027_vm1, %v34263_v38  ;;  %30369 = vmatprep.subr.mxu1 %v34263_v38 }
0x3ba2   : > { %30337 = vmatmul.mubr.f32.vlgmr.msra.gmra.mxu0 %v25445_v27  ;;  %v34432_v27 = vld [vmem:[#allocation109_spill] sm:$0xff] }
0x3ba3   : > { %30345 = vmatpush3.msra.mxu0 %v34424_v59  ;;  %30346 = vmatprep.mubr.msk.f32.mxu0 %vm31027_vm1, %v34263_v38 }
0x3ba4   : > { %30354 = vmatprep.subr.mxu0 %v34263_v38 }
0x3ba6   : > { %30347 = vmatmul.mubr.f32.vlgmr.msra.gmra.mxu0 %v25444_v14  ;;  %v34431_v14 = vld [vmem:[#allocation124_spill] sm:$0xff] }
0x3ba7   : > { %30355 = vmatpush3.msra.mxu0 %v34425_v43  ;;  %30356 = vmatprep.mubr.msk.f32.mxu0 %vm31027_vm1, %v34263_v38 }
0x3ba8   : > { %30364 = vmatprep.subr.mxu0 %v34263_v38 }
0x3c56   : > { %v25526_v46 = vpop.f32.mrf.mxu1 }
0x3c58   : > { %v30333_v40 = vpop.f32.mrf.mxu1 }
0x3c5a   : > { %v25674_v47 = vpop.f32.mrf.mxu1 }
0x3c5c   : > { %v30343_v48 = vpop.f32.mrf.mxu1 }
0x3c5e   : > { %v25450_v53 = vpop.f32.mrf.mxu0  ;;  %v25820_v36 = vpop.f32.mrf.mxu1 }
0x3c5f   : > { %v25527_v58 = vadd.f32 %v25526_v46, %v25450_v53 }
0x3c60   : > { %v30328_v54 = vpop.f32.mrf.mxu0  ;;  %v30353_v56 = vpop.f32.mrf.mxu1 }
0x3c62   : > { %v25600_v37 = vpop.f32.mrf.mxu0 }
0x3c63   : > { %v25601_v42 = vadd.f32 %v25600_v37, %v25527_v58 }
0x3c64   : > { %v30338_v49 = vpop.f32.mrf.mxu0 }
0x3c65   : > { %v25675_v24 = vadd.f32 %v25674_v47, %v25601_v42 }
0x3c66   : > { %v25748_v3 = vpop.f32.mrf.mxu0 }
0x3c67   : > { %v25749_v31 = vadd.f32 %v25748_v3, %v25675_v24 }
0x3c68   : > { %v30348_v44 = vpop.f32.mrf.mxu0 }
0x3c69   : > { %v25821_v39 = vadd.f32 %v25820_v36, %v25749_v31 }
0x3c6b   : > { %v25825_v21 = vsel %vm1782_vm4, %v25821_v39, 0 }
0x3c6c   : > { %v25893_v60 = vand.u32 4294901760, %v25825_v21 }
0x3c6e   : > { %v25894_v45 = vsub.f32 %v25825_v21, %v25893_v60  ;;  %30362 = vmatmul.mubr.f32.vlgmr.msra.gmra.mxu1 %v25893_v60 }
0x3c6f   : > { %30370 = vmatpush3.msra.mxu1 %v34425_v43  ;;  %30371 = vmatprep.mubr.msk.f32.mxu1 %vm31027_vm1, %v34263_v38 }
0x3c70   : > { %v25895_v16 = vand.u32 4294901760, %v25894_v45  ;;  %30379 = vmatprep.subr.mxu1 %v34263_v38 }
0x3c72   : > { %v25896_v2 = vsub.f32 %v25894_v45, %v25895_v16  ;;  %30372 = vmatmul.mubr.f32.vlgmr.msra.gmra.mxu1 %v25895_v16 }
0x3c73   : > { %30380 = vmatpush3.msra.mxu1 %v34425_v43  ;;  %30381 = vmatprep.mubr.msk.f32.mxu1 %vm31027_vm1, %v34263_v38 }
0x3c74   : > { %v25897_v25 = vand.u32 4294901760, %v25896_v2  ;;  %30395 = vmatprep.subr.mxu1 %v34263_v38 }
0x3c76   : > { %30357 = vmatmul.mubr.f32.vlgmr.msra.gmra.mxu0 %v25897_v25  ;;  %30382 = vmatmul.mubr.f32.vlgmr.msra.gmra.mxu1 %v25893_v60 }
0x3c77   : > { %30365 = vmatpush3.msra.mxu0 %v34426_v23  ;;  %30366 = vmatprep.mubr.msk.f32.mxu0 %vm31027_vm1, %v34263_v38 }
0x3c78   : > { %30374 = vmatprep.subr.mxu0 %v34263_v38  ;;  %30396 = vmatpush3.msra.mxu1 %v34427_v11 }
0x3c79   : > { %30397 = vmatprep.subr.mxu1 %v34263_v38  ;;  %30403 = vmatprep.mubr.msk.f32.mxu1 %vm31027_vm1, %v34263_v38 }
0x3c7a   : > { %30367 = vmatmul.mubr.f32.vlgmr.msra.gmra.mxu0 %v25894_v45  ;;  %30398 = vmatpush3.msra.mxu1 %v34428_v33 }
0x3c7b   : > { %30375 = vmatpush3.msra.mxu0 %v34429_v22  ;;  %30376 = vmatprep.mubr.msk.f32.mxu0 %vm31027_vm1, %v34263_v38 }
0x3c7c   : > { %30399 = vmatprep.subr.mxu1 %v34263_v38  ;;  %30384 = vmatprep.subr.mxu0 %v34263_v38 }
0x3c7d   : > { %30400 = vmatpush3.msra.mxu1 %v34430_v29 }
0x3c7e   : > { %30377 = vmatmul.mubr.f32.vlgmr.msra.gmra.mxu0 %v25893_v60  ;;  %30401 = vmatprep.subr.mxu1 %v34263_v38 }
0x3c7f   : > { %30402 = vmatpush3.msra.mxu1 %v34431_v14  ;;  %30385 = vmatpush3.msra.mxu0 %v34432_v27 }
0x3c80   : > { %30417 = vmatprep.subr.mxu1 %v34263_v38  ;;  %30386 = vmatprep.subr.mxu0 %v34263_v38 }
0x3c81   : > { %30387 = vmatpush3.msra.mxu0 %v34433_v0  ;;  %30392 = vmatprep.mubr.msk.f32.mxu0 %vm31027_vm1, %v34263_v38 }
0x3c82   : > { %30388 = vmatprep.subr.mxu0 %v34263_v38 }
0x3c83   : > { %30389 = vmatpush3.msra.mxu0 %v34434_v51 }
0x3c84   : > { %30390 = vmatprep.subr.mxu0 %v34263_v38 }
0x3c85   : > { %30391 = vmatpush3.msra.mxu0 %v34435_v28 }
0x3c86   : > { %30406 = vmatprep.subr.mxu0 %v34263_v38 }
0x3d2e   : > { %v25975_v18 = vpop.f32.mrf.mxu1 }
0x3d30   : > { %v30363_v41 = vpop.f32.mrf.mxu1 }
0x3d31   : > { %v34436_v41 = vld [vmem:[#allocation125_spill] sm:$0xff] }
0x3d32   : > { %v26123_v59 = vpop.f32.mrf.mxu1 }
0x3d34   : > { %v30373_v43 = vpop.f32.mrf.mxu1 }
0x3d36   : > { %v25899_v46 = vpop.f32.mrf.mxu0  ;;  %v26269_v40 = vpop.f32.mrf.mxu1 }
0x3d37   : > { %v25976_v53 = vadd.f32 %v25975_v18, %v25899_v46 }
0x3d38   : > { %v30358_v47 = vpop.f32.mrf.mxu0  ;;  %v30383_v48 = vpop.f32.mrf.mxu1 }
0x3d3a   : > { %v26049_v36 = vpop.f32.mrf.mxu0 }
0x3d3b   : > { %v26050_v54 = vadd.f32 %v26049_v36, %v25976_v53 }
0x3d3c   : > { %v30368_v56 = vpop.f32.mrf.mxu0 }
0x3d3d   : > { %v26124_v58 = vadd.f32 %v26123_v59, %v26050_v54 }
0x3d3e   : > { %v26197_v37 = vpop.f32.mrf.mxu0 }
0x3d3f   : > { %v26198_v42 = vadd.f32 %v26197_v37, %v26124_v58  ;;  %v34438_v37 = vld [vmem:[#allocation113_spill] sm:$0xff] }
0x3d40   : > { %v30378_v49 = vpop.f32.mrf.mxu0 }
0x3d41   : > { %v26270_v24 = vadd.f32 %v26269_v40, %v26198_v42  ;;  %v34437_v40 = vld [vmem:[#allocation126_spill] sm:$0xff]  ;;  %v34440_v49 = vld [vmem:[#allocation115_spill] sm:$0xff] }
0x3d42   : > { %v34439_v42 = vld [vmem:[#allocation114_spill] sm:$0xff] }
0x3d43   : > { %v26273_v3 = vadd.f32 %v26270_v24, %v33731_v35  ;;  %v34444_v24 = vld [vmem:[#allocation127_spill] sm:$0xff] }
0x3d45   : > { %v33799_v31 = vadd.f32 %v26273_v3, %v33395_v26  ;;  %v34446_v3 = vld [vmem:[#allocation128_spill] sm:$0xff] }
0x3d47   : > { %v26275_v44 = vsel %vm769_vm0, %v33799_v31, 0.0  ;;  %v26278_v39 = vmul.f32 %v33799_v31, %v33799_v31 }
0x3d48   : > { %26276 = vadd.xlane.f32.xlu1 %v26275_v44  ;;  %v34447_v44 = vld [vmem:[#allocation120_spill] sm:$0xff] }
0x3d49   : > { %v26279_v21 = vsel %vm769_vm0, %v26278_v39, 0.0  ;;  %v34448_v39 = vld [vmem:[#allocation129_spill] sm:$0xff] }
0x3d4c   : > { %26280 = vadd.xlane.f32.xlu1 %v26279_v21  ;;  %v34449_v21 = vld [vmem:[#allocation130_spill] sm:$0xff] }
0x3dd1   : > { %v26277_v60 = vpop.xlane.xlu1 %26276 }
0x3dd2   : > { %v26282_v45 = vmul.f32 0.03125, %v26277_v60 }
0x3dd4   : > { %v26283_v16 = vmul.f32 %v26282_v45, %v26277_v60  ;;  %v26287_v18 = vsub.f32 %v33799_v31, %v26282_v45  ;;  %v34450_v60 = vld [vmem:[#allocation131_spill] sm:$0xff]  ;;  %v34451_v45 = vld [vmem:[#allocation132_spill] sm:$0xff] }
0x3dd5   : > { %v26281_v2 = vpop.xlane.xlu1 %26280 }
0x3dd6   : > { %v26284_v25 = vsub.f32 %v26281_v2, %v26283_v16  ;;  %v26288_v59 = vmul.f32 %v26287_v18, %v34436_v41  ;;  %v34452_v16 = vld [vmem:[#allocation133_spill] sm:$0xff]  ;;  %v34453_v2 = vld [vmem:[#allocation134_spill] sm:$0xff] }
0x3dd8   : > { %v26285_v23 = vmax.f32 %v26284_v25, 0.0 }
0x3dda   : > { %v26286_v35 = vmul.f32 0.032258064, %v26285_v23 }
0x3ddc   : > { %30755 = vrsqrt.f32 %v26286_v35  ;;  %vm26291_vm14 = vcmp.eq.f32.partialorder %v26286_v35, inf  ;;  %v26294_v33 = vand.u32 2147483648, %v26286_v35  ;;  %vm26293_vm15 = vcmp.eq.f32.partialorder %v26286_v35, 0.0 }
0x3de9   : > { %v30756_v26 = vpop.eup %30755 }
0x3dea   : > { %v26290_v11 = vmul.f32 %v30756_v26, %v26286_v35 }
0x3dec   : > { %v26292_v22 = vsel %vm26291_vm14, %v26286_v35, %v26290_v11 }
0x3ded   : > { %v26295_v29 = vsel %vm26293_vm15, %v26294_v33, %v26292_v22  ;;  %v30773_v22 = vld [vmem:[%s34340_s14] ss:$0 sm:$0xff] }
0x3dee   : > { %v26296_v14 = vadd.f32 1e-06, %v26295_v29 }
0x3df0   : > { %30757 = vrcp.f32 %v26296_v14 }
0x3dfd   : > { %v30758_v43 = vpop.eup %30757 }
0x3dfe   : > { %v26298_v46 = vmul.f32 %v30758_v43, %v26288_v59 }
0x3e00   : > { %v26299_v47 = vadd.f32 %v26298_v46, %v34437_v40 }
0x3e02   : > { %v26301_v48 = vsel %vm769_vm0, %v26299_v47, 0 }
0x3e03   : > { %v26372_v53 = vand.u32 4294901760, %v26301_v48 }
0x3e05   : > { %v26373_v36 = vsub.f32 %v26301_v48, %v26372_v53  ;;  %30404 = vmatmul.mubr.f32.vlgmr.msra.gmra.mxu1 %v26372_v53 }
0x3e06   : > { %30418 = vmatpush3.msra.mxu1 %v34432_v27  ;;  %30425 = vmatprep.mubr.msk.f32.mxu1 %vm31027_vm1, %v34263_v38 }
0x3e07   : > { %30419 = vmatprep.subr.mxu1 %v34263_v38  ;;  %v26374_v54 = vand.u32 4294901760, %v26373_v36 }
0x3e08   : > { %30420 = vmatpush3.msra.mxu1 %v34433_v0 }
0x3e09   : > { %30421 = vmatprep.subr.mxu1 %v34263_v38  ;;  %v26375_v56 = vsub.f32 %v26373_v36, %v26374_v54 }
0x3e0a   : > { %30422 = vmatpush3.msra.mxu1 %v34434_v51 }
0x3e0b   : > { %30423 = vmatprep.subr.mxu1 %v34263_v38  ;;  %v26376_v58 = vand.u32 4294901760, %v26375_v56 }
0x3e0c   : > { %30424 = vmatpush3.msra.mxu1 %v34435_v28 }
0x3e0d   : > { %30426 = vmatmul.mubr.f32.vlgmr.msra.gmra.mxu1 %v26374_v54  ;;  %30439 = vmatprep.subr.mxu1 %v34263_v38 }
0x3e0e   : > { %30393 = vmatmul.mubr.f32.vlgmr.msra.gmra.mxu0 %v26376_v58  ;;  %30440 = vmatpush3.msra.mxu1 %v34432_v27  ;;  %v34441_v27 = vld [vmem:[#allocation116_spill] sm:$0xff] }
0x3e0f   : > { %30407 = vmatpush3.msra.mxu0 %v34438_v37  ;;  %30441 = vmatprep.subr.mxu1 %v34263_v38 }
0x3e10   : > { %30408 = vmatprep.subr.mxu0 %v34263_v38  ;;  %30442 = vmatpush3.msra.mxu1 %v34433_v0  ;;  %v34442_v0 = vld [vmem:[#allocation117_spill] sm:$0xff] }
0x3e11   : > { %30409 = vmatpush3.msra.mxu0 %v34439_v42  ;;  %30443 = vmatprep.subr.mxu1 %v34263_v38 }
0x3e12   : > { %30410 = vmatprep.subr.mxu0 %v34263_v38  ;;  %30444 = vmatpush3.msra.mxu1 %v34434_v51  ;;  %v34443_v51 = vld [vmem:[#allocation118_spill] sm:$0xff] }
0x3e13   : > { %30411 = vmatpush3.msra.mxu0 %v34440_v49  ;;  %30445 = vmatprep.subr.mxu1 %v34263_v38 }
0x3e14   : > { %30412 = vmatprep.subr.mxu0 %v34263_v38  ;;  %30414 = vmatprep.mubr.msk.f32.mxu0 %vm31027_vm1, %v34263_v38 }
0x3e15   : > { %30413 = vmatpush3.msra.mxu0 %v34441_v27  ;;  %30446 = vmatpush3.msra.mxu1 %v34435_v28  ;;  %v34445_v28 = vld [vmem:[#allocation119_spill] sm:$0xff] }
0x3e16   : > { %30447 = vmatprep.mubr.msk.f32.mxu1 %vm31027_vm1, %v34263_v38  ;;  %30415 = vmatmul.mubr.f32.vlgmr.msra.gmra.mxu0 %v26373_v36 }
0x3e17   : > { %30428 = vmatprep.subr.mxu0 %v34263_v38  ;;  %30448 = vmatmul.mubr.f32.vlgmr.msra.gmra.mxu1 %v26372_v53 }
0x3e18   : > { %30429 = vmatpush3.msra.mxu0 %v34442_v0  ;;  %30436 = vmatprep.mubr.msk.f32.mxu0 %vm31027_vm1, %v34263_v38 }
0x3e19   : > { %30430 = vmatprep.subr.mxu0 %v34263_v38  ;;  %30469 = vmatprep.subr.mxu1 %v34263_v38 }
0x3e1a   : > { %30431 = vmatpush3.msra.mxu0 %v34443_v51  ;;  %30470 = vmatpush3.msra.mxu1 %v34444_v24 }
0x3e1b   : > { %30432 = vmatprep.subr.mxu0 %v34263_v38  ;;  %30471 = vmatprep.subr.mxu1 %v34263_v38 }
0x3e1c   : > { %30433 = vmatpush3.msra.mxu0 %v34445_v28  ;;  %30472 = vmatpush3.msra.mxu1 %v34446_v3 }
0x3e1d   : > { %30434 = vmatprep.subr.mxu0 %v34263_v38  ;;  %30473 = vmatprep.subr.mxu1 %v34263_v38 }
0x3e1e   : > { %30435 = vmatpush3.msra.mxu0 %v34447_v44  ;;  %30474 = vmatpush3.msra.mxu1 %v34448_v39 }
0x3e1f   : > { %30437 = vmatmul.mubr.f32.vlgmr.msra.gmra.mxu0 %v26372_v53  ;;  %30475 = vmatprep.subr.mxu1 %v34263_v38 }
0x3e20   : > { %30476 = vmatpush3.msra.mxu1 %v34449_v21  ;;  %30450 = vmatprep.subr.mxu0 %v34263_v38 }
0x3e21   : > { %30477 = vmatprep.subr.mxu1 %v34263_v38  ;;  %30451 = vmatpush3.msra.mxu0 %v32759_v12 }
0x3e22   : > { %30478 = vmatpush3.msra.mxu1 %v34450_v60  ;;  %30452 = vmatprep.subr.mxu0 %v34263_v38 }
0x3e23   : > { %30479 = vmatprep.subr.mxu1 %v34263_v38  ;;  %30453 = vmatpush3.msra.mxu0 %v32767_v52 }
0x3e24   : > { %30480 = vmatpush3.msra.mxu1 %v34451_v45  ;;  %30454 = vmatprep.subr.mxu0 %v34263_v38 }
0x3e25   : > { %30481 = vmatprep.subr.mxu1 %v34263_v38  ;;  %30455 = vmatpush3.msra.mxu0 %v32780_v32 }
0x3e26   : > { %30482 = vmatpush3.msra.mxu1 %v34452_v16  ;;  %30456 = vmatprep.subr.mxu0 %v34263_v38  ;;  %v34454_v16 = vld [vmem:[#allocation26_spill] sm:$0xff] }
0x3e27   : > { %30483 = vmatprep.subr.mxu1 %v34263_v38  ;;  %30457 = vmatpush3.msra.mxu0 %v32795_v30 }
0x3e28   : > { %30484 = vmatpush3.msra.mxu1 %v34453_v2  ;;  %30458 = vmatprep.subr.mxu0 %v34263_v38  ;;  %v27346_v2 = vsub.s32 6, %v34454_v16 }
0x3e29   : > { %30485 = vmatprep.mubr.msk.f32.mxu1 %vm31027_vm1, %v34263_v38  ;;  %30507 = vmatprep.subr.mxu1 %v34263_v38 }
0x3e2a   : > { %30459 = vmatpush3.msra.mxu0 %v32813_v57  ;;  %30466 = vmatprep.mubr.msk.f32.mxu0 %vm31027_vm1, %v34263_v38 }
0x3e2b   : > { %30460 = vmatprep.subr.mxu0 %v34263_v38 }
0x3e2c   : > { %30461 = vmatpush3.msra.mxu0 %v32827_v6 }
0x3e2d   : > { %30462 = vmatprep.subr.mxu0 %v34263_v38 }
0x3e2e   : > { %30463 = vmatpush3.msra.mxu0 %v32845_v19 }
0x3e2f   : > { %30464 = vmatprep.subr.mxu0 %v34263_v38 }
0x3e30   : > { %30465 = vmatpush3.msra.mxu0 %v32865_v34 }
0x3e31   : > { %30488 = vmatprep.subr.mxu0 %v34263_v38 }
0x3ec5   : > { %v26469_v25 = vpop.f32.mrf.mxu1 }
0x3ec7   : > { %v30405_v23 = vpop.f32.mrf.mxu1 }
0x3ecd   : > { %v26626_v35 = vpop.f32.mrf.mxu1 }
0x3ece   : > { %v26378_v26 = vpop.f32.mrf.mxu0 }
0x3ecf   : > { %v30427_v11 = vpop.f32.mrf.mxu1  ;;  %v26379_v29 = vadd.f32 %v30773_v22, %v26378_v26  ;;  %v27361_v26 = vsub.s32 7, %v34454_v16 }
0x3ed0   : > { %v30394_v33 = vpop.f32.mrf.mxu0 }
0x3ed1   : > { %v26470_v41 = vadd.f32 %v26469_v25, %v26379_v29  ;;  %v30775_v25 = vld [vmem:[%s34031_s17] sm:$0xff] }
0x3ed2   : > { %v27347_v23 = vrot.slane %v30775_v25, %v27346_v2  ;;  %v27362_v33 = vrot.slane %v30775_v25, %v27361_v26 }
0x3ed6   : > { %v26549_v14 = vpop.f32.mrf.mxu0 }
0x3ed7   : > { %v26784_v18 = vpop.f32.mrf.mxu1  ;;  %v26550_v46 = vadd.f32 %v26549_v14, %v26470_v41 }
0x3ed8   : > { %v30416_v59 = vpop.f32.mrf.mxu0 }
0x3ed9   : > { %v30449_v43 = vpop.f32.mrf.mxu1  ;;  %v26627_v40 = vadd.f32 %v26626_v35, %v26550_v46 }
0x3edf   : > { %v26709_v47 = vpop.f32.mrf.mxu0 }
0x3ee0   : > { %v26710_v48 = vadd.f32 %v26709_v47, %v26627_v40 }
0x3ee1   : > { %v30438_v53 = vpop.f32.mrf.mxu0 }
0x3ee2   : > { %v26785_v36 = vadd.f32 %v26784_v18, %v26710_v48 }
0x3ee4   : > { %v26788_v54 = vmax.f32 %v26785_v36, 0.0 }
0x3ee6   : > { %v26790_v56 = vsel %vm13778_vm9, %v26788_v54, 0 }
0x3ee7   : > { %v33890_v58 = vand.u32 4294901760, %v26790_v56 }
0x3ee9   : > { %v26866_v37 = vsub.f32 %v26790_v56, %v33890_v58  ;;  %30486 = vmatmul.mubr.f32.vlgmr.msra.gmra.mxu1 %v33890_v58 }
0x3eea   : > { %30508 = vmatpush3.msra.mxu1 %v32759_v12  ;;  %30523 = vmatprep.mubr.msk.f32.mxu1 %vm31027_vm1, %v34263_v38 }
0x3eeb   : > { %v26867_v42 = vand.u32 4294901760, %v26866_v37  ;;  %30509 = vmatprep.subr.mxu1 %v34263_v38 }
0x3eec   : > { %30510 = vmatpush3.msra.mxu1 %v32767_v52 }
0x3eed   : > { %v26868_v49 = vsub.f32 %v26866_v37, %v26867_v42  ;;  %30511 = vmatprep.subr.mxu1 %v34263_v38 }
0x3eee   : > { %30512 = vmatpush3.msra.mxu1 %v32780_v32 }
0x3eef   : > { %v26869_v27 = vand.u32 4294901760, %v26868_v49  ;;  %30513 = vmatprep.subr.mxu1 %v34263_v38 }
0x3ef0   : > { %30514 = vmatpush3.msra.mxu1 %v32795_v30 }
0x3ef1   : > { %30515 = vmatprep.subr.mxu1 %v34263_v38  ;;  %30467 = vmatmul.mubr.f32.vlgmr.msra.gmra.mxu0 %v26869_v27 }
0x3ef2   : > { %30489 = vmatpush3.msra.mxu0 %v32765_v8  ;;  %30516 = vmatpush3.msra.mxu1 %v32813_v57 }
0x3ef3   : > { %30490 = vmatprep.subr.mxu0 %v34263_v38  ;;  %30517 = vmatprep.subr.mxu1 %v34263_v38 }
0x3ef4   : > { %30491 = vmatpush3.msra.mxu0 %v32778_v1  ;;  %30518 = vmatpush3.msra.mxu1 %v32827_v6 }
0x3ef5   : > { %30492 = vmatprep.subr.mxu0 %v34263_v38  ;;  %30519 = vmatprep.subr.mxu1 %v34263_v38 }
0x3ef6   : > { %30493 = vmatpush3.msra.mxu0 %v32793_v55  ;;  %30520 = vmatpush3.msra.mxu1 %v32845_v19 }
0x3ef7   : > { %30494 = vmatprep.subr.mxu0 %v34263_v38  ;;  %30521 = vmatprep.subr.mxu1 %v34263_v38 }
0x3ef8   : > { %30495 = vmatpush3.msra.mxu0 %v32810_v13  ;;  %30522 = vmatpush3.msra.mxu1 %v32865_v34 }
0x3ef9   : > { %30496 = vmatprep.subr.mxu0 %v34263_v38  ;;  %30524 = vmatmul.mubr.f32.vlgmr.msra.gmra.mxu1 %v26867_v42 }
0x3efa   : > { %30545 = vmatprep.subr.mxu1 %v34263_v38  ;;  %30497 = vmatpush3.msra.mxu0 %v32831_v15 }
0x3efb   : > { %30546 = vmatpush3.msra.mxu1 %v32759_v12  ;;  %30498 = vmatprep.subr.mxu0 %v34263_v38 }
0x3efc   : > { %30547 = vmatprep.subr.mxu1 %v34263_v38  ;;  %30499 = vmatpush3.msra.mxu0 %v32843_v61 }
0x3efd   : > { %30548 = vmatpush3.msra.mxu1 %v32767_v52  ;;  %30500 = vmatprep.subr.mxu0 %v34263_v38 }
0x3efe   : > { %30549 = vmatprep.subr.mxu1 %v34263_v38  ;;  %30501 = vmatpush3.msra.mxu0 %v32863_v7 }
0x3eff   : > { %30550 = vmatpush3.msra.mxu1 %v32780_v32  ;;  %30502 = vmatprep.subr.mxu0 %v34263_v38 }
0x3f00   : > { %30551 = vmatprep.subr.mxu1 %v34263_v38  ;;  %30503 = vmatpush3.msra.mxu0 %v32879_v17 }
0x3f01   : > { %30504 = vmatprep.mubr.msk.f32.mxu0 %vm31027_vm1, %v34263_v38  ;;  %30552 = vmatpush3.msra.mxu1 %v32795_v30  ;;  %v30774_v30 = vld [vmem:[%s34342_s25] ss:$0 sm:$0xff] }
0x3f02   : > { %30505 = vmatmul.mubr.f32.vlgmr.msra.gmra.mxu0 %v26866_v37  ;;  %30526 = vmatprep.subr.mxu0 %v34263_v38 }
0x3f03   : > { %30553 = vmatprep.subr.mxu1 %v34263_v38  ;;  %30527 = vmatpush3.msra.mxu0 %v32775_v5 }
0x3f04   : > { %30554 = vmatpush3.msra.mxu1 %v32813_v57  ;;  %30528 = vmatprep.subr.mxu0 %v34263_v38 }
0x3f05   : > { %30555 = vmatprep.subr.mxu1 %v34263_v38  ;;  %30529 = vmatpush3.msra.mxu0 %v32790_v63 }
0x3f06   : > { %30556 = vmatpush3.msra.mxu1 %v32827_v6  ;;  %30530 = vmatprep.subr.mxu0 %v34263_v38 }
0x3f07   : > { %30557 = vmatprep.subr.mxu1 %v34263_v38  ;;  %30531 = vmatpush3.msra.mxu0 %v32807_v10 }
0x3f08   : > { %30558 = vmatpush3.msra.mxu1 %v32845_v19  ;;  %30532 = vmatprep.subr.mxu0 %v34263_v38 }
0x3f09   : > { %30559 = vmatprep.subr.mxu1 %v34263_v38  ;;  %30533 = vmatpush3.msra.mxu0 %v32825_v4 }
0x3f0a   : > { %30560 = vmatpush3.msra.mxu1 %v32865_v34  ;;  %30561 = vmatprep.mubr.msk.f32.mxu1 %vm31027_vm1, %v34263_v38 }
0x3f0b   : > { %30534 = vmatprep.subr.mxu0 %v34263_v38  ;;  %30562 = vmatmul.mubr.f32.vlgmr.msra.gmra.mxu1 %v33890_v58 }
0x3f0c   : > { %30535 = vmatpush3.msra.mxu0 %v32850_v9  ;;  %30542 = vmatprep.mubr.msk.f32.mxu0 %vm31027_vm1, %v34263_v38 }
0x3f0d   : > { %30536 = vmatprep.subr.mxu0 %v34263_v38 }
0x3f0e   : > { %30537 = vmatpush3.msra.mxu0 %v32860_v20 }
0x3f0f   : > { %30538 = vmatprep.subr.mxu0 %v34263_v38 }
0x3f10   : > { %30539 = vmatpush3.msra.mxu0 %v32876_v50 }
0x3f11   : > { %30540 = vmatprep.subr.mxu0 %v34263_v38 }
0x3f12   : > { %30541 = vmatpush3.msra.mxu0 %v32891_v62 }
0x3f13   : > { %30543 = vmatmul.mubr.f32.vlgmr.msra.gmra.mxu0 %v33890_v58 }
0x3fa9   : > { %v26982_v19 = vpop.f32.mrf.mxu1 }
0x3fab   : > { %v30487_v34 = vpop.f32.mrf.mxu1 }
0x3fb1   : > { %v26871_v7 = vpop.f32.mrf.mxu0 }
0x3fb2   : > { %v26983_v8 = vadd.f32 %v26982_v19, %v26871_v7 }
0x3fb3   : > { %v30468_v15 = vpop.f32.mrf.mxu0 }
0x3fb9   : > { %v27151_v6 = vpop.f32.mrf.mxu1 }
0x3fbb   : > { %v30525_v57 = vpop.f32.mrf.mxu1 }
0x3fc2   : > { %v27070_v10 = vpop.f32.mrf.mxu0 }
0x3fc3   : > { %v27071_v5 = vadd.f32 %v27070_v10, %v26983_v8 }
0x3fc4   : > { %v30506_v61 = vpop.f32.mrf.mxu0 }
0x3fc5   : > { %v27152_v1 = vadd.f32 %v27151_v6, %v27071_v5 }
0x3fcb   : > { %v27325_v12 = vpop.f32.mrf.mxu1 }
0x3fcd   : > { %v30563_v52 = vpop.f32.mrf.mxu1 }
0x3fd3   : > { %v27246_v32 = vpop.f32.mrf.mxu0 }
0x3fd4   : > { %v27247_v63 = vadd.f32 %v27246_v32, %v27152_v1 }
0x3fd5   : > { %v30544_v38 = vpop.f32.mrf.mxu0 }
0x3fd6   : > { %v27326_v55 = vadd.f32 %v27325_v12, %v27247_v63 }
0x3fd8   : > { %v27329_v62 = vadd.f32 %v27326_v55, %v33799_v31 }
0x3fda   : > { %v27330_v13 = vadd.f32 %v30774_v30, %v27329_v62 }
0x3fdc   : > { %v27331_v4 = vsel %vm769_vm0, %v27330_v13, 0.0  ;;  %v27334_v50 = vmul.f32 %v27330_v13, %v27330_v13 }
0x3fdd   : > { %27332 = vadd.xlane.f32.xlu1 %v27331_v4 }
0x3fde   : > { %v27335_v9 = vsel %vm769_vm0, %v27334_v50, 0.0 }
0x3fe1   : > { %27336 = vadd.xlane.f32.xlu1 %v27335_v9 }
0x4066   : > { %v27333_v20 = vpop.xlane.xlu1 %27332 }
0x4067   : > { %v27338_v17 = vmul.f32 0.03125, %v27333_v20 }
0x4069   : > { %v27339_v0 = vmul.f32 %v27338_v17, %v27333_v20  ;;  %v27343_v35 = vsub.f32 %v27330_v13, %v27338_v17 }
0x406a   : > { %v27337_v51 = vpop.xlane.xlu1 %27336 }
0x406b   : > { %v27340_v24 = vsub.f32 %v27337_v51, %v27339_v0  ;;  %v27348_v11 = vmul.f32 %v27347_v23, %v27343_v35 }
0x406d   : > { %v27341_v28 = vmax.f32 %v27340_v24, 0.0 }
0x406f   : > { %v27342_v3 = vmul.f32 0.032258064, %v27341_v28 }
0x4071   : > { %30759 = vrsqrt.f32 %v27342_v3  ;;  %vm27351_vm1 = vcmp.eq.f32.partialorder %v27342_v3, inf  ;;  %v27354_v39 = vand.u32 2147483648, %v27342_v3  ;;  %vm27353_vm2 = vcmp.eq.f32.partialorder %v27342_v3, 0.0 }
0x407e   : > { %v30760_v31 = vpop.eup %30759 }
0x407f   : > { %v27350_v44 = vmul.f32 %v30760_v31, %v27342_v3 }
0x4081   : > { %v27352_v21 = vsel %vm27351_vm1, %v27342_v3, %v27350_v44 }
0x4082   : > { %v27355_v60 = vsel %vm27353_vm2, %v27354_v39, %v27352_v21 }
0x4083   : > { %v27356_v45 = vadd.f32 1e-06, %v27355_v60 }
0x4085   : > { %30761 = vrcp.f32 %v27356_v45 }
0x4092   : > { %v30762_v22 = vpop.eup %30761 }
0x4093   : > { %v27358_v29 = vmul.f32 %v30762_v22, %v27348_v11 }
0x4095   : > { %v27363_v14 = vadd.f32 %v27362_v33, %v27358_v29 }
0x4097   : > { %27364 = vst.msk [vmem:[%s683_s21] sm:$0xff] %vm769_vm0, %v27363_v14 }
0x4098   : > { %30949 = shalt.err (!%p30946_p10)
}
0x4099   : > { %s30950_s12 = scalar_lea.hbm %s27377_s24, 128  ;;  %s30954_s21 = scalar_lea.hbm %s34456_s19, 256 }
0x409a   : > { %p30951_p3 = scmp.ne.s32.totalorder %s27377_s24, %s30950_s12  ;;  %p30955_p8 = scmp.lt.s32.totalorder %s27377_s24, %s34456_s19 }
0x409b   : > { %p30956_p12 = scmp.lt.s32.totalorder %s30954_s21, %s30950_s12 }
0x409c   : > { %p30952_p7 = pnand %p30951_p3, %p34457_p9 }
0x409d   : > { %p30957_p0 = por %p30956_p12, %p30955_p8 }
0x409e   : > { %p30953_p5 = pneg %p30952_p7 }
0x40a0   : > { %p30958_p2 = pnand %p30957_p0, %p30953_p5 }
0x40a2   : > { %30961 = shalt.err (!%p30958_p2)
}
0x40a3   : > { %30584 = dma.vmem_to_hbm [thread:$0]  (%p34457_p9), %s27380_s27, 128, %s27377_s24, %s27366_s18  }
0x40a4 PF: > { %s34458_s16 = sld [smem:[#allocation20_spill]]  ;;  %p34461_p13 = scmp.ge.s32.totalorder %s31016_s30, 2 }
0x40a5   : > { %s34459_s29 = sld [smem:[#allocation25_spill]] }
0x40aa   : > { %s27391_s0 = sand.u32 1, %s34458_s16  }
0x40ab   : > { %p34460_p11 = scmp.ne.s32.totalorder %s34459_s29, 0  ;;  %s27392_s1 = scalar_lea.sflag [#allocation4], %s27391_s0 }
0x40ad   : > { %p30607_p1 = pnand %p34461_p13, %p34460_p11 }
0x40af   : > { %p30608_p4 = pneg %p30607_p1 }
0x40b1   : > { %30999 = dma.done.wait (%p30608_p4), %s27392_s1, 128  }
0x40b2   : > { %31001 = vsyncadd (%p30608_p4), %s27392_s1, 4294967168  ;;  %s34462_s30 = sld [smem:[#allocation22_spill]]  ;;  %s34465_s27 = smov %s31008_s28 }
0x40b3   : > { %s34463_s12 = sld [smem:[#allocation21_spill]] }
0x40b4   : > { %s34464_s29 = sld [smem:[#allocation23_spill]] }
0x40b8   : > { %p36_p6 = scmp.ge.s32.totalorder %s34462_s30, 4  }
0x40b9   : > { %s34466_s28 = smov %s34463_s12 }
0x40ba   :  { %38 = sbr.rel (!%p36_p6) target bundleno = 21 (0x15), region = 166 }
0x40bf   :  { %27397 = vsyncpa [#allocation3], 1 }
0x40c0   :  { %27399 = vsyncpa [#allocation3 + $0x1], 1 }
0x40c1   :  { %27400 = vsyncpa [#allocation6], 1 }
0x40c2   :  { %27402 = vsyncpa [#allocation6 + $0x1], 1 }
0x40c3   :  { %27403 = vsyncpa [#allocation9], 1 }
0x40c4   :  { %27404 = vsyncpa [#allocation12], 1 }
0x40c5   :  { %27405 = vsyncpa [#allocation4], 1 }
0x40c6   :  { %27407 = vsyncpa [#allocation4 + $0x1], 1 }

</bundles_post_ra>
